<compile_context>
chip_gen: v7x
topology: tpu7x:2x2x1
jax: 0.10.0
libtpu: 0.0.40
codegen_flags: <defaults>
</compile_context>

<pallas_src>
import functools

import jax
import jax.numpy as jnp
from jax.experimental import pallas as pl
from jax.experimental.pallas import tpu as pltpu

EPS = 1e-5                      # nn.BatchNorm2d default eps
CHANNELS = [3, 32, 64, 64, 32, 3]   # conv1..conv5 in/out widths
CMAX = 64                       # widest activation (shared scratch lane width)


def shading_kernel(x_ref,
                   w1_ref, b1_ref, w2_ref, b2_ref, w3_ref, b3_ref,
                   w4_ref, b4_ref, w5_ref, b5_ref,
                   out_ref, pad_ref, *, H, W):
    """One batch element per grid step.

    x_ref  : (1, H, W, 3) f32 input image (NHWC)
    wK_ref : (9, cin, cout) bf16 conv weights with BN folded, [kh*3+kw, ci, co]
    bK_ref : (1, cout) f32 folded bias
    out_ref: (1, H, W, 3) f32
    pad_ref: VMEM scratch (H+2, W+2, 64) f32 shared padded-activation buffer
    """
    S = H * W

    # Zero only the 1-pixel halo; the interior is fully rewritten before every
    # read.  Re-zeroed each grid step so the kernel stays correct when the
    # batch axis is sharded across TensorCores ("parallel" semantics).
    zrow = jnp.zeros((1, W + 2, CMAX), jnp.float32)
    pad_ref[0:1, :, :] = zrow
    pad_ref[H + 1:H + 2, :, :] = zrow
    zcol = jnp.zeros((H + 2, 1, CMAX), jnp.float32)
    pad_ref[:, 0:1, :] = zcol
    pad_ref[:, W + 1:W + 2, :] = zcol

    def conv3x3(cin, w_ref, b_ref, cout):
        # 9 shifted windows -> bf16 MXU matmuls with f32 accumulation.
        acc = jnp.zeros((S, cout), jnp.float32)
        for dh in range(3):
            for dw in range(3):
                win = pad_ref[dh:dh + H, dw:dw + W, :cin]
                win = win.reshape(S, cin).astype(jnp.bfloat16)
                acc = acc + jnp.dot(win, w_ref[dh * 3 + dw],
                                    preferred_element_type=jnp.float32)
        return jnp.maximum(acc + b_ref[...], 0.0)       # folded BN + ReLU

    x = x_ref[0]                                        # (H, W, 3) f32
    pad_ref[1:H + 1, 1:W + 1, 0:3] = x

    h = conv3x3(3, w1_ref, b1_ref, 32)
    pad_ref[1:H + 1, 1:W + 1, 0:32] = h.reshape(H, W, 32)
    h = conv3x3(32, w2_ref, b2_ref, 64)
    pad_ref[1:H + 1, 1:W + 1, 0:64] = h.reshape(H, W, 64)
    h = conv3x3(64, w3_ref, b3_ref, 64)
    pad_ref[1:H + 1, 1:W + 1, 0:64] = h.reshape(H, W, 64)
    h = conv3x3(64, w4_ref, b4_ref, 32)
    pad_ref[1:H + 1, 1:W + 1, 0:32] = h.reshape(H, W, 32)
    h = conv3x3(32, w5_ref, b5_ref, 3)

    # residual add with the original input, f32, only 3 real output channels
    out_ref[0] = h.reshape(H, W, 3) + x


def _fold_bn(w, b, gamma, beta, mean, var):
    """Fold eval-mode BatchNorm2d into the preceding conv.

    Returns ((9, cin, cout) bf16 weights, (1, cout) f32 bias)."""
    cout, cin = w.shape[0], w.shape[1]
    s = gamma / jnp.sqrt(var + EPS)                     # (cout,)
    wf = jnp.transpose(w, (2, 3, 1, 0)) * s             # (kh, kw, cin, cout)
    wf = wf.reshape(9, cin, cout)
    bf = s * (b - mean) + beta
    return wf.astype(jnp.bfloat16), bf.reshape(1, cout).astype(jnp.float32)


def shading_corrector(x, p):
    """x: (N, 3, H, W) NCHW f32 -> (N, 3, H, W) NCHW f32."""
    N, C, H, W = x.shape
    assert C == 3
    x_nhwc = jnp.transpose(x, (0, 2, 3, 1)).astype(jnp.float32)   # tiny (3-ch) transpose

    folded = []
    for i in range(1, 6):
        folded.extend(_fold_bn(p[f'c{i}_w'], p[f'c{i}_b'], p[f'bn{i}_g'],
                               p[f'bn{i}_b'], p[f'bn{i}_m'], p[f'bn{i}_v']))

    weight_specs = []
    for i in range(5):
        cin, cout = CHANNELS[i], CHANNELS[i + 1]
        weight_specs.append(pl.BlockSpec((9, cin, cout), lambda n: (0, 0, 0)))
        weight_specs.append(pl.BlockSpec((1, cout), lambda n: (0, 0)))

    grid_spec = pltpu.PrefetchScalarGridSpec(
        num_scalar_prefetch=0,
        grid=(N,),
        in_specs=[pl.BlockSpec((1, H, W, 3), lambda n: (n, 0, 0, 0))] + weight_specs,
        out_specs=pl.BlockSpec((1, H, W, 3), lambda n: (n, 0, 0, 0)),
        scratch_shapes=[pltpu.VMEM((H + 2, W + 2, CMAX), jnp.float32)],
    )

    out_nhwc = pl.pallas_call(
        functools.partial(shading_kernel, H=H, W=W),
        out_shape=jax.ShapeDtypeStruct((N, H, W, 3), jnp.float32),
        grid_spec=grid_spec,
        compiler_params=pltpu.CompilerParams(
            dimension_semantics=("parallel",)),
    )(x_nhwc, *folded)

    return jnp.transpose(out_nhwc, (0, 3, 1, 2))


def init_params(key):
    p = {}
    keys = jax.random.split(key, 5 * 6)
    ki = iter(keys)
    for i in range(1, 6):
        cin, cout = CHANNELS[i - 1], CHANNELS[i]
        p[f'c{i}_w'] = jax.random.normal(next(ki), (cout, cin, 3, 3),
                                         jnp.float32) / jnp.sqrt(9.0 * cin)
        p[f'c{i}_b'] = 0.1 * jax.random.normal(next(ki), (cout,), jnp.float32)
        p[f'bn{i}_g'] = 1.0 + 0.1 * jax.random.normal(next(ki), (cout,), jnp.float32)
        p[f'bn{i}_b'] = 0.1 * jax.random.normal(next(ki), (cout,), jnp.float32)
        p[f'bn{i}_m'] = 0.1 * jax.random.normal(next(ki), (cout,), jnp.float32)
        p[f'bn{i}_v'] = jax.random.uniform(next(ki), (cout,), jnp.float32,
                                           minval=0.5, maxval=1.5)
    return p


def reference_forward(x, p):
    """Pure-JAX reference (unfused eval-mode BN, lax convs) for correctness."""
    hp = jax.lax.Precision.HIGHEST
    x_nhwc = jnp.transpose(x, (0, 2, 3, 1))
    h = x_nhwc
    for i in range(1, 6):
        w = jnp.transpose(p[f'c{i}_w'], (2, 3, 1, 0))   # HWIO
        h = jax.lax.conv_general_dilated(
            h, w, (1, 1), ((1, 1), (1, 1)),
            dimension_numbers=('NHWC', 'HWIO', 'NHWC'),
            precision=hp) + p[f'c{i}_b']
        h = (h - p[f'bn{i}_m']) / jnp.sqrt(p[f'bn{i}_v'] + EPS) \
            * p[f'bn{i}_g'] + p[f'bn{i}_b']
        h = jax.nn.relu(h)
    out = h + x_nhwc
    return jnp.transpose(out, (0, 3, 1, 2))


if __name__ == "__main__":
    key = jax.random.PRNGKey(0)
    kx, kp = jax.random.split(key)
    N, C, H, W = 2, 3, 16, 16          # channel count fixed at 3 by the module
    x = jax.random.normal(kx, (N, C, H, W), jnp.float32)
    params = init_params(kp)

    fwd = jax.jit(shading_corrector)
    out = jax.block_until_ready(fwd(x, params))
    assert out.shape == (N, 3, H, W), out.shape

    ref = jax.block_until_ready(reference_forward(x, params))
    rel_err = float(jnp.max(jnp.abs(out - ref)) / (jnp.max(jnp.abs(ref)) + 1e-6))
    assert rel_err < 2e-2, f"relative error too large: {rel_err}"
    print("KERNEL_OK")
</pallas_src>

<mosaic_0001>
module attributes {stable_mosaic.version = 11 : i64} {
  func.func @shading_kernel(%arg0: i32, %arg1: memref<1x16x16x3xf32, #tpu.memory_space<vmem>>, %arg2: memref<9x3x32xbf16, #tpu.memory_space<vmem>>, %arg3: memref<1x32xf32, #tpu.memory_space<vmem>>, %arg4: memref<9x32x64xbf16, #tpu.memory_space<vmem>>, %arg5: memref<1x64xf32, #tpu.memory_space<vmem>>, %arg6: memref<9x64x64xbf16, #tpu.memory_space<vmem>>, %arg7: memref<1x64xf32, #tpu.memory_space<vmem>>, %arg8: memref<9x64x32xbf16, #tpu.memory_space<vmem>>, %arg9: memref<1x32xf32, #tpu.memory_space<vmem>>, %arg10: memref<9x32x3xbf16, #tpu.memory_space<vmem>>, %arg11: memref<1x3xf32, #tpu.memory_space<vmem>>, %arg12: memref<1x16x16x3xf32, #tpu.memory_space<vmem>>, %arg13: memref<18x18x64xf32, #tpu.memory_space<vmem>>) attributes {dimension_semantics = [#tpu.dimension_semantics<parallel>], iteration_bounds = array<i64: 2>, scalar_prefetch = 0 : i64, scratch_operands = 1 : i64, tpu.core_type = #tpu.core_type<tc>, window_params = [{transform_indices = @transform_0, window_bounds = array<i64: 1, 16, 16, 3>}, {pipeline_mode = #tpu.pipeline_mode<synchronous>, transform_indices = @transform_1, window_bounds = array<i64: 9, 3, 32>}, {pipeline_mode = #tpu.pipeline_mode<synchronous>, transform_indices = @transform_2, window_bounds = array<i64: 1, 32>}, {pipeline_mode = #tpu.pipeline_mode<synchronous>, transform_indices = @transform_3, window_bounds = array<i64: 9, 32, 64>}, {pipeline_mode = #tpu.pipeline_mode<synchronous>, transform_indices = @transform_4, window_bounds = array<i64: 1, 64>}, {pipeline_mode = #tpu.pipeline_mode<synchronous>, transform_indices = @transform_5, window_bounds = array<i64: 9, 64, 64>}, {pipeline_mode = #tpu.pipeline_mode<synchronous>, transform_indices = @transform_6, window_bounds = array<i64: 1, 64>}, {pipeline_mode = #tpu.pipeline_mode<synchronous>, transform_indices = @transform_7, window_bounds = array<i64: 9, 64, 32>}, {pipeline_mode = #tpu.pipeline_mode<synchronous>, transform_indices = @transform_8, window_bounds = array<i64: 1, 32>}, {pipeline_mode = #tpu.pipeline_mode<synchronous>, transform_indices = @transform_9, window_bounds = array<i64: 9, 32, 3>}, {pipeline_mode = #tpu.pipeline_mode<synchronous>, transform_indices = @transform_10, window_bounds = array<i64: 1, 3>}, {transform_indices = @transform_11, window_bounds = array<i64: 1, 16, 16, 3>}]} {
    %cst = arith.constant 0.000000e+00 : f32
    %0 = vector.broadcast %cst : f32 to vector<1x18x64xf32>
    %c0 = arith.constant 0 : index
    %c0_0 = arith.constant 0 : index
    %c0_1 = arith.constant 0 : index
    %1 = vector.load %arg13[%c0, %c0_0, %c0_1] : memref<18x18x64xf32, #tpu.memory_space<vmem>>, vector<1x18x64xf32>
    tpu.vector_store %arg13[%c0, %c0_0, %c0_1], %0 {strides = array<i32>} : memref<18x18x64xf32, #tpu.memory_space<vmem>>, vector<1x18x64xf32>,
    %c17 = arith.constant 17 : index
    %c0_2 = arith.constant 0 : index
    %c0_3 = arith.constant 0 : index
    %2 = vector.load %arg13[%c17, %c0_2, %c0_3] : memref<18x18x64xf32, #tpu.memory_space<vmem>>, vector<1x18x64xf32>
    tpu.vector_store %arg13[%c17, %c0_2, %c0_3], %0 {strides = array<i32>} : memref<18x18x64xf32, #tpu.memory_space<vmem>>, vector<1x18x64xf32>,
    %cst_4 = arith.constant 0.000000e+00 : f32
    %3 = vector.broadcast %cst_4 : f32 to vector<18x1x64xf32>
    %c0_5 = arith.constant 0 : index
    %c0_6 = arith.constant 0 : index
    %c0_7 = arith.constant 0 : index
    %4 = vector.load %arg13[%c0_5, %c0_6, %c0_7] : memref<18x18x64xf32, #tpu.memory_space<vmem>>, vector<18x1x64xf32>
    tpu.vector_store %arg13[%c0_5, %c0_6, %c0_7], %3 {strides = array<i32>} : memref<18x18x64xf32, #tpu.memory_space<vmem>>, vector<18x1x64xf32>,
    %c0_8 = arith.constant 0 : index
    %c17_9 = arith.constant 17 : index
    %c0_10 = arith.constant 0 : index
    %5 = vector.load %arg13[%c0_8, %c17_9, %c0_10] : memref<18x18x64xf32, #tpu.memory_space<vmem>>, vector<18x1x64xf32>
    tpu.vector_store %arg13[%c0_8, %c17_9, %c0_10], %3 {strides = array<i32>} : memref<18x18x64xf32, #tpu.memory_space<vmem>>, vector<18x1x64xf32>,
    %c0_11 = arith.constant 0 : index
    %c0_12 = arith.constant 0 : index
    %c0_13 = arith.constant 0 : index
    %c0_14 = arith.constant 0 : index
    %6 = vector.load %arg1[%c0_11, %c0_12, %c0_13, %c0_14] : memref<1x16x16x3xf32, #tpu.memory_space<vmem>>, vector<1x16x16x3xf32>
    %7 = vector.shape_cast %6 : vector<1x16x16x3xf32> to vector<16x16x3xf32>
    %c1 = arith.constant 1 : index
    %c1_15 = arith.constant 1 : index
    %c0_16 = arith.constant 0 : index
    %8 = vector.load %arg13[%c1, %c1_15, %c0_16] : memref<18x18x64xf32, #tpu.memory_space<vmem>>, vector<16x16x3xf32>
    tpu.vector_store %arg13[%c1, %c1_15, %c0_16], %7 {strides = array<i32>} : memref<18x18x64xf32, #tpu.memory_space<vmem>>, vector<16x16x3xf32>,
    %cst_17 = arith.constant 0.000000e+00 : f32
    %9 = vector.broadcast %cst_17 : f32 to vector<256x32xf32>
    %c0_18 = arith.constant 0 : index
    %c0_19 = arith.constant 0 : index
    %c0_20 = arith.constant 0 : index
    %10 = vector.load %arg13[%c0_18, %c0_19, %c0_20] : memref<18x18x64xf32, #tpu.memory_space<vmem>>, vector<16x16x3xf32>
    %11 = vector.shape_cast %10 : vector<16x16x3xf32> to vector<256x3xf32>
    %12 = arith.truncf %11 : vector<256x3xf32> to vector<256x3xbf16>
    %c0_21 = arith.constant 0 : index
    %c0_22 = arith.constant 0 : index
    %c0_23 = arith.constant 0 : index
    %13 = vector.load %arg2[%c0_21, %c0_22, %c0_23] : memref<9x3x32xbf16, #tpu.memory_space<vmem>>, vector<1x3x32xbf16>
    %14 = vector.shape_cast %13 : vector<1x3x32xbf16> to vector<3x32xbf16>
    %cst_24 = arith.constant dense<0.000000e+00> : vector<256x32xf32>
    %15 = tpu.matmul %12, %14, %cst_24 {dimension_numbers = #tpu.dot_dimension_numbers<[1], [0], [0], [1], [0, 0, 1, 1], [], []>} : vector<256x3xbf16>, vector<3x32xbf16>, vector<256x32xf32> -> vector<256x32xf32>
    %16 = arith.addf %9, %15 : vector<256x32xf32>
    %c0_25 = arith.constant 0 : index
    %c1_26 = arith.constant 1 : index
    %c0_27 = arith.constant 0 : index
    %17 = vector.load %arg13[%c0_25, %c1_26, %c0_27] : memref<18x18x64xf32, #tpu.memory_space<vmem>>, vector<16x16x3xf32>
    %18 = vector.shape_cast %17 : vector<16x16x3xf32> to vector<256x3xf32>
    %19 = arith.truncf %18 : vector<256x3xf32> to vector<256x3xbf16>
    %c1_28 = arith.constant 1 : index
    %c0_29 = arith.constant 0 : index
    %c0_30 = arith.constant 0 : index
    %20 = vector.load %arg2[%c1_28, %c0_29, %c0_30] : memref<9x3x32xbf16, #tpu.memory_space<vmem>>, vector<1x3x32xbf16>
    %21 = vector.shape_cast %20 : vector<1x3x32xbf16> to vector<3x32xbf16>
    %cst_31 = arith.constant dense<0.000000e+00> : vector<256x32xf32>
    %22 = tpu.matmul %19, %21, %cst_31 {dimension_numbers = #tpu.dot_dimension_numbers<[1], [0], [0], [1], [0, 0, 1, 1], [], []>} : vector<256x3xbf16>, vector<3x32xbf16>, vector<256x32xf32> -> vector<256x32xf32>
    %23 = arith.addf %16, %22 : vector<256x32xf32>
    %c0_32 = arith.constant 0 : index
    %c2 = arith.constant 2 : index
    %c0_33 = arith.constant 0 : index
    %24 = vector.load %arg13[%c0_32, %c2, %c0_33] : memref<18x18x64xf32, #tpu.memory_space<vmem>>, vector<16x16x3xf32>
    %25 = vector.shape_cast %24 : vector<16x16x3xf32> to vector<256x3xf32>
    %26 = arith.truncf %25 : vector<256x3xf32> to vector<256x3xbf16>
    %c2_34 = arith.constant 2 : index
    %c0_35 = arith.constant 0 : index
    %c0_36 = arith.constant 0 : index
    %27 = vector.load %arg2[%c2_34, %c0_35, %c0_36] : memref<9x3x32xbf16, #tpu.memory_space<vmem>>, vector<1x3x32xbf16>
    %28 = vector.shape_cast %27 : vector<1x3x32xbf16> to vector<3x32xbf16>
    %cst_37 = arith.constant dense<0.000000e+00> : vector<256x32xf32>
    %29 = tpu.matmul %26, %28, %cst_37 {dimension_numbers = #tpu.dot_dimension_numbers<[1], [0], [0], [1], [0, 0, 1, 1], [], []>} : vector<256x3xbf16>, vector<3x32xbf16>, vector<256x32xf32> -> vector<256x32xf32>
    %30 = arith.addf %23, %29 : vector<256x32xf32>
    %c1_38 = arith.constant 1 : index
    %c0_39 = arith.constant 0 : index
    %c0_40 = arith.constant 0 : index
    %31 = vector.load %arg13[%c1_38, %c0_39, %c0_40] : memref<18x18x64xf32, #tpu.memory_space<vmem>>, vector<16x16x3xf32>
    %32 = vector.shape_cast %31 : vector<16x16x3xf32> to vector<256x3xf32>
    %33 = arith.truncf %32 : vector<256x3xf32> to vector<256x3xbf16>
    %c3 = arith.constant 3 : index
    %c0_41 = arith.constant 0 : index
    %c0_42 = arith.constant 0 : index
    %34 = vector.load %arg2[%c3, %c0_41, %c0_42] : memref<9x3x32xbf16, #tpu.memory_space<vmem>>, vector<1x3x32xbf16>
    %35 = vector.shape_cast %34 : vector<1x3x32xbf16> to vector<3x32xbf16>
    %cst_43 = arith.constant dense<0.000000e+00> : vector<256x32xf32>
    %36 = tpu.matmul %33, %35, %cst_43 {dimension_numbers = #tpu.dot_dimension_numbers<[1], [0], [0], [1], [0, 0, 1, 1], [], []>} : vector<256x3xbf16>, vector<3x32xbf16>, vector<256x32xf32> -> vector<256x32xf32>
    %37 = arith.addf %30, %36 : vector<256x32xf32>
    %c1_44 = arith.constant 1 : index
    %c1_45 = arith.constant 1 : index
    %c0_46 = arith.constant 0 : index
    %38 = vector.load %arg13[%c1_44, %c1_45, %c0_46] : memref<18x18x64xf32, #tpu.memory_space<vmem>>, vector<16x16x3xf32>
    %39 = vector.shape_cast %38 : vector<16x16x3xf32> to vector<256x3xf32>
    %40 = arith.truncf %39 : vector<256x3xf32> to vector<256x3xbf16>
    %c4 = arith.constant 4 : index
    %c0_47 = arith.constant 0 : index
    %c0_48 = arith.constant 0 : index
    %41 = vector.load %arg2[%c4, %c0_47, %c0_48] : memref<9x3x32xbf16, #tpu.memory_space<vmem>>, vector<1x3x32xbf16>
    %42 = vector.shape_cast %41 : vector<1x3x32xbf16> to vector<3x32xbf16>
    %cst_49 = arith.constant dense<0.000000e+00> : vector<256x32xf32>
    %43 = tpu.matmul %40, %42, %cst_49 {dimension_numbers = #tpu.dot_dimension_numbers<[1], [0], [0], [1], [0, 0, 1, 1], [], []>} : vector<256x3xbf16>, vector<3x32xbf16>, vector<256x32xf32> -> vector<256x32xf32>
    %44 = arith.addf %37, %43 : vector<256x32xf32>
    %c1_50 = arith.constant 1 : index
    %c2_51 = arith.constant 2 : index
    %c0_52 = arith.constant 0 : index
    %45 = vector.load %arg13[%c1_50, %c2_51, %c0_52] : memref<18x18x64xf32, #tpu.memory_space<vmem>>, vector<16x16x3xf32>
    %46 = vector.shape_cast %45 : vector<16x16x3xf32> to vector<256x3xf32>
    %47 = arith.truncf %46 : vector<256x3xf32> to vector<256x3xbf16>
    %c5 = arith.constant 5 : index
    %c0_53 = arith.constant 0 : index
    %c0_54 = arith.constant 0 : index
    %48 = vector.load %arg2[%c5, %c0_53, %c0_54] : memref<9x3x32xbf16, #tpu.memory_space<vmem>>, vector<1x3x32xbf16>
    %49 = vector.shape_cast %48 : vector<1x3x32xbf16> to vector<3x32xbf16>
    %cst_55 = arith.constant dense<0.000000e+00> : vector<256x32xf32>
    %50 = tpu.matmul %47, %49, %cst_55 {dimension_numbers = #tpu.dot_dimension_numbers<[1], [0], [0], [1], [0, 0, 1, 1], [], []>} : vector<256x3xbf16>, vector<3x32xbf16>, vector<256x32xf32> -> vector<256x32xf32>
    %51 = arith.addf %44, %50 : vector<256x32xf32>
    %c2_56 = arith.constant 2 : index
    %c0_57 = arith.constant 0 : index
    %c0_58 = arith.constant 0 : index
    %52 = vector.load %arg13[%c2_56, %c0_57, %c0_58] : memref<18x18x64xf32, #tpu.memory_space<vmem>>, vector<16x16x3xf32>
    %53 = vector.shape_cast %52 : vector<16x16x3xf32> to vector<256x3xf32>
    %54 = arith.truncf %53 : vector<256x3xf32> to vector<256x3xbf16>
    %c6 = arith.constant 6 : index
    %c0_59 = arith.constant 0 : index
    %c0_60 = arith.constant 0 : index
    %55 = vector.load %arg2[%c6, %c0_59, %c0_60] : memref<9x3x32xbf16, #tpu.memory_space<vmem>>, vector<1x3x32xbf16>
    %56 = vector.shape_cast %55 : vector<1x3x32xbf16> to vector<3x32xbf16>
    %cst_61 = arith.constant dense<0.000000e+00> : vector<256x32xf32>
    %57 = tpu.matmul %54, %56, %cst_61 {dimension_numbers = #tpu.dot_dimension_numbers<[1], [0], [0], [1], [0, 0, 1, 1], [], []>} : vector<256x3xbf16>, vector<3x32xbf16>, vector<256x32xf32> -> vector<256x32xf32>
    %58 = arith.addf %51, %57 : vector<256x32xf32>
    %c2_62 = arith.constant 2 : index
    %c1_63 = arith.constant 1 : index
    %c0_64 = arith.constant 0 : index
    %59 = vector.load %arg13[%c2_62, %c1_63, %c0_64] : memref<18x18x64xf32, #tpu.memory_space<vmem>>, vector<16x16x3xf32>
    %60 = vector.shape_cast %59 : vector<16x16x3xf32> to vector<256x3xf32>
    %61 = arith.truncf %60 : vector<256x3xf32> to vector<256x3xbf16>
    %c7 = arith.constant 7 : index
    %c0_65 = arith.constant 0 : index
    %c0_66 = arith.constant 0 : index
    %62 = vector.load %arg2[%c7, %c0_65, %c0_66] : memref<9x3x32xbf16, #tpu.memory_space<vmem>>, vector<1x3x32xbf16>
    %63 = vector.shape_cast %62 : vector<1x3x32xbf16> to vector<3x32xbf16>
    %cst_67 = arith.constant dense<0.000000e+00> : vector<256x32xf32>
    %64 = tpu.matmul %61, %63, %cst_67 {dimension_numbers = #tpu.dot_dimension_numbers<[1], [0], [0], [1], [0, 0, 1, 1], [], []>} : vector<256x3xbf16>, vector<3x32xbf16>, vector<256x32xf32> -> vector<256x32xf32>
    %65 = arith.addf %58, %64 : vector<256x32xf32>
    %c2_68 = arith.constant 2 : index
    %c2_69 = arith.constant 2 : index
    %c0_70 = arith.constant 0 : index
    %66 = vector.load %arg13[%c2_68, %c2_69, %c0_70] : memref<18x18x64xf32, #tpu.memory_space<vmem>>, vector<16x16x3xf32>
    %67 = vector.shape_cast %66 : vector<16x16x3xf32> to vector<256x3xf32>
    %68 = arith.truncf %67 : vector<256x3xf32> to vector<256x3xbf16>
    %c8 = arith.constant 8 : index
    %c0_71 = arith.constant 0 : index
    %c0_72 = arith.constant 0 : index
    %69 = vector.load %arg2[%c8, %c0_71, %c0_72] : memref<9x3x32xbf16, #tpu.memory_space<vmem>>, vector<1x3x32xbf16>
    %70 = vector.shape_cast %69 : vector<1x3x32xbf16> to vector<3x32xbf16>
    %cst_73 = arith.constant dense<0.000000e+00> : vector<256x32xf32>
    %71 = tpu.matmul %68, %70, %cst_73 {dimension_numbers = #tpu.dot_dimension_numbers<[1], [0], [0], [1], [0, 0, 1, 1], [], []>} : vector<256x3xbf16>, vector<3x32xbf16>, vector<256x32xf32> -> vector<256x32xf32>
    %72 = arith.addf %65, %71 : vector<256x32xf32>
    %c0_74 = arith.constant 0 : index
    %c0_75 = arith.constant 0 : index
    %73 = vector.load %arg3[%c0_74, %c0_75] : memref<1x32xf32, #tpu.memory_space<vmem>>, vector<1x32xf32>
    %74 = vector.broadcast %73 : vector<1x32xf32> to vector<256x32xf32>
    %75 = arith.addf %72, %74 : vector<256x32xf32>
    %cst_76 = arith.constant 0.000000e+00 : f32
    %76 = vector.broadcast %cst_76 : f32 to vector<256x32xf32>
    %77 = arith.maximumf %75, %76 : vector<256x32xf32>
    %78 = vector.shape_cast %77 : vector<256x32xf32> to vector<16x16x32xf32>
    %c1_77 = arith.constant 1 : index
    %c1_78 = arith.constant 1 : index
    %c0_79 = arith.constant 0 : index
    %79 = vector.load %arg13[%c1_77, %c1_78, %c0_79] : memref<18x18x64xf32, #tpu.memory_space<vmem>>, vector<16x16x32xf32>
    tpu.vector_store %arg13[%c1_77, %c1_78, %c0_79], %78 {strides = array<i32>} : memref<18x18x64xf32, #tpu.memory_space<vmem>>, vector<16x16x32xf32>,
    %cst_80 = arith.constant 0.000000e+00 : f32
    %80 = vector.broadcast %cst_80 : f32 to vector<256x64xf32>
    %c0_81 = arith.constant 0 : index
    %c0_82 = arith.constant 0 : index
    %c0_83 = arith.constant 0 : index
    %81 = vector.load %arg13[%c0_81, %c0_82, %c0_83] : memref<18x18x64xf32, #tpu.memory_space<vmem>>, vector<16x16x32xf32>
    %82 = vector.shape_cast %81 : vector<16x16x32xf32> to vector<256x32xf32>
    %83 = arith.truncf %82 : vector<256x32xf32> to vector<256x32xbf16>
    %c0_84 = arith.constant 0 : index
    %c0_85 = arith.constant 0 : index
    %c0_86 = arith.constant 0 : index
    %84 = vector.load %arg4[%c0_84, %c0_85, %c0_86] : memref<9x32x64xbf16, #tpu.memory_space<vmem>>, vector<1x32x64xbf16>
    %85 = vector.shape_cast %84 : vector<1x32x64xbf16> to vector<32x64xbf16>
    %cst_87 = arith.constant dense<0.000000e+00> : vector<256x64xf32>
    %86 = tpu.matmul %83, %85, %cst_87 {dimension_numbers = #tpu.dot_dimension_numbers<[1], [0], [0], [1], [0, 0, 1, 1], [], []>} : vector<256x32xbf16>, vector<32x64xbf16>, vector<256x64xf32> -> vector<256x64xf32>
    %87 = arith.addf %80, %86 : vector<256x64xf32>
    %c0_88 = arith.constant 0 : index
    %c1_89 = arith.constant 1 : index
    %c0_90 = arith.constant 0 : index
    %88 = vector.load %arg13[%c0_88, %c1_89, %c0_90] : memref<18x18x64xf32, #tpu.memory_space<vmem>>, vector<16x16x32xf32>
    %89 = vector.shape_cast %88 : vector<16x16x32xf32> to vector<256x32xf32>
    %90 = arith.truncf %89 : vector<256x32xf32> to vector<256x32xbf16>
    %c1_91 = arith.constant 1 : index
    %c0_92 = arith.constant 0 : index
    %c0_93 = arith.constant 0 : index
    %91 = vector.load %arg4[%c1_91, %c0_92, %c0_93] : memref<9x32x64xbf16, #tpu.memory_space<vmem>>, vector<1x32x64xbf16>
    %92 = vector.shape_cast %91 : vector<1x32x64xbf16> to vector<32x64xbf16>
    %cst_94 = arith.constant dense<0.000000e+00> : vector<256x64xf32>
    %93 = tpu.matmul %90, %92, %cst_94 {dimension_numbers = #tpu.dot_dimension_numbers<[1], [0], [0], [1], [0, 0, 1, 1], [], []>} : vector<256x32xbf16>, vector<32x64xbf16>, vector<256x64xf32> -> vector<256x64xf32>
    %94 = arith.addf %87, %93 : vector<256x64xf32>
    %c0_95 = arith.constant 0 : index
    %c2_96 = arith.constant 2 : index
    %c0_97 = arith.constant 0 : index
    %95 = vector.load %arg13[%c0_95, %c2_96, %c0_97] : memref<18x18x64xf32, #tpu.memory_space<vmem>>, vector<16x16x32xf32>
    %96 = vector.shape_cast %95 : vector<16x16x32xf32> to vector<256x32xf32>
    %97 = arith.truncf %96 : vector<256x32xf32> to vector<256x32xbf16>
    %c2_98 = arith.constant 2 : index
    %c0_99 = arith.constant 0 : index
    %c0_100 = arith.constant 0 : index
    %98 = vector.load %arg4[%c2_98, %c0_99, %c0_100] : memref<9x32x64xbf16, #tpu.memory_space<vmem>>, vector<1x32x64xbf16>
    %99 = vector.shape_cast %98 : vector<1x32x64xbf16> to vector<32x64xbf16>
    %cst_101 = arith.constant dense<0.000000e+00> : vector<256x64xf32>
    %100 = tpu.matmul %97, %99, %cst_101 {dimension_numbers = #tpu.dot_dimension_numbers<[1], [0], [0], [1], [0, 0, 1, 1], [], []>} : vector<256x32xbf16>, vector<32x64xbf16>, vector<256x64xf32> -> vector<256x64xf32>
    %101 = arith.addf %94, %100 : vector<256x64xf32>
    %c1_102 = arith.constant 1 : index
    %c0_103 = arith.constant 0 : index
    %c0_104 = arith.constant 0 : index
    %102 = vector.load %arg13[%c1_102, %c0_103, %c0_104] : memref<18x18x64xf32, #tpu.memory_space<vmem>>, vector<16x16x32xf32>
    %103 = vector.shape_cast %102 : vector<16x16x32xf32> to vector<256x32xf32>
    %104 = arith.truncf %103 : vector<256x32xf32> to vector<256x32xbf16>
    %c3_105 = arith.constant 3 : index
    %c0_106 = arith.constant 0 : index
    %c0_107 = arith.constant 0 : index
    %105 = vector.load %arg4[%c3_105, %c0_106, %c0_107] : memref<9x32x64xbf16, #tpu.memory_space<vmem>>, vector<1x32x64xbf16>
    %106 = vector.shape_cast %105 : vector<1x32x64xbf16> to vector<32x64xbf16>
    %cst_108 = arith.constant dense<0.000000e+00> : vector<256x64xf32>
    %107 = tpu.matmul %104, %106, %cst_108 {dimension_numbers = #tpu.dot_dimension_numbers<[1], [0], [0], [1], [0, 0, 1, 1], [], []>} : vector<256x32xbf16>, vector<32x64xbf16>, vector<256x64xf32> -> vector<256x64xf32>
    %108 = arith.addf %101, %107 : vector<256x64xf32>
    %c1_109 = arith.constant 1 : index
    %c1_110 = arith.constant 1 : index
    %c0_111 = arith.constant 0 : index
    %109 = vector.load %arg13[%c1_109, %c1_110, %c0_111] : memref<18x18x64xf32, #tpu.memory_space<vmem>>, vector<16x16x32xf32>
    %110 = vector.shape_cast %109 : vector<16x16x32xf32> to vector<256x32xf32>
    %111 = arith.truncf %110 : vector<256x32xf32> to vector<256x32xbf16>
    %c4_112 = arith.constant 4 : index
    %c0_113 = arith.constant 0 : index
    %c0_114 = arith.constant 0 : index
    %112 = vector.load %arg4[%c4_112, %c0_113, %c0_114] : memref<9x32x64xbf16, #tpu.memory_space<vmem>>, vector<1x32x64xbf16>
    %113 = vector.shape_cast %112 : vector<1x32x64xbf16> to vector<32x64xbf16>
    %cst_115 = arith.constant dense<0.000000e+00> : vector<256x64xf32>
    %114 = tpu.matmul %111, %113, %cst_115 {dimension_numbers = #tpu.dot_dimension_numbers<[1], [0], [0], [1], [0, 0, 1, 1], [], []>} : vector<256x32xbf16>, vector<32x64xbf16>, vector<256x64xf32> -> vector<256x64xf32>
    %115 = arith.addf %108, %114 : vector<256x64xf32>
    %c1_116 = arith.constant 1 : index
    %c2_117 = arith.constant 2 : index
    %c0_118 = arith.constant 0 : index
    %116 = vector.load %arg13[%c1_116, %c2_117, %c0_118] : memref<18x18x64xf32, #tpu.memory_space<vmem>>, vector<16x16x32xf32>
    %117 = vector.shape_cast %116 : vector<16x16x32xf32> to vector<256x32xf32>
    %118 = arith.truncf %117 : vector<256x32xf32> to vector<256x32xbf16>
    %c5_119 = arith.constant 5 : index
    %c0_120 = arith.constant 0 : index
    %c0_121 = arith.constant 0 : index
    %119 = vector.load %arg4[%c5_119, %c0_120, %c0_121] : memref<9x32x64xbf16, #tpu.memory_space<vmem>>, vector<1x32x64xbf16>
    %120 = vector.shape_cast %119 : vector<1x32x64xbf16> to vector<32x64xbf16>
    %cst_122 = arith.constant dense<0.000000e+00> : vector<256x64xf32>
    %121 = tpu.matmul %118, %120, %cst_122 {dimension_numbers = #tpu.dot_dimension_numbers<[1], [0], [0], [1], [0, 0, 1, 1], [], []>} : vector<256x32xbf16>, vector<32x64xbf16>, vector<256x64xf32> -> vector<256x64xf32>
    %122 = arith.addf %115, %121 : vector<256x64xf32>
    %c2_123 = arith.constant 2 : index
    %c0_124 = arith.constant 0 : index
    %c0_125 = arith.constant 0 : index
    %123 = vector.load %arg13[%c2_123, %c0_124, %c0_125] : memref<18x18x64xf32, #tpu.memory_space<vmem>>, vector<16x16x32xf32>
    %124 = vector.shape_cast %123 : vector<16x16x32xf32> to vector<256x32xf32>
    %125 = arith.truncf %124 : vector<256x32xf32> to vector<256x32xbf16>
    %c6_126 = arith.constant 6 : index
    %c0_127 = arith.constant 0 : index
    %c0_128 = arith.constant 0 : index
    %126 = vector.load %arg4[%c6_126, %c0_127, %c0_128] : memref<9x32x64xbf16, #tpu.memory_space<vmem>>, vector<1x32x64xbf16>
    %127 = vector.shape_cast %126 : vector<1x32x64xbf16> to vector<32x64xbf16>
    %cst_129 = arith.constant dense<0.000000e+00> : vector<256x64xf32>
    %128 = tpu.matmul %125, %127, %cst_129 {dimension_numbers = #tpu.dot_dimension_numbers<[1], [0], [0], [1], [0, 0, 1, 1], [], []>} : vector<256x32xbf16>, vector<32x64xbf16>, vector<256x64xf32> -> vector<256x64xf32>
    %129 = arith.addf %122, %128 : vector<256x64xf32>
    %c2_130 = arith.constant 2 : index
    %c1_131 = arith.constant 1 : index
    %c0_132 = arith.constant 0 : index
    %130 = vector.load %arg13[%c2_130, %c1_131, %c0_132] : memref<18x18x64xf32, #tpu.memory_space<vmem>>, vector<16x16x32xf32>
    %131 = vector.shape_cast %130 : vector<16x16x32xf32> to vector<256x32xf32>
    %132 = arith.truncf %131 : vector<256x32xf32> to vector<256x32xbf16>
    %c7_133 = arith.constant 7 : index
    %c0_134 = arith.constant 0 : index
    %c0_135 = arith.constant 0 : index
    %133 = vector.load %arg4[%c7_133, %c0_134, %c0_135] : memref<9x32x64xbf16, #tpu.memory_space<vmem>>, vector<1x32x64xbf16>
    %134 = vector.shape_cast %133 : vector<1x32x64xbf16> to vector<32x64xbf16>
    %cst_136 = arith.constant dense<0.000000e+00> : vector<256x64xf32>
    %135 = tpu.matmul %132, %134, %cst_136 {dimension_numbers = #tpu.dot_dimension_numbers<[1], [0], [0], [1], [0, 0, 1, 1], [], []>} : vector<256x32xbf16>, vector<32x64xbf16>, vector<256x64xf32> -> vector<256x64xf32>
    %136 = arith.addf %129, %135 : vector<256x64xf32>
    %c2_137 = arith.constant 2 : index
    %c2_138 = arith.constant 2 : index
    %c0_139 = arith.constant 0 : index
    %137 = vector.load %arg13[%c2_137, %c2_138, %c0_139] : memref<18x18x64xf32, #tpu.memory_space<vmem>>, vector<16x16x32xf32>
    %138 = vector.shape_cast %137 : vector<16x16x32xf32> to vector<256x32xf32>
    %139 = arith.truncf %138 : vector<256x32xf32> to vector<256x32xbf16>
    %c8_140 = arith.constant 8 : index
    %c0_141 = arith.constant 0 : index
    %c0_142 = arith.constant 0 : index
    %140 = vector.load %arg4[%c8_140, %c0_141, %c0_142] : memref<9x32x64xbf16, #tpu.memory_space<vmem>>, vector<1x32x64xbf16>
    %141 = vector.shape_cast %140 : vector<1x32x64xbf16> to vector<32x64xbf16>
    %cst_143 = arith.constant dense<0.000000e+00> : vector<256x64xf32>
    %142 = tpu.matmul %139, %141, %cst_143 {dimension_numbers = #tpu.dot_dimension_numbers<[1], [0], [0], [1], [0, 0, 1, 1], [], []>} : vector<256x32xbf16>, vector<32x64xbf16>, vector<256x64xf32> -> vector<256x64xf32>
    %143 = arith.addf %136, %142 : vector<256x64xf32>
    %c0_144 = arith.constant 0 : index
    %c0_145 = arith.constant 0 : index
    %144 = vector.load %arg5[%c0_144, %c0_145] : memref<1x64xf32, #tpu.memory_space<vmem>>, vector<1x64xf32>
    %145 = vector.broadcast %144 : vector<1x64xf32> to vector<256x64xf32>
    %146 = arith.addf %143, %145 : vector<256x64xf32>
    %cst_146 = arith.constant 0.000000e+00 : f32
    %147 = vector.broadcast %cst_146 : f32 to vector<256x64xf32>
    %148 = arith.maximumf %146, %147 : vector<256x64xf32>
    %149 = vector.shape_cast %148 : vector<256x64xf32> to vector<16x16x64xf32>
    %c1_147 = arith.constant 1 : index
    %c1_148 = arith.constant 1 : index
    %c0_149 = arith.constant 0 : index
    %150 = vector.load %arg13[%c1_147, %c1_148, %c0_149] : memref<18x18x64xf32, #tpu.memory_space<vmem>>, vector<16x16x64xf32>
    tpu.vector_store %arg13[%c1_147, %c1_148, %c0_149], %149 {strides = array<i32>} : memref<18x18x64xf32, #tpu.memory_space<vmem>>, vector<16x16x64xf32>,
    %cst_150 = arith.constant 0.000000e+00 : f32
    %151 = vector.broadcast %cst_150 : f32 to vector<256x64xf32>
    %c0_151 = arith.constant 0 : index
    %c0_152 = arith.constant 0 : index
    %c0_153 = arith.constant 0 : index
    %152 = vector.load %arg13[%c0_151, %c0_152, %c0_153] : memref<18x18x64xf32, #tpu.memory_space<vmem>>, vector<16x16x64xf32>
    %153 = vector.shape_cast %152 : vector<16x16x64xf32> to vector<256x64xf32>
    %154 = arith.truncf %153 : vector<256x64xf32> to vector<256x64xbf16>
    %c0_154 = arith.constant 0 : index
    %c0_155 = arith.constant 0 : index
    %c0_156 = arith.constant 0 : index
    %155 = vector.load %arg6[%c0_154, %c0_155, %c0_156] : memref<9x64x64xbf16, #tpu.memory_space<vmem>>, vector<1x64x64xbf16>
    %156 = vector.shape_cast %155 : vector<1x64x64xbf16> to vector<64x64xbf16>
    %cst_157 = arith.constant dense<0.000000e+00> : vector<256x64xf32>
    %157 = tpu.matmul %154, %156, %cst_157 {dimension_numbers = #tpu.dot_dimension_numbers<[1], [0], [0], [1], [0, 0, 1, 1], [], []>} : vector<256x64xbf16>, vector<64x64xbf16>, vector<256x64xf32> -> vector<256x64xf32>
    %158 = arith.addf %151, %157 : vector<256x64xf32>
    %c0_158 = arith.constant 0 : index
    %c1_159 = arith.constant 1 : index
    %c0_160 = arith.constant 0 : index
    %159 = vector.load %arg13[%c0_158, %c1_159, %c0_160] : memref<18x18x64xf32, #tpu.memory_space<vmem>>, vector<16x16x64xf32>
    %160 = vector.shape_cast %159 : vector<16x16x64xf32> to vector<256x64xf32>
    %161 = arith.truncf %160 : vector<256x64xf32> to vector<256x64xbf16>
    %c1_161 = arith.constant 1 : index
    %c0_162 = arith.constant 0 : index
    %c0_163 = arith.constant 0 : index
    %162 = vector.load %arg6[%c1_161, %c0_162, %c0_163] : memref<9x64x64xbf16, #tpu.memory_space<vmem>>, vector<1x64x64xbf16>
    %163 = vector.shape_cast %162 : vector<1x64x64xbf16> to vector<64x64xbf16>
    %cst_164 = arith.constant dense<0.000000e+00> : vector<256x64xf32>
    %164 = tpu.matmul %161, %163, %cst_164 {dimension_numbers = #tpu.dot_dimension_numbers<[1], [0], [0], [1], [0, 0, 1, 1], [], []>} : vector<256x64xbf16>, vector<64x64xbf16>, vector<256x64xf32> -> vector<256x64xf32>
    %165 = arith.addf %158, %164 : vector<256x64xf32>
    %c0_165 = arith.constant 0 : index
    %c2_166 = arith.constant 2 : index
    %c0_167 = arith.constant 0 : index
    %166 = vector.load %arg13[%c0_165, %c2_166, %c0_167] : memref<18x18x64xf32, #tpu.memory_space<vmem>>, vector<16x16x64xf32>
    %167 = vector.shape_cast %166 : vector<16x16x64xf32> to vector<256x64xf32>
    %168 = arith.truncf %167 : vector<256x64xf32> to vector<256x64xbf16>
    %c2_168 = arith.constant 2 : index
    %c0_169 = arith.constant 0 : index
    %c0_170 = arith.constant 0 : index
    %169 = vector.load %arg6[%c2_168, %c0_169, %c0_170] : memref<9x64x64xbf16, #tpu.memory_space<vmem>>, vector<1x64x64xbf16>
    %170 = vector.shape_cast %169 : vector<1x64x64xbf16> to vector<64x64xbf16>
    %cst_171 = arith.constant dense<0.000000e+00> : vector<256x64xf32>
    %171 = tpu.matmul %168, %170, %cst_171 {dimension_numbers = #tpu.dot_dimension_numbers<[1], [0], [0], [1], [0, 0, 1, 1], [], []>} : vector<256x64xbf16>, vector<64x64xbf16>, vector<256x64xf32> -> vector<256x64xf32>
    %172 = arith.addf %165, %171 : vector<256x64xf32>
    %c1_172 = arith.constant 1 : index
    %c0_173 = arith.constant 0 : index
    %c0_174 = arith.constant 0 : index
    %173 = vector.load %arg13[%c1_172, %c0_173, %c0_174] : memref<18x18x64xf32, #tpu.memory_space<vmem>>, vector<16x16x64xf32>
    %174 = vector.shape_cast %173 : vector<16x16x64xf32> to vector<256x64xf32>
    %175 = arith.truncf %174 : vector<256x64xf32> to vector<256x64xbf16>
    %c3_175 = arith.constant 3 : index
    %c0_176 = arith.constant 0 : index
    %c0_177 = arith.constant 0 : index
    %176 = vector.load %arg6[%c3_175, %c0_176, %c0_177] : memref<9x64x64xbf16, #tpu.memory_space<vmem>>, vector<1x64x64xbf16>
    %177 = vector.shape_cast %176 : vector<1x64x64xbf16> to vector<64x64xbf16>
    %cst_178 = arith.constant dense<0.000000e+00> : vector<256x64xf32>
    %178 = tpu.matmul %175, %177, %cst_178 {dimension_numbers = #tpu.dot_dimension_numbers<[1], [0], [0], [1], [0, 0, 1, 1], [], []>} : vector<256x64xbf16>, vector<64x64xbf16>, vector<256x64xf32> -> vector<256x64xf32>
    %179 = arith.addf %172, %178 : vector<256x64xf32>
    %c1_179 = arith.constant 1 : index
    %c1_180 = arith.constant 1 : index
    %c0_181 = arith.constant 0 : index
    %180 = vector.load %arg13[%c1_179, %c1_180, %c0_181] : memref<18x18x64xf32, #tpu.memory_space<vmem>>, vector<16x16x64xf32>
    %181 = vector.shape_cast %180 : vector<16x16x64xf32> to vector<256x64xf32>
    %182 = arith.truncf %181 : vector<256x64xf32> to vector<256x64xbf16>
    %c4_182 = arith.constant 4 : index
    %c0_183 = arith.constant 0 : index
    %c0_184 = arith.constant 0 : index
    %183 = vector.load %arg6[%c4_182, %c0_183, %c0_184] : memref<9x64x64xbf16, #tpu.memory_space<vmem>>, vector<1x64x64xbf16>
    %184 = vector.shape_cast %183 : vector<1x64x64xbf16> to vector<64x64xbf16>
    %cst_185 = arith.constant dense<0.000000e+00> : vector<256x64xf32>
    %185 = tpu.matmul %182, %184, %cst_185 {dimension_numbers = #tpu.dot_dimension_numbers<[1], [0], [0], [1], [0, 0, 1, 1], [], []>} : vector<256x64xbf16>, vector<64x64xbf16>, vector<256x64xf32> -> vector<256x64xf32>
    %186 = arith.addf %179, %185 : vector<256x64xf32>
    %c1_186 = arith.constant 1 : index
    %c2_187 = arith.constant 2 : index
    %c0_188 = arith.constant 0 : index
    %187 = vector.load %arg13[%c1_186, %c2_187, %c0_188] : memref<18x18x64xf32, #tpu.memory_space<vmem>>, vector<16x16x64xf32>
    %188 = vector.shape_cast %187 : vector<16x16x64xf32> to vector<256x64xf32>
    %189 = arith.truncf %188 : vector<256x64xf32> to vector<256x64xbf16>
    %c5_189 = arith.constant 5 : index
    %c0_190 = arith.constant 0 : index
    %c0_191 = arith.constant 0 : index
    %190 = vector.load %arg6[%c5_189, %c0_190, %c0_191] : memref<9x64x64xbf16, #tpu.memory_space<vmem>>, vector<1x64x64xbf16>
    %191 = vector.shape_cast %190 : vector<1x64x64xbf16> to vector<64x64xbf16>
    %cst_192 = arith.constant dense<0.000000e+00> : vector<256x64xf32>
    %192 = tpu.matmul %189, %191, %cst_192 {dimension_numbers = #tpu.dot_dimension_numbers<[1], [0], [0], [1], [0, 0, 1, 1], [], []>} : vector<256x64xbf16>, vector<64x64xbf16>, vector<256x64xf32> -> vector<256x64xf32>
    %193 = arith.addf %186, %192 : vector<256x64xf32>
    %c2_193 = arith.constant 2 : index
    %c0_194 = arith.constant 0 : index
    %c0_195 = arith.constant 0 : index
    %194 = vector.load %arg13[%c2_193, %c0_194, %c0_195] : memref<18x18x64xf32, #tpu.memory_space<vmem>>, vector<16x16x64xf32>
    %195 = vector.shape_cast %194 : vector<16x16x64xf32> to vector<256x64xf32>
    %196 = arith.truncf %195 : vector<256x64xf32> to vector<256x64xbf16>
    %c6_196 = arith.constant 6 : index
    %c0_197 = arith.constant 0 : index
    %c0_198 = arith.constant 0 : index
    %197 = vector.load %arg6[%c6_196, %c0_197, %c0_198] : memref<9x64x64xbf16, #tpu.memory_space<vmem>>, vector<1x64x64xbf16>
    %198 = vector.shape_cast %197 : vector<1x64x64xbf16> to vector<64x64xbf16>
    %cst_199 = arith.constant dense<0.000000e+00> : vector<256x64xf32>
    %199 = tpu.matmul %196, %198, %cst_199 {dimension_numbers = #tpu.dot_dimension_numbers<[1], [0], [0], [1], [0, 0, 1, 1], [], []>} : vector<256x64xbf16>, vector<64x64xbf16>, vector<256x64xf32> -> vector<256x64xf32>
    %200 = arith.addf %193, %199 : vector<256x64xf32>
    %c2_200 = arith.constant 2 : index
    %c1_201 = arith.constant 1 : index
    %c0_202 = arith.constant 0 : index
    %201 = vector.load %arg13[%c2_200, %c1_201, %c0_202] : memref<18x18x64xf32, #tpu.memory_space<vmem>>, vector<16x16x64xf32>
    %202 = vector.shape_cast %201 : vector<16x16x64xf32> to vector<256x64xf32>
    %203 = arith.truncf %202 : vector<256x64xf32> to vector<256x64xbf16>
    %c7_203 = arith.constant 7 : index
    %c0_204 = arith.constant 0 : index
    %c0_205 = arith.constant 0 : index
    %204 = vector.load %arg6[%c7_203, %c0_204, %c0_205] : memref<9x64x64xbf16, #tpu.memory_space<vmem>>, vector<1x64x64xbf16>
    %205 = vector.shape_cast %204 : vector<1x64x64xbf16> to vector<64x64xbf16>
    %cst_206 = arith.constant dense<0.000000e+00> : vector<256x64xf32>
    %206 = tpu.matmul %203, %205, %cst_206 {dimension_numbers = #tpu.dot_dimension_numbers<[1], [0], [0], [1], [0, 0, 1, 1], [], []>} : vector<256x64xbf16>, vector<64x64xbf16>, vector<256x64xf32> -> vector<256x64xf32>
    %207 = arith.addf %200, %206 : vector<256x64xf32>
    %c2_207 = arith.constant 2 : index
    %c2_208 = arith.constant 2 : index
    %c0_209 = arith.constant 0 : index
    %208 = vector.load %arg13[%c2_207, %c2_208, %c0_209] : memref<18x18x64xf32, #tpu.memory_space<vmem>>, vector<16x16x64xf32>
    %209 = vector.shape_cast %208 : vector<16x16x64xf32> to vector<256x64xf32>
    %210 = arith.truncf %209 : vector<256x64xf32> to vector<256x64xbf16>
    %c8_210 = arith.constant 8 : index
    %c0_211 = arith.constant 0 : index
    %c0_212 = arith.constant 0 : index
    %211 = vector.load %arg6[%c8_210, %c0_211, %c0_212] : memref<9x64x64xbf16, #tpu.memory_space<vmem>>, vector<1x64x64xbf16>
    %212 = vector.shape_cast %211 : vector<1x64x64xbf16> to vector<64x64xbf16>
    %cst_213 = arith.constant dense<0.000000e+00> : vector<256x64xf32>
    %213 = tpu.matmul %210, %212, %cst_213 {dimension_numbers = #tpu.dot_dimension_numbers<[1], [0], [0], [1], [0, 0, 1, 1], [], []>} : vector<256x64xbf16>, vector<64x64xbf16>, vector<256x64xf32> -> vector<256x64xf32>
    %214 = arith.addf %207, %213 : vector<256x64xf32>
    %c0_214 = arith.constant 0 : index
    %c0_215 = arith.constant 0 : index
    %215 = vector.load %arg7[%c0_214, %c0_215] : memref<1x64xf32, #tpu.memory_space<vmem>>, vector<1x64xf32>
    %216 = vector.broadcast %215 : vector<1x64xf32> to vector<256x64xf32>
    %217 = arith.addf %214, %216 : vector<256x64xf32>
    %cst_216 = arith.constant 0.000000e+00 : f32
    %218 = vector.broadcast %cst_216 : f32 to vector<256x64xf32>
    %219 = arith.maximumf %217, %218 : vector<256x64xf32>
    %220 = vector.shape_cast %219 : vector<256x64xf32> to vector<16x16x64xf32>
    %c1_217 = arith.constant 1 : index
    %c1_218 = arith.constant 1 : index
    %c0_219 = arith.constant 0 : index
    %221 = vector.load %arg13[%c1_217, %c1_218, %c0_219] : memref<18x18x64xf32, #tpu.memory_space<vmem>>, vector<16x16x64xf32>
    tpu.vector_store %arg13[%c1_217, %c1_218, %c0_219], %220 {strides = array<i32>} : memref<18x18x64xf32, #tpu.memory_space<vmem>>, vector<16x16x64xf32>,
    %cst_220 = arith.constant 0.000000e+00 : f32
    %222 = vector.broadcast %cst_220 : f32 to vector<256x32xf32>
    %c0_221 = arith.constant 0 : index
    %c0_222 = arith.constant 0 : index
    %c0_223 = arith.constant 0 : index
    %223 = vector.load %arg13[%c0_221, %c0_222, %c0_223] : memref<18x18x64xf32, #tpu.memory_space<vmem>>, vector<16x16x64xf32>
    %224 = vector.shape_cast %223 : vector<16x16x64xf32> to vector<256x64xf32>
    %225 = arith.truncf %224 : vector<256x64xf32> to vector<256x64xbf16>
    %c0_224 = arith.constant 0 : index
    %c0_225 = arith.constant 0 : index
    %c0_226 = arith.constant 0 : index
    %226 = vector.load %arg8[%c0_224, %c0_225, %c0_226] : memref<9x64x32xbf16, #tpu.memory_space<vmem>>, vector<1x64x32xbf16>
    %227 = vector.shape_cast %226 : vector<1x64x32xbf16> to vector<64x32xbf16>
    %cst_227 = arith.constant dense<0.000000e+00> : vector<256x32xf32>
    %228 = tpu.matmul %225, %227, %cst_227 {dimension_numbers = #tpu.dot_dimension_numbers<[1], [0], [0], [1], [0, 0, 1, 1], [], []>} : vector<256x64xbf16>, vector<64x32xbf16>, vector<256x32xf32> -> vector<256x32xf32>
    %229 = arith.addf %222, %228 : vector<256x32xf32>
    %c0_228 = arith.constant 0 : index
    %c1_229 = arith.constant 1 : index
    %c0_230 = arith.constant 0 : index
    %230 = vector.load %arg13[%c0_228, %c1_229, %c0_230] : memref<18x18x64xf32, #tpu.memory_space<vmem>>, vector<16x16x64xf32>
    %231 = vector.shape_cast %230 : vector<16x16x64xf32> to vector<256x64xf32>
    %232 = arith.truncf %231 : vector<256x64xf32> to vector<256x64xbf16>
    %c1_231 = arith.constant 1 : index
    %c0_232 = arith.constant 0 : index
    %c0_233 = arith.constant 0 : index
    %233 = vector.load %arg8[%c1_231, %c0_232, %c0_233] : memref<9x64x32xbf16, #tpu.memory_space<vmem>>, vector<1x64x32xbf16>
    %234 = vector.shape_cast %233 : vector<1x64x32xbf16> to vector<64x32xbf16>
    %cst_234 = arith.constant dense<0.000000e+00> : vector<256x32xf32>
    %235 = tpu.matmul %232, %234, %cst_234 {dimension_numbers = #tpu.dot_dimension_numbers<[1], [0], [0], [1], [0, 0, 1, 1], [], []>} : vector<256x64xbf16>, vector<64x32xbf16>, vector<256x32xf32> -> vector<256x32xf32>
    %236 = arith.addf %229, %235 : vector<256x32xf32>
    %c0_235 = arith.constant 0 : index
    %c2_236 = arith.constant 2 : index
    %c0_237 = arith.constant 0 : index
    %237 = vector.load %arg13[%c0_235, %c2_236, %c0_237] : memref<18x18x64xf32, #tpu.memory_space<vmem>>, vector<16x16x64xf32>
    %238 = vector.shape_cast %237 : vector<16x16x64xf32> to vector<256x64xf32>
    %239 = arith.truncf %238 : vector<256x64xf32> to vector<256x64xbf16>
    %c2_238 = arith.constant 2 : index
    %c0_239 = arith.constant 0 : index
    %c0_240 = arith.constant 0 : index
    %240 = vector.load %arg8[%c2_238, %c0_239, %c0_240] : memref<9x64x32xbf16, #tpu.memory_space<vmem>>, vector<1x64x32xbf16>
    %241 = vector.shape_cast %240 : vector<1x64x32xbf16> to vector<64x32xbf16>
    %cst_241 = arith.constant dense<0.000000e+00> : vector<256x32xf32>
    %242 = tpu.matmul %239, %241, %cst_241 {dimension_numbers = #tpu.dot_dimension_numbers<[1], [0], [0], [1], [0, 0, 1, 1], [], []>} : vector<256x64xbf16>, vector<64x32xbf16>, vector<256x32xf32> -> vector<256x32xf32>
    %243 = arith.addf %236, %242 : vector<256x32xf32>
    %c1_242 = arith.constant 1 : index
    %c0_243 = arith.constant 0 : index
    %c0_244 = arith.constant 0 : index
    %244 = vector.load %arg13[%c1_242, %c0_243, %c0_244] : memref<18x18x64xf32, #tpu.memory_space<vmem>>, vector<16x16x64xf32>
    %245 = vector.shape_cast %244 : vector<16x16x64xf32> to vector<256x64xf32>
    %246 = arith.truncf %245 : vector<256x64xf32> to vector<256x64xbf16>
    %c3_245 = arith.constant 3 : index
    %c0_246 = arith.constant 0 : index
    %c0_247 = arith.constant 0 : index
    %247 = vector.load %arg8[%c3_245, %c0_246, %c0_247] : memref<9x64x32xbf16, #tpu.memory_space<vmem>>, vector<1x64x32xbf16>
    %248 = vector.shape_cast %247 : vector<1x64x32xbf16> to vector<64x32xbf16>
    %cst_248 = arith.constant dense<0.000000e+00> : vector<256x32xf32>
    %249 = tpu.matmul %246, %248, %cst_248 {dimension_numbers = #tpu.dot_dimension_numbers<[1], [0], [0], [1], [0, 0, 1, 1], [], []>} : vector<256x64xbf16>, vector<64x32xbf16>, vector<256x32xf32> -> vector<256x32xf32>
    %250 = arith.addf %243, %249 : vector<256x32xf32>
    %c1_249 = arith.constant 1 : index
    %c1_250 = arith.constant 1 : index
    %c0_251 = arith.constant 0 : index
    %251 = vector.load %arg13[%c1_249, %c1_250, %c0_251] : memref<18x18x64xf32, #tpu.memory_space<vmem>>, vector<16x16x64xf32>
    %252 = vector.shape_cast %251 : vector<16x16x64xf32> to vector<256x64xf32>
    %253 = arith.truncf %252 : vector<256x64xf32> to vector<256x64xbf16>
    %c4_252 = arith.constant 4 : index
    %c0_253 = arith.constant 0 : index
    %c0_254 = arith.constant 0 : index
    %254 = vector.load %arg8[%c4_252, %c0_253, %c0_254] : memref<9x64x32xbf16, #tpu.memory_space<vmem>>, vector<1x64x32xbf16>
    %255 = vector.shape_cast %254 : vector<1x64x32xbf16> to vector<64x32xbf16>
    %cst_255 = arith.constant dense<0.000000e+00> : vector<256x32xf32>
    %256 = tpu.matmul %253, %255, %cst_255 {dimension_numbers = #tpu.dot_dimension_numbers<[1], [0], [0], [1], [0, 0, 1, 1], [], []>} : vector<256x64xbf16>, vector<64x32xbf16>, vector<256x32xf32> -> vector<256x32xf32>
    %257 = arith.addf %250, %256 : vector<256x32xf32>
    %c1_256 = arith.constant 1 : index
    %c2_257 = arith.constant 2 : index
    %c0_258 = arith.constant 0 : index
    %258 = vector.load %arg13[%c1_256, %c2_257, %c0_258] : memref<18x18x64xf32, #tpu.memory_space<vmem>>, vector<16x16x64xf32>
    %259 = vector.shape_cast %258 : vector<16x16x64xf32> to vector<256x64xf32>
    %260 = arith.truncf %259 : vector<256x64xf32> to vector<256x64xbf16>
    %c5_259 = arith.constant 5 : index
    %c0_260 = arith.constant 0 : index
    %c0_261 = arith.constant 0 : index
    %261 = vector.load %arg8[%c5_259, %c0_260, %c0_261] : memref<9x64x32xbf16, #tpu.memory_space<vmem>>, vector<1x64x32xbf16>
    %262 = vector.shape_cast %261 : vector<1x64x32xbf16> to vector<64x32xbf16>
    %cst_262 = arith.constant dense<0.000000e+00> : vector<256x32xf32>
    %263 = tpu.matmul %260, %262, %cst_262 {dimension_numbers = #tpu.dot_dimension_numbers<[1], [0], [0], [1], [0, 0, 1, 1], [], []>} : vector<256x64xbf16>, vector<64x32xbf16>, vector<256x32xf32> -> vector<256x32xf32>
    %264 = arith.addf %257, %263 : vector<256x32xf32>
    %c2_263 = arith.constant 2 : index
    %c0_264 = arith.constant 0 : index
    %c0_265 = arith.constant 0 : index
    %265 = vector.load %arg13[%c2_263, %c0_264, %c0_265] : memref<18x18x64xf32, #tpu.memory_space<vmem>>, vector<16x16x64xf32>
    %266 = vector.shape_cast %265 : vector<16x16x64xf32> to vector<256x64xf32>
    %267 = arith.truncf %266 : vector<256x64xf32> to vector<256x64xbf16>
    %c6_266 = arith.constant 6 : index
    %c0_267 = arith.constant 0 : index
    %c0_268 = arith.constant 0 : index
    %268 = vector.load %arg8[%c6_266, %c0_267, %c0_268] : memref<9x64x32xbf16, #tpu.memory_space<vmem>>, vector<1x64x32xbf16>
    %269 = vector.shape_cast %268 : vector<1x64x32xbf16> to vector<64x32xbf16>
    %cst_269 = arith.constant dense<0.000000e+00> : vector<256x32xf32>
    %270 = tpu.matmul %267, %269, %cst_269 {dimension_numbers = #tpu.dot_dimension_numbers<[1], [0], [0], [1], [0, 0, 1, 1], [], []>} : vector<256x64xbf16>, vector<64x32xbf16>, vector<256x32xf32> -> vector<256x32xf32>
    %271 = arith.addf %264, %270 : vector<256x32xf32>
    %c2_270 = arith.constant 2 : index
    %c1_271 = arith.constant 1 : index
    %c0_272 = arith.constant 0 : index
    %272 = vector.load %arg13[%c2_270, %c1_271, %c0_272] : memref<18x18x64xf32, #tpu.memory_space<vmem>>, vector<16x16x64xf32>
    %273 = vector.shape_cast %272 : vector<16x16x64xf32> to vector<256x64xf32>
    %274 = arith.truncf %273 : vector<256x64xf32> to vector<256x64xbf16>
    %c7_273 = arith.constant 7 : index
    %c0_274 = arith.constant 0 : index
    %c0_275 = arith.constant 0 : index
    %275 = vector.load %arg8[%c7_273, %c0_274, %c0_275] : memref<9x64x32xbf16, #tpu.memory_space<vmem>>, vector<1x64x32xbf16>
    %276 = vector.shape_cast %275 : vector<1x64x32xbf16> to vector<64x32xbf16>
    %cst_276 = arith.constant dense<0.000000e+00> : vector<256x32xf32>
    %277 = tpu.matmul %274, %276, %cst_276 {dimension_numbers = #tpu.dot_dimension_numbers<[1], [0], [0], [1], [0, 0, 1, 1], [], []>} : vector<256x64xbf16>, vector<64x32xbf16>, vector<256x32xf32> -> vector<256x32xf32>
    %278 = arith.addf %271, %277 : vector<256x32xf32>
    %c2_277 = arith.constant 2 : index
    %c2_278 = arith.constant 2 : index
    %c0_279 = arith.constant 0 : index
    %279 = vector.load %arg13[%c2_277, %c2_278, %c0_279] : memref<18x18x64xf32, #tpu.memory_space<vmem>>, vector<16x16x64xf32>
    %280 = vector.shape_cast %279 : vector<16x16x64xf32> to vector<256x64xf32>
    %281 = arith.truncf %280 : vector<256x64xf32> to vector<256x64xbf16>
    %c8_280 = arith.constant 8 : index
    %c0_281 = arith.constant 0 : index
    %c0_282 = arith.constant 0 : index
    %282 = vector.load %arg8[%c8_280, %c0_281, %c0_282] : memref<9x64x32xbf16, #tpu.memory_space<vmem>>, vector<1x64x32xbf16>
    %283 = vector.shape_cast %282 : vector<1x64x32xbf16> to vector<64x32xbf16>
    %cst_283 = arith.constant dense<0.000000e+00> : vector<256x32xf32>
    %284 = tpu.matmul %281, %283, %cst_283 {dimension_numbers = #tpu.dot_dimension_numbers<[1], [0], [0], [1], [0, 0, 1, 1], [], []>} : vector<256x64xbf16>, vector<64x32xbf16>, vector<256x32xf32> -> vector<256x32xf32>
    %285 = arith.addf %278, %284 : vector<256x32xf32>
    %c0_284 = arith.constant 0 : index
    %c0_285 = arith.constant 0 : index
    %286 = vector.load %arg9[%c0_284, %c0_285] : memref<1x32xf32, #tpu.memory_space<vmem>>, vector<1x32xf32>
    %287 = vector.broadcast %286 : vector<1x32xf32> to vector<256x32xf32>
    %288 = arith.addf %285, %287 : vector<256x32xf32>
    %cst_286 = arith.constant 0.000000e+00 : f32
    %289 = vector.broadcast %cst_286 : f32 to vector<256x32xf32>
    %290 = arith.maximumf %288, %289 : vector<256x32xf32>
    %291 = vector.shape_cast %290 : vector<256x32xf32> to vector<16x16x32xf32>
    %c1_287 = arith.constant 1 : index
    %c1_288 = arith.constant 1 : index
    %c0_289 = arith.constant 0 : index
    %292 = vector.load %arg13[%c1_287, %c1_288, %c0_289] : memref<18x18x64xf32, #tpu.memory_space<vmem>>, vector<16x16x32xf32>
    tpu.vector_store %arg13[%c1_287, %c1_288, %c0_289], %291 {strides = array<i32>} : memref<18x18x64xf32, #tpu.memory_space<vmem>>, vector<16x16x32xf32>,
    %cst_290 = arith.constant 0.000000e+00 : f32
    %293 = vector.broadcast %cst_290 : f32 to vector<256x3xf32>
    %c0_291 = arith.constant 0 : index
    %c0_292 = arith.constant 0 : index
    %c0_293 = arith.constant 0 : index
    %294 = vector.load %arg13[%c0_291, %c0_292, %c0_293] : memref<18x18x64xf32, #tpu.memory_space<vmem>>, vector<16x16x32xf32>
    %295 = vector.shape_cast %294 : vector<16x16x32xf32> to vector<256x32xf32>
    %296 = arith.truncf %295 : vector<256x32xf32> to vector<256x32xbf16>
    %c0_294 = arith.constant 0 : index
    %c0_295 = arith.constant 0 : index
    %c0_296 = arith.constant 0 : index
    %297 = vector.load %arg10[%c0_294, %c0_295, %c0_296] : memref<9x32x3xbf16, #tpu.memory_space<vmem>>, vector<1x32x3xbf16>
    %298 = vector.shape_cast %297 : vector<1x32x3xbf16> to vector<32x3xbf16>
    %cst_297 = arith.constant dense<0.000000e+00> : vector<256x3xf32>
    %299 = tpu.matmul %296, %298, %cst_297 {dimension_numbers = #tpu.dot_dimension_numbers<[1], [0], [0], [1], [0, 0, 1, 1], [], []>} : vector<256x32xbf16>, vector<32x3xbf16>, vector<256x3xf32> -> vector<256x3xf32>
    %300 = arith.addf %293, %299 : vector<256x3xf32>
    %c0_298 = arith.constant 0 : index
    %c1_299 = arith.constant 1 : index
    %c0_300 = arith.constant 0 : index
    %301 = vector.load %arg13[%c0_298, %c1_299, %c0_300] : memref<18x18x64xf32, #tpu.memory_space<vmem>>, vector<16x16x32xf32>
    %302 = vector.shape_cast %301 : vector<16x16x32xf32> to vector<256x32xf32>
    %303 = arith.truncf %302 : vector<256x32xf32> to vector<256x32xbf16>
    %c1_301 = arith.constant 1 : index
    %c0_302 = arith.constant 0 : index
    %c0_303 = arith.constant 0 : index
    %304 = vector.load %arg10[%c1_301, %c0_302, %c0_303] : memref<9x32x3xbf16, #tpu.memory_space<vmem>>, vector<1x32x3xbf16>
    %305 = vector.shape_cast %304 : vector<1x32x3xbf16> to vector<32x3xbf16>
    %cst_304 = arith.constant dense<0.000000e+00> : vector<256x3xf32>
    %306 = tpu.matmul %303, %305, %cst_304 {dimension_numbers = #tpu.dot_dimension_numbers<[1], [0], [0], [1], [0, 0, 1, 1], [], []>} : vector<256x32xbf16>, vector<32x3xbf16>, vector<256x3xf32> -> vector<256x3xf32>
    %307 = arith.addf %300, %306 : vector<256x3xf32>
    %c0_305 = arith.constant 0 : index
    %c2_306 = arith.constant 2 : index
    %c0_307 = arith.constant 0 : index
    %308 = vector.load %arg13[%c0_305, %c2_306, %c0_307] : memref<18x18x64xf32, #tpu.memory_space<vmem>>, vector<16x16x32xf32>
    %309 = vector.shape_cast %308 : vector<16x16x32xf32> to vector<256x32xf32>
    %310 = arith.truncf %309 : vector<256x32xf32> to vector<256x32xbf16>
    %c2_308 = arith.constant 2 : index
    %c0_309 = arith.constant 0 : index
    %c0_310 = arith.constant 0 : index
    %311 = vector.load %arg10[%c2_308, %c0_309, %c0_310] : memref<9x32x3xbf16, #tpu.memory_space<vmem>>, vector<1x32x3xbf16>
    %312 = vector.shape_cast %311 : vector<1x32x3xbf16> to vector<32x3xbf16>
    %cst_311 = arith.constant dense<0.000000e+00> : vector<256x3xf32>
    %313 = tpu.matmul %310, %312, %cst_311 {dimension_numbers = #tpu.dot_dimension_numbers<[1], [0], [0], [1], [0, 0, 1, 1], [], []>} : vector<256x32xbf16>, vector<32x3xbf16>, vector<256x3xf32> -> vector<256x3xf32>
    %314 = arith.addf %307, %313 : vector<256x3xf32>
    %c1_312 = arith.constant 1 : index
    %c0_313 = arith.constant 0 : index
    %c0_314 = arith.constant 0 : index
    %315 = vector.load %arg13[%c1_312, %c0_313, %c0_314] : memref<18x18x64xf32, #tpu.memory_space<vmem>>, vector<16x16x32xf32>
    %316 = vector.shape_cast %315 : vector<16x16x32xf32> to vector<256x32xf32>
    %317 = arith.truncf %316 : vector<256x32xf32> to vector<256x32xbf16>
    %c3_315 = arith.constant 3 : index
    %c0_316 = arith.constant 0 : index
    %c0_317 = arith.constant 0 : index
    %318 = vector.load %arg10[%c3_315, %c0_316, %c0_317] : memref<9x32x3xbf16, #tpu.memory_space<vmem>>, vector<1x32x3xbf16>
    %319 = vector.shape_cast %318 : vector<1x32x3xbf16> to vector<32x3xbf16>
    %cst_318 = arith.constant dense<0.000000e+00> : vector<256x3xf32>
    %320 = tpu.matmul %317, %319, %cst_318 {dimension_numbers = #tpu.dot_dimension_numbers<[1], [0], [0], [1], [0, 0, 1, 1], [], []>} : vector<256x32xbf16>, vector<32x3xbf16>, vector<256x3xf32> -> vector<256x3xf32>
    %321 = arith.addf %314, %320 : vector<256x3xf32>
    %c1_319 = arith.constant 1 : index
    %c1_320 = arith.constant 1 : index
    %c0_321 = arith.constant 0 : index
    %322 = vector.load %arg13[%c1_319, %c1_320, %c0_321] : memref<18x18x64xf32, #tpu.memory_space<vmem>>, vector<16x16x32xf32>
    %323 = vector.shape_cast %322 : vector<16x16x32xf32> to vector<256x32xf32>
    %324 = arith.truncf %323 : vector<256x32xf32> to vector<256x32xbf16>
    %c4_322 = arith.constant 4 : index
    %c0_323 = arith.constant 0 : index
    %c0_324 = arith.constant 0 : index
    %325 = vector.load %arg10[%c4_322, %c0_323, %c0_324] : memref<9x32x3xbf16, #tpu.memory_space<vmem>>, vector<1x32x3xbf16>
    %326 = vector.shape_cast %325 : vector<1x32x3xbf16> to vector<32x3xbf16>
    %cst_325 = arith.constant dense<0.000000e+00> : vector<256x3xf32>
    %327 = tpu.matmul %324, %326, %cst_325 {dimension_numbers = #tpu.dot_dimension_numbers<[1], [0], [0], [1], [0, 0, 1, 1], [], []>} : vector<256x32xbf16>, vector<32x3xbf16>, vector<256x3xf32> -> vector<256x3xf32>
    %328 = arith.addf %321, %327 : vector<256x3xf32>
    %c1_326 = arith.constant 1 : index
    %c2_327 = arith.constant 2 : index
    %c0_328 = arith.constant 0 : index
    %329 = vector.load %arg13[%c1_326, %c2_327, %c0_328] : memref<18x18x64xf32, #tpu.memory_space<vmem>>, vector<16x16x32xf32>
    %330 = vector.shape_cast %329 : vector<16x16x32xf32> to vector<256x32xf32>
    %331 = arith.truncf %330 : vector<256x32xf32> to vector<256x32xbf16>
    %c5_329 = arith.constant 5 : index
    %c0_330 = arith.constant 0 : index
    %c0_331 = arith.constant 0 : index
    %332 = vector.load %arg10[%c5_329, %c0_330, %c0_331] : memref<9x32x3xbf16, #tpu.memory_space<vmem>>, vector<1x32x3xbf16>
    %333 = vector.shape_cast %332 : vector<1x32x3xbf16> to vector<32x3xbf16>
    %cst_332 = arith.constant dense<0.000000e+00> : vector<256x3xf32>
    %334 = tpu.matmul %331, %333, %cst_332 {dimension_numbers = #tpu.dot_dimension_numbers<[1], [0], [0], [1], [0, 0, 1, 1], [], []>} : vector<256x32xbf16>, vector<32x3xbf16>, vector<256x3xf32> -> vector<256x3xf32>
    %335 = arith.addf %328, %334 : vector<256x3xf32>
    %c2_333 = arith.constant 2 : index
    %c0_334 = arith.constant 0 : index
    %c0_335 = arith.constant 0 : index
    %336 = vector.load %arg13[%c2_333, %c0_334, %c0_335] : memref<18x18x64xf32, #tpu.memory_space<vmem>>, vector<16x16x32xf32>
    %337 = vector.shape_cast %336 : vector<16x16x32xf32> to vector<256x32xf32>
    %338 = arith.truncf %337 : vector<256x32xf32> to vector<256x32xbf16>
    %c6_336 = arith.constant 6 : index
    %c0_337 = arith.constant 0 : index
    %c0_338 = arith.constant 0 : index
    %339 = vector.load %arg10[%c6_336, %c0_337, %c0_338] : memref<9x32x3xbf16, #tpu.memory_space<vmem>>, vector<1x32x3xbf16>
    %340 = vector.shape_cast %339 : vector<1x32x3xbf16> to vector<32x3xbf16>
    %cst_339 = arith.constant dense<0.000000e+00> : vector<256x3xf32>
    %341 = tpu.matmul %338, %340, %cst_339 {dimension_numbers = #tpu.dot_dimension_numbers<[1], [0], [0], [1], [0, 0, 1, 1], [], []>} : vector<256x32xbf16>, vector<32x3xbf16>, vector<256x3xf32> -> vector<256x3xf32>
    %342 = arith.addf %335, %341 : vector<256x3xf32>
    %c2_340 = arith.constant 2 : index
    %c1_341 = arith.constant 1 : index
    %c0_342 = arith.constant 0 : index
    %343 = vector.load %arg13[%c2_340, %c1_341, %c0_342] : memref<18x18x64xf32, #tpu.memory_space<vmem>>, vector<16x16x32xf32>
    %344 = vector.shape_cast %343 : vector<16x16x32xf32> to vector<256x32xf32>
    %345 = arith.truncf %344 : vector<256x32xf32> to vector<256x32xbf16>
    %c7_343 = arith.constant 7 : index
    %c0_344 = arith.constant 0 : index
    %c0_345 = arith.constant 0 : index
    %346 = vector.load %arg10[%c7_343, %c0_344, %c0_345] : memref<9x32x3xbf16, #tpu.memory_space<vmem>>, vector<1x32x3xbf16>
    %347 = vector.shape_cast %346 : vector<1x32x3xbf16> to vector<32x3xbf16>
    %cst_346 = arith.constant dense<0.000000e+00> : vector<256x3xf32>
    %348 = tpu.matmul %345, %347, %cst_346 {dimension_numbers = #tpu.dot_dimension_numbers<[1], [0], [0], [1], [0, 0, 1, 1], [], []>} : vector<256x32xbf16>, vector<32x3xbf16>, vector<256x3xf32> -> vector<256x3xf32>
    %349 = arith.addf %342, %348 : vector<256x3xf32>
    %c2_347 = arith.constant 2 : index
    %c2_348 = arith.constant 2 : index
    %c0_349 = arith.constant 0 : index
    %350 = vector.load %arg13[%c2_347, %c2_348, %c0_349] : memref<18x18x64xf32, #tpu.memory_space<vmem>>, vector<16x16x32xf32>
    %351 = vector.shape_cast %350 : vector<16x16x32xf32> to vector<256x32xf32>
    %352 = arith.truncf %351 : vector<256x32xf32> to vector<256x32xbf16>
    %c8_350 = arith.constant 8 : index
    %c0_351 = arith.constant 0 : index
    %c0_352 = arith.constant 0 : index
    %353 = vector.load %arg10[%c8_350, %c0_351, %c0_352] : memref<9x32x3xbf16, #tpu.memory_space<vmem>>, vector<1x32x3xbf16>
    %354 = vector.shape_cast %353 : vector<1x32x3xbf16> to vector<32x3xbf16>
    %cst_353 = arith.constant dense<0.000000e+00> : vector<256x3xf32>
    %355 = tpu.matmul %352, %354, %cst_353 {dimension_numbers = #tpu.dot_dimension_numbers<[1], [0], [0], [1], [0, 0, 1, 1], [], []>} : vector<256x32xbf16>, vector<32x3xbf16>, vector<256x3xf32> -> vector<256x3xf32>
    %356 = arith.addf %349, %355 : vector<256x3xf32>
    %c0_354 = arith.constant 0 : index
    %c0_355 = arith.constant 0 : index
    %357 = vector.load %arg11[%c0_354, %c0_355] : memref<1x3xf32, #tpu.memory_space<vmem>>, vector<1x3xf32>
    %358 = vector.broadcast %357 : vector<1x3xf32> to vector<256x3xf32>
    %359 = arith.addf %356, %358 : vector<256x3xf32>
    %cst_356 = arith.constant 0.000000e+00 : f32
    %360 = vector.broadcast %cst_356 : f32 to vector<256x3xf32>
    %361 = arith.maximumf %359, %360 : vector<256x3xf32>
    %362 = vector.shape_cast %361 : vector<256x3xf32> to vector<16x16x3xf32>
    %363 = arith.addf %362, %7 : vector<16x16x3xf32>
    %c0_357 = arith.constant 0 : index
    %c0_358 = arith.constant 0 : index
    %c0_359 = arith.constant 0 : index
    %c0_360 = arith.constant 0 : index
    %364 = vector.load %arg12[%c0_357, %c0_358, %c0_359, %c0_360] : memref<1x16x16x3xf32, #tpu.memory_space<vmem>>, vector<1x16x16x3xf32>
    %365 = vector.shape_cast %364 : vector<1x16x16x3xf32> to vector<16x16x3xf32>
    %366 = vector.shape_cast %363 : vector<16x16x3xf32> to vector<1x16x16x3xf32>
    tpu.vector_store %arg12[%c0_357, %c0_358, %c0_359, %c0_360], %366 {strides = array<i32>} : memref<1x16x16x3xf32, #tpu.memory_space<vmem>>, vector<1x16x16x3xf32>,
    return
  }
  func.func @transform_0(%arg0: i32) -> (i32, i32, i32, i32) {
    %c0_i32 = arith.constant 0 : i32
    %c0_i32_0 = arith.constant 0 : i32
    %c0_i32_1 = arith.constant 0 : i32
    %c0_i32_2 = arith.constant 0 : i32
    return %arg0, %c0_i32, %c0_i32_0, %c0_i32_1 : i32, i32, i32, i32
  }
  func.func @transform_1(%arg0: i32) -> (i32, i32, i32) {
    %c0_i32 = arith.constant 0 : i32
    %c0_i32_0 = arith.constant 0 : i32
    %c0_i32_1 = arith.constant 0 : i32
    %c0_i32_2 = arith.constant 0 : i32
    return %c0_i32, %c0_i32_0, %c0_i32_1 : i32, i32, i32
  }
  func.func @transform_2(%arg0: i32) -> (i32, i32) {
    %c0_i32 = arith.constant 0 : i32
    %c0_i32_0 = arith.constant 0 : i32
    %c0_i32_1 = arith.constant 0 : i32
    return %c0_i32, %c0_i32_0 : i32, i32
  }
  func.func @transform_3(%arg0: i32) -> (i32, i32, i32) {
    %c0_i32 = arith.constant 0 : i32
    %c0_i32_0 = arith.constant 0 : i32
    %c0_i32_1 = arith.constant 0 : i32
    %c0_i32_2 = arith.constant 0 : i32
    return %c0_i32, %c0_i32_0, %c0_i32_1 : i32, i32, i32
  }
  func.func @transform_4(%arg0: i32) -> (i32, i32) {
    %c0_i32 = arith.constant 0 : i32
    %c0_i32_0 = arith.constant 0 : i32
    %c0_i32_1 = arith.constant 0 : i32
    return %c0_i32, %c0_i32_0 : i32, i32
  }
  func.func @transform_5(%arg0: i32) -> (i32, i32, i32) {
    %c0_i32 = arith.constant 0 : i32
    %c0_i32_0 = arith.constant 0 : i32
    %c0_i32_1 = arith.constant 0 : i32
    %c0_i32_2 = arith.constant 0 : i32
    return %c0_i32, %c0_i32_0, %c0_i32_1 : i32, i32, i32
  }
  func.func @transform_6(%arg0: i32) -> (i32, i32) {
    %c0_i32 = arith.constant 0 : i32
    %c0_i32_0 = arith.constant 0 : i32
    %c0_i32_1 = arith.constant 0 : i32
    return %c0_i32, %c0_i32_0 : i32, i32
  }
  func.func @transform_7(%arg0: i32) -> (i32, i32, i32) {
    %c0_i32 = arith.constant 0 : i32
    %c0_i32_0 = arith.constant 0 : i32
    %c0_i32_1 = arith.constant 0 : i32
    %c0_i32_2 = arith.constant 0 : i32
    return %c0_i32, %c0_i32_0, %c0_i32_1 : i32, i32, i32
  }
  func.func @transform_8(%arg0: i32) -> (i32, i32) {
    %c0_i32 = arith.constant 0 : i32
    %c0_i32_0 = arith.constant 0 : i32
    %c0_i32_1 = arith.constant 0 : i32
    return %c0_i32, %c0_i32_0 : i32, i32
  }
  func.func @transform_9(%arg0: i32) -> (i32, i32, i32) {
    %c0_i32 = arith.constant 0 : i32
    %c0_i32_0 = arith.constant 0 : i32
    %c0_i32_1 = arith.constant 0 : i32
    %c0_i32_2 = arith.constant 0 : i32
    return %c0_i32, %c0_i32_0, %c0_i32_1 : i32, i32, i32
  }
  func.func @transform_10(%arg0: i32) -> (i32, i32) {
    %c0_i32 = arith.constant 0 : i32
    %c0_i32_0 = arith.constant 0 : i32
    %c0_i32_1 = arith.constant 0 : i32
    return %c0_i32, %c0_i32_0 : i32, i32
  }
  func.func @transform_11(%arg0: i32) -> (i32, i32, i32, i32) {
    %c0_i32 = arith.constant 0 : i32
    %c0_i32_0 = arith.constant 0 : i32
    %c0_i32_1 = arith.constant 0 : i32
    %c0_i32_2 = arith.constant 0 : i32
    return %arg0, %c0_i32, %c0_i32_0, %c0_i32_1 : i32, i32, i32, i32
  }
}

</mosaic_0001>

<bundles_post_ra>
// kernel: shading_corrector.1
= control target key start
LH: loop header
LB: loop body
LE: loop exit
PB: predicated region body
PF: predicated region fallthrough
CT: control target
= control target key end

     0   :  { %s19760_s17 = smov 0   ;;  %s22663_s0 = inlined_call_operand.vmem [shape: f32[2,16,16,3], index: 0, kind: input, shape index: {}]   ;;  %s22664_s1 = inlined_call_operand.vmem [shape: bf16[9,3,32], index: 1, kind: input, shape index: {}]   ;;  %s22665_s2 = inlined_call_operand.vmem [shape: f32[1,32], index: 2, kind: input, shape index: {}]   ;;  %s22666_s3 = inlined_call_operand.vmem [shape: bf16[9,32,64], index: 3, kind: input, shape index: {}]   ;;  %s22667_s4 = inlined_call_operand.vmem [shape: f32[1,64], index: 4, kind: input, shape index: {}]   ;;  %s22668_s5 = inlined_call_operand.vmem [shape: bf16[9,64,64], index: 5, kind: input, shape index: {}]   ;;  %s22669_s6 = inlined_call_operand.vmem [shape: f32[1,64], index: 6, kind: input, shape index: {}]   ;;  %s22670_s7 = inlined_call_operand.vmem [shape: bf16[9,64,32], index: 7, kind: input, shape index: {}]   ;;  %s22671_s8 = inlined_call_operand.vmem [shape: f32[1,32], index: 8, kind: input, shape index: {}]   ;;  %s22672_s9 = inlined_call_operand.vmem [shape: bf16[9,32,3], index: 9, kind: input, shape index: {}]   ;;  %s22673_s10 = inlined_call_operand.vmem [shape: f32[1,3], index: 10, kind: input, shape index: {}]   ;;  %s22674_s11 = inlined_call_operand.vmem [shape: f32[2,16,16,3], index: 11, kind: output, shape index: {}]  }
   0x1 LB: > { %s14733_s18 = sadd.s32 4294967295, %s19696_s17   ;;  %p14737_p0 = scmp.ge.s32.totalorder %s19696_s17, 1  ;;  %s19696_s17 = sphi %s19760_s17, %s21_s17  }
   0x2   : > { %p337_p1 = scmp.lt.s32.totalorder %s19696_s17, 3 }
   0x4   : > { %p338_p2 = pnand %p14737_p0, %p337_p1 }
   0x6   : > { %341 = sbr.rel (%p338_p2) target bundleno = 3515 (0xdbb), region = 64 }
   0xd   : > { %v14742_v0 = vld [vmem:[%s22664_s1 + $0x2] sm:$0x3]  ;;  %vm647_vm0 = vcmask 1040384   ;;  %vm648_vm1 = vcmask 1041408   ;;  %vm388_vm2 = vcmask 523264   ;;  %v19698_v1 = vmov 65535  }
   0xe   : > { %v649_v2 = vsel %vm647_vm0, 4294967295, %v19698_v1  ;;  %v14809_v3 = vld [vmem:[%s22664_s1 + $0x8] sm:$0x3]  ;;  %vm391_vm3 = vcmask 517120   ;;  %v19699_v5 = vmov 0.0   ;;  %p377_p3 = scmp.lt.s32.totalorder %s14733_s18, 1 }
   0xf   : > { %v19774_v4 = vsel %vm648_vm1, %v649_v2, 0  ;;  %389 = vst.msk [vmem:[#allocation2] sm:$0xff] %vm388_vm2, %v19699_v5  ;;  %390 = vst.msk [vmem:[#allocation2 + $0x8] sm:$0xff] %vm388_vm2, %v19699_v5  ;;  %v548_v6 = vld [vmem:[%s22664_s1] sm:$0x3]  ;;  %vm397_vm4 = vcmask 516096  }
  0x10   : > { %392 = vst.msk [vmem:[#allocation2 + $0x10] sm:$0x3] %vm391_vm3, %v19699_v5  ;;  %396 = vst.msk [vmem:[#allocation2 + $0x1a8] sm:$0x3] %vm391_vm3, %v19699_v5  ;;  %v14826_v7 = vld [vmem:[%s22664_s1 + $0xa] sm:$0x3]  ;;  %v652_v8 = vand.u32 %v14742_v0, %v19774_v4  ;;  %v19788_v9 = vand.u32 %v14809_v3, %v19774_v4  ;;  %v19791_v10 = vand.u32 %v19774_v4, %v548_v6 }
  0x11   : > { %394 = vst.msk [vmem:[#allocation2 + $0x198] sm:$0xff] %vm388_vm2, %v19699_v5  ;;  %395 = vst.msk [vmem:[#allocation2 + $0x1a0] sm:$0xff] %vm388_vm2, %v19699_v5  ;;  %v19794_v11 = vand.u32 %v14826_v7, %v19774_v4  ;;  %s22745_s18 = smov (!%p377_p3, %s14733_s18), 1  ;;  %vm467_vm5 = vcmask 23552   ;;  %v14843_v31 = vld [vmem:[%s22664_s1 + $0xc] sm:$0x3] }
  0x12   : > { %16616 = vmatprep.subr.bf16.mxu1 %v652_v8  ;;  %16752 = vmatprep.subr.bf16.mxu0 %v19788_v9  ;;  %417 = vst.msk [vmem:[#allocation2 + $0x29] sm:$0x1] %vm397_vm4, %v19699_v5  ;;  %398 = vst.msk [vmem:[#allocation2] sm:$0x1] %vm397_vm4, %v19699_v5  ;;  %s15777_s27 = sshll.u32 %s22745_s18, 8  ;;  %v19966_v47 = vand.u32 %v14843_v31, %v19774_v4  ;;  %vm3157_vm6 = vcmask 261120  }
  0x13   : > { %399 = vst.msk [vmem:[#allocation2 + $0x18] sm:$0x1] %vm397_vm4, %v19699_v5  ;;  %400 = vst.msk [vmem:[#allocation2 + $0x30] sm:$0x1] %vm397_vm4, %v19699_v5  ;;  %16617 = vmatpush3.bf16.msra.mxu1 %v652_v8  ;;  %16753 = vmatpush3.bf16.msra.mxu0 %v19788_v9  ;;  %s19842_s30 = scalar_lea.vmem %s22663_s0, %s15777_s27  ;;  %v14775_v35 = vld [vmem:[%s22664_s1 + $0x4] sm:$0x3]  ;;  %s22533_s29 = scalar_lea.vmem %s22674_s11, %s15777_s27 }
  0x14   : > { %401 = vst.msk [vmem:[#allocation2 + $0x48] sm:$0x1] %vm397_vm4, %v19699_v5  ;;  %402 = vst.msk [vmem:[#allocation2 + $0x60] sm:$0x1] %vm397_vm4, %v19699_v5  ;;  %16650 = vmatprep.subr.bf16.mxu1 %v19791_v10  ;;  %16786 = vmatprep.subr.bf16.mxu0 %v19794_v11  ;;  %v19847_v12 = vld [vmem:[%s19842_s30] sm:$0xff]  ;;  %v19850_v13 = vld [vmem:[%s19842_s30 + $0x8] sm:$0xff]  ;;  %v19973_v49 = vand.u32 %v14775_v35, %v19774_v4 }
  0x15   : > { %403 = vst.msk [vmem:[#allocation2 + $0x78] sm:$0x1] %vm397_vm4, %v19699_v5  ;;  %404 = vst.msk [vmem:[#allocation2 + $0x90] sm:$0x1] %vm397_vm4, %v19699_v5  ;;  %v19853_v14 = vld [vmem:[%s19842_s30 + $0x10] sm:$0xff]  ;;  %v19860_v17 = vld [vmem:[%s19842_s30 + $0x18] sm:$0xff] }
  0x16   : > { %405 = vst.msk [vmem:[#allocation2 + $0xa8] sm:$0x1] %vm397_vm4, %v19699_v5  ;;  %406 = vst.msk [vmem:[#allocation2 + $0xc0] sm:$0x1] %vm397_vm4, %v19699_v5  ;;  %v549_v15 = vld [vmem:[#allocation2 + $0x1] sm:$0xff]  ;;  %v19873_v21 = vld [vmem:[%s19842_s30 + $0x30] sm:$0xff] }
  0x17   : > { %407 = vst.msk [vmem:[#allocation2 + $0xd8] sm:$0x1] %vm397_vm4, %v19699_v5  ;;  %408 = vst.msk [vmem:[#allocation2 + $0xf0] sm:$0x1] %vm397_vm4, %v19699_v5  ;;  %v550_v16 = vld [vmem:[#allocation2 + $0x9] sm:$0xff]  ;;  %v19867_v19 = vld [vmem:[%s19842_s30 + $0x20] sm:$0xff] }
  0x18   : > { %409 = vst.msk [vmem:[#allocation2 + $0x108] sm:$0x1] %vm397_vm4, %v19699_v5  ;;  %410 = vst.msk [vmem:[#allocation2 + $0x120] sm:$0x1] %vm397_vm4, %v19699_v5  ;;  %v581_v18 = vpack.c.bf16 %v550_v16, %v549_v15  ;;  %v19870_v20 = vld [vmem:[%s19842_s30 + $0x28] sm:$0xff]  ;;  %v19880_v22 = vld [vmem:[%s19842_s30 + $0x38] sm:$0xff] }
  0x19   : > { %411 = vst.msk [vmem:[#allocation2 + $0x138] sm:$0x1] %vm397_vm4, %v19699_v5  ;;  %412 = vst.msk [vmem:[#allocation2 + $0x150] sm:$0x1] %vm397_vm4, %v19699_v5  ;;  %v19885_v23 = vld [vmem:[%s19842_s30 + $0x40] sm:$0xff]  ;;  %v19888_v24 = vld [vmem:[%s19842_s30 + $0x48] sm:$0xff] }
  0x1a   : > { %413 = vst.msk [vmem:[#allocation2 + $0x168] sm:$0x1] %vm397_vm4, %v19699_v5  ;;  %414 = vst.msk [vmem:[#allocation2 + $0x180] sm:$0x1] %vm397_vm4, %v19699_v5  ;;  %16618 = vmatprep.mubr.msk.bf16.mxu1 %vm467_vm5, %v581_v18  ;;  %v19898_v25 = vld [vmem:[%s19842_s30 + $0x50] sm:$0xff]  ;;  %v19901_v26 = vld [vmem:[%s19842_s30 + $0x58] sm:$0xff] }
  0x1b   : > { %415 = vst.msk [vmem:[#allocation2 + $0x198] sm:$0x1] %vm397_vm4, %v19699_v5  ;;  %416 = vst.msk [vmem:[#allocation2 + $0x11] sm:$0x1] %vm397_vm4, %v19699_v5  ;;  %v19904_v27 = vld [vmem:[%s19842_s30 + $0x60] sm:$0xff]  ;;  %v19911_v28 = vld [vmem:[%s19842_s30 + $0x68] sm:$0xff] }
  0x1c   : > { %418 = vst.msk [vmem:[#allocation2 + $0x41] sm:$0x1] %vm397_vm4, %v19699_v5  ;;  %419 = vst.msk [vmem:[#allocation2 + $0x59] sm:$0x1] %vm397_vm4, %v19699_v5  ;;  %v19916_v29 = vld [vmem:[%s19842_s30 + $0x70] sm:$0xff]  ;;  %v19919_v30 = vld [vmem:[%s19842_s30 + $0x78] sm:$0xff] }
  0x1d   : > { %420 = vst.msk [vmem:[#allocation2 + $0x71] sm:$0x1] %vm397_vm4, %v19699_v5  ;;  %421 = vst.msk [vmem:[#allocation2 + $0x89] sm:$0x1] %vm397_vm4, %v19699_v5  ;;  %v19931_v32 = vld [vmem:[%s19842_s30 + $0x80] sm:$0xff]  ;;  %v19934_v33 = vld [vmem:[%s19842_s30 + $0x88] sm:$0xff] }
  0x1e   : > { %422 = vst.msk [vmem:[#allocation2 + $0xa1] sm:$0x1] %vm397_vm4, %v19699_v5  ;;  %423 = vst.msk [vmem:[#allocation2 + $0xb9] sm:$0x1] %vm397_vm4, %v19699_v5  ;;  %v19937_v34 = vld [vmem:[%s19842_s30 + $0x90] sm:$0xff]  ;;  %v19947_v36 = vld [vmem:[%s19842_s30 + $0x98] sm:$0xff] }
  0x1f   : > { %424 = vst.msk [vmem:[#allocation2 + $0xd1] sm:$0x1] %vm397_vm4, %v19699_v5  ;;  %425 = vst.msk [vmem:[#allocation2 + $0xe9] sm:$0x1] %vm397_vm4, %v19699_v5  ;;  %v19952_v37 = vld [vmem:[%s19842_s30 + $0xa0] sm:$0xff]  ;;  %v19955_v38 = vld [vmem:[%s19842_s30 + $0xa8] sm:$0xff] }
  0x20   : > { %426 = vst.msk [vmem:[#allocation2 + $0x101] sm:$0x1] %vm397_vm4, %v19699_v5  ;;  %427 = vst.msk [vmem:[#allocation2 + $0x119] sm:$0x1] %vm397_vm4, %v19699_v5  ;;  %v19990_v56 = vld [vmem:[%s19842_s30 + $0xb0] sm:$0xff]  ;;  %v19993_v57 = vld [vmem:[%s19842_s30 + $0xb8] sm:$0xff] }
  0x21   : > { %428 = vst.msk [vmem:[#allocation2 + $0x131] sm:$0x1] %vm397_vm4, %v19699_v5  ;;  %429 = vst.msk [vmem:[#allocation2 + $0x149] sm:$0x1] %vm397_vm4, %v19699_v5  ;;  %v19996_v58 = vld [vmem:[%s19842_s30 + $0xc0] sm:$0xff]  ;;  %v20005_v59 = vld [vmem:[%s19842_s30 + $0xc8] sm:$0xff] }
  0x22   : > { %430 = vst.msk [vmem:[#allocation2 + $0x161] sm:$0x1] %vm397_vm4, %v19699_v5  ;;  %431 = vst.msk [vmem:[#allocation2 + $0x179] sm:$0x1] %vm397_vm4, %v19699_v5  ;;  %v20016_v62 = vld [vmem:[%s19842_s30 + $0xd0] sm:$0xff]  ;;  %v20021_v63 = vld [vmem:[%s19842_s30 + $0xd8] sm:$0xff] }
  0x23   : > { %432 = vst.msk [vmem:[#allocation2 + $0x191] sm:$0x1] %vm397_vm4, %v19699_v5  ;;  %433 = vst.msk [vmem:[#allocation2 + $0x1a9] sm:$0x1] %vm397_vm4, %v19699_v5  ;;  %v20026_v0 = vld [vmem:[%s19842_s30 + $0xe0] sm:$0xff]  ;;  %v20029_v1 = vld [vmem:[%s19842_s30 + $0xe8] sm:$0xff] }
  0x24   : > { %468 = vst.msk [vmem:[#allocation2 + $0x19] sm:$0xff] %vm467_vm5, %v19847_v12  ;;  %469 = vst.msk [vmem:[#allocation2 + $0x21] sm:$0xff] %vm467_vm5, %v19850_v13 }
  0x25   : > { %470 = vst.msk [vmem:[#allocation2 + $0x31] sm:$0xff] %vm467_vm5, %v19853_v14  ;;  %471 = vst.msk [vmem:[#allocation2 + $0x39] sm:$0xff] %vm467_vm5, %v19860_v17 }
  0x26   : > { %472 = vst.msk [vmem:[#allocation2 + $0x49] sm:$0xff] %vm467_vm5, %v19867_v19  ;;  %473 = vst.msk [vmem:[#allocation2 + $0x51] sm:$0xff] %vm467_vm5, %v19870_v20 }
  0x27   : > { %474 = vst.msk [vmem:[#allocation2 + $0x61] sm:$0xff] %vm467_vm5, %v19873_v21  ;;  %22698 = vst [vmem:[#allocation3_spill] sm:$0xff] %v19885_v23 }
  0x28   : > { %22699 = vst [vmem:[#allocation4_spill] sm:$0xff] %v19888_v24  ;;  %475 = vst.msk [vmem:[#allocation2 + $0x69] sm:$0xff] %vm467_vm5, %v19880_v22 }
  0x29   : > { %476 = vst.msk [vmem:[#allocation2 + $0x79] sm:$0xff] %vm467_vm5, %v19885_v23  ;;  %477 = vst.msk [vmem:[#allocation2 + $0x81] sm:$0xff] %vm467_vm5, %v19888_v24  ;;  %v1028_v23 = vld [vmem:[#allocation2 + $0xa] sm:$0xff] }
  0x2a   : > { %22700 = vst [vmem:[#allocation5_spill] sm:$0xff] %v19901_v26  ;;  %22701 = vst [vmem:[#allocation6_spill] sm:$0xff] %v19904_v27 }
  0x2b   : > { %478 = vst.msk [vmem:[#allocation2 + $0x91] sm:$0xff] %vm467_vm5, %v19898_v25  ;;  %479 = vst.msk [vmem:[#allocation2 + $0x99] sm:$0xff] %vm467_vm5, %v19901_v26  ;;  %v551_v39 = vld [vmem:[#allocation2 + $0x19] sm:$0xff]  ;;  %v552_v40 = vld [vmem:[#allocation2 + $0x21] sm:$0xff] }
  0x2c   : > { %22702 = vst [vmem:[#allocation7_spill] sm:$0xff] %v19911_v28  ;;  %480 = vst.msk [vmem:[#allocation2 + $0xa9] sm:$0xff] %vm467_vm5, %v19904_v27  ;;  %v1617_v41 = vld [vmem:[#allocation2 + $0x31] sm:$0xff]  ;;  %v582_v42 = vpack.c.bf16 %v552_v40, %v551_v39  ;;  %v1618_v43 = vld [vmem:[#allocation2 + $0x39] sm:$0xff] }
  0x2d   : > { %22703 = vst [vmem:[#allocation8_spill] sm:$0xff] %v19916_v29  ;;  %22704 = vst [vmem:[#allocation9_spill] sm:$0xff] %v19919_v30  ;;  %v19963_v44 = vpack.c.bf16 %v1618_v43, %v1617_v41  ;;  %v555_v45 = vld [vmem:[#allocation2 + $0x49] sm:$0xff]  ;;  %v556_v46 = vld [vmem:[#allocation2 + $0x51] sm:$0xff] }
  0x2e   : > { %481 = vst.msk [vmem:[#allocation2 + $0xb1] sm:$0xff] %vm467_vm5, %v19911_v28  ;;  %482 = vst.msk [vmem:[#allocation2 + $0xc1] sm:$0xff] %vm467_vm5, %v19916_v29  ;;  %16619 = vmatmul.mubr.msk.bf16.vlgmr.msra.gmra.mrb[0].mxu1 %vm467_vm5, %v582_v42  ;;  %16754 = vmatprep.mubr.msk.bf16.mxu0 %vm467_vm5, %v582_v42  ;;  %v19970_v48 = vpack.c.bf16 %v556_v46, %v555_v45  ;;  %v1621_v50 = vld [vmem:[#allocation2 + $0x61] sm:$0xff]  ;;  %v1911_v35 = vld [vmem:[#allocation2 + $0x32] sm:$0xff] }
  0x2f   : > { %483 = vst.msk [vmem:[#allocation2 + $0xc9] sm:$0xff] %vm467_vm5, %v19919_v30  ;;  %22705 = vst [vmem:[#allocation10_spill] sm:$0xff] %v19931_v32  ;;  %16651 = vmatpush3.bf16.msra.mxu1 %v19791_v10  ;;  %16755 = vmatmul.mubr.msk.bf16.vlgmr.msra.gmra.mrb[0].mxu0 %vm467_vm5, %v19963_v44  ;;  %v1622_v51 = vld [vmem:[#allocation2 + $0x69] sm:$0xff]  ;;  %v1909_v10 = vld [vmem:[#allocation2 + $0x1a] sm:$0xff] }
  0x30   : > { %22706 = vst [vmem:[#allocation11_spill] sm:$0xff] %v19934_v33  ;;  %22707 = vst [vmem:[#allocation12_spill] sm:$0xff] %v19937_v34  ;;  %16787 = vmatpush3.bf16.msra.mxu0 %v19794_v11  ;;  %16622 = vmatprep.mubr.msk.bf16.mxu1 %vm467_vm5, %v19963_v44  ;;  %v559_v52 = vld [vmem:[#allocation2 + $0x79] sm:$0xff]  ;;  %v560_v53 = vld [vmem:[#allocation2 + $0x81] sm:$0xff]  ;;  %v19985_v54 = vpack.c.bf16 %v1622_v51, %v1621_v50 }
  0x31   : > { %484 = vst.msk [vmem:[#allocation2 + $0xd9] sm:$0xff] %vm467_vm5, %v19931_v32  ;;  %485 = vst.msk [vmem:[#allocation2 + $0xe1] sm:$0xff] %vm467_vm5, %v19934_v33  ;;  %16758 = vmatprep.mubr.msk.bf16.mxu0 %vm467_vm5, %v19970_v48  ;;  %16820 = vmatprep.subr.bf16.mxu0 %v19966_v47  ;;  %v19987_v55 = vpack.c.bf16 %v560_v53, %v559_v52  ;;  %v1910_v11 = vld [vmem:[#allocation2 + $0x22] sm:$0xff]  ;;  %v20060_v39 = vld [vmem:[%s19842_s30 + $0xf0] sm:$0xff] }
  0x32   : > { %22708 = vst [vmem:[#allocation13_spill] sm:$0xff] %v19947_v36  ;;  %486 = vst.msk [vmem:[#allocation2 + $0xf1] sm:$0xff] %vm467_vm5, %v19937_v34  ;;  %16684 = vmatprep.subr.bf16.mxu1 %v19973_v49  ;;  %v1625_v60 = vld [vmem:[#allocation2 + $0x91] sm:$0xff]  ;;  %v1626_v61 = vld [vmem:[#allocation2 + $0x99] sm:$0xff]  ;;  %v20051_v16 = vpack.c.bf16 %v1910_v11, %v1909_v10 }
  0x33   : > { %22709 = vst [vmem:[#allocation14_spill] sm:$0xff] %v19952_v37  ;;  %22710 = vst [vmem:[#allocation15_spill] sm:$0xff] %v19955_v38  ;;  %v563_v2 = vld [vmem:[#allocation2 + $0xa9] sm:$0xff]  ;;  %v20037_v5 = vpack.c.bf16 %v1626_v61, %v1625_v60  ;;  %v20063_v40 = vld [vmem:[%s19842_s30 + $0xf8] sm:$0xff] }
  0x34   : > { %487 = vst.msk [vmem:[#allocation2 + $0xf9] sm:$0xff] %vm467_vm5, %v19947_v36  ;;  %488 = vst.msk [vmem:[#allocation2 + $0x109] sm:$0xff] %vm467_vm5, %v19952_v37  ;;  %v1912_v41 = vld [vmem:[#allocation2 + $0x3a] sm:$0xff]  ;;  %v1913_v45 = vld [vmem:[#allocation2 + $0x4a] sm:$0xff] }
  0x35   : > { %489 = vst.msk [vmem:[#allocation2 + $0x111] sm:$0xff] %vm467_vm5, %v19955_v38  ;;  %22711 = vst [vmem:[#allocation16_spill] sm:$0xff] %v19990_v56  ;;  %v564_v3 = vld [vmem:[#allocation2 + $0xb1] sm:$0xff]  ;;  %v1629_v7 = vld [vmem:[#allocation2 + $0xc1] sm:$0xff]  ;;  %v20076_v52 = vpack.c.bf16 %v1912_v41, %v1911_v35 }
  0x36   : > { %22712 = vst [vmem:[#allocation17_spill] sm:$0xff] %v19993_v57  ;;  %22713 = vst [vmem:[#allocation18_spill] sm:$0xff] %v19996_v58  ;;  %16623 = vmatmul.mubr.msk.bf16.gmra.mrb[4].mxu1 %vm467_vm5, %v19970_v48  ;;  %v20039_v6 = vpack.c.bf16 %v564_v3, %v563_v2  ;;  %v1630_v8 = vld [vmem:[#allocation2 + $0xc9] sm:$0xff]  ;;  %v1914_v46 = vld [vmem:[#allocation2 + $0x52] sm:$0xff] }
  0x37   : > { %490 = vst.msk [vmem:[#allocation2 + $0x121] sm:$0xff] %vm467_vm5, %v19990_v56  ;;  %491 = vst.msk [vmem:[#allocation2 + $0x129] sm:$0xff] %vm467_vm5, %v19993_v57  ;;  %16759 = vmatmul.mubr.msk.bf16.gmra.mrb[4].mxu0 %vm467_vm5, %v19985_v54  ;;  %16626 = vmatprep.mubr.msk.bf16.mxu1 %vm467_vm5, %v19985_v54  ;;  %v20049_v15 = vpack.c.bf16 %v1630_v8, %v1629_v7  ;;  %v14860_v51 = vld [vmem:[%s22664_s1 + $0xe] sm:$0x3]  ;;  %v20080_v60 = vpack.c.bf16 %v1914_v46, %v1913_v45  ;;  %v1915_v7 = vld [vmem:[#allocation2 + $0x62] sm:$0xff] }
  0x38   : > { %22714 = vst [vmem:[#allocation19_spill] sm:$0xff] %v20005_v59  ;;  %492 = vst.msk [vmem:[#allocation2 + $0x139] sm:$0xff] %vm467_vm5, %v19996_v58  ;;  %16762 = vmatprep.mubr.msk.bf16.mxu0 %vm467_vm5, %v19987_v55  ;;  %v567_v18 = vld [vmem:[#allocation2 + $0xd9] sm:$0xff]  ;;  %v568_v31 = vld [vmem:[#allocation2 + $0xe1] sm:$0xff]  ;;  %v20083_v2 = vand.u32 %v14860_v51, %v19774_v4 }
  0x39   : > { %493 = vst.msk [vmem:[#allocation2 + $0x141] sm:$0xff] %vm467_vm5, %v20005_v59  ;;  %22715 = vst [vmem:[#allocation20_spill] sm:$0xff] %v20016_v62  ;;  %v569_v42 = vld [vmem:[#allocation2 + $0xf1] sm:$0xff]  ;;  %v20071_v50 = vpack.c.bf16 %v568_v31, %v567_v18  ;;  %v1917_v11 = vld [vmem:[#allocation2 + $0x7a] sm:$0xff] }
  0x3a   : > { %22716 = vst [vmem:[#allocation21_spill] sm:$0xff] %v20021_v63  ;;  %494 = vst.msk [vmem:[#allocation2 + $0x151] sm:$0xff] %vm467_vm5, %v20016_v62  ;;  %v1916_v8 = vld [vmem:[#allocation2 + $0x6a] sm:$0xff]  ;;  %v1918_v18 = vld [vmem:[#allocation2 + $0x82] sm:$0xff] }
  0x3b   : > { %22717 = vst [vmem:[#allocation22_spill] sm:$0xff] %v20026_v0  ;;  %22718 = vst [vmem:[#allocation23_spill] sm:$0xff] %v20029_v1  ;;  %v570_v43 = vld [vmem:[#allocation2 + $0xf9] sm:$0xff]  ;;  %v571_v61 = vld [vmem:[#allocation2 + $0x109] sm:$0xff]  ;;  %v20097_v41 = vpack.c.bf16 %v1916_v8, %v1915_v7 }
  0x3c   : > { %495 = vst.msk [vmem:[#allocation2 + $0x159] sm:$0xff] %vm467_vm5, %v20021_v63  ;;  %496 = vst.msk [vmem:[#allocation2 + $0x169] sm:$0xff] %vm467_vm5, %v20026_v0  ;;  %v20078_v53 = vpack.c.bf16 %v570_v43, %v569_v42  ;;  %v572_v3 = vld [vmem:[#allocation2 + $0x111] sm:$0xff]  ;;  %v20101_v43 = vpack.c.bf16 %v1918_v18, %v1917_v11  ;;  %v1920_v51 = vld [vmem:[#allocation2 + $0x9a] sm:$0xff] }
  0x3d   : > { %497 = vst.msk [vmem:[#allocation2 + $0x171] sm:$0xff] %vm467_vm5, %v20029_v1  ;;  %22719 = vst [vmem:[#allocation24_spill] sm:$0xff] %v20060_v39  ;;  %v20095_v35 = vpack.c.bf16 %v572_v3, %v571_v61  ;;  %v1921_v61 = vld [vmem:[#allocation2 + $0xaa] sm:$0xff]  ;;  %v1922_v3 = vld [vmem:[#allocation2 + $0xb2] sm:$0xff] }
  0x3e   : > { %16627 = vmatmul.mubr.msk.bf16.gmra.mrb[8].mxu1 %vm467_vm5, %v19987_v55  ;;  %22720 = vst [vmem:[#allocation25_spill] sm:$0xff] %v20063_v40  ;;  %498 = vst.msk [vmem:[#allocation2 + $0x181] sm:$0xff] %vm467_vm5, %v20060_v39  ;;  %v573_v10 = vld [vmem:[#allocation2 + $0x121] sm:$0xff]  ;;  %v574_v31 = vld [vmem:[#allocation2 + $0x129] sm:$0xff]  ;;  %v20117_v11 = vpack.c.bf16 %v1922_v3, %v1921_v61 }
  0x3f   : > { %16763 = vmatmul.mubr.msk.bf16.gmra.mrb[8].mxu0 %vm467_vm5, %v20037_v5  ;;  %16630 = vmatprep.mubr.msk.bf16.mxu1 %vm467_vm5, %v20037_v5  ;;  %499 = vst.msk [vmem:[#allocation2 + $0x189] sm:$0xff] %vm467_vm5, %v20063_v40  ;;  %v20099_v42 = vpack.c.bf16 %v574_v31, %v573_v10  ;;  %v575_v45 = vld [vmem:[#allocation2 + $0x139] sm:$0xff]  ;;  %v1923_v0 = vld [vmem:[#allocation2 + $0xc2] sm:$0xff]  ;;  %v1924_v39 = vld [vmem:[#allocation2 + $0xca] sm:$0xff] }
  0x40   : > { %16766 = vmatprep.mubr.msk.bf16.mxu0 %vm467_vm5, %v20039_v6  ;;  %v576_v46 = vld [vmem:[#allocation2 + $0x141] sm:$0xff]  ;;  %v502_v61 = vld [vmem:[#allocation2 + $0x18] sm:$0xff]  ;;  %v504_v38 = vld [vmem:[#allocation2 + $0x30] sm:$0xff] }
  0x41   : > { %v577_v1 = vld [vmem:[#allocation2 + $0x151] sm:$0xff]  ;;  %v20111_v7 = vpack.c.bf16 %v576_v46, %v575_v45  ;;  %v500_v59 = vld [vmem:[#allocation2] sm:$0xff]  ;;  %v501_v63 = vld [vmem:[#allocation2 + $0x8] sm:$0xff]  ;;  %v20129_v46 = vpack.c.bf16 %v1924_v39, %v1923_v0 }
  0x42   : > { %v1925_v45 = vld [vmem:[#allocation2 + $0xda] sm:$0xff]  ;;  %v1927_v58 = vld [vmem:[#allocation2 + $0xf2] sm:$0xff]  ;;  %v1931_v56 = vld [vmem:[#allocation2 + $0x122] sm:$0xff] }
  0x43   : > { %v578_v40 = vld [vmem:[#allocation2 + $0x159] sm:$0xff]  ;;  %v579_v18 = vld [vmem:[#allocation2 + $0x169] sm:$0xff] }
  0x44   : > { %v20115_v10 = vpack.c.bf16 %v578_v40, %v577_v1  ;;  %v580_v31 = vld [vmem:[#allocation2 + $0x171] sm:$0xff]  ;;  %v1926_v1 = vld [vmem:[#allocation2 + $0xe2] sm:$0xff]  ;;  %v1928_v62 = vld [vmem:[#allocation2 + $0xfa] sm:$0xff] }
  0x45   : > { %v20127_v40 = vpack.c.bf16 %v580_v31, %v579_v18  ;;  %v503_v3 = vld [vmem:[#allocation2 + $0x20] sm:$0xff]  ;;  %v505_v18 = vld [vmem:[#allocation2 + $0x38] sm:$0xff]  ;;  %v1929_v31 = vld [vmem:[#allocation2 + $0x10a] sm:$0xff]  ;;  %v20145_v39 = vpack.c.bf16 %v1928_v62, %v1927_v58 }
  0x46   : > { %16631 = vmatmul.mubr.msk.bf16.gmra.mrb[12].mxu1 %vm467_vm5, %v20039_v6  ;;  %v1930_v0 = vld [vmem:[#allocation2 + $0x112] sm:$0xff]  ;;  %v1932_v33 = vld [vmem:[#allocation2 + $0x12a] sm:$0xff]  ;;  %v508_v36 = vld [vmem:[#allocation2 + $0x60] sm:$0xff] }
  0x47   : > { %16767 = vmatmul.mubr.msk.bf16.gmra.mrb[12].mxu0 %vm467_vm5, %v20049_v15  ;;  %16634 = vmatprep.mubr.msk.bf16.mxu1 %vm467_vm5, %v20049_v15  ;;  %v507_v57 = vld [vmem:[#allocation2 + $0x50] sm:$0xff]  ;;  %v509_v32 = vld [vmem:[#allocation2 + $0x68] sm:$0xff]  ;;  %v513_v28 = vld [vmem:[#allocation2 + $0x98] sm:$0xff] }
  0x48   : > { %16788 = vmatprep.mubr.msk.bf16.mxu0 %vm467_vm5, %v20051_v16  ;;  %v1934_v58 = vld [vmem:[#allocation2 + $0x142] sm:$0xff]  ;;  %v512_v34 = vld [vmem:[#allocation2 + $0x90] sm:$0xff] }
  0x49   : > { %v1939_v30 = vld [vmem:[#allocation2 + $0x182] sm:$0xff]  ;;  %v1940_v27 = vld [vmem:[#allocation2 + $0x18a] sm:$0xff] }
  0x4a   : > { %v516_v29 = vld [vmem:[#allocation2 + $0xc0] sm:$0xff]  ;;  %v517_v24 = vld [vmem:[#allocation2 + $0xc8] sm:$0xff] }
  0x4b   : > { %v525_v26 = vld [vmem:[#allocation2 + $0x128] sm:$0xff] }
  0x4e   : > { %16635 = vmatmul.mubr.msk.bf16.gmra.mrb[16].mxu1 %vm467_vm5, %v20071_v50 }
  0x4f   : > { %16789 = vmatmul.mubr.msk.bf16.vlgmr.msra.gmra.mrb[0].mxu0 %vm467_vm5, %v20076_v52  ;;  %16638 = vmatprep.mubr.msk.bf16.mxu1 %vm467_vm5, %v20078_v53 }
  0x50   : > { %16821 = vmatpush3.bf16.msra.mxu0 %v19966_v47  ;;  %16792 = vmatprep.mubr.msk.bf16.mxu0 %vm467_vm5, %v20080_v60  ;;  %v1919_v47 = vld [vmem:[#allocation2 + $0x92] sm:$0xff] }
  0x51   : > { %16854 = vmatprep.subr.bf16.mxu0 %v20083_v2  ;;  %v20113_v8 = vpack.c.bf16 %v1920_v51, %v1919_v47  ;;  %v532_v47 = vpack.c.bf16 %v501_v63, %v500_v59  ;;  %v20131_v51 = vpack.c.bf16 %v1926_v1, %v1925_v45  ;;  %v14792_v59 = vld [vmem:[%s22664_s1 + $0x6] sm:$0x3]  ;;  %v20143_v63 = vpack.c.bf16 %v503_v3, %v502_v61 }
  0x52   : > { %v20147_v45 = vpack.c.bf16 %v505_v18, %v504_v38  ;;  %v20149_v1 = vpack.c.bf16 %v1930_v0, %v1929_v31  ;;  %v20152_v37 = vand.u32 %v14792_v59, %v19774_v4  ;;  %v1933_v38 = vld [vmem:[#allocation2 + $0x13a] sm:$0xff]  ;;  %v20166_v61 = vpack.c.bf16 %v1932_v33, %v1931_v56  ;;  %v1935_v0 = vld [vmem:[#allocation2 + $0x152] sm:$0xff]  ;;  %v1937_v33 = vld [vmem:[#allocation2 + $0x16a] sm:$0xff] }
  0x53   : > { %v20168_v3 = vpack.c.bf16 %v509_v32, %v508_v36  ;;  %v510_v18 = vld [vmem:[#allocation2 + $0x78] sm:$0xff]  ;;  %v511_v31 = vld [vmem:[#allocation2 + $0x80] sm:$0xff] }
  0x54   : > { %v1936_v59 = vld [vmem:[#allocation2 + $0x15a] sm:$0xff]  ;;  %v1938_v32 = vld [vmem:[#allocation2 + $0x172] sm:$0xff]  ;;  %v20180_v36 = vpack.c.bf16 %v511_v31, %v510_v18  ;;  %v20200_v18 = vpack.c.bf16 %v517_v24, %v516_v29  ;;  %v14877_v24 = vld [vmem:[%s22664_s1 + $0x10] sm:$0x3] }
  0x55   : > { %v20182_v56 = vpack.c.bf16 %v1936_v59, %v1935_v0  ;;  %v518_v31 = vld [vmem:[#allocation2 + $0xd8] sm:$0xff]  ;;  %v519_v0 = vld [vmem:[#allocation2 + $0xe0] sm:$0xff]  ;;  %v520_v59 = vld [vmem:[#allocation2 + $0xf0] sm:$0xff] }
  0x56   : > { %16639 = vmatmul.mubr.msk.bf16.gmra.mrb[20].mxu1 %vm467_vm5, %v20095_v35 }
  0x57   : > { %16793 = vmatmul.mubr.msk.bf16.gmra.mrb[4].mxu0 %vm467_vm5, %v20097_v41  ;;  %16642 = vmatprep.mubr.msk.bf16.mxu1 %vm467_vm5, %v20099_v42 }
  0x58   : > { %16796 = vmatprep.mubr.msk.bf16.mxu0 %vm467_vm5, %v20101_v43 }
  0x5e   : > { %16643 = vmatmul.mubr.msk.bf16.gmra.mrb[24].mxu1 %vm467_vm5, %v20111_v7 }
  0x5f   : > { %16797 = vmatmul.mubr.msk.bf16.gmra.mrb[8].mxu0 %vm467_vm5, %v20113_v8  ;;  %16646 = vmatprep.mubr.msk.bf16.mxu1 %vm467_vm5, %v20115_v10 }
  0x60   : > { %16800 = vmatprep.mubr.msk.bf16.mxu0 %vm467_vm5, %v20117_v11 }
  0x66   : > { %16647 = vmatmul.mubr.msk.bf16.gmra.mrb[28].mxu1 %vm467_vm5, %v20127_v40 }
  0x67   : > { %16801 = vmatmul.mubr.msk.bf16.gmra.mrb[12].mxu0 %vm467_vm5, %v20129_v46  ;;  %16652 = vmatprep.mubr.msk.bf16.mxu1 %vm467_vm5, %v532_v47  ;;  %v506_v47 = vld [vmem:[#allocation2 + $0x48] sm:$0xff] }
  0x68   : > { %16804 = vmatprep.mubr.msk.bf16.mxu0 %vm467_vm5, %v20131_v51  ;;  %v20164_v62 = vpack.c.bf16 %v507_v57, %v506_v47  ;;  %v20184_v57 = vpack.c.bf16 %v513_v28, %v512_v34  ;;  %v20186_v47 = vpack.c.bf16 %v1938_v32, %v1937_v33  ;;  %v20198_v34 = vpack.c.bf16 %v1940_v27, %v1939_v30  ;;  %v521_v33 = vld [vmem:[#allocation2 + $0xf8] sm:$0xff]  ;;  %v522_v30 = vld [vmem:[#allocation2 + $0x108] sm:$0xff]  ;;  %v523_v32 = vld [vmem:[#allocation2 + $0x110] sm:$0xff] }
  0x69   : > { %v20213_v27 = vpack.c.bf16 %v519_v0, %v518_v31  ;;  %v20215_v29 = vpack.c.bf16 %v521_v33, %v520_v59  ;;  %v20227_v31 = vpack.c.bf16 %v523_v32, %v522_v30  ;;  %v526_v0 = vld [vmem:[#allocation2 + $0x138] sm:$0xff]  ;;  %v527_v59 = vld [vmem:[#allocation2 + $0x140] sm:$0xff]  ;;  %v530_v30 = vld [vmem:[#allocation2 + $0x168] sm:$0xff] }
  0x6a   : > { %v529_v33 = vld [vmem:[#allocation2 + $0x158] sm:$0xff]  ;;  %v531_v32 = vld [vmem:[#allocation2 + $0x170] sm:$0xff] }
  0x6e   : > { %16653 = vmatmul.mubr.msk.bf16.vlgmr.msra.gmra.mrb[0].mxu1 %vm467_vm5, %v20143_v63 }
  0x6f   : > { %16685 = vmatpush3.bf16.msra.mxu1 %v19973_v49  ;;  %16805 = vmatmul.mubr.msk.bf16.gmra.mrb[16].mxu0 %vm467_vm5, %v20145_v39  ;;  %v20170_v49 = vpack.c.bf16 %v1934_v58, %v1933_v38  ;;  %v514_v38 = vld [vmem:[#allocation2 + $0xa8] sm:$0xff]  ;;  %v515_v58 = vld [vmem:[#allocation2 + $0xb0] sm:$0xff] }
  0x70   : > { %16656 = vmatprep.mubr.msk.bf16.mxu1 %vm467_vm5, %v20147_v45  ;;  %16808 = vmatprep.mubr.msk.bf16.mxu0 %vm467_vm5, %v20149_v1  ;;  %v20196_v28 = vpack.c.bf16 %v515_v58, %v514_v38  ;;  %v2891_v38 = vand.u32 %v14877_v24, %v19774_v4  ;;  %v524_v58 = vld [vmem:[#allocation2 + $0x120] sm:$0xff]  ;;  %v20239_v24 = vpack.c.bf16 %v527_v59, %v526_v0 }
  0x71   : > { %16718 = vmatprep.subr.bf16.mxu1 %v20152_v37  ;;  %v20229_v4 = vpack.c.bf16 %v525_v26, %v524_v58  ;;  %v1027_v58 = vld [vmem:[#allocation2 + $0x2] sm:$0xff]  ;;  %v20251_v0 = vpack.c.bf16 %v531_v32, %v530_v30 }
  0x72   : > { %v1059_v59 = vpack.c.bf16 %v1028_v23, %v1027_v58  ;;  %v2232_v23 = vld [vmem:[#allocation2 + $0x180] sm:$0xff] }
  0x76   : > { %16657 = vmatmul.mubr.msk.bf16.gmra.mrb[4].mxu1 %vm467_vm5, %v20164_v62 }
  0x77   : > { %16809 = vmatmul.mubr.msk.bf16.gmra.mrb[20].mxu0 %vm467_vm5, %v20166_v61  ;;  %16660 = vmatprep.mubr.msk.bf16.mxu1 %vm467_vm5, %v20168_v3 }
  0x78   : > { %16812 = vmatprep.mubr.msk.bf16.mxu0 %vm467_vm5, %v20170_v49 }
  0x7e   : > { %16661 = vmatmul.mubr.msk.bf16.gmra.mrb[8].mxu1 %vm467_vm5, %v20180_v36 }
  0x7f   : > { %16813 = vmatmul.mubr.msk.bf16.gmra.mrb[24].mxu0 %vm467_vm5, %v20182_v56  ;;  %16664 = vmatprep.mubr.msk.bf16.mxu1 %vm467_vm5, %v20184_v57 }
  0x80   : > { %16816 = vmatprep.mubr.msk.bf16.mxu0 %vm467_vm5, %v20186_v47 }
  0x86   : > { %16665 = vmatmul.mubr.msk.bf16.gmra.mrb[12].mxu1 %vm467_vm5, %v20196_v28 }
  0x87   : > { %16817 = vmatmul.mubr.msk.bf16.gmra.mrb[28].mxu0 %vm467_vm5, %v20198_v34  ;;  %16668 = vmatprep.mubr.msk.bf16.mxu1 %vm467_vm5, %v20200_v18 }
  0x88   : > { %16822 = vmatprep.mubr.msk.bf16.mxu0 %vm467_vm5, %v20147_v45 }
  0x8e   : > { %16669 = vmatmul.mubr.msk.bf16.gmra.mrb[16].mxu1 %vm467_vm5, %v20213_v27 }
  0x8f   : > { %16823 = vmatmul.mubr.msk.bf16.vlgmr.msra.gmra.mrb[0].mxu0 %vm467_vm5, %v20164_v62  ;;  %16672 = vmatprep.mubr.msk.bf16.mxu1 %vm467_vm5, %v20215_v29 }
  0x90   : > { %16855 = vmatpush3.bf16.msra.mxu0 %v20083_v2  ;;  %16826 = vmatprep.mubr.msk.bf16.mxu0 %vm467_vm5, %v20168_v3  ;;  %v528_v2 = vld [vmem:[#allocation2 + $0x150] sm:$0xff] }
  0x91   : > { %16888 = vmatprep.subr.bf16.mxu0 %v2891_v38  ;;  %v20241_v26 = vpack.c.bf16 %v529_v33, %v528_v2  ;;  %v2234_v2 = vld [vmem:[#allocation2 + $0x198] sm:$0xff]  ;;  %v2235_v33 = vld [vmem:[#allocation2 + $0x1a0] sm:$0xff] }
  0x92   : > { %v2251_v30 = vpack.c.bf16 %v2235_v33, %v2234_v2 }
  0x96   : > { %16673 = vmatmul.mubr.msk.bf16.gmra.mrb[20].mxu1 %vm467_vm5, %v20227_v31 }
  0x97   : > { %16827 = vmatmul.mubr.msk.bf16.gmra.mrb[4].mxu0 %vm467_vm5, %v20180_v36  ;;  %16676 = vmatprep.mubr.msk.bf16.mxu1 %vm467_vm5, %v20229_v4 }
  0x98   : > { %16830 = vmatprep.mubr.msk.bf16.mxu0 %vm467_vm5, %v20184_v57 }
  0x9e   : > { %16677 = vmatmul.mubr.msk.bf16.gmra.mrb[24].mxu1 %vm467_vm5, %v20239_v24 }
  0x9f   : > { %16831 = vmatmul.mubr.msk.bf16.gmra.mrb[8].mxu0 %vm467_vm5, %v20196_v28  ;;  %16680 = vmatprep.mubr.msk.bf16.mxu1 %vm467_vm5, %v20241_v26 }
  0xa0   : > { %16834 = vmatprep.mubr.msk.bf16.mxu0 %vm467_vm5, %v20200_v18 }
  0xa6   : > { %16681 = vmatmul.mubr.msk.bf16.gmra.mrb[28].mxu1 %vm467_vm5, %v20251_v0 }
  0xa7   : > { %16835 = vmatmul.mubr.msk.bf16.gmra.mrb[12].mxu0 %vm467_vm5, %v20213_v27  ;;  %16686 = vmatprep.mubr.msk.bf16.mxu1 %vm467_vm5, %v1059_v59 }
  0xa8   : > { %16838 = vmatprep.mubr.msk.bf16.mxu0 %vm467_vm5, %v20215_v29 }
  0xae   : > { %16687 = vmatmul.mubr.msk.bf16.vlgmr.msra.gmra.mrb[0].mxu1 %vm467_vm5, %v20051_v16 }
  0xaf   : > { %16719 = vmatpush3.bf16.msra.mxu1 %v20152_v37  ;;  %16839 = vmatmul.mubr.msk.bf16.gmra.mrb[16].mxu0 %vm467_vm5, %v20227_v31  ;;  %v2233_v37 = vld [vmem:[#allocation2 + $0x188] sm:$0xff] }
  0xb0   : > { %16690 = vmatprep.mubr.msk.bf16.mxu1 %vm467_vm5, %v20076_v52  ;;  %16842 = vmatprep.mubr.msk.bf16.mxu0 %vm467_vm5, %v20229_v4  ;;  %v20278_v16 = vpack.c.bf16 %v2233_v37, %v2232_v23 }
  0xb1   : > { %18290 = vmatprep.subr.bf16.mxu1 %v19788_v9 }
  0xb6   : > { %16691 = vmatmul.mubr.msk.bf16.gmra.mrb[4].mxu1 %vm467_vm5, %v20080_v60 }
  0xb7   : > { %16843 = vmatmul.mubr.msk.bf16.gmra.mrb[20].mxu0 %vm467_vm5, %v20239_v24  ;;  %16694 = vmatprep.mubr.msk.bf16.mxu1 %vm467_vm5, %v20097_v41 }
  0xb8   : > { %16846 = vmatprep.mubr.msk.bf16.mxu0 %vm467_vm5, %v20241_v26 }
  0xbe   : > { %16695 = vmatmul.mubr.msk.bf16.gmra.mrb[8].mxu1 %vm467_vm5, %v20101_v43 }
  0xbf   : > { %16847 = vmatmul.mubr.msk.bf16.gmra.mrb[24].mxu0 %vm467_vm5, %v20251_v0  ;;  %16698 = vmatprep.mubr.msk.bf16.mxu1 %vm467_vm5, %v20113_v8 }
  0xc0   : > { %16850 = vmatprep.mubr.msk.bf16.mxu0 %vm467_vm5, %v20278_v16 }
  0xc6   : > { %16699 = vmatmul.mubr.msk.bf16.gmra.mrb[12].mxu1 %vm467_vm5, %v20117_v11 }
  0xc7   : > { %16851 = vmatmul.mubr.msk.bf16.gmra.mrb[28].mxu0 %vm467_vm5, %v2251_v30  ;;  %16702 = vmatprep.mubr.msk.bf16.mxu1 %vm467_vm5, %v20129_v46 }
  0xc8   : > { %16856 = vmatprep.mubr.msk.bf16.mxu0 %vm467_vm5, %v19963_v44  ;;  %v2527_v44 = vld [vmem:[#allocation2 + $0x189] sm:$0xff] }
  0xce   : > { %16703 = vmatmul.mubr.msk.bf16.gmra.mrb[16].mxu1 %vm467_vm5, %v20131_v51 }
  0xcf   : > { %16857 = vmatmul.mubr.msk.bf16.vlgmr.msra.gmra.mrb[0].mxu0 %vm467_vm5, %v19970_v48  ;;  %16706 = vmatprep.mubr.msk.bf16.mxu1 %vm467_vm5, %v20145_v39 }
  0xd0   : > { %16889 = vmatpush3.bf16.msra.mxu0 %v2891_v38  ;;  %16860 = vmatprep.mubr.msk.bf16.mxu0 %vm467_vm5, %v19985_v54  ;;  %v2528_v54 = vld [vmem:[#allocation2 + $0x199] sm:$0xff] }
  0xd6   : > { %16707 = vmatmul.mubr.msk.bf16.gmra.mrb[20].mxu1 %vm467_vm5, %v20149_v1 }
  0xd7   : > { %16861 = vmatmul.mubr.msk.bf16.gmra.mrb[4].mxu0 %vm467_vm5, %v19987_v55  ;;  %16710 = vmatprep.mubr.msk.bf16.mxu1 %vm467_vm5, %v20166_v61  ;;  %v2529_v55 = vld [vmem:[#allocation2 + $0x1a1] sm:$0xff] }
  0xd8   : > { %16864 = vmatprep.mubr.msk.bf16.mxu0 %vm467_vm5, %v20037_v5  ;;  %v2545_v5 = vpack.c.bf16 %v2529_v55, %v2528_v54 }
  0xde   : > { %16711 = vmatmul.mubr.msk.bf16.gmra.mrb[24].mxu1 %vm467_vm5, %v20170_v49 }
  0xdf   : > { %16865 = vmatmul.mubr.msk.bf16.gmra.mrb[8].mxu0 %vm467_vm5, %v20039_v6  ;;  %16714 = vmatprep.mubr.msk.bf16.mxu1 %vm467_vm5, %v20182_v56  ;;  %v1631_v6 = vld [vmem:[#allocation2 + $0xd9] sm:$0xff] }
  0xe0   : > { %16868 = vmatprep.mubr.msk.bf16.mxu0 %vm467_vm5, %v20049_v15  ;;  %v1632_v15 = vld [vmem:[#allocation2 + $0xe1] sm:$0xff] }
  0xe6   : > { %16715 = vmatmul.mubr.msk.bf16.gmra.mrb[28].mxu1 %vm467_vm5, %v20186_v47 }
  0xe7   : > { %16869 = vmatmul.mubr.msk.bf16.gmra.mrb[12].mxu0 %vm467_vm5, %v20071_v50  ;;  %16720 = vmatprep.mubr.msk.bf16.mxu1 %vm467_vm5, %v20143_v63  ;;  %v1655_v50 = vpack.c.bf16 %v1632_v15, %v1631_v6 }
  0xe8   : > { %16872 = vmatprep.mubr.msk.bf16.mxu0 %vm467_vm5, %v20078_v53 }
  0xee   : > { %16721 = vmatmul.mubr.msk.bf16.vlgmr.msra.gmra.mrb[0].mxu1 %vm467_vm5, %v20147_v45 }
  0xef   : > { %18291 = vmatpush3.bf16.msra.mxu1 %v19788_v9  ;;  %16873 = vmatmul.mubr.msk.bf16.gmra.mrb[16].mxu0 %vm467_vm5, %v20095_v35  ;;  %v2526_v9 = vld [vmem:[#allocation2 + $0x181] sm:$0xff] }
  0xf0   : > { %16724 = vmatprep.mubr.msk.bf16.mxu1 %vm467_vm5, %v20164_v62  ;;  %16876 = vmatprep.mubr.msk.bf16.mxu0 %vm467_vm5, %v20099_v42  ;;  %v2544_v48 = vpack.c.bf16 %v2527_v44, %v2526_v9 }
  0xf6   : > { %16725 = vmatmul.mubr.msk.bf16.gmra.mrb[4].mxu1 %vm467_vm5, %v20168_v3 }
  0xf7   : > { %16877 = vmatmul.mubr.msk.bf16.gmra.mrb[20].mxu0 %vm467_vm5, %v20111_v7  ;;  %16728 = vmatprep.mubr.msk.bf16.mxu1 %vm467_vm5, %v20180_v36 }
  0xf8   : > { %16880 = vmatprep.mubr.msk.bf16.mxu0 %vm467_vm5, %v20115_v10 }
  0xfe   : > { %16729 = vmatmul.mubr.msk.bf16.gmra.mrb[8].mxu1 %vm467_vm5, %v20184_v57 }
  0xff   : > { %16881 = vmatmul.mubr.msk.bf16.gmra.mrb[24].mxu0 %vm467_vm5, %v20127_v40  ;;  %16732 = vmatprep.mubr.msk.bf16.mxu1 %vm467_vm5, %v20196_v28  ;;  %v20439_v28 = vld [vmem:[%s22665_s2] ss:$0 sm:$0xff] }
 0x100   : > { %16884 = vmatprep.mubr.msk.bf16.mxu0 %vm467_vm5, %v2544_v48 }
 0x106   : > { %16733 = vmatmul.mubr.msk.bf16.gmra.mrb[12].mxu1 %vm467_vm5, %v20200_v18 }
 0x107   : > { %16885 = vmatmul.mubr.msk.bf16.gmra.mrb[28].mxu0 %vm467_vm5, %v2545_v5  ;;  %16736 = vmatprep.mubr.msk.bf16.mxu1 %vm467_vm5, %v20213_v27 }
 0x108   : > { %16890 = vmatprep.mubr.msk.bf16.mxu0 %vm467_vm5, %v20076_v52  ;;  %v2822_v52 = vld [vmem:[#allocation2 + $0x19a] sm:$0xff] }
 0x10e   : > { %16737 = vmatmul.mubr.msk.bf16.gmra.mrb[16].mxu1 %vm467_vm5, %v20215_v29 }
 0x10f   : > { %16891 = vmatmul.mubr.msk.bf16.vlgmr.msra.gmra.mrb[0].mxu0 %vm467_vm5, %v20080_v60  ;;  %16740 = vmatprep.mubr.msk.bf16.mxu1 %vm467_vm5, %v20227_v31 }
 0x110   : > { %16894 = vmatprep.mubr.msk.bf16.mxu0 %vm467_vm5, %v20097_v41  ;;  %v19583_v41 = vld [vmem:[%s22666_s3 + $0x18] sm:$0xff]  }
 0x116   : > { %16741 = vmatmul.mubr.msk.bf16.gmra.mrb[20].mxu1 %vm467_vm5, %v20229_v4 }
 0x117   : > { %16895 = vmatmul.mubr.msk.bf16.gmra.mrb[4].mxu0 %vm467_vm5, %v20101_v43  ;;  %16744 = vmatprep.mubr.msk.bf16.mxu1 %vm467_vm5, %v20239_v24  ;;  %v3243_v43 = vld [vmem:[#allocation2 + $0x9] sm:$0xff] }
 0x118   : > { %16898 = vmatprep.mubr.msk.bf16.mxu0 %vm467_vm5, %v20113_v8  ;;  %v20425_v8 = vld [vmem:[%s22666_s3] sm:$0xff]  }
 0x11e   : > { %16745 = vmatmul.mubr.msk.bf16.gmra.mrb[24].mxu1 %vm467_vm5, %v20241_v26 }
 0x11f   : > { %16899 = vmatmul.mubr.msk.bf16.gmra.mrb[8].mxu0 %vm467_vm5, %v20117_v11  ;;  %16748 = vmatprep.mubr.msk.bf16.mxu1 %vm467_vm5, %v20251_v0 }
 0x120   : > { %16902 = vmatprep.mubr.msk.bf16.mxu0 %vm467_vm5, %v20129_v46 }
 0x126   : > { %16749 = vmatmul.mubr.msk.bf16.gmra.mrb[28].mxu1 %vm467_vm5, %v20278_v16 }
 0x127   : > { %16903 = vmatmul.mubr.msk.bf16.gmra.mrb[12].mxu0 %vm467_vm5, %v20131_v51  ;;  %16770 = vmatprep.mubr.msk.bf16.mxu1 %vm467_vm5, %v1655_v50 }
 0x128   : > { %16906 = vmatprep.mubr.msk.bf16.mxu0 %vm467_vm5, %v20145_v39 }
 0x12e   : > { %16771 = vmatmul.mubr.msk.bf16.vlgmr.msra.gmra.mrb[16].mxu1 %vm467_vm5, %v20078_v53  ;;  %v2823_v53 = vld [vmem:[#allocation2 + $0x1a2] sm:$0xff] }
 0x12f   : > { %16907 = vmatmul.mubr.msk.bf16.gmra.mrb[16].mxu0 %vm467_vm5, %v20149_v1  ;;  %16774 = vmatprep.mubr.msk.bf16.mxu1 %vm467_vm5, %v20095_v35  ;;  %v2839_v60 = vpack.c.bf16 %v2823_v53, %v2822_v52  ;;  %v19582_v35 = vld [vmem:[%s22666_s3 + $0x10] sm:$0xff]  }
 0x130   : > { %16910 = vmatprep.mubr.msk.bf16.mxu0 %vm467_vm5, %v20166_v61  ;;  %16922 = vmatprep.subr.bf16.mxu1 %v19582_v35 }
 0x131   : > { %16923 = vmatpush3.bf16.msra.mxu1 %v19582_v35 }
 0x132   : > { %16924 = vmatprep.subr.bf16.mxu1 %v19583_v41 }
 0x135   : > { %16925 = vmatpush3.bf16.msra.mxu1 %v19583_v41 }
 0x136   : > { %16775 = vmatmul.mubr.msk.bf16.gmra.mrb[20].mxu1 %vm467_vm5, %v20099_v42  ;;  %v3242_v42 = vld [vmem:[#allocation2 + $0x1] sm:$0xff]  ;;  %16958 = vmatprep.subr.bf16.mxu1 %v20425_v8 }
 0x137   : > { %16911 = vmatmul.mubr.msk.bf16.gmra.mrb[20].mxu0 %vm467_vm5, %v20170_v49  ;;  %16778 = vmatprep.mubr.msk.bf16.mxu1 %vm467_vm5, %v20111_v7  ;;  %v3274_v7 = vpack.c.bf16 %v3243_v43, %v3242_v42 }
 0x138   : > { %16914 = vmatprep.mubr.msk.bf16.mxu0 %vm467_vm5, %v20182_v56 }
 0x13e   : > { %16779 = vmatmul.mubr.msk.bf16.gmra.mrb[24].mxu1 %vm467_vm5, %v20115_v10 }
 0x13f   : > { %16915 = vmatmul.mubr.msk.bf16.gmra.mrb[24].mxu0 %vm467_vm5, %v20186_v47  ;;  %16782 = vmatprep.mubr.msk.bf16.mxu1 %vm467_vm5, %v20127_v40 }
 0x140   : > { %16918 = vmatprep.mubr.msk.bf16.mxu0 %vm467_vm5, %v20198_v34 }
 0x146   : > { %16783 = vmatmul.mubr.msk.bf16.gmra.mrb[28].mxu1 %vm467_vm5, %v2544_v48 }
 0x147   : > { %16919 = vmatmul.mubr.msk.bf16.gmra.mrb[28].mxu0 %vm467_vm5, %v2839_v60  ;;  %16926 = vmatprep.mubr.msk.bf16.mxu1 %vm3157_vm6, %v3274_v7 }
 0x1c1   : > { %v16722_v10 = vpop.f32.mrb[0].mxu1 }
 0x1c2   : > { %v1456_v11 = vpop.f32.mrb[1].mxu1 }
 0x1c3   : > { %v16723_v40 = vpop.f32.mrb[2].mxu1 }
 0x1c4   : > { %v1459_v46 = vpop.f32.mrb[3].mxu1 }
 0x1c9   : > { %v16726_v51 = vpop.f32.mrb[4].mxu1 }
 0x1ca   : > { %v1472_v63 = vpop.f32.mrb[5].mxu1 }
 0x1cb   : > { %v16727_v39 = vpop.f32.mrb[6].mxu1 }
 0x1cc   : > { %v1475_v45 = vpop.f32.mrb[7].mxu1 }
 0x1d1   : > { %v16730_v1 = vpop.f32.mrb[8].mxu1 }
 0x1d2   : > { %v1488_v62 = vpop.f32.mrb[9].mxu1 }
 0x1d3   : > { %v16731_v61 = vpop.f32.mrb[10].mxu1 }
 0x1d4   : > { %v1491_v3 = vpop.f32.mrb[11].mxu1 }
 0x1d9   : > { %v20428_v49 = vpop.f32.mrb[12].mxu1 }
 0x1da   : > { %v20430_v36 = vpop.f32.mrb[13].mxu1 }
 0x1db   : > { %v20432_v56 = vpop.f32.mrb[14].mxu1 }
 0x1dc   : > { %v20434_v57 = vpop.f32.mrb[15].mxu1 }
 0x1e2   : > { %v16892_v47 = vpop.f32.mrb[0].mxu0 }
 0x1e3   : > { %v18292_v34 = vadd.f32 %v16892_v47, %v16722_v10  ;;  %v2927_v18 = vpop.f32.mrb[1].mxu0 }
 0x1e4   : > { %v18293_v27 = vadd.f32 %v2927_v18, %v1456_v11  ;;  %v16893_v29 = vpop.f32.mrb[2].mxu0 }
 0x1e5   : > { %v3095_v38 = vadd.f32 %v18292_v34, %v20439_v28  ;;  %v18294_v31 = vadd.f32 %v16893_v29, %v16723_v40  ;;  %v2930_v4 = vpop.f32.mrb[3].mxu0 }
 0x1e6   : > { %v3093_v24 = vadd.f32 %v18293_v27, %v20439_v28  ;;  %v18295_v26 = vadd.f32 %v2930_v4, %v1459_v46 }
 0x1e7   : > { %v3127_v32 = vmax.f32 %v3095_v38, 0.0  ;;  %v3096_v58 = vadd.f32 %v18294_v31, %v20439_v28  ;;  %v20476_v38 = vld [vmem:[%s22666_s3 + $0x20] sm:$0xff]  }
 0x1e8   : > { %v3125_v0 = vmax.f32 %v3093_v24, 0.0  ;;  %v3094_v59 = vadd.f32 %v18295_v26, %v20439_v28 }
 0x1e9   : > { %v3128_v23 = vmax.f32 %v3096_v58, 0.0  ;;  %3160 = vst.msk [vmem:[#allocation2 + $0x31] sm:$0xff] %vm3157_vm6, %v3127_v32 }
 0x1ea   : > { %v3126_v37 = vmax.f32 %v3094_v59, 0.0  ;;  %v16896_v16 = vpop.f32.mrb[4].mxu0  ;;  %3158 = vst.msk [vmem:[#allocation2 + $0x19] sm:$0xff] %vm3157_vm6, %v3125_v0 }
 0x1eb   : > { %v18296_v2 = vadd.f32 %v16896_v16, %v16726_v51  ;;  %v2943_v33 = vpop.f32.mrb[5].mxu0  ;;  %3161 = vst.msk [vmem:[#allocation2 + $0x39] sm:$0xff] %vm3157_vm6, %v3128_v23 }
 0x1ec   : > { %v18297_v30 = vadd.f32 %v2943_v33, %v1472_v63  ;;  %v16897_v9 = vpop.f32.mrb[6].mxu0  ;;  %3159 = vst.msk [vmem:[#allocation2 + $0x21] sm:$0xff] %vm3157_vm6, %v3126_v37  ;;  %v19585_v63 = vld [vmem:[%s22666_s3 + $0x8] sm:$0xff]  }
 0x1ed   : > { %v3099_v44 = vadd.f32 %v18296_v2, %v20439_v28  ;;  %v18298_v48 = vadd.f32 %v16897_v9, %v16727_v39  ;;  %v2946_v54 = vpop.f32.mrb[7].mxu0 }
 0x1ee   : > { %v3097_v55 = vadd.f32 %v18297_v30, %v20439_v28  ;;  %v18299_v5 = vadd.f32 %v2946_v54, %v1475_v45 }
 0x1ef   : > { %v3131_v6 = vmax.f32 %v3099_v44, 0.0  ;;  %v3100_v15 = vadd.f32 %v18298_v48, %v20439_v28 }
 0x1f0   : > { %v3129_v50 = vmax.f32 %v3097_v55, 0.0  ;;  %v3098_v52 = vadd.f32 %v18299_v5, %v20439_v28  ;;  %v3246_v51 = vld [vmem:[#allocation2 + $0x31] sm:$0xff] }
 0x1f1   : > { %v3132_v53 = vmax.f32 %v3100_v15, 0.0  ;;  %3164 = vst.msk [vmem:[#allocation2 + $0x61] sm:$0xff] %vm3157_vm6, %v3131_v6  ;;  %v3244_v7 = vld [vmem:[#allocation2 + $0x19] sm:$0xff] }
 0x1f2   : > { %v3130_v60 = vmax.f32 %v3098_v52, 0.0  ;;  %v16900_v35 = vpop.f32.mrb[8].mxu0  ;;  %3162 = vst.msk [vmem:[#allocation2 + $0x49] sm:$0xff] %vm3157_vm6, %v3129_v50  ;;  %v3247_v41 = vld [vmem:[#allocation2 + $0x39] sm:$0xff] }
 0x1f3   : > { %v18300_v42 = vadd.f32 %v16900_v35, %v16730_v1  ;;  %v2959_v43 = vpop.f32.mrb[9].mxu0  ;;  %3165 = vst.msk [vmem:[#allocation2 + $0x69] sm:$0xff] %vm3157_vm6, %v3132_v53  ;;  %v3245_v10 = vld [vmem:[#allocation2 + $0x21] sm:$0xff]  ;;  %v20463_v47 = vpack.c.bf16 %v3247_v41, %v3246_v51 }
 0x1f4   : > { %v18301_v11 = vadd.f32 %v2959_v43, %v1488_v62  ;;  %v16901_v40 = vpop.f32.mrb[10].mxu0  ;;  %3163 = vst.msk [vmem:[#allocation2 + $0x51] sm:$0xff] %vm3157_vm6, %v3130_v60  ;;  %v20457_v46 = vpack.c.bf16 %v3245_v10, %v3244_v7 }
 0x1f5   : > { %v3103_v39 = vadd.f32 %v18300_v42, %v20439_v28  ;;  %v18302_v45 = vadd.f32 %v16901_v40, %v16731_v61  ;;  %v2962_v1 = vpop.f32.mrb[11].mxu0 }
 0x1f6   : > { %v3101_v34 = vadd.f32 %v18301_v11, %v20439_v28  ;;  %v18303_v18 = vadd.f32 %v2962_v1, %v1491_v3  ;;  %16927 = vmatmul.mubr.msk.bf16.vlgmr.msra.gmra.mrb[32].mxu1 %vm3157_vm6, %v20457_v46 }
 0x1f7   : > { %v3135_v62 = vmax.f32 %v3103_v39, 0.0  ;;  %v3104_v27 = vadd.f32 %v18302_v45, %v20439_v28  ;;  %16959 = vmatpush3.bf16.msra.mxu1 %v20425_v8  ;;  %16930 = vmatprep.mubr.msk.bf16.mxu1 %vm3157_vm6, %v20463_v47 }
 0x1f8   : > { %v3133_v29 = vmax.f32 %v3101_v34, 0.0  ;;  %v3102_v61 = vadd.f32 %v18303_v18, %v20439_v28  ;;  %16960 = vmatprep.subr.bf16.mxu1 %v19585_v63  ;;  %v3250_v37 = vld [vmem:[#allocation2 + $0x61] sm:$0xff] }
 0x1f9   : > { %v3136_v3 = vmax.f32 %v3104_v27, 0.0  ;;  %3168 = vst.msk [vmem:[#allocation2 + $0x91] sm:$0xff] %vm3157_vm6, %v3135_v62  ;;  %v3248_v32 = vld [vmem:[#allocation2 + $0x49] sm:$0xff] }
 0x1fa   : > { %v3134_v31 = vmax.f32 %v3102_v61, 0.0  ;;  %3166 = vst.msk [vmem:[#allocation2 + $0x79] sm:$0xff] %vm3157_vm6, %v3133_v29  ;;  %v16904_v4 = vpop.f32.mrb[12].mxu0  ;;  %v3251_v8 = vld [vmem:[#allocation2 + $0x69] sm:$0xff] }
 0x1fb   : > { %3169 = vst.msk [vmem:[#allocation2 + $0x99] sm:$0xff] %vm3157_vm6, %v3136_v3  ;;  %v18304_v24 = vadd.f32 %v16904_v4, %v20428_v49  ;;  %v2975_v26 = vpop.f32.mrb[13].mxu0  ;;  %v3249_v58 = vld [vmem:[#allocation2 + $0x51] sm:$0xff]  ;;  %16961 = vmatpush3.bf16.msra.mxu1 %v19585_v63  ;;  %v20489_v49 = vpack.c.bf16 %v3251_v8, %v3250_v37 }
 0x1fc   : > { %3167 = vst.msk [vmem:[#allocation2 + $0x81] sm:$0xff] %vm3157_vm6, %v3134_v31  ;;  %v18305_v0 = vadd.f32 %v2975_v26, %v20430_v36  ;;  %v16905_v59 = vpop.f32.mrb[14].mxu0  ;;  %v20484_v23 = vpack.c.bf16 %v3249_v58, %v3248_v32  ;;  %16994 = vmatprep.subr.bf16.mxu1 %v20476_v38 }
 0x1fd   : > { %v3107_v16 = vadd.f32 %v18304_v24, %v20439_v28  ;;  %v18306_v2 = vadd.f32 %v16905_v59, %v20432_v56  ;;  %v2978_v33 = vpop.f32.mrb[15].mxu0 }
 0x1fe   : > { %v3105_v30 = vadd.f32 %v18305_v0, %v20439_v28  ;;  %v18307_v9 = vadd.f32 %v2978_v33, %v20434_v57  ;;  %16931 = vmatmul.mubr.msk.bf16.gmra.mrb[36].mxu1 %vm3157_vm6, %v20484_v23 }
 0x1ff   : > { %v3139_v36 = vmax.f32 %v3107_v16, 0.0  ;;  %v3108_v44 = vadd.f32 %v18306_v2, %v20439_v28  ;;  %16934 = vmatprep.mubr.msk.bf16.mxu1 %vm3157_vm6, %v20489_v49 }
 0x200   : > { %v3137_v48 = vmax.f32 %v3105_v30, 0.0  ;;  %v3106_v54 = vadd.f32 %v18307_v9, %v20439_v28  ;;  %v3254_v10 = vld [vmem:[#allocation2 + $0x91] sm:$0xff] }
 0x201   : > { %3172 = vst.msk [vmem:[#allocation2 + $0xc1] sm:$0xff] %vm3157_vm6, %v3139_v36  ;;  %v3140_v56 = vmax.f32 %v3108_v44, 0.0  ;;  %v16772_v55 = vpop.f32.mrb[16].mxu1  ;;  %v3252_v60 = vld [vmem:[#allocation2 + $0x79] sm:$0xff] }
 0x202   : > { %3170 = vst.msk [vmem:[#allocation2 + $0xa9] sm:$0xff] %vm3157_vm6, %v3137_v48  ;;  %v3138_v5 = vmax.f32 %v3106_v54, 0.0  ;;  %v1814_v57 = vpop.f32.mrb[17].mxu1  ;;  %v16908_v6 = vpop.f32.mrb[16].mxu0  ;;  %v3255_v15 = vld [vmem:[#allocation2 + $0x99] sm:$0xff] }
 0x203   : > { %3173 = vst.msk [vmem:[#allocation2 + $0xc9] sm:$0xff] %vm3157_vm6, %v3140_v56  ;;  %v18308_v50 = vadd.f32 %v16908_v6, %v16772_v55  ;;  %v16773_v52 = vpop.f32.mrb[18].mxu1  ;;  %v2991_v53 = vpop.f32.mrb[17].mxu0  ;;  %v3253_v35 = vld [vmem:[#allocation2 + $0x81] sm:$0xff]  ;;  %v20506_v63 = vpack.c.bf16 %v3255_v15, %v3254_v10 }
 0x204   : > { %3171 = vst.msk [vmem:[#allocation2 + $0xb1] sm:$0xff] %vm3157_vm6, %v3138_v5  ;;  %v18309_v41 = vadd.f32 %v2991_v53, %v1814_v57  ;;  %v1817_v42 = vpop.f32.mrb[19].mxu1  ;;  %v16909_v43 = vpop.f32.mrb[18].mxu0  ;;  %v20503_v7 = vpack.c.bf16 %v3253_v35, %v3252_v60 }
 0x205   : > { %v3111_v11 = vadd.f32 %v18308_v50, %v20439_v28  ;;  %v18310_v40 = vadd.f32 %v16909_v43, %v16773_v52  ;;  %v2994_v51 = vpop.f32.mrb[19].mxu0 }
 0x206   : > { %v3109_v39 = vadd.f32 %v18309_v41, %v20439_v28  ;;  %v18311_v45 = vadd.f32 %v2994_v51, %v1817_v42  ;;  %16935 = vmatmul.mubr.msk.bf16.gmra.mrb[40].mxu1 %vm3157_vm6, %v20503_v7 }
 0x207   : > { %v3143_v1 = vmax.f32 %v3111_v11, 0.0  ;;  %v3112_v34 = vadd.f32 %v18310_v40, %v20439_v28  ;;  %16938 = vmatprep.mubr.msk.bf16.mxu1 %vm3157_vm6, %v20506_v63 }
 0x208   : > { %v3141_v18 = vmax.f32 %v3109_v39, 0.0  ;;  %v3110_v62 = vadd.f32 %v18311_v45, %v20439_v28  ;;  %v3258_v2 = vld [vmem:[#allocation2 + $0xc1] sm:$0xff] }
 0x209   : > { %3176 = vst.msk [vmem:[#allocation2 + $0xf1] sm:$0xff] %vm3157_vm6, %v3143_v1  ;;  %v3144_v27 = vmax.f32 %v3112_v34, 0.0  ;;  %v16776_v29 = vpop.f32.mrb[20].mxu1  ;;  %v3256_v32 = vld [vmem:[#allocation2 + $0xa9] sm:$0xff] }
 0x20a   : > { %3174 = vst.msk [vmem:[#allocation2 + $0xd9] sm:$0xff] %vm3157_vm6, %v3141_v18  ;;  %v3142_v61 = vmax.f32 %v3110_v62, 0.0  ;;  %v1830_v3 = vpop.f32.mrb[21].mxu1  ;;  %v16912_v31 = vpop.f32.mrb[20].mxu0  ;;  %v3259_v4 = vld [vmem:[#allocation2 + $0xc9] sm:$0xff] }
 0x20b   : > { %3177 = vst.msk [vmem:[#allocation2 + $0xf9] sm:$0xff] %vm3157_vm6, %v3144_v27  ;;  %v18312_v8 = vadd.f32 %v16912_v31, %v16776_v29  ;;  %v16777_v24 = vpop.f32.mrb[22].mxu1  ;;  %v3007_v26 = vpop.f32.mrb[21].mxu0  ;;  %v3257_v58 = vld [vmem:[#allocation2 + $0xb1] sm:$0xff]  ;;  %v20522_v36 = vpack.c.bf16 %v3259_v4, %v3258_v2 }
 0x20c   : > { %3175 = vst.msk [vmem:[#allocation2 + $0xe1] sm:$0xff] %vm3157_vm6, %v3142_v61  ;;  %v18313_v0 = vadd.f32 %v3007_v26, %v1830_v3  ;;  %v1833_v59 = vpop.f32.mrb[23].mxu1  ;;  %v16913_v37 = vpop.f32.mrb[22].mxu0  ;;  %v20519_v16 = vpack.c.bf16 %v3257_v58, %v3256_v32 }
 0x20d   : > { %v3115_v33 = vadd.f32 %v18312_v8, %v20439_v28  ;;  %v18314_v30 = vadd.f32 %v16913_v37, %v16777_v24  ;;  %v3010_v9 = vpop.f32.mrb[23].mxu0 }
 0x20e   : > { %v3113_v44 = vadd.f32 %v18313_v0, %v20439_v28  ;;  %v18315_v48 = vadd.f32 %v3010_v9, %v1833_v59  ;;  %16939 = vmatmul.mubr.msk.bf16.gmra.mrb[44].mxu1 %vm3157_vm6, %v20519_v16 }
 0x20f   : > { %v3147_v54 = vmax.f32 %v3115_v33, 0.0  ;;  %v3116_v56 = vadd.f32 %v18314_v30, %v20439_v28  ;;  %16942 = vmatprep.mubr.msk.bf16.mxu1 %vm3157_vm6, %v20522_v36 }
 0x210   : > { %v3145_v55 = vmax.f32 %v3113_v44, 0.0  ;;  %v3114_v5 = vadd.f32 %v18315_v48, %v20439_v28  ;;  %v3262_v39 = vld [vmem:[#allocation2 + $0xf1] sm:$0xff] }
 0x211   : > { %3180 = vst.msk [vmem:[#allocation2 + $0x121] sm:$0xff] %vm3157_vm6, %v3147_v54  ;;  %v3148_v57 = vmax.f32 %v3116_v56, 0.0  ;;  %v16780_v6 = vpop.f32.mrb[24].mxu1  ;;  %v3260_v42 = vld [vmem:[#allocation2 + $0xd9] sm:$0xff] }
 0x212   : > { %3178 = vst.msk [vmem:[#allocation2 + $0x109] sm:$0xff] %vm3157_vm6, %v3145_v55  ;;  %v3146_v15 = vmax.f32 %v3114_v5, 0.0  ;;  %v1846_v50 = vpop.f32.mrb[25].mxu1  ;;  %v16916_v52 = vpop.f32.mrb[24].mxu0  ;;  %v3263_v53 = vld [vmem:[#allocation2 + $0xf9] sm:$0xff] }
 0x213   : > { %3181 = vst.msk [vmem:[#allocation2 + $0x129] sm:$0xff] %vm3157_vm6, %v3148_v57  ;;  %v18316_v60 = vadd.f32 %v16916_v52, %v16780_v6  ;;  %v16781_v35 = vpop.f32.mrb[26].mxu1  ;;  %v3023_v41 = vpop.f32.mrb[25].mxu0  ;;  %v3261_v43 = vld [vmem:[#allocation2 + $0xe1] sm:$0xff]  ;;  %v20538_v18 = vpack.c.bf16 %v3263_v53, %v3262_v39 }
 0x214   : > { %3179 = vst.msk [vmem:[#allocation2 + $0x111] sm:$0xff] %vm3157_vm6, %v3146_v15  ;;  %v18317_v10 = vadd.f32 %v3023_v41, %v1846_v50  ;;  %v1849_v11 = vpop.f32.mrb[27].mxu1  ;;  %v16917_v40 = vpop.f32.mrb[26].mxu0  ;;  %v20535_v51 = vpack.c.bf16 %v3261_v43, %v3260_v42 }
 0x215   : > { %v3119_v45 = vadd.f32 %v18316_v60, %v20439_v28  ;;  %v18318_v1 = vadd.f32 %v16917_v40, %v16781_v35  ;;  %v3026_v34 = vpop.f32.mrb[27].mxu0 }
 0x216   : > { %v3117_v62 = vadd.f32 %v18317_v10, %v20439_v28  ;;  %v18319_v27 = vadd.f32 %v3026_v34, %v1849_v11  ;;  %16943 = vmatmul.mubr.msk.bf16.gmra.mrb[48].mxu1 %vm3157_vm6, %v20535_v51 }
 0x217   : > { %v3151_v29 = vmax.f32 %v3119_v45, 0.0  ;;  %v3120_v61 = vadd.f32 %v18318_v1, %v20439_v28  ;;  %16946 = vmatprep.mubr.msk.bf16.mxu1 %vm3157_vm6, %v20538_v18  ;;  %v3191_v45 = vld [vmem:[#allocation2 + $0x8] sm:$0xff] }
 0x218   : > { %v3149_v3 = vmax.f32 %v3117_v62, 0.0  ;;  %v3118_v31 = vadd.f32 %v18319_v27, %v20439_v28  ;;  %v3266_v54 = vld [vmem:[#allocation2 + $0x121] sm:$0xff] }
 0x219   : > { %3184 = vst.msk [vmem:[#allocation2 + $0x151] sm:$0xff] %vm3157_vm6, %v3151_v29  ;;  %v3152_v4 = vmax.f32 %v3120_v61, 0.0  ;;  %v16784_v8 = vpop.f32.mrb[28].mxu1  ;;  %v3264_v2 = vld [vmem:[#allocation2 + $0x109] sm:$0xff]  ;;  %v3193_v29 = vld [vmem:[#allocation2 + $0x20] sm:$0xff]  ;;  %v3195_v61 = vld [vmem:[#allocation2 + $0x38] sm:$0xff] }
 0x21a   : > { %3182 = vst.msk [vmem:[#allocation2 + $0x139] sm:$0xff] %vm3157_vm6, %v3149_v3  ;;  %v3150_v24 = vmax.f32 %v3118_v31, 0.0  ;;  %v1862_v26 = vpop.f32.mrb[29].mxu1  ;;  %v16920_v32 = vpop.f32.mrb[28].mxu0  ;;  %v3267_v58 = vld [vmem:[#allocation2 + $0x129] sm:$0xff]  ;;  %v3192_v3 = vld [vmem:[#allocation2 + $0x18] sm:$0xff] }
 0x21b   : > { %3185 = vst.msk [vmem:[#allocation2 + $0x159] sm:$0xff] %vm3157_vm6, %v3152_v4  ;;  %v18320_v0 = vadd.f32 %v16920_v32, %v16784_v8  ;;  %v16785_v59 = vpop.f32.mrb[30].mxu1  ;;  %v3039_v37 = vpop.f32.mrb[29].mxu0  ;;  %v3265_v33 = vld [vmem:[#allocation2 + $0x111] sm:$0xff]  ;;  %v20554_v57 = vpack.c.bf16 %v3267_v58, %v3266_v54  ;;  %v20580_v31 = vpack.c.bf16 %v3193_v29, %v3192_v3  ;;  %v19587_v8 = vld [vmem:[%s22666_s3 + $0x28] sm:$0xff]  }
 0x21c   : > { %3183 = vst.msk [vmem:[#allocation2 + $0x141] sm:$0xff] %vm3157_vm6, %v3150_v24  ;;  %v18321_v30 = vadd.f32 %v3039_v37, %v1862_v26  ;;  %v1865_v9 = vpop.f32.mrb[31].mxu1  ;;  %v16921_v44 = vpop.f32.mrb[30].mxu0  ;;  %v20551_v48 = vpack.c.bf16 %v3265_v33, %v3264_v2  ;;  %v3194_v4 = vld [vmem:[#allocation2 + $0x30] sm:$0xff]  ;;  %v3199_v58 = vld [vmem:[#allocation2 + $0x68] sm:$0xff]  ;;  %v3198_v37 = vld [vmem:[#allocation2 + $0x60] sm:$0xff] }
 0x21d   : > { %v3123_v56 = vadd.f32 %v18320_v0, %v20439_v28  ;;  %v18322_v55 = vadd.f32 %v16921_v44, %v16785_v59  ;;  %v3042_v5 = vpop.f32.mrb[31].mxu0  ;;  %v20585_v24 = vpack.c.bf16 %v3195_v61, %v3194_v4  ;;  %v20595_v26 = vld [vmem:[%s22666_s3 + $0x30] sm:$0xff]   ;;  %v3196_v0 = vld [vmem:[#allocation2 + $0x48] sm:$0xff]  ;;  %v20600_v2 = vpack.c.bf16 %v3199_v58, %v3198_v37  ;;  %v3203_v33 = vld [vmem:[#allocation2 + $0x98] sm:$0xff] }
 0x21e   : > { %v3121_v6 = vadd.f32 %v18321_v30, %v20439_v28  ;;  %v18323_v15 = vadd.f32 %v3042_v5, %v1865_v9  ;;  %16947 = vmatmul.mubr.msk.bf16.gmra.mrb[52].mxu1 %vm3157_vm6, %v20551_v48  ;;  %v3197_v32 = vld [vmem:[#allocation2 + $0x50] sm:$0xff]  ;;  %v3200_v30 = vld [vmem:[#allocation2 + $0x78] sm:$0xff]  ;;  %v3204_v5 = vld [vmem:[#allocation2 + $0xa8] sm:$0xff] }
 0x21f   : > { %v3155_v50 = vmax.f32 %v3123_v56, 0.0  ;;  %v3124_v52 = vadd.f32 %v18322_v55, %v20439_v28  ;;  %16950 = vmatprep.mubr.msk.bf16.mxu1 %vm3157_vm6, %v20554_v57  ;;  %v20597_v59 = vpack.c.bf16 %v3197_v32, %v3196_v0  ;;  %v3202_v44 = vld [vmem:[#allocation2 + $0x90] sm:$0xff]  ;;  %v3207_v55 = vld [vmem:[#allocation2 + $0xc8] sm:$0xff] }
 0x220   : > { %v3153_v53 = vmax.f32 %v3121_v6, 0.0  ;;  %v3122_v60 = vadd.f32 %v18323_v15, %v20439_v28  ;;  %v3270_v40 = vld [vmem:[#allocation2 + $0x151] sm:$0xff]  ;;  %v3190_v28 = vld [vmem:[#allocation2] sm:$0xff]  ;;  %v20608_v54 = vpack.c.bf16 %v3203_v33, %v3202_v44 }
 0x221   : > { %3188 = vst.msk [vmem:[#allocation2 + $0x181] sm:$0xff] %vm3157_vm6, %v3155_v50  ;;  %v3156_v35 = vmax.f32 %v3124_v52, 0.0  ;;  %v3268_v43 = vld [vmem:[#allocation2 + $0x139] sm:$0xff]  ;;  %v3222_v62 = vpack.c.bf16 %v3191_v45, %v3190_v28  ;;  %v3205_v56 = vld [vmem:[#allocation2 + $0xb0] sm:$0xff] }
 0x222   : > { %3186 = vst.msk [vmem:[#allocation2 + $0x169] sm:$0xff] %vm3157_vm6, %v3153_v53  ;;  %v3154_v41 = vmax.f32 %v3122_v60, 0.0  ;;  %v3271_v42 = vld [vmem:[#allocation2 + $0x159] sm:$0xff]  ;;  %v20614_v6 = vpack.c.bf16 %v3205_v56, %v3204_v5  ;;  %v3218_v3 = vld [vmem:[#allocation2 + $0x150] sm:$0xff] }
 0x223   : > { %3189 = vst.msk [vmem:[#allocation2 + $0x189] sm:$0xff] %vm3157_vm6, %v3156_v35  ;;  %v3269_v10 = vld [vmem:[#allocation2 + $0x141] sm:$0xff]  ;;  %v20569_v39 = vpack.c.bf16 %v3271_v42, %v3270_v40  ;;  %v3211_v53 = vld [vmem:[#allocation2 + $0xf8] sm:$0xff]  ;;  %v3738_v32 = vld [vmem:[#allocation2 + $0xa] sm:$0xff] }
 0x224   : > { %3187 = vst.msk [vmem:[#allocation2 + $0x171] sm:$0xff] %vm3157_vm6, %v3154_v41  ;;  %v20567_v11 = vpack.c.bf16 %v3269_v10, %v3268_v43  ;;  %v3206_v15 = vld [vmem:[#allocation2 + $0xc0] sm:$0xff]  ;;  %v3208_v60 = vld [vmem:[#allocation2 + $0xd8] sm:$0xff]  ;;  %v3210_v41 = vld [vmem:[#allocation2 + $0xf0] sm:$0xff] }
 0x225   : > { %v20616_v50 = vpack.c.bf16 %v3207_v55, %v3206_v15  ;;  %v3209_v52 = vld [vmem:[#allocation2 + $0xe0] sm:$0xff]  ;;  %v20624_v42 = vpack.c.bf16 %v3211_v53, %v3210_v41  ;;  %v3213_v43 = vld [vmem:[#allocation2 + $0x110] sm:$0xff]  ;;  %v3215_v10 = vld [vmem:[#allocation2 + $0x128] sm:$0xff] }
 0x226   : > { %16951 = vmatmul.mubr.msk.bf16.gmra.mrb[56].mxu1 %vm3157_vm6, %v20567_v11  ;;  %v20622_v35 = vpack.c.bf16 %v3209_v52, %v3208_v60  ;;  %v3212_v40 = vld [vmem:[#allocation2 + $0x108] sm:$0xff]  ;;  %v3214_v45 = vld [vmem:[#allocation2 + $0x120] sm:$0xff]  ;;  %v3216_v29 = vld [vmem:[#allocation2 + $0x138] sm:$0xff] }
 0x227   : > { %16954 = vmatprep.mubr.msk.bf16.mxu1 %vm3157_vm6, %v20569_v39  ;;  %v20630_v28 = vpack.c.bf16 %v3213_v43, %v3212_v40  ;;  %v3739_v33 = vld [vmem:[#allocation2 + $0x1a] sm:$0xff]  ;;  %v3741_v44 = vld [vmem:[#allocation2 + $0x32] sm:$0xff]  ;;  %v3743_v53 = vld [vmem:[#allocation2 + $0x4a] sm:$0xff] }
 0x228   : > { %v3742_v56 = vld [vmem:[#allocation2 + $0x3a] sm:$0xff]  ;;  %v3744_v60 = vld [vmem:[#allocation2 + $0x52] sm:$0xff]  ;;  %v3745_v41 = vld [vmem:[#allocation2 + $0x62] sm:$0xff] }
 0x229   : > { %v3272_v1 = vld [vmem:[#allocation2 + $0x169] sm:$0xff]  ;;  %v19589_v5 = vld [vmem:[%s22666_s3 + $0x38] sm:$0xff]   ;;  %v20656_v15 = vpack.c.bf16 %v3742_v56, %v3741_v44  ;;  %v19590_v52 = vld [vmem:[%s22666_s3 + $0x40] sm:$0xff]  }
 0x22a   : > { %v3220_v0 = vld [vmem:[#allocation2 + $0x168] sm:$0xff]  ;;  %v3757_v56 = vld [vmem:[#allocation2 + $0xf2] sm:$0xff] }
 0x22b   : > { %v3273_v34 = vld [vmem:[#allocation2 + $0x171] sm:$0xff]  ;;  %v3756_v44 = vld [vmem:[#allocation2 + $0xe2] sm:$0xff] }
 0x22c   : > { %v20575_v27 = vpack.c.bf16 %v3273_v34, %v3272_v1  ;;  %v20632_v1 = vpack.c.bf16 %v3215_v10, %v3214_v45  ;;  %v3217_v34 = vld [vmem:[#allocation2 + $0x140] sm:$0xff]  ;;  %v3221_v58 = vld [vmem:[#allocation2 + $0x170] sm:$0xff]  ;;  %v20666_v10 = vpack.c.bf16 %v3744_v60, %v3743_v53 }
 0x22d   : > { %v20638_v61 = vpack.c.bf16 %v3217_v34, %v3216_v29  ;;  %v3746_v43 = vld [vmem:[#allocation2 + $0x6a] sm:$0xff]  ;;  %v3748_v45 = vld [vmem:[#allocation2 + $0x82] sm:$0xff]  ;;  %v3749_v34 = vld [vmem:[#allocation2 + $0x92] sm:$0xff] }
 0x22e   : > { %16955 = vmatmul.mubr.msk.bf16.gmra.mrb[60].mxu1 %vm3157_vm6, %v20575_v27  ;;  %v20668_v40 = vpack.c.bf16 %v3746_v43, %v3745_v41  ;;  %v3759_v41 = vld [vmem:[#allocation2 + $0x10a] sm:$0xff]  ;;  %v3760_v43 = vld [vmem:[#allocation2 + $0x112] sm:$0xff] }
 0x22f   : > { %16962 = vmatprep.mubr.msk.bf16.mxu1 %vm3157_vm6, %v3222_v62  ;;  %v3219_v62 = vld [vmem:[#allocation2 + $0x158] sm:$0xff] }
 0x230   : > { %v20640_v4 = vpack.c.bf16 %v3219_v62, %v3218_v3  ;;  %v3750_v62 = vld [vmem:[#allocation2 + $0x9a] sm:$0xff] }
 0x231   : > { %v20676_v3 = vpack.c.bf16 %v3750_v62, %v3749_v34  ;;  %v20698_v34 = vpack.c.bf16 %v3760_v43, %v3759_v41  ;;  %v19591_v43 = vld [vmem:[%s22666_s3 + $0x48] sm:$0xff]  }
 0x236   : > { %16963 = vmatmul.mubr.msk.bf16.vlgmr.msra.gmra.mrb[32].mxu1 %vm3157_vm6, %v20580_v31 }
 0x237   : > { %16995 = vmatpush3.bf16.msra.mxu1 %v20476_v38  ;;  %16966 = vmatprep.mubr.msk.bf16.mxu1 %vm3157_vm6, %v20585_v24  ;;  %v3201_v38 = vld [vmem:[#allocation2 + $0x80] sm:$0xff] }
 0x238   : > { %16996 = vmatprep.subr.bf16.mxu1 %v19587_v8  ;;  %v20606_v9 = vpack.c.bf16 %v3201_v38, %v3200_v30  ;;  %v20646_v38 = vpack.c.bf16 %v3221_v58, %v3220_v0  ;;  %v3740_v30 = vld [vmem:[#allocation2 + $0x22] sm:$0xff]  ;;  %v3754_v0 = vld [vmem:[#allocation2 + $0xca] sm:$0xff] }
 0x239   : > { %v20651_v55 = vpack.c.bf16 %v3740_v30, %v3739_v33  ;;  %v3753_v58 = vld [vmem:[#allocation2 + $0xc2] sm:$0xff]  ;;  %v3755_v30 = vld [vmem:[#allocation2 + $0xda] sm:$0xff] }
 0x23a   : > { %v20684_v33 = vpack.c.bf16 %v3754_v0, %v3753_v58  ;;  %v20690_v53 = vpack.c.bf16 %v3756_v44, %v3755_v30  ;;  %v3765_v58 = vld [vmem:[#allocation2 + $0x152] sm:$0xff]  ;;  %v3766_v0 = vld [vmem:[#allocation2 + $0x15a] sm:$0xff] }
 0x23b   : > { %16997 = vmatpush3.bf16.msra.mxu1 %v19587_v8  ;;  %v3737_v8 = vld [vmem:[#allocation2 + $0x2] sm:$0xff]  ;;  %v20708_v44 = vpack.c.bf16 %v3766_v0, %v3765_v58 }
 0x23c   : > { %17030 = vmatprep.subr.bf16.mxu1 %v20595_v26  ;;  %v3769_v37 = vpack.c.bf16 %v3738_v32, %v3737_v8  ;;  %v3751_v8 = vld [vmem:[#allocation2 + $0xaa] sm:$0xff]  ;;  %v3752_v32 = vld [vmem:[#allocation2 + $0xb2] sm:$0xff]  ;;  %v5274_v0 = vld [vmem:[#allocation2 + $0x81] sm:$0xff] }
 0x23e   : > { %16967 = vmatmul.mubr.msk.bf16.gmra.mrb[36].mxu1 %vm3157_vm6, %v20597_v59 }
 0x23f   : > { %16970 = vmatprep.mubr.msk.bf16.mxu1 %vm3157_vm6, %v20600_v2 }
 0x246   : > { %16971 = vmatmul.mubr.msk.bf16.gmra.mrb[40].mxu1 %vm3157_vm6, %v20606_v9 }
 0x247   : > { %16974 = vmatprep.mubr.msk.bf16.mxu1 %vm3157_vm6, %v20608_v54 }
 0x24e   : > { %16975 = vmatmul.mubr.msk.bf16.gmra.mrb[44].mxu1 %vm3157_vm6, %v20614_v6 }
 0x24f   : > { %16978 = vmatprep.mubr.msk.bf16.mxu1 %vm3157_vm6, %v20616_v50 }
 0x256   : > { %16979 = vmatmul.mubr.msk.bf16.gmra.mrb[48].mxu1 %vm3157_vm6, %v20622_v35 }
 0x257   : > { %16982 = vmatprep.mubr.msk.bf16.mxu1 %vm3157_vm6, %v20624_v42 }
 0x25e   : > { %16983 = vmatmul.mubr.msk.bf16.gmra.mrb[52].mxu1 %vm3157_vm6, %v20630_v28 }
 0x25f   : > { %16986 = vmatprep.mubr.msk.bf16.mxu1 %vm3157_vm6, %v20632_v1 }
 0x266   : > { %16987 = vmatmul.mubr.msk.bf16.gmra.mrb[56].mxu1 %vm3157_vm6, %v20638_v61 }
 0x267   : > { %16990 = vmatprep.mubr.msk.bf16.mxu1 %vm3157_vm6, %v20640_v4 }
 0x26e   : > { %16991 = vmatmul.mubr.msk.bf16.gmra.mrb[60].mxu1 %vm3157_vm6, %v20646_v38 }
 0x26f   : > { %16998 = vmatprep.mubr.msk.bf16.mxu1 %vm3157_vm6, %v3769_v37  ;;  %v20682_v37 = vpack.c.bf16 %v3752_v32, %v3751_v8  ;;  %v3763_v8 = vld [vmem:[#allocation2 + $0x13a] sm:$0xff]  ;;  %v3764_v32 = vld [vmem:[#allocation2 + $0x142] sm:$0xff] }
 0x270   : > { %v20706_v30 = vpack.c.bf16 %v3764_v32, %v3763_v8  ;;  %v19593_v8 = vld [vmem:[%s22666_s3 + $0x58] sm:$0xff]   ;;  %v19594_v32 = vld [vmem:[%s22666_s3 + $0x60] sm:$0xff]  }
 0x276   : > { %16999 = vmatmul.mubr.msk.bf16.vlgmr.msra.gmra.mrb[32].mxu1 %vm3157_vm6, %v20651_v55 }
 0x277   : > { %17031 = vmatpush3.bf16.msra.mxu1 %v20595_v26  ;;  %17002 = vmatprep.mubr.msk.bf16.mxu1 %vm3157_vm6, %v20656_v15  ;;  %v3747_v26 = vld [vmem:[#allocation2 + $0x7a] sm:$0xff] }
 0x278   : > { %17032 = vmatprep.subr.bf16.mxu1 %v19589_v5  ;;  %v20674_v29 = vpack.c.bf16 %v3748_v45, %v3747_v26  ;;  %v3761_v26 = vld [vmem:[#allocation2 + $0x122] sm:$0xff]  ;;  %v3762_v45 = vld [vmem:[#allocation2 + $0x12a] sm:$0xff] }
 0x279   : > { %v20700_v62 = vpack.c.bf16 %v3762_v45, %v3761_v26  ;;  %v19592_v26 = vld [vmem:[%s22666_s3 + $0x50] sm:$0xff]  }
 0x27b   : > { %17033 = vmatpush3.bf16.msra.mxu1 %v19589_v5  ;;  %v3758_v5 = vld [vmem:[#allocation2 + $0xfa] sm:$0xff] }
 0x27c   : > { %17066 = vmatprep.subr.bf16.mxu1 %v19590_v52  ;;  %v20692_v60 = vpack.c.bf16 %v3758_v5, %v3757_v56  ;;  %v3767_v56 = vld [vmem:[#allocation2 + $0x16a] sm:$0xff]  ;;  %v3768_v5 = vld [vmem:[#allocation2 + $0x172] sm:$0xff] }
 0x27d   : > { %v20714_v41 = vpack.c.bf16 %v3768_v5, %v3767_v56  ;;  %v5276_v56 = vld [vmem:[#allocation2 + $0x99] sm:$0xff] }
 0x27e   : > { %17003 = vmatmul.mubr.msk.bf16.gmra.mrb[36].mxu1 %vm3157_vm6, %v20666_v10  ;;  %v5273_v5 = vld [vmem:[#allocation2 + $0x79] sm:$0xff] }
 0x27f   : > { %17006 = vmatprep.mubr.msk.bf16.mxu1 %vm3157_vm6, %v20668_v40 }
 0x286   : > { %17007 = vmatmul.mubr.msk.bf16.gmra.mrb[40].mxu1 %vm3157_vm6, %v20674_v29 }
 0x287   : > { %17010 = vmatprep.mubr.msk.bf16.mxu1 %vm3157_vm6, %v20676_v3 }
 0x28e   : > { %17011 = vmatmul.mubr.msk.bf16.gmra.mrb[44].mxu1 %vm3157_vm6, %v20682_v37 }
 0x28f   : > { %17014 = vmatprep.mubr.msk.bf16.mxu1 %vm3157_vm6, %v20684_v33 }
 0x296   : > { %17015 = vmatmul.mubr.msk.bf16.gmra.mrb[48].mxu1 %vm3157_vm6, %v20690_v53 }
 0x297   : > { %17018 = vmatprep.mubr.msk.bf16.mxu1 %vm3157_vm6, %v20692_v60 }
 0x29e   : > { %17019 = vmatmul.mubr.msk.bf16.gmra.mrb[52].mxu1 %vm3157_vm6, %v20698_v34 }
 0x29f   : > { %17022 = vmatprep.mubr.msk.bf16.mxu1 %vm3157_vm6, %v20700_v62 }
 0x2a6   : > { %17023 = vmatmul.mubr.msk.bf16.gmra.mrb[56].mxu1 %vm3157_vm6, %v20706_v30 }
 0x2a7   : > { %17026 = vmatprep.mubr.msk.bf16.mxu1 %vm3157_vm6, %v20708_v44 }
 0x2ae   : > { %17027 = vmatmul.mubr.msk.bf16.gmra.mrb[60].mxu1 %vm3157_vm6, %v20714_v41 }
 0x2af   : > { %17034 = vmatprep.mubr.msk.bf16.mxu1 %vm3157_vm6, %v20580_v31  ;;  %v4074_v31 = vld [vmem:[#allocation2 + $0x188] sm:$0xff] }
 0x2b6   : > { %17035 = vmatmul.mubr.msk.bf16.vlgmr.msra.gmra.mrb[32].mxu1 %vm3157_vm6, %v20585_v24 }
 0x2b7   : > { %17067 = vmatpush3.bf16.msra.mxu1 %v19590_v52  ;;  %17038 = vmatprep.mubr.msk.bf16.mxu1 %vm3157_vm6, %v20597_v59  ;;  %v4073_v52 = vld [vmem:[#allocation2 + $0x180] sm:$0xff] }
 0x2b8   : > { %17068 = vmatprep.subr.bf16.mxu1 %v19591_v43  ;;  %v20754_v45 = vpack.c.bf16 %v4074_v31, %v4073_v52  ;;  %v5278_v52 = vld [vmem:[#allocation2 + $0xb1] sm:$0xff] }
 0x2bb   : > { %17069 = vmatpush3.bf16.msra.mxu1 %v19591_v43  ;;  %v5302_v43 = vpack.c.bf16 %v5274_v0, %v5273_v5 }
 0x2bc   : > { %17102 = vmatprep.subr.bf16.mxu1 %v19592_v26 }
 0x2be   : > { %17039 = vmatmul.mubr.msk.bf16.gmra.mrb[36].mxu1 %vm3157_vm6, %v20600_v2 }
 0x2bf   : > { %17042 = vmatprep.mubr.msk.bf16.mxu1 %vm3157_vm6, %v20606_v9 }
 0x2c6   : > { %17043 = vmatmul.mubr.msk.bf16.gmra.mrb[40].mxu1 %vm3157_vm6, %v20608_v54 }
 0x2c7   : > { %17046 = vmatprep.mubr.msk.bf16.mxu1 %vm3157_vm6, %v20614_v6 }
 0x2ce   : > { %17047 = vmatmul.mubr.msk.bf16.gmra.mrb[44].mxu1 %vm3157_vm6, %v20616_v50 }
 0x2cf   : > { %17050 = vmatprep.mubr.msk.bf16.mxu1 %vm3157_vm6, %v20622_v35 }
 0x2d6   : > { %17051 = vmatmul.mubr.msk.bf16.gmra.mrb[48].mxu1 %vm3157_vm6, %v20624_v42 }
 0x2d7   : > { %17054 = vmatprep.mubr.msk.bf16.mxu1 %vm3157_vm6, %v20630_v28 }
 0x2de   : > { %17055 = vmatmul.mubr.msk.bf16.gmra.mrb[52].mxu1 %vm3157_vm6, %v20632_v1 }
 0x2df   : > { %17058 = vmatprep.mubr.msk.bf16.mxu1 %vm3157_vm6, %v20638_v61 }
 0x2e6   : > { %17059 = vmatmul.mubr.msk.bf16.gmra.mrb[56].mxu1 %vm3157_vm6, %v20640_v4 }
 0x2e7   : > { %17062 = vmatprep.mubr.msk.bf16.mxu1 %vm3157_vm6, %v20646_v38 }
 0x2ee   : > { %17063 = vmatmul.mubr.msk.bf16.gmra.mrb[60].mxu1 %vm3157_vm6, %v20754_v45 }
 0x2ef   : > { %17070 = vmatprep.mubr.msk.bf16.mxu1 %vm3157_vm6, %v20457_v46  ;;  %v4380_v46 = vld [vmem:[#allocation2 + $0x189] sm:$0xff] }
 0x2f6   : > { %17071 = vmatmul.mubr.msk.bf16.vlgmr.msra.gmra.mrb[32].mxu1 %vm3157_vm6, %v20463_v47  ;;  %v4379_v47 = vld [vmem:[#allocation2 + $0x181] sm:$0xff] }
 0x2f7   : > { %17103 = vmatpush3.bf16.msra.mxu1 %v19592_v26  ;;  %17074 = vmatprep.mubr.msk.bf16.mxu1 %vm3157_vm6, %v20484_v23  ;;  %v20794_v23 = vpack.c.bf16 %v4380_v46, %v4379_v47  ;;  %v5275_v26 = vld [vmem:[#allocation2 + $0x91] sm:$0xff]  ;;  %v5279_v46 = vld [vmem:[#allocation2 + $0xc1] sm:$0xff] }
 0x2f8   : > { %17104 = vmatprep.subr.bf16.mxu1 %v19593_v8  ;;  %v5303_v31 = vpack.c.bf16 %v5276_v56, %v5275_v26 }
 0x2fb   : > { %17105 = vmatpush3.bf16.msra.mxu1 %v19593_v8  ;;  %v5277_v8 = vld [vmem:[#allocation2 + $0xa9] sm:$0xff] }
 0x2fc   : > { %17138 = vmatprep.subr.bf16.mxu1 %v19594_v32 }
 0x2fe   : > { %17075 = vmatmul.mubr.msk.bf16.gmra.mrb[36].mxu1 %vm3157_vm6, %v20489_v49  ;;  %v19595_v49 = vld [vmem:[%s22666_s3 + $0x68] sm:$0xff]  }
 0x2ff   : > { %17078 = vmatprep.mubr.msk.bf16.mxu1 %vm3157_vm6, %v20503_v7  ;;  %v19596_v7 = vld [vmem:[%s22666_s3 + $0x70] sm:$0xff]  }
 0x306   : > { %17079 = vmatmul.mubr.msk.bf16.gmra.mrb[40].mxu1 %vm3157_vm6, %v20506_v63  ;;  %v4685_v63 = vld [vmem:[#allocation2 + $0x182] sm:$0xff] }
 0x307   : > { %17082 = vmatprep.mubr.msk.bf16.mxu1 %vm3157_vm6, %v20519_v16  ;;  %v4686_v16 = vld [vmem:[#allocation2 + $0x18a] sm:$0xff] }
 0x30e   : > { %17083 = vmatmul.mubr.msk.bf16.gmra.mrb[44].mxu1 %vm3157_vm6, %v20522_v36  ;;  %v20834_v36 = vpack.c.bf16 %v4686_v16, %v4685_v63  ;;  %v5281_v63 = vld [vmem:[#allocation2 + $0xd9] sm:$0xff] }
 0x30f   : > { %17086 = vmatprep.mubr.msk.bf16.mxu1 %vm3157_vm6, %v20535_v51  ;;  %v19597_v51 = vld [vmem:[%s22666_s3 + $0x78] sm:$0xff]  }
 0x316   : > { %17087 = vmatmul.mubr.msk.bf16.gmra.mrb[48].mxu1 %vm3157_vm6, %v20538_v18  ;;  %v19598_v18 = vld [vmem:[%s22666_s3 + $0x80] sm:$0xff]  }
 0x317   : > { %17090 = vmatprep.mubr.msk.bf16.mxu1 %vm3157_vm6, %v20551_v48 }
 0x31e   : > { %17091 = vmatmul.mubr.msk.bf16.gmra.mrb[52].mxu1 %vm3157_vm6, %v20554_v57 }
 0x31f   : > { %17094 = vmatprep.mubr.msk.bf16.mxu1 %vm3157_vm6, %v20567_v11 }
 0x326   : > { %17095 = vmatmul.mubr.msk.bf16.gmra.mrb[56].mxu1 %vm3157_vm6, %v20569_v39 }
 0x327   : > { %17098 = vmatprep.mubr.msk.bf16.mxu1 %vm3157_vm6, %v20575_v27 }
 0x32e   : > { %17099 = vmatmul.mubr.msk.bf16.gmra.mrb[60].mxu1 %vm3157_vm6, %v20794_v23 }
 0x32f   : > { %17106 = vmatprep.mubr.msk.bf16.mxu1 %vm3157_vm6, %v20651_v55  ;;  %v19599_v55 = vld [vmem:[%s22666_s3 + $0x88] sm:$0xff]  }
 0x336   : > { %17107 = vmatmul.mubr.msk.bf16.vlgmr.msra.gmra.mrb[32].mxu1 %vm3157_vm6, %v20656_v15 }
 0x337   : > { %17139 = vmatpush3.bf16.msra.mxu1 %v19594_v32  ;;  %17110 = vmatprep.mubr.msk.bf16.mxu1 %vm3157_vm6, %v20666_v10  ;;  %v5304_v32 = vpack.c.bf16 %v5278_v52, %v5277_v8 }
 0x338   : > { %17140 = vmatprep.subr.bf16.mxu1 %v19595_v49 }
 0x33b   : > { %17141 = vmatpush3.bf16.msra.mxu1 %v19595_v49  ;;  %v5282_v49 = vld [vmem:[#allocation2 + $0xe1] sm:$0xff] }
 0x33c   : > { %17174 = vmatprep.subr.bf16.mxu1 %v19596_v7  ;;  %v5306_v16 = vpack.c.bf16 %v5282_v49, %v5281_v63 }
 0x33e   : > { %17111 = vmatmul.mubr.msk.bf16.gmra.mrb[36].mxu1 %vm3157_vm6, %v20668_v40 }
 0x33f   : > { %17114 = vmatprep.mubr.msk.bf16.mxu1 %vm3157_vm6, %v20674_v29 }
 0x346   : > { %17115 = vmatmul.mubr.msk.bf16.gmra.mrb[40].mxu1 %vm3157_vm6, %v20676_v3 }
 0x347   : > { %17118 = vmatprep.mubr.msk.bf16.mxu1 %vm3157_vm6, %v20682_v37 }
 0x34e   : > { %17119 = vmatmul.mubr.msk.bf16.gmra.mrb[44].mxu1 %vm3157_vm6, %v20684_v33 }
 0x34f   : > { %17122 = vmatprep.mubr.msk.bf16.mxu1 %vm3157_vm6, %v20690_v53 }
 0x356   : > { %17123 = vmatmul.mubr.msk.bf16.gmra.mrb[48].mxu1 %vm3157_vm6, %v20692_v60 }
 0x357   : > { %17126 = vmatprep.mubr.msk.bf16.mxu1 %vm3157_vm6, %v20698_v34 }
 0x35e   : > { %17127 = vmatmul.mubr.msk.bf16.gmra.mrb[52].mxu1 %vm3157_vm6, %v20700_v62 }
 0x35f   : > { %17130 = vmatprep.mubr.msk.bf16.mxu1 %vm3157_vm6, %v20706_v30 }
 0x366   : > { %17131 = vmatmul.mubr.msk.bf16.gmra.mrb[56].mxu1 %vm3157_vm6, %v20708_v44 }
 0x367   : > { %17134 = vmatprep.mubr.msk.bf16.mxu1 %vm3157_vm6, %v20714_v41 }
 0x36e   : > { %17135 = vmatmul.mubr.msk.bf16.gmra.mrb[60].mxu1 %vm3157_vm6, %v20834_v36 }
 0x36f   : > { %17142 = vmatprep.mubr.msk.bf16.mxu1 %vm3157_vm6, %v20585_v24  ;;  %v4991_v24 = vld [vmem:[#allocation2 + $0x198] sm:$0xff] }
 0x376   : > { %17143 = vmatmul.mubr.msk.bf16.vlgmr.msra.gmra.mrb[32].mxu1 %vm3157_vm6, %v20597_v59  ;;  %v4992_v59 = vld [vmem:[#allocation2 + $0x1a0] sm:$0xff] }
 0x377   : > { %17175 = vmatpush3.bf16.msra.mxu1 %v19596_v7  ;;  %17146 = vmatprep.mubr.msk.bf16.mxu1 %vm3157_vm6, %v20600_v2  ;;  %v5008_v2 = vpack.c.bf16 %v4992_v59, %v4991_v24  ;;  %v5284_v7 = vld [vmem:[#allocation2 + $0xf9] sm:$0xff]  ;;  %v5298_v59 = vld [vmem:[#allocation2 + $0x1a1] sm:$0xff] }
 0x378   : > { %17176 = vmatprep.subr.bf16.mxu1 %v19597_v51  ;;  %v5297_v24 = vld [vmem:[#allocation2 + $0x199] sm:$0xff] }
 0x37b   : > { %17177 = vmatpush3.bf16.msra.mxu1 %v19597_v51  ;;  %v5283_v51 = vld [vmem:[#allocation2 + $0xf1] sm:$0xff] }
 0x37c   : > { %17210 = vmatprep.subr.bf16.mxu1 %v19598_v18 }
 0x37e   : > { %17147 = vmatmul.mubr.msk.bf16.gmra.mrb[36].mxu1 %vm3157_vm6, %v20606_v9  ;;  %v5268_v9 = vld [vmem:[#allocation2 + $0x39] sm:$0xff] }
 0x37f   : > { %17150 = vmatprep.mubr.msk.bf16.mxu1 %vm3157_vm6, %v20608_v54  ;;  %v5267_v54 = vld [vmem:[#allocation2 + $0x31] sm:$0xff] }
 0x386   : > { %17151 = vmatmul.mubr.msk.bf16.gmra.mrb[40].mxu1 %vm3157_vm6, %v20614_v6  ;;  %v5299_v6 = vpack.c.bf16 %v5268_v9, %v5267_v54 }
 0x387   : > { %17154 = vmatprep.mubr.msk.bf16.mxu1 %vm3157_vm6, %v20616_v50  ;;  %v19600_v50 = vld [vmem:[%s22668_s5 + $0x20] sm:$0xff]  }
 0x388   : > { %17246 = vmatprep.subr.bf16.mxu0 %v19600_v50 }
 0x389   : > { %17247 = vmatpush3.bf16.msra.mxu0 %v19600_v50 }
 0x38e   : > { %17155 = vmatmul.mubr.msk.bf16.gmra.mrb[44].mxu1 %vm3157_vm6, %v20622_v35  ;;  %v19601_v35 = vld [vmem:[%s22668_s5 + $0x28] sm:$0xff]  }
 0x38f   : > { %17158 = vmatprep.mubr.msk.bf16.mxu1 %vm3157_vm6, %v20624_v42  ;;  %v5270_v42 = vld [vmem:[#allocation2 + $0x51] sm:$0xff]  ;;  %17248 = vmatprep.subr.bf16.mxu0 %v19601_v35 }
 0x390   : > { %17249 = vmatpush3.bf16.msra.mxu0 %v19601_v35 }
 0x396   : > { %17159 = vmatmul.mubr.msk.bf16.gmra.mrb[48].mxu1 %vm3157_vm6, %v20630_v28  ;;  %v5272_v28 = vld [vmem:[#allocation2 + $0x69] sm:$0xff] }
 0x397   : > { %17162 = vmatprep.mubr.msk.bf16.mxu1 %vm3157_vm6, %v20632_v1  ;;  %v19602_v1 = vld [vmem:[%s22668_s5 + $0x30] sm:$0xff]  }
 0x398   : > { %17250 = vmatprep.subr.bf16.mxu0 %v19602_v1 }
 0x399   : > { %17251 = vmatpush3.bf16.msra.mxu0 %v19602_v1 }
 0x39e   : > { %17163 = vmatmul.mubr.msk.bf16.gmra.mrb[52].mxu1 %vm3157_vm6, %v20638_v61  ;;  %v5269_v61 = vld [vmem:[#allocation2 + $0x49] sm:$0xff] }
 0x39f   : > { %17166 = vmatprep.mubr.msk.bf16.mxu1 %vm3157_vm6, %v20640_v4  ;;  %v5300_v4 = vpack.c.bf16 %v5270_v42, %v5269_v61 }
 0x3a6   : > { %17167 = vmatmul.mubr.msk.bf16.gmra.mrb[56].mxu1 %vm3157_vm6, %v20646_v38  ;;  %v5271_v38 = vld [vmem:[#allocation2 + $0x61] sm:$0xff] }
 0x3a7   : > { %17170 = vmatprep.mubr.msk.bf16.mxu1 %vm3157_vm6, %v20754_v45  ;;  %v5301_v58 = vpack.c.bf16 %v5272_v28, %v5271_v38  ;;  %v5280_v45 = vld [vmem:[#allocation2 + $0xc9] sm:$0xff] }
 0x3a8   : > { %v5305_v47 = vpack.c.bf16 %v5280_v45, %v5279_v46 }
 0x3ae   : > { %17171 = vmatmul.mubr.msk.bf16.gmra.mrb[60].mxu1 %vm3157_vm6, %v5008_v2  ;;  %v5314_v2 = vpack.c.bf16 %v5298_v59, %v5297_v24 }
 0x3af   : > { %17178 = vmatprep.mubr.msk.bf16.mxu1 %vm3157_vm6, %v5299_v6 }
 0x3b6   : > { %17179 = vmatmul.mubr.msk.bf16.vlgmr.msra.gmra.mrb[32].mxu1 %vm3157_vm6, %v5300_v4 }
 0x3b7   : > { %17211 = vmatpush3.bf16.msra.mxu1 %v19598_v18  ;;  %17182 = vmatprep.mubr.msk.bf16.mxu1 %vm3157_vm6, %v5301_v58  ;;  %v5307_v18 = vpack.c.bf16 %v5284_v7, %v5283_v51  ;;  %v19606_v51 = vld [vmem:[%s22668_s5 + $0x10] sm:$0xff]  }
 0x3b8   : > { %17212 = vmatprep.subr.bf16.mxu1 %v19599_v55 }
 0x3bb   : > { %17213 = vmatpush3.bf16.msra.mxu1 %v19599_v55 }
 0x3be   : > { %17183 = vmatmul.mubr.msk.bf16.gmra.mrb[36].mxu1 %vm3157_vm6, %v5302_v43 }
 0x3bf   : > { %17186 = vmatprep.mubr.msk.bf16.mxu1 %vm3157_vm6, %v5303_v31  ;;  %v19605_v31 = vld [vmem:[%s22668_s5 + $0x8] sm:$0xff]  }
 0x3c6   : > { %17187 = vmatmul.mubr.msk.bf16.gmra.mrb[40].mxu1 %vm3157_vm6, %v5304_v32 }
 0x3c7   : > { %17190 = vmatprep.mubr.msk.bf16.mxu1 %vm3157_vm6, %v5305_v47 }
 0x3ce   : > { %17191 = vmatmul.mubr.msk.bf16.gmra.mrb[44].mxu1 %vm3157_vm6, %v5306_v16 }
 0x3cf   : > { %17194 = vmatprep.mubr.msk.bf16.mxu1 %vm3157_vm6, %v5307_v18 }
 0x3d6   : > { %17195 = vmatmul.mubr.msk.bf16.gmra.mrb[48].mxu1 %vm3157_vm6, %v20551_v48  ;;  %v5603_v48 = vld [vmem:[#allocation2 + $0x19a] sm:$0xff] }
 0x3d7   : > { %17198 = vmatprep.mubr.msk.bf16.mxu1 %vm3157_vm6, %v20554_v57  ;;  %v5604_v57 = vld [vmem:[#allocation2 + $0x1a2] sm:$0xff] }
 0x3de   : > { %17199 = vmatmul.mubr.msk.bf16.gmra.mrb[52].mxu1 %vm3157_vm6, %v20567_v11  ;;  %v5620_v11 = vpack.c.bf16 %v5604_v57, %v5603_v48 }
 0x3df   : > { %17202 = vmatprep.mubr.msk.bf16.mxu1 %vm3157_vm6, %v20569_v39  ;;  %v19603_v39 = vld [vmem:[%s22668_s5 + $0x38] sm:$0xff]  }
 0x3e0   : > { %17252 = vmatprep.subr.bf16.mxu0 %v19603_v39 }
 0x3e1   : > { %17253 = vmatpush3.bf16.msra.mxu0 %v19603_v39 }
 0x3e6   : > { %17203 = vmatmul.mubr.msk.bf16.gmra.mrb[56].mxu1 %vm3157_vm6, %v20575_v27  ;;  %v6038_v27 = vld [vmem:[#allocation2 + $0x1] sm:$0xff] }
 0x3e7   : > { %17206 = vmatprep.mubr.msk.bf16.mxu1 %vm3157_vm6, %v20794_v23 }
 0x3ee   : > { %17207 = vmatmul.mubr.msk.bf16.gmra.mrb[60].mxu1 %vm3157_vm6, %v5314_v2 }
 0x3ef   : > { %17214 = vmatprep.mubr.msk.bf16.mxu1 %vm3157_vm6, %v20656_v15  ;;  %v6039_v15 = vld [vmem:[#allocation2 + $0x9] sm:$0xff] }
 0x3f6   : > { %17215 = vmatmul.mubr.msk.bf16.vlgmr.msra.gmra.mrb[32].mxu1 %vm3157_vm6, %v20666_v10  ;;  %v6070_v10 = vpack.c.bf16 %v6039_v15, %v6038_v27  ;;  %v19607_v27 = vld [vmem:[%s22668_s5 + $0x18] sm:$0xff]  }
 0x3f7   : > { %17218 = vmatprep.mubr.msk.bf16.mxu1 %vm3157_vm6, %v20668_v40  ;;  %v19604_v40 = vld [vmem:[%s22668_s5] sm:$0xff]  }
 0x3f8   : > { %17254 = vmatprep.mubr.msk.bf16.mxu0 %vm388_vm2, %v6070_v10  ;;  %17286 = vmatprep.subr.bf16.mxu0 %v19604_v40 }
 0x3fe   : > { %17219 = vmatmul.mubr.msk.bf16.gmra.mrb[36].mxu1 %vm3157_vm6, %v20674_v29  ;;  %v20950_v29 = vld [vmem:[%s22667_s4] ss:$0 sm:$0xff] }
 0x3ff   : > { %17222 = vmatprep.mubr.msk.bf16.mxu1 %vm3157_vm6, %v20676_v3 }
 0x406   : > { %17223 = vmatmul.mubr.msk.bf16.gmra.mrb[40].mxu1 %vm3157_vm6, %v20682_v37 }
 0x407   : > { %17226 = vmatprep.mubr.msk.bf16.mxu1 %vm3157_vm6, %v20684_v33 }
 0x40e   : > { %17227 = vmatmul.mubr.msk.bf16.gmra.mrb[44].mxu1 %vm3157_vm6, %v20690_v53 }
 0x40f   : > { %17230 = vmatprep.mubr.msk.bf16.mxu1 %vm3157_vm6, %v20692_v60 }
 0x416   : > { %17231 = vmatmul.mubr.msk.bf16.gmra.mrb[48].mxu1 %vm3157_vm6, %v20698_v34 }
 0x417   : > { %17234 = vmatprep.mubr.msk.bf16.mxu1 %vm3157_vm6, %v20700_v62 }
 0x41e   : > { %17235 = vmatmul.mubr.msk.bf16.gmra.mrb[52].mxu1 %vm3157_vm6, %v20706_v30 }
 0x41f   : > { %17238 = vmatprep.mubr.msk.bf16.mxu1 %vm3157_vm6, %v20708_v44 }
 0x426   : > { %17239 = vmatmul.mubr.msk.bf16.gmra.mrb[56].mxu1 %vm3157_vm6, %v20714_v41 }
 0x427   : > { %17242 = vmatprep.mubr.msk.bf16.mxu1 %vm3157_vm6, %v20834_v36 }
 0x42e   : > { %17243 = vmatmul.mubr.msk.bf16.gmra.mrb[60].mxu1 %vm3157_vm6, %v5620_v11 }
 0x4c9   : > { %v17216_v3 = vpop.f32.mrb[32].mxu1 }
 0x4ca   : > { %v5888_v37 = vadd.f32 %v17216_v3, %v20950_v29  ;;  %v5720_v33 = vpop.f32.mrb[33].mxu1 }
 0x4cb   : > { %v5886_v53 = vadd.f32 %v20950_v29, %v5720_v33  ;;  %v17217_v60 = vpop.f32.mrb[34].mxu1 }
 0x4cc   : > { %v5920_v34 = vmax.f32 %v5888_v37, 0.0  ;;  %v5889_v62 = vadd.f32 %v17217_v60, %v20950_v29  ;;  %v5723_v30 = vpop.f32.mrb[35].mxu1 }
 0x4cd   : > { %v5918_v44 = vmax.f32 %v5886_v53, 0.0  ;;  %v5887_v41 = vadd.f32 %v20950_v29, %v5723_v30  ;;  %v21008_v30 = vld [vmem:[%s22668_s5 + $0x40] sm:$0xff]  }
 0x4ce   : > { %5952 = vst.msk [vmem:[#allocation2 + $0x31] sm:$0xff] %vm388_vm2, %v5920_v34  ;;  %v5921_v23 = vmax.f32 %v5889_v62, 0.0 }
 0x4cf   : > { %5950 = vst.msk [vmem:[#allocation2 + $0x19] sm:$0xff] %vm388_vm2, %v5918_v44  ;;  %v5919_v36 = vmax.f32 %v5887_v41, 0.0 }
 0x4d0   : > { %5953 = vst.msk [vmem:[#allocation2 + $0x39] sm:$0xff] %vm388_vm2, %v5921_v23 }
 0x4d1   : > { %5951 = vst.msk [vmem:[#allocation2 + $0x21] sm:$0xff] %vm388_vm2, %v5919_v36  ;;  %v17220_v9 = vpop.f32.mrb[36].mxu1 }
 0x4d2   : > { %v5892_v54 = vadd.f32 %v17220_v9, %v20950_v29  ;;  %v5736_v6 = vpop.f32.mrb[37].mxu1 }
 0x4d3   : > { %v5890_v50 = vadd.f32 %v20950_v29, %v5736_v6  ;;  %v17221_v35 = vpop.f32.mrb[38].mxu1 }
 0x4d4   : > { %v5924_v42 = vmax.f32 %v5892_v54, 0.0  ;;  %v5893_v28 = vadd.f32 %v17221_v35, %v20950_v29  ;;  %v5739_v1 = vpop.f32.mrb[39].mxu1 }
 0x4d5   : > { %v5922_v61 = vmax.f32 %v5890_v50, 0.0  ;;  %v5891_v4 = vadd.f32 %v20950_v29, %v5739_v1  ;;  %v6042_v26 = vld [vmem:[#allocation2 + $0x31] sm:$0xff] }
 0x4d6   : > { %5956 = vst.msk [vmem:[#allocation2 + $0x61] sm:$0xff] %vm388_vm2, %v5924_v42  ;;  %v5925_v38 = vmax.f32 %v5893_v28, 0.0  ;;  %v6040_v0 = vld [vmem:[#allocation2 + $0x19] sm:$0xff] }
 0x4d7   : > { %5954 = vst.msk [vmem:[#allocation2 + $0x49] sm:$0xff] %vm388_vm2, %v5922_v61  ;;  %v5923_v55 = vmax.f32 %v5891_v4, 0.0  ;;  %v6043_v58 = vld [vmem:[#allocation2 + $0x39] sm:$0xff] }
 0x4d8   : > { %5957 = vst.msk [vmem:[#allocation2 + $0x69] sm:$0xff] %vm388_vm2, %v5925_v38  ;;  %v6041_v56 = vld [vmem:[#allocation2 + $0x21] sm:$0xff]  ;;  %v20974_v8 = vpack.c.bf16 %v6043_v58, %v6042_v26 }
 0x4d9   : > { %5955 = vst.msk [vmem:[#allocation2 + $0x51] sm:$0xff] %vm388_vm2, %v5923_v55  ;;  %v17224_v5 = vpop.f32.mrb[40].mxu1  ;;  %v20968_v43 = vpack.c.bf16 %v6041_v56, %v6040_v0 }
 0x4da   : > { %v5896_v52 = vadd.f32 %v17224_v5, %v20950_v29  ;;  %v5752_v45 = vpop.f32.mrb[41].mxu1 }
 0x4db   : > { %v5894_v32 = vadd.f32 %v20950_v29, %v5752_v45  ;;  %v17225_v46 = vpop.f32.mrb[42].mxu1  ;;  %17255 = vmatmul.mubr.msk.bf16.vlgmr.msra.gmra.mrb[32].mxu0 %vm388_vm2, %v20968_v43 }
 0x4dc   : > { %v5928_v47 = vmax.f32 %v5896_v52, 0.0  ;;  %v5897_v49 = vadd.f32 %v17225_v46, %v20950_v29  ;;  %17287 = vmatpush3.bf16.msra.mxu0 %v19604_v40  ;;  %v5755_v7 = vpop.f32.mrb[43].mxu1  ;;  %17258 = vmatprep.mubr.msk.bf16.mxu0 %vm388_vm2, %v20974_v8 }
 0x4dd   : > { %v5926_v63 = vmax.f32 %v5894_v32, 0.0  ;;  %v5895_v16 = vadd.f32 %v20950_v29, %v5755_v7  ;;  %17288 = vmatprep.subr.bf16.mxu0 %v19605_v31  ;;  %v6046_v39 = vld [vmem:[#allocation2 + $0x61] sm:$0xff] }
 0x4de   : > { %5960 = vst.msk [vmem:[#allocation2 + $0x91] sm:$0xff] %vm388_vm2, %v5928_v47  ;;  %v5929_v18 = vmax.f32 %v5897_v49, 0.0  ;;  %v6044_v2 = vld [vmem:[#allocation2 + $0x49] sm:$0xff] }
 0x4df   : > { %5958 = vst.msk [vmem:[#allocation2 + $0x79] sm:$0xff] %vm388_vm2, %v5926_v63  ;;  %v5927_v24 = vmax.f32 %v5895_v16, 0.0  ;;  %v6047_v59 = vld [vmem:[#allocation2 + $0x69] sm:$0xff] }
 0x4e0   : > { %5961 = vst.msk [vmem:[#allocation2 + $0x99] sm:$0xff] %vm388_vm2, %v5929_v18  ;;  %v6045_v48 = vld [vmem:[#allocation2 + $0x51] sm:$0xff]  ;;  %17289 = vmatpush3.bf16.msra.mxu0 %v19605_v31  ;;  %v20996_v40 = vpack.c.bf16 %v6047_v59, %v6046_v39 }
 0x4e1   : > { %5959 = vst.msk [vmem:[#allocation2 + $0x81] sm:$0xff] %vm388_vm2, %v5927_v24  ;;  %v17228_v57 = vpop.f32.mrb[44].mxu1  ;;  %v20990_v11 = vpack.c.bf16 %v6045_v48, %v6044_v2  ;;  %17290 = vmatprep.subr.bf16.mxu0 %v19606_v51 }
 0x4e2   : > { %v5900_v15 = vadd.f32 %v17228_v57, %v20950_v29  ;;  %v5768_v10 = vpop.f32.mrb[45].mxu1 }
 0x4e3   : > { %v5898_v3 = vadd.f32 %v20950_v29, %v5768_v10  ;;  %v17229_v37 = vpop.f32.mrb[46].mxu1  ;;  %17259 = vmatmul.mubr.msk.bf16.gmra.mrb[36].mxu0 %vm388_vm2, %v20990_v11 }
 0x4e4   : > { %v5932_v33 = vmax.f32 %v5900_v15, 0.0  ;;  %v5901_v53 = vadd.f32 %v17229_v37, %v20950_v29  ;;  %v5771_v60 = vpop.f32.mrb[47].mxu1  ;;  %17262 = vmatprep.mubr.msk.bf16.mxu0 %vm388_vm2, %v20996_v40  ;;  %17291 = vmatpush3.bf16.msra.mxu0 %v19606_v51 }
 0x4e5   : > { %v5930_v34 = vmax.f32 %v5898_v3, 0.0  ;;  %v5899_v62 = vadd.f32 %v20950_v29, %v5771_v60  ;;  %17292 = vmatprep.subr.bf16.mxu0 %v19607_v27  ;;  %v6050_v50 = vld [vmem:[#allocation2 + $0x91] sm:$0xff] }
 0x4e6   : > { %5964 = vst.msk [vmem:[#allocation2 + $0xc1] sm:$0xff] %vm388_vm2, %v5932_v33  ;;  %v5933_v44 = vmax.f32 %v5901_v53, 0.0  ;;  %v6048_v36 = vld [vmem:[#allocation2 + $0x79] sm:$0xff] }
 0x4e7   : > { %5962 = vst.msk [vmem:[#allocation2 + $0xa9] sm:$0xff] %vm388_vm2, %v5930_v34  ;;  %v5931_v41 = vmax.f32 %v5899_v62, 0.0  ;;  %v6051_v23 = vld [vmem:[#allocation2 + $0x99] sm:$0xff] }
 0x4e8   : > { %5965 = vst.msk [vmem:[#allocation2 + $0xc9] sm:$0xff] %vm388_vm2, %v5933_v44  ;;  %v6049_v9 = vld [vmem:[#allocation2 + $0x81] sm:$0xff]  ;;  %17293 = vmatpush3.bf16.msra.mxu0 %v19607_v27  ;;  %v21018_v28 = vpack.c.bf16 %v6051_v23, %v6050_v50 }
 0x4e9   : > { %5963 = vst.msk [vmem:[#allocation2 + $0xb1] sm:$0xff] %vm388_vm2, %v5931_v41  ;;  %v17232_v54 = vpop.f32.mrb[48].mxu1  ;;  %v21014_v6 = vpack.c.bf16 %v6049_v9, %v6048_v36  ;;  %17326 = vmatprep.subr.bf16.mxu0 %v21008_v30 }
 0x4ea   : > { %v5904_v35 = vadd.f32 %v17232_v54, %v20950_v29  ;;  %v5784_v42 = vpop.f32.mrb[49].mxu1 }
 0x4eb   : > { %v5902_v1 = vadd.f32 %v20950_v29, %v5784_v42  ;;  %v17233_v61 = vpop.f32.mrb[50].mxu1  ;;  %17263 = vmatmul.mubr.msk.bf16.gmra.mrb[40].mxu0 %vm388_vm2, %v21014_v6 }
 0x4ec   : > { %v5936_v4 = vmax.f32 %v5904_v35, 0.0  ;;  %v5905_v38 = vadd.f32 %v17233_v61, %v20950_v29  ;;  %v5787_v55 = vpop.f32.mrb[51].mxu1  ;;  %17266 = vmatprep.mubr.msk.bf16.mxu0 %vm388_vm2, %v21018_v28 }
 0x4ed   : > { %v5934_v58 = vmax.f32 %v5902_v1, 0.0  ;;  %v5903_v0 = vadd.f32 %v20950_v29, %v5787_v55  ;;  %v6054_v46 = vld [vmem:[#allocation2 + $0xc1] sm:$0xff] }
 0x4ee   : > { %5968 = vst.msk [vmem:[#allocation2 + $0xf1] sm:$0xff] %vm388_vm2, %v5936_v4  ;;  %v5937_v56 = vmax.f32 %v5905_v38, 0.0  ;;  %v6052_v31 = vld [vmem:[#allocation2 + $0xa9] sm:$0xff] }
 0x4ef   : > { %5966 = vst.msk [vmem:[#allocation2 + $0xd9] sm:$0xff] %vm388_vm2, %v5934_v58  ;;  %v5935_v5 = vmax.f32 %v5903_v0, 0.0  ;;  %v6055_v26 = vld [vmem:[#allocation2 + $0xc9] sm:$0xff] }
 0x4f0   : > { %5969 = vst.msk [vmem:[#allocation2 + $0xf9] sm:$0xff] %vm388_vm2, %v5937_v56  ;;  %v6053_v52 = vld [vmem:[#allocation2 + $0xb1] sm:$0xff]  ;;  %v21034_v7 = vpack.c.bf16 %v6055_v26, %v6054_v46 }
 0x4f1   : > { %5967 = vst.msk [vmem:[#allocation2 + $0xe1] sm:$0xff] %vm388_vm2, %v5935_v5  ;;  %v17236_v45 = vpop.f32.mrb[52].mxu1  ;;  %v21031_v32 = vpack.c.bf16 %v6053_v52, %v6052_v31 }
 0x4f2   : > { %v5908_v47 = vadd.f32 %v17236_v45, %v20950_v29  ;;  %v5800_v49 = vpop.f32.mrb[53].mxu1 }
 0x4f3   : > { %v5906_v63 = vadd.f32 %v20950_v29, %v5800_v49  ;;  %v17237_v16 = vpop.f32.mrb[54].mxu1  ;;  %17267 = vmatmul.mubr.msk.bf16.gmra.mrb[44].mxu0 %vm388_vm2, %v21031_v32 }
 0x4f4   : > { %v5940_v51 = vmax.f32 %v5908_v47, 0.0  ;;  %v5909_v18 = vadd.f32 %v17237_v16, %v20950_v29  ;;  %v5803_v24 = vpop.f32.mrb[55].mxu1  ;;  %17270 = vmatprep.mubr.msk.bf16.mxu0 %vm388_vm2, %v21034_v7 }
 0x4f5   : > { %v5938_v59 = vmax.f32 %v5906_v63, 0.0  ;;  %v5907_v2 = vadd.f32 %v20950_v29, %v5803_v24  ;;  %v6058_v37 = vld [vmem:[#allocation2 + $0xf1] sm:$0xff] }
 0x4f6   : > { %5972 = vst.msk [vmem:[#allocation2 + $0x121] sm:$0xff] %vm388_vm2, %v5940_v51  ;;  %v5941_v48 = vmax.f32 %v5909_v18, 0.0  ;;  %v6056_v27 = vld [vmem:[#allocation2 + $0xd9] sm:$0xff] }
 0x4f7   : > { %5970 = vst.msk [vmem:[#allocation2 + $0x109] sm:$0xff] %vm388_vm2, %v5938_v59  ;;  %v5939_v57 = vmax.f32 %v5907_v2, 0.0  ;;  %v6059_v39 = vld [vmem:[#allocation2 + $0xf9] sm:$0xff]  ;;  %v5983_v2 = vld [vmem:[#allocation2 + $0x8] sm:$0xff] }
 0x4f8   : > { %5973 = vst.msk [vmem:[#allocation2 + $0x129] sm:$0xff] %vm388_vm2, %v5941_v48  ;;  %v6057_v15 = vld [vmem:[#allocation2 + $0xe1] sm:$0xff]  ;;  %v21050_v60 = vpack.c.bf16 %v6059_v39, %v6058_v37  ;;  %v5984_v37 = vld [vmem:[#allocation2 + $0x18] sm:$0xff] }
 0x4f9   : > { %5971 = vst.msk [vmem:[#allocation2 + $0x111] sm:$0xff] %vm388_vm2, %v5939_v57  ;;  %v17240_v10 = vpop.f32.mrb[56].mxu1  ;;  %v21047_v3 = vpack.c.bf16 %v6057_v15, %v6056_v27  ;;  %v5985_v15 = vld [vmem:[#allocation2 + $0x20] sm:$0xff] }
 0x4fa   : > { %v5912_v33 = vadd.f32 %v17240_v10, %v20950_v29  ;;  %v5816_v53 = vpop.f32.mrb[57].mxu1  ;;  %v5987_v10 = vld [vmem:[#allocation2 + $0x38] sm:$0xff] }
 0x4fb   : > { %v5910_v34 = vadd.f32 %v20950_v29, %v5816_v53  ;;  %v17241_v62 = vpop.f32.mrb[58].mxu1  ;;  %17271 = vmatmul.mubr.msk.bf16.gmra.mrb[48].mxu0 %vm388_vm2, %v21047_v3  ;;  %v5986_v53 = vld [vmem:[#allocation2 + $0x30] sm:$0xff] }
 0x4fc   : > { %v5944_v44 = vmax.f32 %v5912_v33, 0.0  ;;  %v5913_v41 = vadd.f32 %v17241_v62, %v20950_v29  ;;  %v5819_v23 = vpop.f32.mrb[59].mxu1  ;;  %17274 = vmatprep.mubr.msk.bf16.mxu0 %vm388_vm2, %v21050_v60  ;;  %v21092_v33 = vpack.c.bf16 %v5985_v15, %v5984_v37  ;;  %v21097_v62 = vpack.c.bf16 %v5987_v10, %v5986_v53 }
 0x4fd   : > { %v5942_v36 = vmax.f32 %v5910_v34, 0.0  ;;  %v5911_v9 = vadd.f32 %v20950_v29, %v5819_v23  ;;  %v6062_v38 = vld [vmem:[#allocation2 + $0x121] sm:$0xff] }
 0x4fe   : > { %5976 = vst.msk [vmem:[#allocation2 + $0x151] sm:$0xff] %vm388_vm2, %v5944_v44  ;;  %v5945_v54 = vmax.f32 %v5913_v41, 0.0  ;;  %v6060_v42 = vld [vmem:[#allocation2 + $0x109] sm:$0xff] }
 0x4ff   : > { %5974 = vst.msk [vmem:[#allocation2 + $0x139] sm:$0xff] %vm388_vm2, %v5942_v36  ;;  %v5943_v50 = vmax.f32 %v5911_v9, 0.0  ;;  %v6063_v35 = vld [vmem:[#allocation2 + $0x129] sm:$0xff] }
 0x500   : > { %5977 = vst.msk [vmem:[#allocation2 + $0x159] sm:$0xff] %vm388_vm2, %v5945_v54  ;;  %v6061_v1 = vld [vmem:[#allocation2 + $0x111] sm:$0xff]  ;;  %v21066_v0 = vpack.c.bf16 %v6063_v35, %v6062_v38  ;;  %v19609_v34 = vld [vmem:[%s22668_s5 + $0x48] sm:$0xff]   ;;  %v5990_v54 = vld [vmem:[#allocation2 + $0x60] sm:$0xff] }
 0x501   : > { %5975 = vst.msk [vmem:[#allocation2 + $0x141] sm:$0xff] %vm388_vm2, %v5943_v50  ;;  %v17244_v61 = vpop.f32.mrb[60].mxu1  ;;  %v21063_v4 = vpack.c.bf16 %v6061_v1, %v6060_v42  ;;  %v19610_v44 = vld [vmem:[%s22668_s5 + $0x50] sm:$0xff]   ;;  %v5991_v23 = vld [vmem:[#allocation2 + $0x68] sm:$0xff]  ;;  %v19612_v35 = vld [vmem:[%s22668_s5 + $0x60] sm:$0xff]  }
 0x502   : > { %v5916_v55 = vadd.f32 %v17244_v61, %v20950_v29  ;;  %v5832_v58 = vpop.f32.mrb[61].mxu1  ;;  %v5989_v41 = vld [vmem:[#allocation2 + $0x50] sm:$0xff]  ;;  %v5988_v36 = vld [vmem:[#allocation2 + $0x48] sm:$0xff]  ;;  %v21112_v50 = vpack.c.bf16 %v5991_v23, %v5990_v54  ;;  %v5993_v42 = vld [vmem:[#allocation2 + $0x80] sm:$0xff] }
 0x503   : > { %v5914_v56 = vadd.f32 %v20950_v29, %v5832_v58  ;;  %v17245_v5 = vpop.f32.mrb[62].mxu1  ;;  %17275 = vmatmul.mubr.msk.bf16.gmra.mrb[52].mxu0 %vm388_vm2, %v21063_v4  ;;  %v21107_v9 = vpack.c.bf16 %v5989_v41, %v5988_v36  ;;  %v5995_v1 = vld [vmem:[#allocation2 + $0x98] sm:$0xff]  ;;  %v6561_v41 = vld [vmem:[#allocation2 + $0x2] sm:$0xff]  ;;  %v6562_v23 = vld [vmem:[#allocation2 + $0xa] sm:$0xff] }
 0x504   : > { %v5948_v26 = vmax.f32 %v5916_v55, 0.0  ;;  %v5917_v31 = vadd.f32 %v17245_v5, %v20950_v29  ;;  %v5835_v52 = vpop.f32.mrb[63].mxu1  ;;  %17278 = vmatprep.mubr.msk.bf16.mxu0 %vm388_vm2, %v21066_v0  ;;  %v5992_v61 = vld [vmem:[#allocation2 + $0x78] sm:$0xff]  ;;  %v5994_v55 = vld [vmem:[#allocation2 + $0x90] sm:$0xff]  ;;  %v5999_v5 = vld [vmem:[#allocation2 + $0xc8] sm:$0xff] }
 0x505   : > { %v5946_v45 = vmax.f32 %v5914_v56, 0.0  ;;  %v5915_v46 = vadd.f32 %v20950_v29, %v5835_v52  ;;  %v6066_v24 = vld [vmem:[#allocation2 + $0x151] sm:$0xff]  ;;  %v5982_v29 = vld [vmem:[#allocation2] sm:$0xff]  ;;  %v21121_v38 = vpack.c.bf16 %v5993_v42, %v5992_v61  ;;  %v21123_v58 = vpack.c.bf16 %v5995_v1, %v5994_v55 }
 0x506   : > { %5980 = vst.msk [vmem:[#allocation2 + $0x181] sm:$0xff] %vm388_vm2, %v5948_v26  ;;  %v5949_v47 = vmax.f32 %v5917_v31, 0.0  ;;  %v6064_v16 = vld [vmem:[#allocation2 + $0x139] sm:$0xff]  ;;  %v6014_v39 = vpack.c.bf16 %v5983_v2, %v5982_v29  ;;  %v5997_v56 = vld [vmem:[#allocation2 + $0xb0] sm:$0xff]  ;;  %v5996_v26 = vld [vmem:[#allocation2 + $0xa8] sm:$0xff] }
 0x507   : > { %5978 = vst.msk [vmem:[#allocation2 + $0x169] sm:$0xff] %vm388_vm2, %v5946_v45  ;;  %v5947_v49 = vmax.f32 %v5915_v46, 0.0  ;;  %v6067_v63 = vld [vmem:[#allocation2 + $0x159] sm:$0xff]  ;;  %v21129_v31 = vpack.c.bf16 %v5997_v56, %v5996_v26  ;;  %v6007_v29 = vld [vmem:[#allocation2 + $0x128] sm:$0xff] }
 0x508   : > { %5981 = vst.msk [vmem:[#allocation2 + $0x189] sm:$0xff] %vm388_vm2, %v5949_v47  ;;  %v6065_v51 = vld [vmem:[#allocation2 + $0x141] sm:$0xff]  ;;  %v21081_v59 = vpack.c.bf16 %v6067_v63, %v6066_v24  ;;  %v6003_v47 = vld [vmem:[#allocation2 + $0xf8] sm:$0xff]  ;;  %v6005_v24 = vld [vmem:[#allocation2 + $0x110] sm:$0xff] }
 0x509   : > { %5979 = vst.msk [vmem:[#allocation2 + $0x171] sm:$0xff] %vm388_vm2, %v5947_v49  ;;  %v21079_v18 = vpack.c.bf16 %v6065_v51, %v6064_v16  ;;  %v5998_v52 = vld [vmem:[#allocation2 + $0xc0] sm:$0xff]  ;;  %v6000_v49 = vld [vmem:[#allocation2 + $0xd8] sm:$0xff]  ;;  %v6002_v16 = vld [vmem:[#allocation2 + $0xf0] sm:$0xff] }
 0x50a   : > { %v21131_v45 = vpack.c.bf16 %v5999_v5, %v5998_v52  ;;  %v6001_v46 = vld [vmem:[#allocation2 + $0xe0] sm:$0xff]  ;;  %v21139_v51 = vpack.c.bf16 %v6003_v47, %v6002_v16  ;;  %v6004_v2 = vld [vmem:[#allocation2 + $0x108] sm:$0xff]  ;;  %v6011_v10 = vld [vmem:[#allocation2 + $0x158] sm:$0xff] }
 0x50b   : > { %17279 = vmatmul.mubr.msk.bf16.gmra.mrb[56].mxu0 %vm388_vm2, %v21079_v18  ;;  %v21137_v63 = vpack.c.bf16 %v6001_v46, %v6000_v49  ;;  %v6009_v15 = vld [vmem:[#allocation2 + $0x140] sm:$0xff]  ;;  %v6008_v37 = vld [vmem:[#allocation2 + $0x138] sm:$0xff]  ;;  %v19613_v26 = vld [vmem:[%s22668_s5 + $0x68] sm:$0xff]  }
 0x50c   : > { %17282 = vmatprep.mubr.msk.bf16.mxu0 %vm388_vm2, %v21081_v59  ;;  %v21153_v53 = vpack.c.bf16 %v6009_v15, %v6008_v37  ;;  %v6563_v1 = vld [vmem:[#allocation2 + $0x1a] sm:$0xff]  ;;  %v6564_v61 = vld [vmem:[#allocation2 + $0x22] sm:$0xff]  ;;  %v6565_v55 = vld [vmem:[#allocation2 + $0x32] sm:$0xff] }
 0x50d   : > { %v6566_v56 = vld [vmem:[#allocation2 + $0x3a] sm:$0xff]  ;;  %v21166_v5 = vpack.c.bf16 %v6564_v61, %v6563_v1  ;;  %v19614_v46 = vld [vmem:[%s22668_s5 + $0x70] sm:$0xff]   ;;  %v6569_v16 = vld [vmem:[#allocation2 + $0x62] sm:$0xff] }
 0x50e   : > { %v6068_v48 = vld [vmem:[#allocation2 + $0x169] sm:$0xff]  ;;  %v21171_v52 = vpack.c.bf16 %v6566_v56, %v6565_v55  ;;  %v6568_v49 = vld [vmem:[#allocation2 + $0x52] sm:$0xff]  ;;  %v6571_v15 = vld [vmem:[#allocation2 + $0x7a] sm:$0xff] }
 0x50f   : > { %v6012_v54 = vld [vmem:[#allocation2 + $0x168] sm:$0xff]  ;;  %v6573_v37 = vld [vmem:[#allocation2 + $0x92] sm:$0xff]  ;;  %v6579_v56 = vld [vmem:[#allocation2 + $0xda] sm:$0xff] }
 0x510   : > { %v6069_v57 = vld [vmem:[#allocation2 + $0x171] sm:$0xff] }
 0x511   : > { %v21087_v27 = vpack.c.bf16 %v6069_v57, %v6068_v48  ;;  %v21145_v48 = vpack.c.bf16 %v6005_v24, %v6004_v2  ;;  %v6006_v57 = vld [vmem:[#allocation2 + $0x120] sm:$0xff]  ;;  %v6013_v36 = vld [vmem:[#allocation2 + $0x170] sm:$0xff] }
 0x512   : > { %v21161_v42 = vpack.c.bf16 %v6013_v36, %v6012_v54  ;;  %v6567_v47 = vld [vmem:[#allocation2 + $0x4a] sm:$0xff]  ;;  %v6576_v54 = vld [vmem:[#allocation2 + $0xb2] sm:$0xff] }
 0x513   : > { %17283 = vmatmul.mubr.msk.bf16.gmra.mrb[60].mxu0 %vm388_vm2, %v21087_v27  ;;  %v6570_v24 = vld [vmem:[#allocation2 + $0x6a] sm:$0xff] }
 0x514   : > { %17294 = vmatprep.mubr.msk.bf16.mxu0 %vm388_vm2, %v6014_v39  ;;  %v21147_v39 = vpack.c.bf16 %v6007_v29, %v6006_v57  ;;  %v21180_v29 = vpack.c.bf16 %v6568_v49, %v6567_v47  ;;  %v21185_v2 = vpack.c.bf16 %v6570_v24, %v6569_v16  ;;  %v19616_v57 = vld [vmem:[%s22668_s5 + $0x80] sm:$0xff]   ;;  %v6575_v36 = vld [vmem:[#allocation2 + $0xaa] sm:$0xff] }
 0x515   : > { %v6578_v1 = vld [vmem:[#allocation2 + $0xca] sm:$0xff]  ;;  %v21202_v61 = vpack.c.bf16 %v6576_v54, %v6575_v36  ;;  %v6582_v47 = vld [vmem:[#allocation2 + $0xfa] sm:$0xff]  ;;  %v6588_v54 = vld [vmem:[#allocation2 + $0x142] sm:$0xff] }
 0x516   : > { %v6583_v24 = vld [vmem:[#allocation2 + $0x10a] sm:$0xff]  ;;  %v6587_v36 = vld [vmem:[#allocation2 + $0x13a] sm:$0xff] }
 0x51b   : > { %17295 = vmatmul.mubr.msk.bf16.vlgmr.msra.gmra.mrb[32].mxu0 %vm388_vm2, %v21092_v33 }
 0x51c   : > { %17327 = vmatpush3.bf16.msra.mxu0 %v21008_v30  ;;  %17298 = vmatprep.mubr.msk.bf16.mxu0 %vm388_vm2, %v21097_v62  ;;  %v19611_v30 = vld [vmem:[%s22668_s5 + $0x58] sm:$0xff]  }
 0x51d   : > { %17328 = vmatprep.subr.bf16.mxu0 %v19609_v34 }
 0x520   : > { %17329 = vmatpush3.bf16.msra.mxu0 %v19609_v34  ;;  %v6010_v34 = vld [vmem:[#allocation2 + $0x150] sm:$0xff] }
 0x521   : > { %17330 = vmatprep.subr.bf16.mxu0 %v19610_v44 }
 0x523   : > { %17299 = vmatmul.mubr.msk.bf16.gmra.mrb[36].mxu0 %vm388_vm2, %v21107_v9 }
 0x524   : > { %17302 = vmatprep.mubr.msk.bf16.mxu0 %vm388_vm2, %v21112_v50  ;;  %17331 = vmatpush3.bf16.msra.mxu0 %v19610_v44  ;;  %v21155_v44 = vpack.c.bf16 %v6011_v10, %v6010_v34  ;;  %v6572_v10 = vld [vmem:[#allocation2 + $0x82] sm:$0xff]  ;;  %v6574_v34 = vld [vmem:[#allocation2 + $0x9a] sm:$0xff] }
 0x525   : > { %17332 = vmatprep.subr.bf16.mxu0 %v19611_v30 }
 0x528   : > { %17333 = vmatpush3.bf16.msra.mxu0 %v19611_v30  ;;  %v6593_v30 = vpack.c.bf16 %v6562_v23, %v6561_v41  ;;  %v21194_v41 = vpack.c.bf16 %v6572_v10, %v6571_v15  ;;  %v21196_v23 = vpack.c.bf16 %v6574_v34, %v6573_v37  ;;  %v6585_v15 = vld [vmem:[#allocation2 + $0x122] sm:$0xff]  ;;  %v6586_v10 = vld [vmem:[#allocation2 + $0x12a] sm:$0xff] }
 0x529   : > { %17366 = vmatprep.subr.bf16.mxu0 %v19612_v35  ;;  %v21220_v34 = vpack.c.bf16 %v6586_v10, %v6585_v15  ;;  %v19618_v15 = vld [vmem:[%s22668_s5 + $0x90] sm:$0xff]   ;;  %v6914_v10 = vld [vmem:[#allocation2 + $0x188] sm:$0xff] }
 0x52b   : > { %17303 = vmatmul.mubr.msk.bf16.gmra.mrb[40].mxu0 %vm388_vm2, %v21121_v38 }
 0x52c   : > { %17306 = vmatprep.mubr.msk.bf16.mxu0 %vm388_vm2, %v21123_v58 }
 0x533   : > { %17307 = vmatmul.mubr.msk.bf16.gmra.mrb[44].mxu0 %vm388_vm2, %v21129_v31 }
 0x534   : > { %17310 = vmatprep.mubr.msk.bf16.mxu0 %vm388_vm2, %v21131_v45 }
 0x53b   : > { %17311 = vmatmul.mubr.msk.bf16.gmra.mrb[48].mxu0 %vm388_vm2, %v21137_v63 }
 0x53c   : > { %17314 = vmatprep.mubr.msk.bf16.mxu0 %vm388_vm2, %v21139_v51 }
 0x543   : > { %17315 = vmatmul.mubr.msk.bf16.gmra.mrb[52].mxu0 %vm388_vm2, %v21145_v48 }
 0x544   : > { %17318 = vmatprep.mubr.msk.bf16.mxu0 %vm388_vm2, %v21147_v39 }
 0x54b   : > { %17319 = vmatmul.mubr.msk.bf16.gmra.mrb[56].mxu0 %vm388_vm2, %v21153_v53 }
 0x54c   : > { %17322 = vmatprep.mubr.msk.bf16.mxu0 %vm388_vm2, %v21155_v44 }
 0x553   : > { %17323 = vmatmul.mubr.msk.bf16.gmra.mrb[60].mxu0 %vm388_vm2, %v21161_v42 }
 0x554   : > { %17334 = vmatprep.mubr.msk.bf16.mxu0 %vm388_vm2, %v6593_v30  ;;  %v6577_v30 = vld [vmem:[#allocation2 + $0xc2] sm:$0xff] }
 0x555   : > { %v21204_v55 = vpack.c.bf16 %v6578_v1, %v6577_v30  ;;  %v6589_v30 = vld [vmem:[#allocation2 + $0x152] sm:$0xff]  ;;  %v6590_v1 = vld [vmem:[#allocation2 + $0x15a] sm:$0xff] }
 0x55b   : > { %17335 = vmatmul.mubr.msk.bf16.vlgmr.msra.gmra.mrb[32].mxu0 %vm388_vm2, %v21166_v5 }
 0x55c   : > { %17367 = vmatpush3.bf16.msra.mxu0 %v19612_v35  ;;  %17338 = vmatprep.mubr.msk.bf16.mxu0 %vm388_vm2, %v21171_v52  ;;  %v19615_v35 = vld [vmem:[%s22668_s5 + $0x78] sm:$0xff]  }
 0x55d   : > { %17368 = vmatprep.subr.bf16.mxu0 %v19613_v26 }
 0x560   : > { %17369 = vmatpush3.bf16.msra.mxu0 %v19613_v26  ;;  %v6580_v26 = vld [vmem:[#allocation2 + $0xe2] sm:$0xff] }
 0x561   : > { %17370 = vmatprep.subr.bf16.mxu0 %v19614_v46  ;;  %v21210_v49 = vpack.c.bf16 %v6580_v26, %v6579_v56  ;;  %v21226_v56 = vpack.c.bf16 %v6588_v54, %v6587_v36  ;;  %v21228_v26 = vpack.c.bf16 %v6590_v1, %v6589_v30  ;;  %v6913_v36 = vld [vmem:[#allocation2 + $0x180] sm:$0xff]  ;;  %v19621_v30 = vld [vmem:[%s22668_s5 + $0xa8] sm:$0xff]   ;;  %v19622_v1 = vld [vmem:[%s22668_s5 + $0xb0] sm:$0xff]  }
 0x562   : > { %v21280_v54 = vpack.c.bf16 %v6914_v10, %v6913_v36  ;;  %v8179_v36 = vld [vmem:[#allocation2 + $0x91] sm:$0xff] }
 0x563   : > { %17339 = vmatmul.mubr.msk.bf16.gmra.mrb[36].mxu0 %vm388_vm2, %v21180_v29 }
 0x564   : > { %17342 = vmatprep.mubr.msk.bf16.mxu0 %vm388_vm2, %v21185_v2  ;;  %17371 = vmatpush3.bf16.msra.mxu0 %v19614_v46  ;;  %v6581_v46 = vld [vmem:[#allocation2 + $0xf2] sm:$0xff] }
 0x565   : > { %17372 = vmatprep.subr.bf16.mxu0 %v19615_v35  ;;  %v21212_v16 = vpack.c.bf16 %v6582_v47, %v6581_v46  ;;  %v6591_v46 = vld [vmem:[#allocation2 + $0x16a] sm:$0xff]  ;;  %v6592_v47 = vld [vmem:[#allocation2 + $0x172] sm:$0xff] }
 0x568   : > { %17373 = vmatpush3.bf16.msra.mxu0 %v19615_v35  ;;  %v6584_v35 = vld [vmem:[#allocation2 + $0x112] sm:$0xff] }
 0x569   : > { %17406 = vmatprep.subr.bf16.mxu0 %v19616_v57  ;;  %v21218_v37 = vpack.c.bf16 %v6584_v35, %v6583_v24  ;;  %v21234_v24 = vpack.c.bf16 %v6592_v47, %v6591_v46  ;;  %v19617_v35 = vld [vmem:[%s22668_s5 + $0x88] sm:$0xff]  }
 0x56a   : > { %v19633_v46 = vld [vmem:[%s22668_s5 + $0x108] sm:$0xff]  }
 0x56b   : > { %17343 = vmatmul.mubr.msk.bf16.gmra.mrb[40].mxu0 %vm388_vm2, %v21194_v41 }
 0x56c   : > { %17346 = vmatprep.mubr.msk.bf16.mxu0 %vm388_vm2, %v21196_v23 }
 0x573   : > { %17347 = vmatmul.mubr.msk.bf16.gmra.mrb[44].mxu0 %vm388_vm2, %v21202_v61 }
 0x574   : > { %17350 = vmatprep.mubr.msk.bf16.mxu0 %vm388_vm2, %v21204_v55 }
 0x57b   : > { %17351 = vmatmul.mubr.msk.bf16.gmra.mrb[48].mxu0 %vm388_vm2, %v21210_v49 }
 0x57c   : > { %17354 = vmatprep.mubr.msk.bf16.mxu0 %vm388_vm2, %v21212_v16 }
 0x583   : > { %17355 = vmatmul.mubr.msk.bf16.gmra.mrb[52].mxu0 %vm388_vm2, %v21218_v37 }
 0x584   : > { %17358 = vmatprep.mubr.msk.bf16.mxu0 %vm388_vm2, %v21220_v34 }
 0x58b   : > { %17359 = vmatmul.mubr.msk.bf16.gmra.mrb[56].mxu0 %vm388_vm2, %v21226_v56 }
 0x58c   : > { %17362 = vmatprep.mubr.msk.bf16.mxu0 %vm388_vm2, %v21228_v26 }
 0x593   : > { %17363 = vmatmul.mubr.msk.bf16.gmra.mrb[60].mxu0 %vm388_vm2, %v21234_v24 }
 0x594   : > { %17374 = vmatprep.mubr.msk.bf16.mxu0 %vm388_vm2, %v21092_v33  ;;  %v19619_v33 = vld [vmem:[%s22668_s5 + $0x98] sm:$0xff]  }
 0x59b   : > { %17375 = vmatmul.mubr.msk.bf16.vlgmr.msra.gmra.mrb[32].mxu0 %vm388_vm2, %v21097_v62 }
 0x59c   : > { %17407 = vmatpush3.bf16.msra.mxu0 %v19616_v57  ;;  %17378 = vmatprep.mubr.msk.bf16.mxu0 %vm388_vm2, %v21107_v9  ;;  %v19620_v57 = vld [vmem:[%s22668_s5 + $0xa0] sm:$0xff]  }
 0x59d   : > { %17408 = vmatprep.subr.bf16.mxu0 %v19617_v35 }
 0x5a0   : > { %17409 = vmatpush3.bf16.msra.mxu0 %v19617_v35  ;;  %v19634_v35 = vld [vmem:[%s22668_s5 + $0x110] sm:$0xff]  }
 0x5a1   : > { %17410 = vmatprep.subr.bf16.mxu0 %v19618_v15 }
 0x5a3   : > { %17379 = vmatmul.mubr.msk.bf16.gmra.mrb[36].mxu0 %vm388_vm2, %v21112_v50 }
 0x5a4   : > { %17382 = vmatprep.mubr.msk.bf16.mxu0 %vm388_vm2, %v21121_v38  ;;  %17411 = vmatpush3.bf16.msra.mxu0 %v19618_v15  ;;  %v8178_v15 = vld [vmem:[#allocation2 + $0x81] sm:$0xff] }
 0x5a5   : > { %17412 = vmatprep.subr.bf16.mxu0 %v19619_v33 }
 0x5a8   : > { %17413 = vmatpush3.bf16.msra.mxu0 %v19619_v33  ;;  %v8180_v33 = vld [vmem:[#allocation2 + $0x99] sm:$0xff] }
 0x5a9   : > { %17446 = vmatprep.subr.bf16.mxu0 %v19620_v57 }
 0x5ab   : > { %17383 = vmatmul.mubr.msk.bf16.gmra.mrb[40].mxu0 %vm388_vm2, %v21123_v58 }
 0x5ac   : > { %17386 = vmatprep.mubr.msk.bf16.mxu0 %vm388_vm2, %v21129_v31 }
 0x5b3   : > { %17387 = vmatmul.mubr.msk.bf16.gmra.mrb[44].mxu0 %vm388_vm2, %v21131_v45 }
 0x5b4   : > { %17390 = vmatprep.mubr.msk.bf16.mxu0 %vm388_vm2, %v21137_v63 }
 0x5bb   : > { %17391 = vmatmul.mubr.msk.bf16.gmra.mrb[48].mxu0 %vm388_vm2, %v21139_v51 }
 0x5bc   : > { %17394 = vmatprep.mubr.msk.bf16.mxu0 %vm388_vm2, %v21145_v48 }
 0x5c3   : > { %17395 = vmatmul.mubr.msk.bf16.gmra.mrb[52].mxu0 %vm388_vm2, %v21147_v39 }
 0x5c4   : > { %17398 = vmatprep.mubr.msk.bf16.mxu0 %vm388_vm2, %v21153_v53 }
 0x5cb   : > { %17399 = vmatmul.mubr.msk.bf16.gmra.mrb[56].mxu0 %vm388_vm2, %v21155_v44 }
 0x5cc   : > { %17402 = vmatprep.mubr.msk.bf16.mxu0 %vm388_vm2, %v21161_v42 }
 0x5d3   : > { %17403 = vmatmul.mubr.msk.bf16.gmra.mrb[60].mxu0 %vm388_vm2, %v21280_v54 }
 0x5d4   : > { %17414 = vmatprep.mubr.msk.bf16.mxu0 %vm388_vm2, %v20968_v43  ;;  %v19623_v43 = vld [vmem:[%s22668_s5 + $0xb8] sm:$0xff]  }
 0x5db   : > { %17415 = vmatmul.mubr.msk.bf16.vlgmr.msra.gmra.mrb[32].mxu0 %vm388_vm2, %v20974_v8  ;;  %v19624_v8 = vld [vmem:[%s22668_s5 + $0xc0] sm:$0xff]  }
 0x5dc   : > { %17447 = vmatpush3.bf16.msra.mxu0 %v19620_v57  ;;  %17418 = vmatprep.mubr.msk.bf16.mxu0 %vm388_vm2, %v20990_v11  ;;  %v7236_v11 = vld [vmem:[#allocation2 + $0x189] sm:$0xff]  ;;  %v8177_v57 = vld [vmem:[#allocation2 + $0x79] sm:$0xff] }
 0x5dd   : > { %17448 = vmatprep.subr.bf16.mxu0 %v19621_v30  ;;  %v8206_v10 = vpack.c.bf16 %v8178_v15, %v8177_v57 }
 0x5e0   : > { %17449 = vmatpush3.bf16.msra.mxu0 %v19621_v30  ;;  %v8207_v30 = vpack.c.bf16 %v8180_v33, %v8179_v36 }
 0x5e1   : > { %17450 = vmatprep.subr.bf16.mxu0 %v19622_v1 }
 0x5e3   : > { %17419 = vmatmul.mubr.msk.bf16.gmra.mrb[36].mxu0 %vm388_vm2, %v20996_v40  ;;  %v7235_v40 = vld [vmem:[#allocation2 + $0x181] sm:$0xff] }
 0x5e4   : > { %17422 = vmatprep.mubr.msk.bf16.mxu0 %vm388_vm2, %v21014_v6  ;;  %17451 = vmatpush3.bf16.msra.mxu0 %v19622_v1  ;;  %v21326_v6 = vpack.c.bf16 %v7236_v11, %v7235_v40  ;;  %v8182_v1 = vld [vmem:[#allocation2 + $0xb1] sm:$0xff]  ;;  %v8183_v40 = vld [vmem:[#allocation2 + $0xc1] sm:$0xff] }
 0x5e5   : > { %17452 = vmatprep.subr.bf16.mxu0 %v19623_v43 }
 0x5e8   : > { %17453 = vmatpush3.bf16.msra.mxu0 %v19623_v43  ;;  %v8184_v43 = vld [vmem:[#allocation2 + $0xc9] sm:$0xff] }
 0x5e9   : > { %17486 = vmatprep.subr.bf16.mxu0 %v19624_v8 }
 0x5eb   : > { %17423 = vmatmul.mubr.msk.bf16.gmra.mrb[40].mxu0 %vm388_vm2, %v21018_v28  ;;  %v19625_v28 = vld [vmem:[%s22668_s5 + $0xc8] sm:$0xff]  }
 0x5ec   : > { %17426 = vmatprep.mubr.msk.bf16.mxu0 %vm388_vm2, %v21031_v32  ;;  %v19626_v32 = vld [vmem:[%s22668_s5 + $0xd0] sm:$0xff]  }
 0x5f3   : > { %17427 = vmatmul.mubr.msk.bf16.gmra.mrb[44].mxu0 %vm388_vm2, %v21034_v7  ;;  %v19627_v7 = vld [vmem:[%s22668_s5 + $0xd8] sm:$0xff]  }
 0x5f4   : > { %17430 = vmatprep.mubr.msk.bf16.mxu0 %vm388_vm2, %v21047_v3  ;;  %v19628_v3 = vld [vmem:[%s22668_s5 + $0xe0] sm:$0xff]  }
 0x5fb   : > { %17431 = vmatmul.mubr.msk.bf16.gmra.mrb[48].mxu0 %vm388_vm2, %v21050_v60  ;;  %v7557_v60 = vld [vmem:[#allocation2 + $0x182] sm:$0xff] }
 0x5fc   : > { %17434 = vmatprep.mubr.msk.bf16.mxu0 %vm388_vm2, %v21063_v4  ;;  %v7558_v4 = vld [vmem:[#allocation2 + $0x18a] sm:$0xff] }
 0x603   : > { %17435 = vmatmul.mubr.msk.bf16.gmra.mrb[52].mxu0 %vm388_vm2, %v21066_v0  ;;  %v21372_v0 = vpack.c.bf16 %v7558_v4, %v7557_v60  ;;  %v8187_v4 = vld [vmem:[#allocation2 + $0xf1] sm:$0xff] }
 0x604   : > { %17438 = vmatprep.mubr.msk.bf16.mxu0 %vm388_vm2, %v21079_v18  ;;  %v19629_v18 = vld [vmem:[%s22668_s5 + $0xe8] sm:$0xff]  }
 0x60b   : > { %17439 = vmatmul.mubr.msk.bf16.gmra.mrb[56].mxu0 %vm388_vm2, %v21081_v59  ;;  %v19630_v59 = vld [vmem:[%s22668_s5 + $0xf0] sm:$0xff]  }
 0x60c   : > { %17442 = vmatprep.mubr.msk.bf16.mxu0 %vm388_vm2, %v21087_v27  ;;  %v19631_v27 = vld [vmem:[%s22668_s5 + $0xf8] sm:$0xff]  }
 0x613   : > { %17443 = vmatmul.mubr.msk.bf16.gmra.mrb[60].mxu0 %vm388_vm2, %v21326_v6 }
 0x614   : > { %17454 = vmatprep.mubr.msk.bf16.mxu0 %vm388_vm2, %v21166_v5  ;;  %v8175_v5 = vld [vmem:[#allocation2 + $0x61] sm:$0xff] }
 0x61b   : > { %17455 = vmatmul.mubr.msk.bf16.vlgmr.msra.gmra.mrb[32].mxu0 %vm388_vm2, %v21171_v52 }
 0x61c   : > { %17487 = vmatpush3.bf16.msra.mxu0 %v19624_v8  ;;  %17458 = vmatprep.mubr.msk.bf16.mxu0 %vm388_vm2, %v21180_v29  ;;  %v8181_v8 = vld [vmem:[#allocation2 + $0xa9] sm:$0xff] }
 0x61d   : > { %17488 = vmatprep.subr.bf16.mxu0 %v19625_v28  ;;  %v8208_v11 = vpack.c.bf16 %v8182_v1, %v8181_v8 }
 0x620   : > { %17489 = vmatpush3.bf16.msra.mxu0 %v19625_v28  ;;  %v8209_v28 = vpack.c.bf16 %v8184_v43, %v8183_v40 }
 0x621   : > { %17490 = vmatprep.subr.bf16.mxu0 %v19626_v32 }
 0x623   : > { %17459 = vmatmul.mubr.msk.bf16.gmra.mrb[36].mxu0 %vm388_vm2, %v21185_v2 }
 0x624   : > { %17462 = vmatprep.mubr.msk.bf16.mxu0 %vm388_vm2, %v21194_v41  ;;  %17491 = vmatpush3.bf16.msra.mxu0 %v19626_v32  ;;  %v8186_v32 = vld [vmem:[#allocation2 + $0xe1] sm:$0xff] }
 0x625   : > { %17492 = vmatprep.subr.bf16.mxu0 %v19627_v7 }
 0x628   : > { %17493 = vmatpush3.bf16.msra.mxu0 %v19627_v7  ;;  %v8188_v7 = vld [vmem:[#allocation2 + $0xf9] sm:$0xff] }
 0x629   : > { %17526 = vmatprep.subr.bf16.mxu0 %v19628_v3 }
 0x62b   : > { %17463 = vmatmul.mubr.msk.bf16.gmra.mrb[40].mxu0 %vm388_vm2, %v21196_v23 }
 0x62c   : > { %17466 = vmatprep.mubr.msk.bf16.mxu0 %vm388_vm2, %v21202_v61 }
 0x633   : > { %17467 = vmatmul.mubr.msk.bf16.gmra.mrb[44].mxu0 %vm388_vm2, %v21204_v55 }
 0x634   : > { %17470 = vmatprep.mubr.msk.bf16.mxu0 %vm388_vm2, %v21210_v49 }
 0x63b   : > { %17471 = vmatmul.mubr.msk.bf16.gmra.mrb[48].mxu0 %vm388_vm2, %v21212_v16 }
 0x63c   : > { %17474 = vmatprep.mubr.msk.bf16.mxu0 %vm388_vm2, %v21218_v37 }
 0x643   : > { %17475 = vmatmul.mubr.msk.bf16.gmra.mrb[52].mxu0 %vm388_vm2, %v21220_v34 }
 0x644   : > { %17478 = vmatprep.mubr.msk.bf16.mxu0 %vm388_vm2, %v21226_v56 }
 0x64b   : > { %17479 = vmatmul.mubr.msk.bf16.gmra.mrb[56].mxu0 %vm388_vm2, %v21228_v26 }
 0x64c   : > { %17482 = vmatprep.mubr.msk.bf16.mxu0 %vm388_vm2, %v21234_v24 }
 0x653   : > { %17483 = vmatmul.mubr.msk.bf16.gmra.mrb[60].mxu0 %vm388_vm2, %v21372_v0 }
 0x654   : > { %17494 = vmatprep.mubr.msk.bf16.mxu0 %vm388_vm2, %v21097_v62  ;;  %v19632_v62 = vld [vmem:[%s22668_s5 + $0x100] sm:$0xff]  }
 0x65b   : > { %17495 = vmatmul.mubr.msk.bf16.vlgmr.msra.gmra.mrb[32].mxu0 %vm388_vm2, %v21107_v9  ;;  %v7879_v9 = vld [vmem:[#allocation2 + $0x198] sm:$0xff] }
 0x65c   : > { %17527 = vmatpush3.bf16.msra.mxu0 %v19628_v3  ;;  %17498 = vmatprep.mubr.msk.bf16.mxu0 %vm388_vm2, %v21112_v50  ;;  %v7880_v50 = vld [vmem:[#allocation2 + $0x1a0] sm:$0xff] }
 0x65d   : > { %17528 = vmatprep.subr.bf16.mxu0 %v19629_v18  ;;  %v8185_v3 = vld [vmem:[#allocation2 + $0xd9] sm:$0xff] }
 0x65e   : > { %v8210_v60 = vpack.c.bf16 %v8186_v32, %v8185_v3 }
 0x660   : > { %17529 = vmatpush3.bf16.msra.mxu0 %v19629_v18  ;;  %v8211_v18 = vpack.c.bf16 %v8188_v7, %v8187_v4 }
 0x661   : > { %17530 = vmatprep.subr.bf16.mxu0 %v19630_v59 }
 0x663   : > { %17499 = vmatmul.mubr.msk.bf16.gmra.mrb[36].mxu0 %vm388_vm2, %v21121_v38  ;;  %v7896_v38 = vpack.c.bf16 %v7880_v50, %v7879_v9  ;;  %v8191_v50 = vld [vmem:[#allocation2 + $0x121] sm:$0xff] }
 0x664   : > { %17502 = vmatprep.mubr.msk.bf16.mxu0 %vm388_vm2, %v21123_v58  ;;  %17531 = vmatpush3.bf16.msra.mxu0 %v19630_v59  ;;  %v8172_v58 = vld [vmem:[#allocation2 + $0x39] sm:$0xff]  ;;  %v8190_v59 = vld [vmem:[#allocation2 + $0x111] sm:$0xff] }
 0x665   : > { %17532 = vmatprep.subr.bf16.mxu0 %v19631_v27 }
 0x668   : > { %17533 = vmatpush3.bf16.msra.mxu0 %v19631_v27  ;;  %v8192_v27 = vld [vmem:[#allocation2 + $0x129] sm:$0xff] }
 0x669   : > { %17566 = vmatprep.subr.bf16.mxu0 %v19632_v62 }
 0x66b   : > { %17503 = vmatmul.mubr.msk.bf16.gmra.mrb[40].mxu0 %vm388_vm2, %v21129_v31  ;;  %v8171_v31 = vld [vmem:[#allocation2 + $0x31] sm:$0xff] }
 0x66c   : > { %17506 = vmatprep.mubr.msk.bf16.mxu0 %vm388_vm2, %v21131_v45  ;;  %v8203_v45 = vpack.c.bf16 %v8172_v58, %v8171_v31  ;;  %v8194_v58 = vld [vmem:[#allocation2 + $0x141] sm:$0xff]  ;;  %v8196_v31 = vld [vmem:[#allocation2 + $0x159] sm:$0xff] }
 0x673   : > { %17507 = vmatmul.mubr.msk.bf16.gmra.mrb[44].mxu0 %vm388_vm2, %v21137_v63  ;;  %v19636_v63 = vld [vmem:[%s22670_s7 + $0x20] sm:$0xff]  }
 0x674   : > { %17510 = vmatprep.mubr.msk.bf16.mxu0 %vm388_vm2, %v21139_v51  ;;  %v19637_v51 = vld [vmem:[%s22670_s7 + $0x28] sm:$0xff]   ;;  %17606 = vmatprep.subr.bf16.mxu1 %v19636_v63 }
 0x675   : > { %17607 = vmatpush3.bf16.msra.mxu1 %v19636_v63 }
 0x676   : > { %17608 = vmatprep.subr.bf16.mxu1 %v19637_v51 }
 0x679   : > { %17609 = vmatpush3.bf16.msra.mxu1 %v19637_v51  ;;  %v8195_v51 = vld [vmem:[#allocation2 + $0x151] sm:$0xff] }
 0x67b   : > { %17511 = vmatmul.mubr.msk.bf16.gmra.mrb[48].mxu0 %vm388_vm2, %v21145_v48  ;;  %v8174_v48 = vld [vmem:[#allocation2 + $0x51] sm:$0xff] }
 0x67c   : > { %17514 = vmatprep.mubr.msk.bf16.mxu0 %vm388_vm2, %v21147_v39  ;;  %v8176_v39 = vld [vmem:[#allocation2 + $0x69] sm:$0xff] }
 0x67d   : > { %v8205_v47 = vpack.c.bf16 %v8176_v39, %v8175_v5  ;;  %v8198_v39 = vld [vmem:[#allocation2 + $0x171] sm:$0xff]  ;;  %v8202_v5 = vld [vmem:[#allocation2 + $0x1a1] sm:$0xff] }
 0x683   : > { %17515 = vmatmul.mubr.msk.bf16.gmra.mrb[52].mxu0 %vm388_vm2, %v21153_v53  ;;  %v19638_v53 = vld [vmem:[%s22670_s7 + $0x30] sm:$0xff]  }
 0x684   : > { %17518 = vmatprep.mubr.msk.bf16.mxu0 %vm388_vm2, %v21155_v44  ;;  %v8173_v44 = vld [vmem:[#allocation2 + $0x49] sm:$0xff]  ;;  %17610 = vmatprep.subr.bf16.mxu1 %v19638_v53 }
 0x685   : > { %17611 = vmatpush3.bf16.msra.mxu1 %v19638_v53  ;;  %v8197_v53 = vld [vmem:[#allocation2 + $0x169] sm:$0xff] }
 0x68b   : > { %17519 = vmatmul.mubr.msk.bf16.gmra.mrb[56].mxu0 %vm388_vm2, %v21161_v42  ;;  %v8204_v42 = vpack.c.bf16 %v8174_v48, %v8173_v44  ;;  %v8215_v48 = vpack.c.bf16 %v8196_v31, %v8195_v51  ;;  %v8216_v44 = vpack.c.bf16 %v8198_v39, %v8197_v53  ;;  %v19642_v53 = vld [vmem:[%s22670_s7 + $0x10] sm:$0xff]  }
 0x68c   : > { %17522 = vmatprep.mubr.msk.bf16.mxu0 %vm388_vm2, %v21280_v54  ;;  %v19635_v54 = vld [vmem:[%s22668_s5 + $0x118] sm:$0xff]  }
 0x693   : > { %17523 = vmatmul.mubr.msk.bf16.gmra.mrb[60].mxu0 %vm388_vm2, %v7896_v38  ;;  %v8213_v38 = vpack.c.bf16 %v8192_v27, %v8191_v50 }
 0x694   : > { %17534 = vmatprep.mubr.msk.bf16.mxu0 %vm388_vm2, %v8203_v45  ;;  %v8193_v45 = vld [vmem:[#allocation2 + $0x139] sm:$0xff] }
 0x695   : > { %v8214_v63 = vpack.c.bf16 %v8194_v58, %v8193_v45 }
 0x69b   : > { %17535 = vmatmul.mubr.msk.bf16.vlgmr.msra.gmra.mrb[32].mxu0 %vm388_vm2, %v8204_v42  ;;  %v8201_v42 = vld [vmem:[#allocation2 + $0x199] sm:$0xff] }
 0x69c   : > { %17567 = vmatpush3.bf16.msra.mxu0 %v19632_v62  ;;  %17538 = vmatprep.mubr.msk.bf16.mxu0 %vm388_vm2, %v8205_v47  ;;  %v8189_v62 = vld [vmem:[#allocation2 + $0x109] sm:$0xff] }
 0x69d   : > { %17568 = vmatprep.subr.bf16.mxu0 %v19633_v46  ;;  %v8212_v9 = vpack.c.bf16 %v8190_v59, %v8189_v62  ;;  %v19641_v62 = vld [vmem:[%s22670_s7 + $0x8] sm:$0xff]  }
 0x6a0   : > { %17569 = vmatpush3.bf16.msra.mxu0 %v19633_v46  ;;  %v8218_v46 = vpack.c.bf16 %v8202_v5, %v8201_v42 }
 0x6a1   : > { %17570 = vmatprep.subr.bf16.mxu0 %v19634_v35 }
 0x6a3   : > { %17539 = vmatmul.mubr.msk.bf16.gmra.mrb[36].mxu0 %vm388_vm2, %v8206_v10 }
 0x6a4   : > { %17542 = vmatprep.mubr.msk.bf16.mxu0 %vm388_vm2, %v8207_v30  ;;  %17571 = vmatpush3.bf16.msra.mxu0 %v19634_v35 }
 0x6a5   : > { %17572 = vmatprep.subr.bf16.mxu0 %v19635_v54 }
 0x6a8   : > { %17573 = vmatpush3.bf16.msra.mxu0 %v19635_v54 }
 0x6ab   : > { %17543 = vmatmul.mubr.msk.bf16.gmra.mrb[40].mxu0 %vm388_vm2, %v8208_v11 }
 0x6ac   : > { %17546 = vmatprep.mubr.msk.bf16.mxu0 %vm388_vm2, %v8209_v28 }
 0x6b3   : > { %17547 = vmatmul.mubr.msk.bf16.gmra.mrb[44].mxu0 %vm388_vm2, %v8210_v60 }
 0x6b4   : > { %17550 = vmatprep.mubr.msk.bf16.mxu0 %vm388_vm2, %v8211_v18 }
 0x6bb   : > { %17551 = vmatmul.mubr.msk.bf16.gmra.mrb[48].mxu0 %vm388_vm2, %v8212_v9 }
 0x6bc   : > { %17554 = vmatprep.mubr.msk.bf16.mxu0 %vm388_vm2, %v8213_v38 }
 0x6c3   : > { %17555 = vmatmul.mubr.msk.bf16.gmra.mrb[52].mxu0 %vm388_vm2, %v8214_v63 }
 0x6c4   : > { %17558 = vmatprep.mubr.msk.bf16.mxu0 %vm388_vm2, %v8215_v48 }
 0x6cb   : > { %17559 = vmatmul.mubr.msk.bf16.gmra.mrb[56].mxu0 %vm388_vm2, %v8216_v44 }
 0x6cc   : > { %17562 = vmatprep.mubr.msk.bf16.mxu0 %vm388_vm2, %v21326_v6 }
 0x6d3   : > { %17563 = vmatmul.mubr.msk.bf16.gmra.mrb[60].mxu0 %vm388_vm2, %v8218_v46 }
 0x6d4   : > { %17574 = vmatprep.mubr.msk.bf16.mxu0 %vm388_vm2, %v21171_v52  ;;  %v8523_v52 = vld [vmem:[#allocation2 + $0x19a] sm:$0xff] }
 0x6db   : > { %17575 = vmatmul.mubr.msk.bf16.vlgmr.msra.gmra.mrb[32].mxu0 %vm388_vm2, %v21180_v29  ;;  %v8524_v29 = vld [vmem:[#allocation2 + $0x1a2] sm:$0xff] }
 0x6dc   : > { %17578 = vmatprep.mubr.msk.bf16.mxu0 %vm388_vm2, %v21185_v2  ;;  %v8540_v2 = vpack.c.bf16 %v8524_v29, %v8523_v52 }
 0x6e3   : > { %17579 = vmatmul.mubr.msk.bf16.gmra.mrb[36].mxu0 %vm388_vm2, %v21194_v41  ;;  %v19639_v41 = vld [vmem:[%s22670_s7 + $0x38] sm:$0xff]  }
 0x6e4   : > { %17582 = vmatprep.mubr.msk.bf16.mxu0 %vm388_vm2, %v21196_v23  ;;  %17612 = vmatprep.subr.bf16.mxu1 %v19639_v41  ;;  %v8974_v23 = vld [vmem:[#allocation2 + $0x1] sm:$0xff] }
 0x6e5   : > { %17613 = vmatpush3.bf16.msra.mxu1 %v19639_v41 }
 0x6eb   : > { %17583 = vmatmul.mubr.msk.bf16.gmra.mrb[40].mxu0 %vm388_vm2, %v21202_v61  ;;  %v8975_v61 = vld [vmem:[#allocation2 + $0x9] sm:$0xff] }
 0x6ec   : > { %17586 = vmatprep.mubr.msk.bf16.mxu0 %vm388_vm2, %v21204_v55  ;;  %v9006_v55 = vpack.c.bf16 %v8975_v61, %v8974_v23  ;;  %v19643_v23 = vld [vmem:[%s22670_s7 + $0x18] sm:$0xff]  }
 0x6ee   : > { %17614 = vmatprep.mubr.msk.bf16.mxu1 %vm388_vm2, %v9006_v55 }
 0x6f3   : > { %17587 = vmatmul.mubr.msk.bf16.gmra.mrb[44].mxu0 %vm388_vm2, %v21210_v49  ;;  %v19640_v49 = vld [vmem:[%s22670_s7] sm:$0xff]  }
 0x6f4   : > { %17590 = vmatprep.mubr.msk.bf16.mxu0 %vm388_vm2, %v21212_v16  ;;  %17646 = vmatprep.subr.bf16.mxu1 %v19640_v49  ;;  %v21495_v16 = vld [vmem:[%s22669_s6] ss:$0 sm:$0xff] }
 0x6fb   : > { %17591 = vmatmul.mubr.msk.bf16.gmra.mrb[48].mxu0 %vm388_vm2, %v21218_v37 }
 0x6fc   : > { %17594 = vmatprep.mubr.msk.bf16.mxu0 %vm388_vm2, %v21220_v34 }
 0x703   : > { %17595 = vmatmul.mubr.msk.bf16.gmra.mrb[52].mxu0 %vm388_vm2, %v21226_v56 }
 0x704   : > { %17598 = vmatprep.mubr.msk.bf16.mxu0 %vm388_vm2, %v21228_v26 }
 0x70b   : > { %17599 = vmatmul.mubr.msk.bf16.gmra.mrb[56].mxu0 %vm388_vm2, %v21234_v24 }
 0x70c   : > { %17602 = vmatprep.mubr.msk.bf16.mxu0 %vm388_vm2, %v21372_v0 }
 0x713   : > { %17603 = vmatmul.mubr.msk.bf16.gmra.mrb[60].mxu0 %vm388_vm2, %v8540_v2 }
 0x7ae   : > { %v17576_v37 = vpop.f32.mrb[32].mxu0 }
 0x7af   : > { %v8824_v34 = vadd.f32 %v17576_v37, %v21495_v16  ;;  %v8656_v56 = vpop.f32.mrb[33].mxu0 }
 0x7b0   : > { %v8822_v26 = vadd.f32 %v21495_v16, %v8656_v56  ;;  %v17577_v24 = vpop.f32.mrb[34].mxu0 }
 0x7b1   : > { %v8856_v6 = vmax.f32 %v8824_v34, 0.0  ;;  %v8825_v0 = vadd.f32 %v17577_v24, %v21495_v16  ;;  %v8659_v47 = vpop.f32.mrb[35].mxu0 }
 0x7b2   : > { %v8854_v35 = vmax.f32 %v8822_v26, 0.0  ;;  %v8823_v15 = vadd.f32 %v21495_v16, %v8659_v47  ;;  %v21553_v47 = vld [vmem:[%s22670_s7 + $0x40] sm:$0xff]  }
 0x7b3   : > { %8888 = vst.msk [vmem:[#allocation2 + $0x31] sm:$0xff] %vm388_vm2, %v8856_v6  ;;  %v8857_v33 = vmax.f32 %v8825_v0, 0.0 }
 0x7b4   : > { %8886 = vst.msk [vmem:[#allocation2 + $0x19] sm:$0xff] %vm388_vm2, %v8854_v35  ;;  %v8855_v57 = vmax.f32 %v8823_v15, 0.0 }
 0x7b5   : > { %8889 = vst.msk [vmem:[#allocation2 + $0x39] sm:$0xff] %vm388_vm2, %v8857_v33 }
 0x7b6   : > { %8887 = vst.msk [vmem:[#allocation2 + $0x21] sm:$0xff] %vm388_vm2, %v8855_v57  ;;  %v17580_v10 = vpop.f32.mrb[36].mxu0 }
 0x7b7   : > { %v8828_v36 = vadd.f32 %v17580_v10, %v21495_v16  ;;  %v8672_v54 = vpop.f32.mrb[37].mxu0 }
 0x7b8   : > { %v8826_v30 = vadd.f32 %v21495_v16, %v8672_v54  ;;  %v17581_v1 = vpop.f32.mrb[38].mxu0 }
 0x7b9   : > { %v8860_v43 = vmax.f32 %v8828_v36, 0.0  ;;  %v8829_v8 = vadd.f32 %v17581_v1, %v21495_v16  ;;  %v8675_v11 = vpop.f32.mrb[39].mxu0 }
 0x7ba   : > { %v8858_v40 = vmax.f32 %v8826_v30, 0.0  ;;  %v8827_v28 = vadd.f32 %v21495_v16, %v8675_v11  ;;  %v8978_v27 = vld [vmem:[#allocation2 + $0x31] sm:$0xff] }
 0x7bb   : > { %8892 = vst.msk [vmem:[#allocation2 + $0x61] sm:$0xff] %vm388_vm2, %v8860_v43  ;;  %v8861_v32 = vmax.f32 %v8829_v8, 0.0  ;;  %v8976_v60 = vld [vmem:[#allocation2 + $0x19] sm:$0xff] }
 0x7bc   : > { %8890 = vst.msk [vmem:[#allocation2 + $0x49] sm:$0xff] %vm388_vm2, %v8858_v40  ;;  %v8859_v7 = vmax.f32 %v8827_v28, 0.0  ;;  %v8979_v3 = vld [vmem:[#allocation2 + $0x39] sm:$0xff] }
 0x7bd   : > { %8893 = vst.msk [vmem:[#allocation2 + $0x69] sm:$0xff] %vm388_vm2, %v8861_v32  ;;  %v8977_v4 = vld [vmem:[#allocation2 + $0x21] sm:$0xff]  ;;  %v21519_v38 = vpack.c.bf16 %v8979_v3, %v8978_v27 }
 0x7be   : > { %8891 = vst.msk [vmem:[#allocation2 + $0x51] sm:$0xff] %vm388_vm2, %v8859_v7  ;;  %v17584_v18 = vpop.f32.mrb[40].mxu0  ;;  %v21513_v59 = vpack.c.bf16 %v8977_v4, %v8976_v60 }
 0x7bf   : > { %v8832_v9 = vadd.f32 %v17584_v18, %v21495_v16  ;;  %v8688_v50 = vpop.f32.mrb[41].mxu0 }
 0x7c0   : > { %v8830_v58 = vadd.f32 %v21495_v16, %v8688_v50  ;;  %v17585_v31 = vpop.f32.mrb[42].mxu0  ;;  %17615 = vmatmul.mubr.msk.bf16.vlgmr.msra.gmra.mrb[64].mxu1 %vm388_vm2, %v21513_v59 }
 0x7c1   : > { %v8864_v45 = vmax.f32 %v8832_v9, 0.0  ;;  %v8833_v63 = vadd.f32 %v17585_v31, %v21495_v16  ;;  %17647 = vmatpush3.bf16.msra.mxu1 %v19640_v49  ;;  %v8691_v51 = vpop.f32.mrb[43].mxu0  ;;  %17618 = vmatprep.mubr.msk.bf16.mxu1 %vm388_vm2, %v21519_v38 }
 0x7c2   : > { %v8862_v48 = vmax.f32 %v8830_v58, 0.0  ;;  %v8831_v39 = vadd.f32 %v21495_v16, %v8691_v51  ;;  %17648 = vmatprep.subr.bf16.mxu1 %v19641_v62  ;;  %v8982_v41 = vld [vmem:[#allocation2 + $0x61] sm:$0xff] }
 0x7c3   : > { %8896 = vst.msk [vmem:[#allocation2 + $0x91] sm:$0xff] %vm388_vm2, %v8864_v45  ;;  %v8865_v44 = vmax.f32 %v8833_v63, 0.0  ;;  %v8980_v46 = vld [vmem:[#allocation2 + $0x49] sm:$0xff] }
 0x7c4   : > { %8894 = vst.msk [vmem:[#allocation2 + $0x79] sm:$0xff] %vm388_vm2, %v8862_v48  ;;  %v8863_v42 = vmax.f32 %v8831_v39, 0.0  ;;  %v8983_v5 = vld [vmem:[#allocation2 + $0x69] sm:$0xff] }
 0x7c5   : > { %8897 = vst.msk [vmem:[#allocation2 + $0x99] sm:$0xff] %vm388_vm2, %v8865_v44  ;;  %v8981_v52 = vld [vmem:[#allocation2 + $0x51] sm:$0xff]  ;;  %17649 = vmatpush3.bf16.msra.mxu1 %v19641_v62  ;;  %v21541_v49 = vpack.c.bf16 %v8983_v5, %v8982_v41 }
 0x7c6   : > { %8895 = vst.msk [vmem:[#allocation2 + $0x81] sm:$0xff] %vm388_vm2, %v8863_v42  ;;  %v17588_v29 = vpop.f32.mrb[44].mxu0  ;;  %v21535_v2 = vpack.c.bf16 %v8981_v52, %v8980_v46  ;;  %17650 = vmatprep.subr.bf16.mxu1 %v19642_v53 }
 0x7c7   : > { %v8836_v61 = vadd.f32 %v17588_v29, %v21495_v16  ;;  %v8704_v55 = vpop.f32.mrb[45].mxu0 }
 0x7c8   : > { %v8834_v37 = vadd.f32 %v21495_v16, %v8704_v55  ;;  %v17589_v34 = vpop.f32.mrb[46].mxu0  ;;  %17619 = vmatmul.mubr.msk.bf16.gmra.mrb[68].mxu1 %vm388_vm2, %v21535_v2 }
 0x7c9   : > { %v8868_v56 = vmax.f32 %v8836_v61, 0.0  ;;  %v8837_v26 = vadd.f32 %v17589_v34, %v21495_v16  ;;  %v8707_v24 = vpop.f32.mrb[47].mxu0  ;;  %17622 = vmatprep.mubr.msk.bf16.mxu1 %vm388_vm2, %v21541_v49  ;;  %17651 = vmatpush3.bf16.msra.mxu1 %v19642_v53 }
 0x7ca   : > { %v8866_v6 = vmax.f32 %v8834_v37, 0.0  ;;  %v8835_v0 = vadd.f32 %v21495_v16, %v8707_v24  ;;  %17652 = vmatprep.subr.bf16.mxu1 %v19643_v23  ;;  %v8986_v30 = vld [vmem:[#allocation2 + $0x91] sm:$0xff] }
 0x7cb   : > { %8900 = vst.msk [vmem:[#allocation2 + $0xc1] sm:$0xff] %vm388_vm2, %v8868_v56  ;;  %v8869_v35 = vmax.f32 %v8837_v26, 0.0  ;;  %v8984_v57 = vld [vmem:[#allocation2 + $0x79] sm:$0xff] }
 0x7cc   : > { %8898 = vst.msk [vmem:[#allocation2 + $0xa9] sm:$0xff] %vm388_vm2, %v8866_v6  ;;  %v8867_v15 = vmax.f32 %v8835_v0, 0.0  ;;  %v8987_v33 = vld [vmem:[#allocation2 + $0x99] sm:$0xff] }
 0x7cd   : > { %8901 = vst.msk [vmem:[#allocation2 + $0xc9] sm:$0xff] %vm388_vm2, %v8869_v35  ;;  %v8985_v10 = vld [vmem:[#allocation2 + $0x81] sm:$0xff]  ;;  %17653 = vmatpush3.bf16.msra.mxu1 %v19643_v23  ;;  %v21563_v8 = vpack.c.bf16 %v8987_v33, %v8986_v30 }
 0x7ce   : > { %8899 = vst.msk [vmem:[#allocation2 + $0xb1] sm:$0xff] %vm388_vm2, %v8867_v15  ;;  %v17592_v36 = vpop.f32.mrb[48].mxu0  ;;  %v21559_v54 = vpack.c.bf16 %v8985_v10, %v8984_v57  ;;  %17686 = vmatprep.subr.bf16.mxu1 %v21553_v47 }
 0x7cf   : > { %v8840_v1 = vadd.f32 %v17592_v36, %v21495_v16  ;;  %v8720_v43 = vpop.f32.mrb[49].mxu0 }
 0x7d0   : > { %v8838_v11 = vadd.f32 %v21495_v16, %v8720_v43  ;;  %v17593_v40 = vpop.f32.mrb[50].mxu0  ;;  %17623 = vmatmul.mubr.msk.bf16.gmra.mrb[72].mxu1 %vm388_vm2, %v21559_v54 }
 0x7d1   : > { %v8872_v28 = vmax.f32 %v8840_v1, 0.0  ;;  %v8841_v32 = vadd.f32 %v17593_v40, %v21495_v16  ;;  %v8723_v7 = vpop.f32.mrb[51].mxu0  ;;  %17626 = vmatprep.mubr.msk.bf16.mxu1 %vm388_vm2, %v21563_v8 }
 0x7d2   : > { %v8870_v3 = vmax.f32 %v8838_v11, 0.0  ;;  %v8839_v60 = vadd.f32 %v21495_v16, %v8723_v7  ;;  %v8990_v31 = vld [vmem:[#allocation2 + $0xc1] sm:$0xff] }
 0x7d3   : > { %8904 = vst.msk [vmem:[#allocation2 + $0xf1] sm:$0xff] %vm388_vm2, %v8872_v28  ;;  %v8873_v4 = vmax.f32 %v8841_v32, 0.0  ;;  %v8988_v62 = vld [vmem:[#allocation2 + $0xa9] sm:$0xff] }
 0x7d4   : > { %8902 = vst.msk [vmem:[#allocation2 + $0xd9] sm:$0xff] %vm388_vm2, %v8870_v3  ;;  %v8871_v18 = vmax.f32 %v8839_v60, 0.0  ;;  %v8991_v27 = vld [vmem:[#allocation2 + $0xc9] sm:$0xff] }
 0x7d5   : > { %8905 = vst.msk [vmem:[#allocation2 + $0xf9] sm:$0xff] %vm388_vm2, %v8873_v4  ;;  %v8989_v9 = vld [vmem:[#allocation2 + $0xb1] sm:$0xff]  ;;  %v21579_v51 = vpack.c.bf16 %v8991_v27, %v8990_v31 }
 0x7d6   : > { %8903 = vst.msk [vmem:[#allocation2 + $0xe1] sm:$0xff] %vm388_vm2, %v8871_v18  ;;  %v17596_v50 = vpop.f32.mrb[52].mxu0  ;;  %v21576_v58 = vpack.c.bf16 %v8989_v9, %v8988_v62 }
 0x7d7   : > { %v8844_v45 = vadd.f32 %v17596_v50, %v21495_v16  ;;  %v8736_v63 = vpop.f32.mrb[53].mxu0 }
 0x7d8   : > { %v8842_v48 = vadd.f32 %v21495_v16, %v8736_v63  ;;  %v17597_v39 = vpop.f32.mrb[54].mxu0  ;;  %17627 = vmatmul.mubr.msk.bf16.gmra.mrb[76].mxu1 %vm388_vm2, %v21576_v58 }
 0x7d9   : > { %v8876_v53 = vmax.f32 %v8844_v45, 0.0  ;;  %v8845_v44 = vadd.f32 %v17597_v39, %v21495_v16  ;;  %v8739_v42 = vpop.f32.mrb[55].mxu0  ;;  %17630 = vmatprep.mubr.msk.bf16.mxu1 %vm388_vm2, %v21579_v51 }
 0x7da   : > { %v8874_v5 = vmax.f32 %v8842_v48, 0.0  ;;  %v8843_v46 = vadd.f32 %v21495_v16, %v8739_v42  ;;  %v8994_v34 = vld [vmem:[#allocation2 + $0xf1] sm:$0xff] }
 0x7db   : > { %8908 = vst.msk [vmem:[#allocation2 + $0x121] sm:$0xff] %vm388_vm2, %v8876_v53  ;;  %v8877_v52 = vmax.f32 %v8845_v44, 0.0  ;;  %v8992_v23 = vld [vmem:[#allocation2 + $0xd9] sm:$0xff] }
 0x7dc   : > { %8906 = vst.msk [vmem:[#allocation2 + $0x109] sm:$0xff] %vm388_vm2, %v8874_v5  ;;  %v8875_v29 = vmax.f32 %v8843_v46, 0.0  ;;  %v8995_v41 = vld [vmem:[#allocation2 + $0xf9] sm:$0xff]  ;;  %v8919_v46 = vld [vmem:[#allocation2 + $0x8] sm:$0xff] }
 0x7dd   : > { %8909 = vst.msk [vmem:[#allocation2 + $0x129] sm:$0xff] %vm388_vm2, %v8877_v52  ;;  %v8993_v61 = vld [vmem:[#allocation2 + $0xe1] sm:$0xff]  ;;  %v21595_v24 = vpack.c.bf16 %v8995_v41, %v8994_v34  ;;  %v8920_v34 = vld [vmem:[#allocation2 + $0x18] sm:$0xff] }
 0x7de   : > { %8907 = vst.msk [vmem:[#allocation2 + $0x111] sm:$0xff] %vm388_vm2, %v8875_v29  ;;  %v17600_v55 = vpop.f32.mrb[56].mxu0  ;;  %v21592_v37 = vpack.c.bf16 %v8993_v61, %v8992_v23  ;;  %v8921_v61 = vld [vmem:[#allocation2 + $0x20] sm:$0xff] }
 0x7df   : > { %v8848_v56 = vadd.f32 %v17600_v55, %v21495_v16  ;;  %v8752_v26 = vpop.f32.mrb[57].mxu0  ;;  %v8923_v55 = vld [vmem:[#allocation2 + $0x38] sm:$0xff] }
 0x7e0   : > { %v8846_v6 = vadd.f32 %v21495_v16, %v8752_v26  ;;  %v17601_v0 = vpop.f32.mrb[58].mxu0  ;;  %17631 = vmatmul.mubr.msk.bf16.gmra.mrb[80].mxu1 %vm388_vm2, %v21592_v37  ;;  %v8922_v26 = vld [vmem:[#allocation2 + $0x30] sm:$0xff] }
 0x7e1   : > { %v8880_v35 = vmax.f32 %v8848_v56, 0.0  ;;  %v8849_v15 = vadd.f32 %v17601_v0, %v21495_v16  ;;  %v8755_v33 = vpop.f32.mrb[59].mxu0  ;;  %17634 = vmatprep.mubr.msk.bf16.mxu1 %vm388_vm2, %v21595_v24  ;;  %v21637_v56 = vpack.c.bf16 %v8921_v61, %v8920_v34  ;;  %v21642_v0 = vpack.c.bf16 %v8923_v55, %v8922_v26 }
 0x7e2   : > { %v8878_v57 = vmax.f32 %v8846_v6, 0.0  ;;  %v8847_v10 = vadd.f32 %v21495_v16, %v8755_v33  ;;  %v8998_v32 = vld [vmem:[#allocation2 + $0x121] sm:$0xff] }
 0x7e3   : > { %8912 = vst.msk [vmem:[#allocation2 + $0x151] sm:$0xff] %vm388_vm2, %v8880_v35  ;;  %v8881_v36 = vmax.f32 %v8849_v15, 0.0  ;;  %v8996_v43 = vld [vmem:[#allocation2 + $0x109] sm:$0xff] }
 0x7e4   : > { %8910 = vst.msk [vmem:[#allocation2 + $0x139] sm:$0xff] %vm388_vm2, %v8878_v57  ;;  %v8879_v30 = vmax.f32 %v8847_v10, 0.0  ;;  %v8999_v1 = vld [vmem:[#allocation2 + $0x129] sm:$0xff] }
 0x7e5   : > { %8913 = vst.msk [vmem:[#allocation2 + $0x159] sm:$0xff] %vm388_vm2, %v8881_v36  ;;  %v8997_v11 = vld [vmem:[#allocation2 + $0x111] sm:$0xff]  ;;  %v21611_v60 = vpack.c.bf16 %v8999_v1, %v8998_v32  ;;  %v19645_v6 = vld [vmem:[%s22670_s7 + $0x48] sm:$0xff]   ;;  %v8926_v36 = vld [vmem:[#allocation2 + $0x60] sm:$0xff] }
 0x7e6   : > { %8911 = vst.msk [vmem:[#allocation2 + $0x141] sm:$0xff] %vm388_vm2, %v8879_v30  ;;  %v17604_v40 = vpop.f32.mrb[60].mxu0  ;;  %v21608_v28 = vpack.c.bf16 %v8997_v11, %v8996_v43  ;;  %v19646_v35 = vld [vmem:[%s22670_s7 + $0x50] sm:$0xff]   ;;  %v8927_v33 = vld [vmem:[#allocation2 + $0x68] sm:$0xff]  ;;  %v19648_v1 = vld [vmem:[%s22670_s7 + $0x60] sm:$0xff]  }
 0x7e7   : > { %v8852_v7 = vadd.f32 %v17604_v40, %v21495_v16  ;;  %v8768_v3 = vpop.f32.mrb[61].mxu0  ;;  %v8925_v15 = vld [vmem:[#allocation2 + $0x50] sm:$0xff]  ;;  %v8924_v57 = vld [vmem:[#allocation2 + $0x48] sm:$0xff]  ;;  %v21657_v30 = vpack.c.bf16 %v8927_v33, %v8926_v36  ;;  %v8929_v43 = vld [vmem:[#allocation2 + $0x80] sm:$0xff] }
 0x7e8   : > { %v8850_v4 = vadd.f32 %v21495_v16, %v8768_v3  ;;  %v17605_v18 = vpop.f32.mrb[62].mxu0  ;;  %17635 = vmatmul.mubr.msk.bf16.gmra.mrb[84].mxu1 %vm388_vm2, %v21608_v28  ;;  %v21652_v10 = vpack.c.bf16 %v8925_v15, %v8924_v57  ;;  %v8931_v11 = vld [vmem:[#allocation2 + $0x98] sm:$0xff]  ;;  %v9497_v15 = vld [vmem:[#allocation2 + $0x2] sm:$0xff]  ;;  %v9498_v33 = vld [vmem:[#allocation2 + $0xa] sm:$0xff] }
 0x7e9   : > { %v8884_v27 = vmax.f32 %v8852_v7, 0.0  ;;  %v8853_v62 = vadd.f32 %v17605_v18, %v21495_v16  ;;  %v8771_v9 = vpop.f32.mrb[63].mxu0  ;;  %17638 = vmatprep.mubr.msk.bf16.mxu1 %vm388_vm2, %v21611_v60  ;;  %v8928_v40 = vld [vmem:[#allocation2 + $0x78] sm:$0xff]  ;;  %v8930_v7 = vld [vmem:[#allocation2 + $0x90] sm:$0xff]  ;;  %v8935_v18 = vld [vmem:[#allocation2 + $0xc8] sm:$0xff] }
 0x7ea   : > { %v8882_v50 = vmax.f32 %v8850_v4, 0.0  ;;  %v8851_v31 = vadd.f32 %v21495_v16, %v8771_v9  ;;  %v9002_v42 = vld [vmem:[#allocation2 + $0x151] sm:$0xff]  ;;  %v8918_v16 = vld [vmem:[#allocation2] sm:$0xff]  ;;  %v21666_v32 = vpack.c.bf16 %v8929_v43, %v8928_v40  ;;  %v21668_v3 = vpack.c.bf16 %v8931_v11, %v8930_v7 }
 0x7eb   : > { %8916 = vst.msk [vmem:[#allocation2 + $0x181] sm:$0xff] %vm388_vm2, %v8884_v27  ;;  %v8885_v45 = vmax.f32 %v8853_v62, 0.0  ;;  %v9000_v39 = vld [vmem:[#allocation2 + $0x139] sm:$0xff]  ;;  %v8950_v41 = vpack.c.bf16 %v8919_v46, %v8918_v16  ;;  %v8933_v4 = vld [vmem:[#allocation2 + $0xb0] sm:$0xff]  ;;  %v8932_v27 = vld [vmem:[#allocation2 + $0xa8] sm:$0xff] }
 0x7ec   : > { %8914 = vst.msk [vmem:[#allocation2 + $0x169] sm:$0xff] %vm388_vm2, %v8882_v50  ;;  %v8883_v63 = vmax.f32 %v8851_v31, 0.0  ;;  %v9003_v48 = vld [vmem:[#allocation2 + $0x159] sm:$0xff]  ;;  %v21674_v62 = vpack.c.bf16 %v8933_v4, %v8932_v27  ;;  %v8943_v16 = vld [vmem:[#allocation2 + $0x128] sm:$0xff] }
 0x7ed   : > { %8917 = vst.msk [vmem:[#allocation2 + $0x189] sm:$0xff] %vm388_vm2, %v8885_v45  ;;  %v9001_v53 = vld [vmem:[#allocation2 + $0x141] sm:$0xff]  ;;  %v21626_v5 = vpack.c.bf16 %v9003_v48, %v9002_v42  ;;  %v8939_v45 = vld [vmem:[#allocation2 + $0xf8] sm:$0xff]  ;;  %v8941_v42 = vld [vmem:[#allocation2 + $0x110] sm:$0xff] }
 0x7ee   : > { %8915 = vst.msk [vmem:[#allocation2 + $0x171] sm:$0xff] %vm388_vm2, %v8883_v63  ;;  %v21624_v44 = vpack.c.bf16 %v9001_v53, %v9000_v39  ;;  %v8934_v9 = vld [vmem:[#allocation2 + $0xc0] sm:$0xff]  ;;  %v8936_v63 = vld [vmem:[#allocation2 + $0xd8] sm:$0xff]  ;;  %v8938_v39 = vld [vmem:[#allocation2 + $0xf0] sm:$0xff] }
 0x7ef   : > { %v21676_v50 = vpack.c.bf16 %v8935_v18, %v8934_v9  ;;  %v8937_v31 = vld [vmem:[#allocation2 + $0xe0] sm:$0xff]  ;;  %v21684_v53 = vpack.c.bf16 %v8939_v45, %v8938_v39  ;;  %v8940_v46 = vld [vmem:[#allocation2 + $0x108] sm:$0xff]  ;;  %v8947_v55 = vld [vmem:[#allocation2 + $0x158] sm:$0xff] }
 0x7f0   : > { %17639 = vmatmul.mubr.msk.bf16.gmra.mrb[88].mxu1 %vm388_vm2, %v21624_v44  ;;  %v21682_v48 = vpack.c.bf16 %v8937_v31, %v8936_v63  ;;  %v8945_v61 = vld [vmem:[#allocation2 + $0x140] sm:$0xff]  ;;  %v8944_v34 = vld [vmem:[#allocation2 + $0x138] sm:$0xff]  ;;  %v19649_v27 = vld [vmem:[%s22670_s7 + $0x68] sm:$0xff]  }
 0x7f1   : > { %17642 = vmatprep.mubr.msk.bf16.mxu1 %vm388_vm2, %v21626_v5  ;;  %v21698_v26 = vpack.c.bf16 %v8945_v61, %v8944_v34  ;;  %v9499_v11 = vld [vmem:[#allocation2 + $0x1a] sm:$0xff]  ;;  %v9500_v40 = vld [vmem:[#allocation2 + $0x22] sm:$0xff]  ;;  %v9501_v7 = vld [vmem:[#allocation2 + $0x32] sm:$0xff] }
 0x7f2   : > { %v9502_v4 = vld [vmem:[#allocation2 + $0x3a] sm:$0xff]  ;;  %v21711_v18 = vpack.c.bf16 %v9500_v40, %v9499_v11  ;;  %v19650_v31 = vld [vmem:[%s22670_s7 + $0x70] sm:$0xff]   ;;  %v9505_v39 = vld [vmem:[#allocation2 + $0x62] sm:$0xff] }
 0x7f3   : > { %v9004_v52 = vld [vmem:[#allocation2 + $0x169] sm:$0xff]  ;;  %v21716_v9 = vpack.c.bf16 %v9502_v4, %v9501_v7  ;;  %v9504_v63 = vld [vmem:[#allocation2 + $0x52] sm:$0xff]  ;;  %v9507_v61 = vld [vmem:[#allocation2 + $0x7a] sm:$0xff] }
 0x7f4   : > { %v8948_v36 = vld [vmem:[#allocation2 + $0x168] sm:$0xff]  ;;  %v9509_v34 = vld [vmem:[#allocation2 + $0x92] sm:$0xff]  ;;  %v9515_v4 = vld [vmem:[#allocation2 + $0xda] sm:$0xff] }
 0x7f5   : > { %v9005_v29 = vld [vmem:[#allocation2 + $0x171] sm:$0xff] }
 0x7f6   : > { %v21632_v23 = vpack.c.bf16 %v9005_v29, %v9004_v52  ;;  %v21690_v52 = vpack.c.bf16 %v8941_v42, %v8940_v46  ;;  %v8942_v29 = vld [vmem:[#allocation2 + $0x120] sm:$0xff]  ;;  %v8949_v57 = vld [vmem:[#allocation2 + $0x170] sm:$0xff] }
 0x7f7   : > { %v21706_v43 = vpack.c.bf16 %v8949_v57, %v8948_v36  ;;  %v9503_v45 = vld [vmem:[#allocation2 + $0x4a] sm:$0xff]  ;;  %v9512_v36 = vld [vmem:[#allocation2 + $0xb2] sm:$0xff] }
 0x7f8   : > { %17643 = vmatmul.mubr.msk.bf16.gmra.mrb[92].mxu1 %vm388_vm2, %v21632_v23  ;;  %v9506_v42 = vld [vmem:[#allocation2 + $0x6a] sm:$0xff] }
 0x7f9   : > { %17654 = vmatprep.mubr.msk.bf16.mxu1 %vm388_vm2, %v8950_v41  ;;  %v21692_v41 = vpack.c.bf16 %v8943_v16, %v8942_v29  ;;  %v21725_v16 = vpack.c.bf16 %v9504_v63, %v9503_v45  ;;  %v21730_v46 = vpack.c.bf16 %v9506_v42, %v9505_v39  ;;  %v19652_v29 = vld [vmem:[%s22670_s7 + $0x80] sm:$0xff]   ;;  %v9511_v57 = vld [vmem:[#allocation2 + $0xaa] sm:$0xff] }
 0x7fa   : > { %v9514_v11 = vld [vmem:[#allocation2 + $0xca] sm:$0xff]  ;;  %v21747_v40 = vpack.c.bf16 %v9512_v36, %v9511_v57  ;;  %v9518_v45 = vld [vmem:[#allocation2 + $0xfa] sm:$0xff]  ;;  %v9524_v36 = vld [vmem:[#allocation2 + $0x142] sm:$0xff] }
 0x7fb   : > { %v9519_v42 = vld [vmem:[#allocation2 + $0x10a] sm:$0xff]  ;;  %v9523_v57 = vld [vmem:[#allocation2 + $0x13a] sm:$0xff] }
 0x800   : > { %17655 = vmatmul.mubr.msk.bf16.vlgmr.msra.gmra.mrb[64].mxu1 %vm388_vm2, %v21637_v56 }
 0x801   : > { %17687 = vmatpush3.bf16.msra.mxu1 %v21553_v47  ;;  %17658 = vmatprep.mubr.msk.bf16.mxu1 %vm388_vm2, %v21642_v0  ;;  %v19647_v47 = vld [vmem:[%s22670_s7 + $0x58] sm:$0xff]  }
 0x802   : > { %17688 = vmatprep.subr.bf16.mxu1 %v19645_v6 }
 0x805   : > { %17689 = vmatpush3.bf16.msra.mxu1 %v19645_v6  ;;  %v8946_v6 = vld [vmem:[#allocation2 + $0x150] sm:$0xff] }
 0x806   : > { %17690 = vmatprep.subr.bf16.mxu1 %v19646_v35 }
 0x808   : > { %17659 = vmatmul.mubr.msk.bf16.gmra.mrb[68].mxu1 %vm388_vm2, %v21652_v10 }
 0x809   : > { %17662 = vmatprep.mubr.msk.bf16.mxu1 %vm388_vm2, %v21657_v30  ;;  %17691 = vmatpush3.bf16.msra.mxu1 %v19646_v35  ;;  %v21700_v35 = vpack.c.bf16 %v8947_v55, %v8946_v6  ;;  %v9508_v55 = vld [vmem:[#allocation2 + $0x82] sm:$0xff]  ;;  %v9510_v6 = vld [vmem:[#allocation2 + $0x9a] sm:$0xff] }
 0x80a   : > { %17692 = vmatprep.subr.bf16.mxu1 %v19647_v47 }
 0x80d   : > { %17693 = vmatpush3.bf16.msra.mxu1 %v19647_v47  ;;  %v9529_v47 = vpack.c.bf16 %v9498_v33, %v9497_v15  ;;  %v21739_v15 = vpack.c.bf16 %v9508_v55, %v9507_v61  ;;  %v21741_v33 = vpack.c.bf16 %v9510_v6, %v9509_v34  ;;  %v9521_v61 = vld [vmem:[#allocation2 + $0x122] sm:$0xff]  ;;  %v9522_v55 = vld [vmem:[#allocation2 + $0x12a] sm:$0xff] }
 0x80e   : > { %17726 = vmatprep.subr.bf16.mxu1 %v19648_v1  ;;  %v21765_v6 = vpack.c.bf16 %v9522_v55, %v9521_v61  ;;  %v19654_v61 = vld [vmem:[%s22670_s7 + $0x90] sm:$0xff]   ;;  %v9850_v55 = vld [vmem:[#allocation2 + $0x188] sm:$0xff] }
 0x810   : > { %17663 = vmatmul.mubr.msk.bf16.gmra.mrb[72].mxu1 %vm388_vm2, %v21666_v32 }
 0x811   : > { %17666 = vmatprep.mubr.msk.bf16.mxu1 %vm388_vm2, %v21668_v3 }
 0x818   : > { %17667 = vmatmul.mubr.msk.bf16.gmra.mrb[76].mxu1 %vm388_vm2, %v21674_v62 }
 0x819   : > { %17670 = vmatprep.mubr.msk.bf16.mxu1 %vm388_vm2, %v21676_v50 }
 0x820   : > { %17671 = vmatmul.mubr.msk.bf16.gmra.mrb[80].mxu1 %vm388_vm2, %v21682_v48 }
 0x821   : > { %17674 = vmatprep.mubr.msk.bf16.mxu1 %vm388_vm2, %v21684_v53 }
 0x828   : > { %17675 = vmatmul.mubr.msk.bf16.gmra.mrb[84].mxu1 %vm388_vm2, %v21690_v52 }
 0x829   : > { %17678 = vmatprep.mubr.msk.bf16.mxu1 %vm388_vm2, %v21692_v41 }
 0x830   : > { %17679 = vmatmul.mubr.msk.bf16.gmra.mrb[88].mxu1 %vm388_vm2, %v21698_v26 }
 0x831   : > { %17682 = vmatprep.mubr.msk.bf16.mxu1 %vm388_vm2, %v21700_v35 }
 0x838   : > { %17683 = vmatmul.mubr.msk.bf16.gmra.mrb[92].mxu1 %vm388_vm2, %v21706_v43 }
 0x839   : > { %17694 = vmatprep.mubr.msk.bf16.mxu1 %vm388_vm2, %v9529_v47  ;;  %v9513_v47 = vld [vmem:[#allocation2 + $0xc2] sm:$0xff] }
 0x83a   : > { %v21749_v7 = vpack.c.bf16 %v9514_v11, %v9513_v47  ;;  %v9525_v47 = vld [vmem:[#allocation2 + $0x152] sm:$0xff]  ;;  %v9526_v11 = vld [vmem:[#allocation2 + $0x15a] sm:$0xff] }
 0x840   : > { %17695 = vmatmul.mubr.msk.bf16.vlgmr.msra.gmra.mrb[64].mxu1 %vm388_vm2, %v21711_v18 }
 0x841   : > { %17727 = vmatpush3.bf16.msra.mxu1 %v19648_v1  ;;  %17698 = vmatprep.mubr.msk.bf16.mxu1 %vm388_vm2, %v21716_v9  ;;  %v19651_v1 = vld [vmem:[%s22670_s7 + $0x78] sm:$0xff]  }
 0x842   : > { %17728 = vmatprep.subr.bf16.mxu1 %v19649_v27 }
 0x845   : > { %17729 = vmatpush3.bf16.msra.mxu1 %v19649_v27  ;;  %v9516_v27 = vld [vmem:[#allocation2 + $0xe2] sm:$0xff] }
 0x846   : > { %17730 = vmatprep.subr.bf16.mxu1 %v19650_v31  ;;  %v21755_v63 = vpack.c.bf16 %v9516_v27, %v9515_v4  ;;  %v21771_v4 = vpack.c.bf16 %v9524_v36, %v9523_v57  ;;  %v21773_v27 = vpack.c.bf16 %v9526_v11, %v9525_v47  ;;  %v9849_v57 = vld [vmem:[#allocation2 + $0x180] sm:$0xff]  ;;  %v19657_v47 = vld [vmem:[%s22670_s7 + $0xa8] sm:$0xff]   ;;  %v19658_v11 = vld [vmem:[%s22670_s7 + $0xb0] sm:$0xff]  }
 0x847   : > { %v21825_v36 = vpack.c.bf16 %v9850_v55, %v9849_v57  ;;  %v11115_v55 = vld [vmem:[#allocation2 + $0x91] sm:$0xff] }
 0x848   : > { %17699 = vmatmul.mubr.msk.bf16.gmra.mrb[68].mxu1 %vm388_vm2, %v21725_v16  ;;  %v19671_v57 = vld [vmem:[%s22670_s7 + $0x118] sm:$0xff]  }
 0x849   : > { %17702 = vmatprep.mubr.msk.bf16.mxu1 %vm388_vm2, %v21730_v46  ;;  %17731 = vmatpush3.bf16.msra.mxu1 %v19650_v31  ;;  %v9517_v31 = vld [vmem:[#allocation2 + $0xf2] sm:$0xff] }
 0x84a   : > { %17732 = vmatprep.subr.bf16.mxu1 %v19651_v1  ;;  %v21757_v39 = vpack.c.bf16 %v9518_v45, %v9517_v31  ;;  %v9527_v31 = vld [vmem:[#allocation2 + $0x16a] sm:$0xff]  ;;  %v9528_v45 = vld [vmem:[#allocation2 + $0x172] sm:$0xff] }
 0x84d   : > { %17733 = vmatpush3.bf16.msra.mxu1 %v19651_v1  ;;  %v9520_v1 = vld [vmem:[#allocation2 + $0x112] sm:$0xff] }
 0x84e   : > { %17766 = vmatprep.subr.bf16.mxu1 %v19652_v29  ;;  %v21763_v34 = vpack.c.bf16 %v9520_v1, %v9519_v42  ;;  %v21779_v42 = vpack.c.bf16 %v9528_v45, %v9527_v31  ;;  %v19653_v1 = vld [vmem:[%s22670_s7 + $0x88] sm:$0xff]   ;;  %v19670_v45 = vld [vmem:[%s22670_s7 + $0x110] sm:$0xff]  }
 0x850   : > { %17703 = vmatmul.mubr.msk.bf16.gmra.mrb[72].mxu1 %vm388_vm2, %v21739_v15 }
 0x851   : > { %17706 = vmatprep.mubr.msk.bf16.mxu1 %vm388_vm2, %v21741_v33 }
 0x858   : > { %17707 = vmatmul.mubr.msk.bf16.gmra.mrb[76].mxu1 %vm388_vm2, %v21747_v40 }
 0x859   : > { %17710 = vmatprep.mubr.msk.bf16.mxu1 %vm388_vm2, %v21749_v7 }
 0x860   : > { %17711 = vmatmul.mubr.msk.bf16.gmra.mrb[80].mxu1 %vm388_vm2, %v21755_v63 }
 0x861   : > { %17714 = vmatprep.mubr.msk.bf16.mxu1 %vm388_vm2, %v21757_v39 }
 0x868   : > { %17715 = vmatmul.mubr.msk.bf16.gmra.mrb[84].mxu1 %vm388_vm2, %v21763_v34 }
 0x869   : > { %17718 = vmatprep.mubr.msk.bf16.mxu1 %vm388_vm2, %v21765_v6 }
 0x870   : > { %17719 = vmatmul.mubr.msk.bf16.gmra.mrb[88].mxu1 %vm388_vm2, %v21771_v4 }
 0x871   : > { %17722 = vmatprep.mubr.msk.bf16.mxu1 %vm388_vm2, %v21773_v27 }
 0x878   : > { %17723 = vmatmul.mubr.msk.bf16.gmra.mrb[92].mxu1 %vm388_vm2, %v21779_v42 }
 0x879   : > { %17734 = vmatprep.mubr.msk.bf16.mxu1 %vm388_vm2, %v21637_v56  ;;  %v19655_v56 = vld [vmem:[%s22670_s7 + $0x98] sm:$0xff]  }
 0x880   : > { %17735 = vmatmul.mubr.msk.bf16.vlgmr.msra.gmra.mrb[64].mxu1 %vm388_vm2, %v21642_v0 }
 0x881   : > { %17767 = vmatpush3.bf16.msra.mxu1 %v19652_v29  ;;  %17738 = vmatprep.mubr.msk.bf16.mxu1 %vm388_vm2, %v21652_v10  ;;  %v19656_v29 = vld [vmem:[%s22670_s7 + $0xa0] sm:$0xff]  }
 0x882   : > { %17768 = vmatprep.subr.bf16.mxu1 %v19653_v1 }
 0x885   : > { %17769 = vmatpush3.bf16.msra.mxu1 %v19653_v1  ;;  %v11114_v1 = vld [vmem:[#allocation2 + $0x81] sm:$0xff] }
 0x886   : > { %17770 = vmatprep.subr.bf16.mxu1 %v19654_v61 }
 0x888   : > { %17739 = vmatmul.mubr.msk.bf16.gmra.mrb[68].mxu1 %vm388_vm2, %v21657_v30 }
 0x889   : > { %17742 = vmatprep.mubr.msk.bf16.mxu1 %vm388_vm2, %v21666_v32  ;;  %17771 = vmatpush3.bf16.msra.mxu1 %v19654_v61  ;;  %v11116_v61 = vld [vmem:[#allocation2 + $0x99] sm:$0xff] }
 0x88a   : > { %17772 = vmatprep.subr.bf16.mxu1 %v19655_v56 }
 0x88d   : > { %17773 = vmatpush3.bf16.msra.mxu1 %v19655_v56  ;;  %v11113_v56 = vld [vmem:[#allocation2 + $0x79] sm:$0xff] }
 0x88e   : > { %17806 = vmatprep.subr.bf16.mxu1 %v19656_v29 }
 0x890   : > { %17743 = vmatmul.mubr.msk.bf16.gmra.mrb[72].mxu1 %vm388_vm2, %v21668_v3 }
 0x891   : > { %17746 = vmatprep.mubr.msk.bf16.mxu1 %vm388_vm2, %v21674_v62 }
 0x898   : > { %17747 = vmatmul.mubr.msk.bf16.gmra.mrb[76].mxu1 %vm388_vm2, %v21676_v50 }
 0x899   : > { %17750 = vmatprep.mubr.msk.bf16.mxu1 %vm388_vm2, %v21682_v48 }
 0x8a0   : > { %17751 = vmatmul.mubr.msk.bf16.gmra.mrb[80].mxu1 %vm388_vm2, %v21684_v53 }
 0x8a1   : > { %17754 = vmatprep.mubr.msk.bf16.mxu1 %vm388_vm2, %v21690_v52 }
 0x8a8   : > { %17755 = vmatmul.mubr.msk.bf16.gmra.mrb[84].mxu1 %vm388_vm2, %v21692_v41 }
 0x8a9   : > { %17758 = vmatprep.mubr.msk.bf16.mxu1 %vm388_vm2, %v21698_v26 }
 0x8b0   : > { %17759 = vmatmul.mubr.msk.bf16.gmra.mrb[88].mxu1 %vm388_vm2, %v21700_v35 }
 0x8b1   : > { %17762 = vmatprep.mubr.msk.bf16.mxu1 %vm388_vm2, %v21706_v43 }
 0x8b8   : > { %17763 = vmatmul.mubr.msk.bf16.gmra.mrb[92].mxu1 %vm388_vm2, %v21825_v36 }
 0x8b9   : > { %17774 = vmatprep.mubr.msk.bf16.mxu1 %vm388_vm2, %v21513_v59  ;;  %v19659_v59 = vld [vmem:[%s22670_s7 + $0xb8] sm:$0xff]  }
 0x8c0   : > { %17775 = vmatmul.mubr.msk.bf16.vlgmr.msra.gmra.mrb[64].mxu1 %vm388_vm2, %v21519_v38  ;;  %v19660_v38 = vld [vmem:[%s22670_s7 + $0xc0] sm:$0xff]  }
 0x8c1   : > { %17807 = vmatpush3.bf16.msra.mxu1 %v19656_v29  ;;  %17778 = vmatprep.mubr.msk.bf16.mxu1 %vm388_vm2, %v21535_v2  ;;  %v10172_v2 = vld [vmem:[#allocation2 + $0x189] sm:$0xff]  ;;  %v11142_v29 = vpack.c.bf16 %v11114_v1, %v11113_v56 }
 0x8c2   : > { %17808 = vmatprep.subr.bf16.mxu1 %v19657_v47 }
 0x8c5   : > { %17809 = vmatpush3.bf16.msra.mxu1 %v19657_v47  ;;  %v11118_v47 = vld [vmem:[#allocation2 + $0xb1] sm:$0xff] }
 0x8c6   : > { %17810 = vmatprep.subr.bf16.mxu1 %v19658_v11 }
 0x8c8   : > { %17779 = vmatmul.mubr.msk.bf16.gmra.mrb[68].mxu1 %vm388_vm2, %v21541_v49  ;;  %v10171_v49 = vld [vmem:[#allocation2 + $0x181] sm:$0xff] }
 0x8c9   : > { %17782 = vmatprep.mubr.msk.bf16.mxu1 %vm388_vm2, %v21559_v54  ;;  %17811 = vmatpush3.bf16.msra.mxu1 %v19658_v11  ;;  %v21871_v54 = vpack.c.bf16 %v10172_v2, %v10171_v49  ;;  %v11120_v11 = vld [vmem:[#allocation2 + $0xc9] sm:$0xff]  ;;  %v11119_v2 = vld [vmem:[#allocation2 + $0xc1] sm:$0xff] }
 0x8ca   : > { %17812 = vmatprep.subr.bf16.mxu1 %v19659_v59  ;;  %v11145_v49 = vpack.c.bf16 %v11120_v11, %v11119_v2 }
 0x8cd   : > { %17813 = vmatpush3.bf16.msra.mxu1 %v19659_v59  ;;  %v11117_v59 = vld [vmem:[#allocation2 + $0xa9] sm:$0xff] }
 0x8ce   : > { %17846 = vmatprep.subr.bf16.mxu1 %v19660_v38 }
 0x8d0   : > { %17783 = vmatmul.mubr.msk.bf16.gmra.mrb[72].mxu1 %vm388_vm2, %v21563_v8  ;;  %v19661_v8 = vld [vmem:[%s22670_s7 + $0xc8] sm:$0xff]  }
 0x8d1   : > { %17786 = vmatprep.mubr.msk.bf16.mxu1 %vm388_vm2, %v21576_v58  ;;  %v19662_v58 = vld [vmem:[%s22670_s7 + $0xd0] sm:$0xff]  }
 0x8d8   : > { %17787 = vmatmul.mubr.msk.bf16.gmra.mrb[76].mxu1 %vm388_vm2, %v21579_v51  ;;  %v19663_v51 = vld [vmem:[%s22670_s7 + $0xd8] sm:$0xff]  }
 0x8d9   : > { %17790 = vmatprep.mubr.msk.bf16.mxu1 %vm388_vm2, %v21592_v37  ;;  %v19664_v37 = vld [vmem:[%s22670_s7 + $0xe0] sm:$0xff]  }
 0x8e0   : > { %17791 = vmatmul.mubr.msk.bf16.gmra.mrb[80].mxu1 %vm388_vm2, %v21595_v24  ;;  %v10493_v24 = vld [vmem:[#allocation2 + $0x182] sm:$0xff] }
 0x8e1   : > { %17794 = vmatprep.mubr.msk.bf16.mxu1 %vm388_vm2, %v21608_v28  ;;  %v10494_v28 = vld [vmem:[#allocation2 + $0x18a] sm:$0xff] }
 0x8e8   : > { %17795 = vmatmul.mubr.msk.bf16.gmra.mrb[84].mxu1 %vm388_vm2, %v21611_v60  ;;  %v21917_v60 = vpack.c.bf16 %v10494_v28, %v10493_v24  ;;  %v11123_v24 = vld [vmem:[#allocation2 + $0xf1] sm:$0xff] }
 0x8e9   : > { %17798 = vmatprep.mubr.msk.bf16.mxu1 %vm388_vm2, %v21624_v44  ;;  %v19665_v44 = vld [vmem:[%s22670_s7 + $0xe8] sm:$0xff]  }
 0x8f0   : > { %17799 = vmatmul.mubr.msk.bf16.gmra.mrb[88].mxu1 %vm388_vm2, %v21626_v5  ;;  %v19666_v5 = vld [vmem:[%s22670_s7 + $0xf0] sm:$0xff]  }
 0x8f1   : > { %17802 = vmatprep.mubr.msk.bf16.mxu1 %vm388_vm2, %v21632_v23  ;;  %v19667_v23 = vld [vmem:[%s22670_s7 + $0xf8] sm:$0xff]  }
 0x8f8   : > { %17803 = vmatmul.mubr.msk.bf16.gmra.mrb[92].mxu1 %vm388_vm2, %v21871_v54 }
 0x8f9   : > { %17814 = vmatprep.mubr.msk.bf16.mxu1 %vm388_vm2, %v21711_v18  ;;  %v19669_v18 = vld [vmem:[%s22670_s7 + $0x108] sm:$0xff]  }
 0x900   : > { %17815 = vmatmul.mubr.msk.bf16.vlgmr.msra.gmra.mrb[64].mxu1 %vm388_vm2, %v21716_v9 }
 0x901   : > { %17847 = vmatpush3.bf16.msra.mxu1 %v19660_v38  ;;  %17818 = vmatprep.mubr.msk.bf16.mxu1 %vm388_vm2, %v21725_v16  ;;  %v11144_v38 = vpack.c.bf16 %v11118_v47, %v11117_v59 }
 0x902   : > { %17848 = vmatprep.subr.bf16.mxu1 %v19661_v8 }
 0x905   : > { %17849 = vmatpush3.bf16.msra.mxu1 %v19661_v8  ;;  %v11122_v8 = vld [vmem:[#allocation2 + $0xe1] sm:$0xff] }
 0x906   : > { %17850 = vmatprep.subr.bf16.mxu1 %v19662_v58 }
 0x908   : > { %17819 = vmatmul.mubr.msk.bf16.gmra.mrb[68].mxu1 %vm388_vm2, %v21730_v46 }
 0x909   : > { %17822 = vmatprep.mubr.msk.bf16.mxu1 %vm388_vm2, %v21739_v15  ;;  %17851 = vmatpush3.bf16.msra.mxu1 %v19662_v58  ;;  %v11124_v58 = vld [vmem:[#allocation2 + $0xf9] sm:$0xff] }
 0x90a   : > { %17852 = vmatprep.subr.bf16.mxu1 %v19663_v51  ;;  %v11147_v28 = vpack.c.bf16 %v11124_v58, %v11123_v24 }
 0x90d   : > { %17853 = vmatpush3.bf16.msra.mxu1 %v19663_v51  ;;  %v11121_v51 = vld [vmem:[#allocation2 + $0xd9] sm:$0xff] }
 0x90e   : > { %17886 = vmatprep.subr.bf16.mxu1 %v19664_v37 }
 0x910   : > { %17823 = vmatmul.mubr.msk.bf16.gmra.mrb[72].mxu1 %vm388_vm2, %v21741_v33 }
 0x911   : > { %17826 = vmatprep.mubr.msk.bf16.mxu1 %vm388_vm2, %v21747_v40 }
 0x918   : > { %17827 = vmatmul.mubr.msk.bf16.gmra.mrb[76].mxu1 %vm388_vm2, %v21749_v7 }
 0x919   : > { %17830 = vmatprep.mubr.msk.bf16.mxu1 %vm388_vm2, %v21755_v63 }
 0x920   : > { %17831 = vmatmul.mubr.msk.bf16.gmra.mrb[80].mxu1 %vm388_vm2, %v21757_v39 }
 0x921   : > { %17834 = vmatprep.mubr.msk.bf16.mxu1 %vm388_vm2, %v21763_v34 }
 0x928   : > { %17835 = vmatmul.mubr.msk.bf16.gmra.mrb[84].mxu1 %vm388_vm2, %v21765_v6 }
 0x929   : > { %17838 = vmatprep.mubr.msk.bf16.mxu1 %vm388_vm2, %v21771_v4 }
 0x930   : > { %17839 = vmatmul.mubr.msk.bf16.gmra.mrb[88].mxu1 %vm388_vm2, %v21773_v27 }
 0x931   : > { %17842 = vmatprep.mubr.msk.bf16.mxu1 %vm388_vm2, %v21779_v42 }
 0x938   : > { %17843 = vmatmul.mubr.msk.bf16.gmra.mrb[92].mxu1 %vm388_vm2, %v21917_v60 }
 0x939   : > { %17854 = vmatprep.mubr.msk.bf16.mxu1 %vm388_vm2, %v21642_v0  ;;  %v19668_v0 = vld [vmem:[%s22670_s7 + $0x100] sm:$0xff]  }
 0x940   : > { %17855 = vmatmul.mubr.msk.bf16.vlgmr.msra.gmra.mrb[64].mxu1 %vm388_vm2, %v21652_v10  ;;  %v10815_v10 = vld [vmem:[#allocation2 + $0x198] sm:$0xff] }
 0x941   : > { %17887 = vmatpush3.bf16.msra.mxu1 %v19664_v37  ;;  %17858 = vmatprep.mubr.msk.bf16.mxu1 %vm388_vm2, %v21657_v30  ;;  %v10816_v30 = vld [vmem:[#allocation2 + $0x1a0] sm:$0xff]  ;;  %v11146_v37 = vpack.c.bf16 %v11122_v8, %v11121_v51 }
 0x942   : > { %17888 = vmatprep.subr.bf16.mxu1 %v19665_v44 }
 0x945   : > { %17889 = vmatpush3.bf16.msra.mxu1 %v19665_v44  ;;  %v11126_v44 = vld [vmem:[#allocation2 + $0x111] sm:$0xff] }
 0x946   : > { %17890 = vmatprep.subr.bf16.mxu1 %v19666_v5 }
 0x948   : > { %17859 = vmatmul.mubr.msk.bf16.gmra.mrb[68].mxu1 %vm388_vm2, %v21666_v32  ;;  %v10832_v32 = vpack.c.bf16 %v10816_v30, %v10815_v10  ;;  %v11127_v10 = vld [vmem:[#allocation2 + $0x121] sm:$0xff] }
 0x949   : > { %17862 = vmatprep.mubr.msk.bf16.mxu1 %vm388_vm2, %v21668_v3  ;;  %17891 = vmatpush3.bf16.msra.mxu1 %v19666_v5  ;;  %v11108_v3 = vld [vmem:[#allocation2 + $0x39] sm:$0xff]  ;;  %v11128_v5 = vld [vmem:[#allocation2 + $0x129] sm:$0xff] }
 0x94a   : > { %17892 = vmatprep.subr.bf16.mxu1 %v19667_v23  ;;  %v11149_v30 = vpack.c.bf16 %v11128_v5, %v11127_v10  ;;  %v19675_v5 = vld [vmem:[%s22672_s9 + $0x8] sm:$0xff]  }
 0x94d   : > { %17893 = vmatpush3.bf16.msra.mxu1 %v19667_v23  ;;  %v11125_v23 = vld [vmem:[#allocation2 + $0x109] sm:$0xff] }
 0x94e   : > { %17926 = vmatprep.subr.bf16.mxu1 %v19668_v0 }
 0x950   : > { %17863 = vmatmul.mubr.msk.bf16.gmra.mrb[72].mxu1 %vm388_vm2, %v21674_v62  ;;  %v11107_v62 = vld [vmem:[#allocation2 + $0x31] sm:$0xff] }
 0x951   : > { %17866 = vmatprep.mubr.msk.bf16.mxu1 %vm388_vm2, %v21676_v50  ;;  %v11139_v50 = vpack.c.bf16 %v11108_v3, %v11107_v62  ;;  %v11132_v3 = vld [vmem:[#allocation2 + $0x159] sm:$0xff] }
 0x952   : > { %v11129_v62 = vld [vmem:[#allocation2 + $0x139] sm:$0xff] }
 0x958   : > { %17867 = vmatmul.mubr.msk.bf16.gmra.mrb[76].mxu1 %vm388_vm2, %v21682_v48  ;;  %v19672_v48 = vld [vmem:[%s22672_s9 + $0x10] sm:$0xff]  }
 0x959   : > { %17870 = vmatprep.mubr.msk.bf16.mxu1 %vm388_vm2, %v21684_v53  ;;  %v19673_v53 = vld [vmem:[%s22672_s9 + $0x18] sm:$0xff]   ;;  %17966 = vmatprep.subr.bf16.mxu0 %v19672_v48 }
 0x95a   : > { %17967 = vmatpush3.bf16.msra.mxu0 %v19672_v48  ;;  %v11131_v48 = vld [vmem:[#allocation2 + $0x151] sm:$0xff] }
 0x95b   : > { %17968 = vmatprep.subr.bf16.mxu0 %v19673_v53 }
 0x95e   : > { %17969 = vmatpush3.bf16.msra.mxu0 %v19673_v53  ;;  %v11151_v53 = vpack.c.bf16 %v11132_v3, %v11131_v48 }
 0x960   : > { %17871 = vmatmul.mubr.msk.bf16.gmra.mrb[80].mxu1 %vm388_vm2, %v21690_v52  ;;  %v11110_v52 = vld [vmem:[#allocation2 + $0x51] sm:$0xff] }
 0x961   : > { %17874 = vmatprep.mubr.msk.bf16.mxu1 %vm388_vm2, %v21692_v41  ;;  %v11112_v41 = vld [vmem:[#allocation2 + $0x69] sm:$0xff] }
 0x968   : > { %17875 = vmatmul.mubr.msk.bf16.gmra.mrb[84].mxu1 %vm388_vm2, %v21698_v26  ;;  %v11109_v26 = vld [vmem:[#allocation2 + $0x49] sm:$0xff] }
 0x969   : > { %17878 = vmatprep.mubr.msk.bf16.mxu1 %vm388_vm2, %v21700_v35  ;;  %v11140_v35 = vpack.c.bf16 %v11110_v52, %v11109_v26  ;;  %v11134_v52 = vld [vmem:[#allocation2 + $0x171] sm:$0xff] }
 0x970   : > { %17879 = vmatmul.mubr.msk.bf16.gmra.mrb[88].mxu1 %vm388_vm2, %v21706_v43  ;;  %v11111_v43 = vld [vmem:[#allocation2 + $0x61] sm:$0xff] }
 0x971   : > { %17882 = vmatprep.mubr.msk.bf16.mxu1 %vm388_vm2, %v21825_v36  ;;  %v11141_v31 = vpack.c.bf16 %v11112_v41, %v11111_v43  ;;  %v11143_v36 = vpack.c.bf16 %v11116_v61, %v11115_v55  ;;  %v11133_v41 = vld [vmem:[#allocation2 + $0x169] sm:$0xff]  ;;  %v11138_v43 = vld [vmem:[#allocation2 + $0x1a1] sm:$0xff] }
 0x972   : > { %v11152_v26 = vpack.c.bf16 %v11134_v52, %v11133_v41  ;;  %v22070_v52 = vld [vmem:[%s22672_s9 + $0x20] sm:$0xff]  }
 0x978   : > { %17883 = vmatmul.mubr.msk.bf16.gmra.mrb[92].mxu1 %vm388_vm2, %v10832_v32  ;;  %v11130_v32 = vld [vmem:[#allocation2 + $0x141] sm:$0xff] }
 0x979   : > { %17894 = vmatprep.mubr.msk.bf16.mxu1 %vm388_vm2, %v11139_v50  ;;  %v11150_v50 = vpack.c.bf16 %v11130_v32, %v11129_v62 }
 0x980   : > { %17895 = vmatmul.mubr.msk.bf16.vlgmr.msra.gmra.mrb[64].mxu1 %vm388_vm2, %v11140_v35  ;;  %v11137_v35 = vld [vmem:[#allocation2 + $0x199] sm:$0xff] }
 0x981   : > { %17927 = vmatpush3.bf16.msra.mxu1 %v19668_v0  ;;  %17898 = vmatprep.mubr.msk.bf16.mxu1 %vm388_vm2, %v11141_v31  ;;  %v11148_v0 = vpack.c.bf16 %v11126_v44, %v11125_v23 }
 0x982   : > { %17928 = vmatprep.subr.bf16.mxu1 %v19669_v18 }
 0x985   : > { %17929 = vmatpush3.bf16.msra.mxu1 %v19669_v18  ;;  %v11154_v18 = vpack.c.bf16 %v11138_v43, %v11137_v35 }
 0x986   : > { %17930 = vmatprep.subr.bf16.mxu1 %v19670_v45 }
 0x988   : > { %17899 = vmatmul.mubr.msk.bf16.gmra.mrb[68].mxu1 %vm388_vm2, %v11142_v29 }
 0x989   : > { %17902 = vmatprep.mubr.msk.bf16.mxu1 %vm388_vm2, %v11143_v36  ;;  %17931 = vmatpush3.bf16.msra.mxu1 %v19670_v45 }
 0x98a   : > { %17932 = vmatprep.subr.bf16.mxu1 %v19671_v57 }
 0x98d   : > { %17933 = vmatpush3.bf16.msra.mxu1 %v19671_v57 }
 0x990   : > { %17903 = vmatmul.mubr.msk.bf16.gmra.mrb[72].mxu1 %vm388_vm2, %v11144_v38 }
 0x991   : > { %17906 = vmatprep.mubr.msk.bf16.mxu1 %vm388_vm2, %v11145_v49 }
 0x998   : > { %17907 = vmatmul.mubr.msk.bf16.gmra.mrb[76].mxu1 %vm388_vm2, %v11146_v37 }
 0x999   : > { %17910 = vmatprep.mubr.msk.bf16.mxu1 %vm388_vm2, %v11147_v28 }
 0x9a0   : > { %17911 = vmatmul.mubr.msk.bf16.gmra.mrb[80].mxu1 %vm388_vm2, %v11148_v0 }
 0x9a1   : > { %17914 = vmatprep.mubr.msk.bf16.mxu1 %vm388_vm2, %v11149_v30 }
 0x9a8   : > { %17915 = vmatmul.mubr.msk.bf16.gmra.mrb[84].mxu1 %vm388_vm2, %v11150_v50 }
 0x9a9   : > { %17918 = vmatprep.mubr.msk.bf16.mxu1 %vm388_vm2, %v11151_v53 }
 0x9b0   : > { %17919 = vmatmul.mubr.msk.bf16.gmra.mrb[88].mxu1 %vm388_vm2, %v11152_v26 }
 0x9b1   : > { %17922 = vmatprep.mubr.msk.bf16.mxu1 %vm388_vm2, %v21871_v54 }
 0x9b8   : > { %17923 = vmatmul.mubr.msk.bf16.gmra.mrb[92].mxu1 %vm388_vm2, %v11154_v18 }
 0x9b9   : > { %17934 = vmatprep.mubr.msk.bf16.mxu1 %vm388_vm2, %v21716_v9  ;;  %v11459_v9 = vld [vmem:[#allocation2 + $0x19a] sm:$0xff] }
 0x9c0   : > { %17935 = vmatmul.mubr.msk.bf16.vlgmr.msra.gmra.mrb[64].mxu1 %vm388_vm2, %v21725_v16  ;;  %v11460_v16 = vld [vmem:[#allocation2 + $0x1a2] sm:$0xff] }
 0x9c1   : > { %17938 = vmatprep.mubr.msk.bf16.mxu1 %vm388_vm2, %v21730_v46  ;;  %v11476_v46 = vpack.c.bf16 %v11460_v16, %v11459_v9 }
 0x9c8   : > { %17939 = vmatmul.mubr.msk.bf16.gmra.mrb[68].mxu1 %vm388_vm2, %v21739_v15  ;;  %v11906_v15 = vld [vmem:[#allocation2 + $0x1] sm:$0xff] }
 0x9c9   : > { %17942 = vmatprep.mubr.msk.bf16.mxu1 %vm388_vm2, %v21741_v33  ;;  %v11907_v33 = vld [vmem:[#allocation2 + $0x9] sm:$0xff] }
 0x9d0   : > { %17943 = vmatmul.mubr.msk.bf16.gmra.mrb[72].mxu1 %vm388_vm2, %v21747_v40  ;;  %v11938_v40 = vpack.c.bf16 %v11907_v33, %v11906_v15 }
 0x9d1   : > { %17946 = vmatprep.mubr.msk.bf16.mxu1 %vm388_vm2, %v21749_v7  ;;  %v19674_v7 = vld [vmem:[%s22672_s9] sm:$0xff]  }
 0x9d2   : > { %17970 = vmatprep.mubr.msk.bf16.mxu0 %vm3157_vm6, %v11938_v40  ;;  %18002 = vmatprep.subr.bf16.mxu0 %v19674_v7 }
 0x9d8   : > { %17947 = vmatmul.mubr.msk.bf16.gmra.mrb[76].mxu1 %vm388_vm2, %v21755_v63  ;;  %v22034_v63 = vld [vmem:[%s22671_s8] ss:$0 sm:$0xff] }
 0x9d9   : > { %17950 = vmatprep.mubr.msk.bf16.mxu1 %vm388_vm2, %v21757_v39 }
 0x9e0   : > { %17951 = vmatmul.mubr.msk.bf16.gmra.mrb[80].mxu1 %vm388_vm2, %v21763_v34 }
 0x9e1   : > { %17954 = vmatprep.mubr.msk.bf16.mxu1 %vm388_vm2, %v21765_v6 }
 0x9e8   : > { %17955 = vmatmul.mubr.msk.bf16.gmra.mrb[84].mxu1 %vm388_vm2, %v21771_v4 }
 0x9e9   : > { %17958 = vmatprep.mubr.msk.bf16.mxu1 %vm388_vm2, %v21773_v27 }
 0x9f0   : > { %17959 = vmatmul.mubr.msk.bf16.gmra.mrb[88].mxu1 %vm388_vm2, %v21779_v42 }
 0x9f1   : > { %17962 = vmatprep.mubr.msk.bf16.mxu1 %vm388_vm2, %v21917_v60 }
 0x9f8   : > { %17963 = vmatmul.mubr.msk.bf16.gmra.mrb[92].mxu1 %vm388_vm2, %v11476_v46 }
 0xa93   : > { %v17936_v39 = vpop.f32.mrb[64].mxu1 }
 0xa94   : > { %v11760_v34 = vadd.f32 %v17936_v39, %v22034_v63  ;;  %v11592_v6 = vpop.f32.mrb[65].mxu1 }
 0xa95   : > { %v11758_v4 = vadd.f32 %v22034_v63, %v11592_v6  ;;  %v17937_v27 = vpop.f32.mrb[66].mxu1 }
 0xa96   : > { %v11792_v42 = vmax.f32 %v11760_v34, 0.0  ;;  %v11761_v54 = vadd.f32 %v17937_v27, %v22034_v63  ;;  %v11595_v60 = vpop.f32.mrb[67].mxu1 }
 0xa97   : > { %v11790_v31 = vmax.f32 %v11758_v4, 0.0  ;;  %v11759_v45 = vadd.f32 %v22034_v63, %v11595_v60 }
 0xa98   : > { %11824 = vst.msk [vmem:[#allocation2 + $0x31] sm:$0xff] %vm3157_vm6, %v11792_v42  ;;  %v11793_v1 = vmax.f32 %v11761_v54, 0.0 }
 0xa99   : > { %11822 = vst.msk [vmem:[#allocation2 + $0x19] sm:$0xff] %vm3157_vm6, %v11790_v31  ;;  %v11791_v61 = vmax.f32 %v11759_v45, 0.0 }
 0xa9a   : > { %11825 = vst.msk [vmem:[#allocation2 + $0x39] sm:$0xff] %vm3157_vm6, %v11793_v1 }
 0xa9b   : > { %11823 = vst.msk [vmem:[#allocation2 + $0x21] sm:$0xff] %vm3157_vm6, %v11791_v61  ;;  %v17940_v56 = vpop.f32.mrb[68].mxu1 }
 0xa9c   : > { %v11764_v29 = vadd.f32 %v17940_v56, %v22034_v63  ;;  %v11608_v55 = vpop.f32.mrb[69].mxu1 }
 0xa9d   : > { %v11762_v57 = vadd.f32 %v22034_v63, %v11608_v55  ;;  %v17941_v36 = vpop.f32.mrb[70].mxu1 }
 0xa9e   : > { %v11796_v47 = vmax.f32 %v11764_v29, 0.0  ;;  %v11765_v11 = vadd.f32 %v17941_v36, %v22034_v63  ;;  %v11611_v59 = vpop.f32.mrb[71].mxu1 }
 0xa9f   : > { %v11794_v38 = vmax.f32 %v11762_v57, 0.0  ;;  %v11763_v2 = vadd.f32 %v22034_v63, %v11611_v59  ;;  %v11910_v44 = vld [vmem:[#allocation2 + $0x31] sm:$0xff] }
 0xaa0   : > { %11828 = vst.msk [vmem:[#allocation2 + $0x61] sm:$0xff] %vm3157_vm6, %v11796_v47  ;;  %v11797_v49 = vmax.f32 %v11765_v11, 0.0  ;;  %v11908_v51 = vld [vmem:[#allocation2 + $0x19] sm:$0xff] }
 0xaa1   : > { %11826 = vst.msk [vmem:[#allocation2 + $0x49] sm:$0xff] %vm3157_vm6, %v11794_v38  ;;  %v11795_v8 = vmax.f32 %v11763_v2, 0.0  ;;  %v11911_v58 = vld [vmem:[#allocation2 + $0x39] sm:$0xff] }
 0xaa2   : > { %11829 = vst.msk [vmem:[#allocation2 + $0x69] sm:$0xff] %vm3157_vm6, %v11797_v49  ;;  %v11909_v37 = vld [vmem:[#allocation2 + $0x21] sm:$0xff]  ;;  %v22058_v10 = vpack.c.bf16 %v11911_v58, %v11910_v44 }
 0xaa3   : > { %11827 = vst.msk [vmem:[#allocation2 + $0x51] sm:$0xff] %vm3157_vm6, %v11795_v8  ;;  %v17944_v24 = vpop.f32.mrb[72].mxu1  ;;  %v22052_v28 = vpack.c.bf16 %v11909_v37, %v11908_v51 }
 0xaa4   : > { %v11768_v23 = vadd.f32 %v17944_v24, %v22034_v63  ;;  %v11624_v0 = vpop.f32.mrb[73].mxu1 }
 0xaa5   : > { %v11766_v30 = vadd.f32 %v22034_v63, %v11624_v0  ;;  %v17945_v32 = vpop.f32.mrb[74].mxu1  ;;  %17971 = vmatmul.mubr.msk.bf16.vlgmr.msra.gmra.mrb[64].mxu0 %vm3157_vm6, %v22052_v28 }
 0xaa6   : > { %v11800_v3 = vmax.f32 %v11768_v23, 0.0  ;;  %v11769_v62 = vadd.f32 %v17945_v32, %v22034_v63  ;;  %18003 = vmatpush3.bf16.msra.mxu0 %v19674_v7  ;;  %v11627_v50 = vpop.f32.mrb[75].mxu1  ;;  %17974 = vmatprep.mubr.msk.bf16.mxu0 %vm3157_vm6, %v22058_v10 }
 0xaa7   : > { %v11798_v48 = vmax.f32 %v11766_v30, 0.0  ;;  %v11767_v53 = vadd.f32 %v22034_v63, %v11627_v50  ;;  %18004 = vmatprep.subr.bf16.mxu0 %v19675_v5  ;;  %v11914_v46 = vld [vmem:[#allocation2 + $0x61] sm:$0xff] }
 0xaa8   : > { %11832 = vst.msk [vmem:[#allocation2 + $0x91] sm:$0xff] %vm3157_vm6, %v11800_v3  ;;  %v11801_v41 = vmax.f32 %v11769_v62, 0.0  ;;  %v11912_v43 = vld [vmem:[#allocation2 + $0x49] sm:$0xff] }
 0xaa9   : > { %11830 = vst.msk [vmem:[#allocation2 + $0x79] sm:$0xff] %vm3157_vm6, %v11798_v48  ;;  %v11799_v26 = vmax.f32 %v11767_v53, 0.0  ;;  %v11915_v35 = vld [vmem:[#allocation2 + $0x69] sm:$0xff] }
 0xaaa   : > { %11833 = vst.msk [vmem:[#allocation2 + $0x99] sm:$0xff] %vm3157_vm6, %v11801_v41  ;;  %v11913_v18 = vld [vmem:[#allocation2 + $0x51] sm:$0xff]  ;;  %18005 = vmatpush3.bf16.msra.mxu0 %v19675_v5  ;;  %v22080_v40 = vpack.c.bf16 %v11915_v35, %v11914_v46 }
 0xaab   : > { %11831 = vst.msk [vmem:[#allocation2 + $0x81] sm:$0xff] %vm3157_vm6, %v11799_v26  ;;  %v17948_v9 = vpop.f32.mrb[76].mxu1  ;;  %v22076_v16 = vpack.c.bf16 %v11913_v18, %v11912_v43  ;;  %18038 = vmatprep.subr.bf16.mxu0 %v22070_v52 }
 0xaac   : > { %v11772_v15 = vadd.f32 %v17948_v9, %v22034_v63  ;;  %v11640_v33 = vpop.f32.mrb[77].mxu1 }
 0xaad   : > { %v11770_v7 = vadd.f32 %v22034_v63, %v11640_v33  ;;  %v17949_v39 = vpop.f32.mrb[78].mxu1  ;;  %17975 = vmatmul.mubr.msk.bf16.gmra.mrb[68].mxu0 %vm3157_vm6, %v22076_v16 }
 0xaae   : > { %v11804_v34 = vmax.f32 %v11772_v15, 0.0  ;;  %v11773_v6 = vadd.f32 %v17949_v39, %v22034_v63  ;;  %v11643_v4 = vpop.f32.mrb[79].mxu1  ;;  %17978 = vmatprep.mubr.msk.bf16.mxu0 %vm3157_vm6, %v22080_v40 }
 0xaaf   : > { %v11802_v27 = vmax.f32 %v11770_v7, 0.0  ;;  %v11771_v42 = vadd.f32 %v22034_v63, %v11643_v4  ;;  %v11918_v29 = vld [vmem:[#allocation2 + $0x91] sm:$0xff] }
 0xab0   : > { %11836 = vst.msk [vmem:[#allocation2 + $0xc1] sm:$0xff] %vm3157_vm6, %v11804_v34  ;;  %v11805_v54 = vmax.f32 %v11773_v6, 0.0  ;;  %v11916_v45 = vld [vmem:[#allocation2 + $0x79] sm:$0xff] }
 0xab1   : > { %11834 = vst.msk [vmem:[#allocation2 + $0xa9] sm:$0xff] %vm3157_vm6, %v11802_v27  ;;  %v11803_v60 = vmax.f32 %v11771_v42, 0.0  ;;  %v11919_v31 = vld [vmem:[#allocation2 + $0x99] sm:$0xff] }
 0xab2   : > { %11837 = vst.msk [vmem:[#allocation2 + $0xc9] sm:$0xff] %vm3157_vm6, %v11805_v54  ;;  %v11917_v1 = vld [vmem:[#allocation2 + $0x81] sm:$0xff]  ;;  %v22096_v36 = vpack.c.bf16 %v11919_v31, %v11918_v29 }
 0xab3   : > { %11835 = vst.msk [vmem:[#allocation2 + $0xb1] sm:$0xff] %vm3157_vm6, %v11803_v60  ;;  %v17952_v61 = vpop.f32.mrb[80].mxu1  ;;  %v22093_v56 = vpack.c.bf16 %v11917_v1, %v11916_v45 }
 0xab4   : > { %v11776_v55 = vadd.f32 %v17952_v61, %v22034_v63  ;;  %v11656_v57 = vpop.f32.mrb[81].mxu1 }
 0xab5   : > { %v11774_v47 = vadd.f32 %v22034_v63, %v11656_v57  ;;  %v17953_v11 = vpop.f32.mrb[82].mxu1  ;;  %17979 = vmatmul.mubr.msk.bf16.gmra.mrb[72].mxu0 %vm3157_vm6, %v22093_v56 }
 0xab6   : > { %v11808_v59 = vmax.f32 %v11776_v55, 0.0  ;;  %v11777_v38 = vadd.f32 %v17953_v11, %v22034_v63  ;;  %v11659_v2 = vpop.f32.mrb[83].mxu1  ;;  %17982 = vmatprep.mubr.msk.bf16.mxu0 %vm3157_vm6, %v22096_v36 }
 0xab7   : > { %v11806_v49 = vmax.f32 %v11774_v47, 0.0  ;;  %v11775_v8 = vadd.f32 %v22034_v63, %v11659_v2  ;;  %v11922_v0 = vld [vmem:[#allocation2 + $0xc1] sm:$0xff] }
 0xab8   : > { %11840 = vst.msk [vmem:[#allocation2 + $0xf1] sm:$0xff] %vm3157_vm6, %v11808_v59  ;;  %v11809_v58 = vmax.f32 %v11777_v38, 0.0  ;;  %v11920_v24 = vld [vmem:[#allocation2 + $0xa9] sm:$0xff] }
 0xab9   : > { %11838 = vst.msk [vmem:[#allocation2 + $0xd9] sm:$0xff] %vm3157_vm6, %v11806_v49  ;;  %v11807_v51 = vmax.f32 %v11775_v8, 0.0  ;;  %v11923_v37 = vld [vmem:[#allocation2 + $0xc9] sm:$0xff] }
 0xaba   : > { %11841 = vst.msk [vmem:[#allocation2 + $0xf9] sm:$0xff] %vm3157_vm6, %v11809_v58  ;;  %v11921_v44 = vld [vmem:[#allocation2 + $0xb1] sm:$0xff]  ;;  %v22112_v3 = vpack.c.bf16 %v11923_v37, %v11922_v0 }
 0xabb   : > { %11839 = vst.msk [vmem:[#allocation2 + $0xe1] sm:$0xff] %vm3157_vm6, %v11807_v51  ;;  %v17956_v5 = vpop.f32.mrb[84].mxu1  ;;  %v22109_v23 = vpack.c.bf16 %v11921_v44, %v11920_v24 }
 0xabc   : > { %v11780_v30 = vadd.f32 %v17956_v5, %v22034_v63  ;;  %v11672_v32 = vpop.f32.mrb[85].mxu1 }
 0xabd   : > { %v11778_v62 = vadd.f32 %v22034_v63, %v11672_v32  ;;  %v17957_v50 = vpop.f32.mrb[86].mxu1  ;;  %17983 = vmatmul.mubr.msk.bf16.gmra.mrb[76].mxu0 %vm3157_vm6, %v22109_v23 }
 0xabe   : > { %v11812_v48 = vmax.f32 %v11780_v30, 0.0  ;;  %v11781_v53 = vadd.f32 %v17957_v50, %v22034_v63  ;;  %v11675_v41 = vpop.f32.mrb[87].mxu1  ;;  %17986 = vmatprep.mubr.msk.bf16.mxu0 %vm3157_vm6, %v22112_v3 }
 0xabf   : > { %v11810_v26 = vmax.f32 %v11778_v62, 0.0  ;;  %v11779_v35 = vadd.f32 %v22034_v63, %v11675_v41  ;;  %v11926_v39 = vld [vmem:[#allocation2 + $0xf1] sm:$0xff] }
 0xac0   : > { %11844 = vst.msk [vmem:[#allocation2 + $0x121] sm:$0xff] %vm3157_vm6, %v11812_v48  ;;  %v11813_v43 = vmax.f32 %v11781_v53, 0.0  ;;  %v11924_v46 = vld [vmem:[#allocation2 + $0xd9] sm:$0xff] }
 0xac1   : > { %11842 = vst.msk [vmem:[#allocation2 + $0x109] sm:$0xff] %vm3157_vm6, %v11810_v26  ;;  %v11811_v18 = vmax.f32 %v11779_v35, 0.0  ;;  %v11927_v9 = vld [vmem:[#allocation2 + $0xf9] sm:$0xff]  ;;  %v11855_v35 = vld [vmem:[#allocation2 + $0x8] sm:$0xff] }
 0xac2   : > { %11845 = vst.msk [vmem:[#allocation2 + $0x129] sm:$0xff] %vm3157_vm6, %v11813_v43  ;;  %v11925_v15 = vld [vmem:[#allocation2 + $0xe1] sm:$0xff]  ;;  %v22128_v4 = vpack.c.bf16 %v11927_v9, %v11926_v39  ;;  %v11856_v39 = vld [vmem:[#allocation2 + $0x18] sm:$0xff] }
 0xac3   : > { %11843 = vst.msk [vmem:[#allocation2 + $0x111] sm:$0xff] %vm3157_vm6, %v11811_v18  ;;  %v17960_v33 = vpop.f32.mrb[88].mxu1  ;;  %v22125_v7 = vpack.c.bf16 %v11925_v15, %v11924_v46  ;;  %v11857_v15 = vld [vmem:[#allocation2 + $0x20] sm:$0xff] }
 0xac4   : > { %v11784_v34 = vadd.f32 %v17960_v33, %v22034_v63  ;;  %v11688_v6 = vpop.f32.mrb[89].mxu1  ;;  %v11859_v33 = vld [vmem:[#allocation2 + $0x38] sm:$0xff] }
 0xac5   : > { %v11782_v27 = vadd.f32 %v22034_v63, %v11688_v6  ;;  %v17961_v42 = vpop.f32.mrb[90].mxu1  ;;  %17987 = vmatmul.mubr.msk.bf16.gmra.mrb[80].mxu0 %vm3157_vm6, %v22125_v7  ;;  %v11858_v6 = vld [vmem:[#allocation2 + $0x30] sm:$0xff] }
 0xac6   : > { %v11816_v54 = vmax.f32 %v11784_v34, 0.0  ;;  %v11785_v60 = vadd.f32 %v17961_v42, %v22034_v63  ;;  %v11691_v31 = vpop.f32.mrb[91].mxu1  ;;  %17990 = vmatprep.mubr.msk.bf16.mxu0 %vm3157_vm6, %v22128_v4  ;;  %v22170_v34 = vpack.c.bf16 %v11857_v15, %v11856_v39  ;;  %v22175_v42 = vpack.c.bf16 %v11859_v33, %v11858_v6 }
 0xac7   : > { %v11814_v45 = vmax.f32 %v11782_v27, 0.0  ;;  %v11783_v1 = vadd.f32 %v22034_v63, %v11691_v31  ;;  %v11930_v38 = vld [vmem:[#allocation2 + $0x121] sm:$0xff] }
 0xac8   : > { %11848 = vst.msk [vmem:[#allocation2 + $0x151] sm:$0xff] %vm3157_vm6, %v11816_v54  ;;  %v11817_v61 = vmax.f32 %v11785_v60, 0.0  ;;  %v11928_v57 = vld [vmem:[#allocation2 + $0x109] sm:$0xff] }
 0xac9   : > { %11846 = vst.msk [vmem:[#allocation2 + $0x139] sm:$0xff] %vm3157_vm6, %v11814_v45  ;;  %v11815_v29 = vmax.f32 %v11783_v1, 0.0  ;;  %v11931_v55 = vld [vmem:[#allocation2 + $0x129] sm:$0xff] }
 0xaca   : > { %11849 = vst.msk [vmem:[#allocation2 + $0x159] sm:$0xff] %vm3157_vm6, %v11817_v61  ;;  %v11929_v47 = vld [vmem:[#allocation2 + $0x111] sm:$0xff]  ;;  %v22144_v8 = vpack.c.bf16 %v11931_v55, %v11930_v38  ;;  %v19677_v27 = vld [vmem:[%s22672_s9 + $0x28] sm:$0xff]   ;;  %v11862_v61 = vld [vmem:[#allocation2 + $0x60] sm:$0xff] }
 0xacb   : > { %11847 = vst.msk [vmem:[#allocation2 + $0x141] sm:$0xff] %vm3157_vm6, %v11815_v29  ;;  %v17964_v11 = vpop.f32.mrb[92].mxu1  ;;  %v22141_v59 = vpack.c.bf16 %v11929_v47, %v11928_v57  ;;  %v22185_v54 = vld [vmem:[%s22672_s9 + $0x30] sm:$0xff]   ;;  %v11863_v31 = vld [vmem:[#allocation2 + $0x68] sm:$0xff]  ;;  %v11867_v55 = vld [vmem:[#allocation2 + $0x98] sm:$0xff] }
 0xacc   : > { %v11788_v2 = vadd.f32 %v17964_v11, %v22034_v63  ;;  %v11704_v49 = vpop.f32.mrb[93].mxu1  ;;  %v11861_v60 = vld [vmem:[#allocation2 + $0x50] sm:$0xff]  ;;  %v11860_v45 = vld [vmem:[#allocation2 + $0x48] sm:$0xff]  ;;  %v22190_v29 = vpack.c.bf16 %v11863_v31, %v11862_v61  ;;  %v11864_v57 = vld [vmem:[#allocation2 + $0x78] sm:$0xff] }
 0xacd   : > { %v11786_v58 = vadd.f32 %v22034_v63, %v11704_v49  ;;  %v17965_v51 = vpop.f32.mrb[94].mxu1  ;;  %17991 = vmatmul.mubr.msk.bf16.gmra.mrb[84].mxu0 %vm3157_vm6, %v22141_v59  ;;  %v22187_v1 = vpack.c.bf16 %v11861_v60, %v11860_v45  ;;  %v11866_v11 = vld [vmem:[#allocation2 + $0x90] sm:$0xff]  ;;  %v11871_v49 = vld [vmem:[#allocation2 + $0xc8] sm:$0xff] }
 0xace   : > { %v11820_v37 = vmax.f32 %v11788_v2, 0.0  ;;  %v11789_v24 = vadd.f32 %v17965_v51, %v22034_v63  ;;  %v11707_v44 = vpop.f32.mrb[95].mxu1  ;;  %17994 = vmatprep.mubr.msk.bf16.mxu0 %vm3157_vm6, %v22144_v8  ;;  %v22198_v38 = vpack.c.bf16 %v11867_v55, %v11866_v11  ;;  %v11869_v2 = vld [vmem:[#allocation2 + $0xb0] sm:$0xff]  ;;  %v12403_v55 = vld [vmem:[#allocation2 + $0x1a] sm:$0xff] }
 0xacf   : > { %v11818_v5 = vmax.f32 %v11786_v58, 0.0  ;;  %v11787_v0 = vadd.f32 %v22034_v63, %v11707_v44  ;;  %v11934_v41 = vld [vmem:[#allocation2 + $0x151] sm:$0xff]  ;;  %v11854_v63 = vld [vmem:[#allocation2] sm:$0xff]  ;;  %v11868_v58 = vld [vmem:[#allocation2 + $0xa8] sm:$0xff] }
 0xad0   : > { %11852 = vst.msk [vmem:[#allocation2 + $0x181] sm:$0xff] %vm3157_vm6, %v11820_v37  ;;  %v11821_v30 = vmax.f32 %v11789_v24, 0.0  ;;  %v11932_v50 = vld [vmem:[#allocation2 + $0x139] sm:$0xff]  ;;  %v11886_v9 = vpack.c.bf16 %v11855_v35, %v11854_v63  ;;  %v22204_v51 = vpack.c.bf16 %v11869_v2, %v11868_v58  ;;  %v11882_v39 = vld [vmem:[#allocation2 + $0x150] sm:$0xff] }
 0xad1   : > { %11850 = vst.msk [vmem:[#allocation2 + $0x169] sm:$0xff] %vm3157_vm6, %v11818_v5  ;;  %v11819_v32 = vmax.f32 %v11787_v0, 0.0  ;;  %v11935_v62 = vld [vmem:[#allocation2 + $0x159] sm:$0xff]  ;;  %v12402_v60 = vld [vmem:[#allocation2 + $0xa] sm:$0xff] }
 0xad2   : > { %11853 = vst.msk [vmem:[#allocation2 + $0x189] sm:$0xff] %vm3157_vm6, %v11821_v30  ;;  %v11933_v48 = vld [vmem:[#allocation2 + $0x141] sm:$0xff]  ;;  %v22159_v26 = vpack.c.bf16 %v11935_v62, %v11934_v41  ;;  %v11875_v5 = vld [vmem:[#allocation2 + $0xf8] sm:$0xff] }
 0xad3   : > { %11851 = vst.msk [vmem:[#allocation2 + $0x171] sm:$0xff] %vm3157_vm6, %v11819_v32  ;;  %v22157_v53 = vpack.c.bf16 %v11933_v48, %v11932_v50  ;;  %v11870_v37 = vld [vmem:[#allocation2 + $0xc0] sm:$0xff]  ;;  %v11872_v0 = vld [vmem:[#allocation2 + $0xd8] sm:$0xff]  ;;  %v11874_v32 = vld [vmem:[#allocation2 + $0xf0] sm:$0xff] }
 0xad4   : > { %v22206_v24 = vpack.c.bf16 %v11871_v49, %v11870_v37  ;;  %v11873_v44 = vld [vmem:[#allocation2 + $0xe0] sm:$0xff]  ;;  %v22214_v62 = vpack.c.bf16 %v11875_v5, %v11874_v32  ;;  %v11877_v50 = vld [vmem:[#allocation2 + $0x110] sm:$0xff]  ;;  %v11879_v48 = vld [vmem:[#allocation2 + $0x128] sm:$0xff] }
 0xad5   : > { %17995 = vmatmul.mubr.msk.bf16.gmra.mrb[88].mxu0 %vm3157_vm6, %v22157_v53  ;;  %v22212_v30 = vpack.c.bf16 %v11873_v44, %v11872_v0  ;;  %v11876_v41 = vld [vmem:[#allocation2 + $0x108] sm:$0xff]  ;;  %v11878_v35 = vld [vmem:[#allocation2 + $0x120] sm:$0xff]  ;;  %v11880_v15 = vld [vmem:[#allocation2 + $0x138] sm:$0xff] }
 0xad6   : > { %17998 = vmatprep.mubr.msk.bf16.mxu0 %vm3157_vm6, %v22159_v26  ;;  %v22220_v63 = vpack.c.bf16 %v11877_v50, %v11876_v41  ;;  %v12405_v11 = vld [vmem:[#allocation2 + $0x32] sm:$0xff]  ;;  %v12406_v2 = vld [vmem:[#allocation2 + $0x3a] sm:$0xff]  ;;  %v12407_v5 = vld [vmem:[#allocation2 + $0x4a] sm:$0xff] }
 0xad7   : > { %v19679_v58 = vld [vmem:[%s22672_s9 + $0x38] sm:$0xff]   ;;  %v22246_v37 = vpack.c.bf16 %v12406_v2, %v12405_v11  ;;  %v19680_v44 = vld [vmem:[%s22672_s9 + $0x40] sm:$0xff]   ;;  %v12410_v50 = vld [vmem:[#allocation2 + $0x6a] sm:$0xff] }
 0xad8   : > { %v11936_v43 = vld [vmem:[#allocation2 + $0x169] sm:$0xff]  ;;  %v12408_v0 = vld [vmem:[#allocation2 + $0x52] sm:$0xff] }
 0xad9   : > { %v11884_v45 = vld [vmem:[#allocation2 + $0x168] sm:$0xff]  ;;  %v12421_v2 = vld [vmem:[#allocation2 + $0xf2] sm:$0xff] }
 0xada   : > { %v11937_v18 = vld [vmem:[#allocation2 + $0x171] sm:$0xff]  ;;  %v12409_v32 = vld [vmem:[#allocation2 + $0x62] sm:$0xff] }
 0xadb   : > { %v22165_v46 = vpack.c.bf16 %v11937_v18, %v11936_v43  ;;  %v22222_v43 = vpack.c.bf16 %v11879_v48, %v11878_v35  ;;  %v11881_v18 = vld [vmem:[#allocation2 + $0x140] sm:$0xff]  ;;  %v11885_v31 = vld [vmem:[#allocation2 + $0x170] sm:$0xff]  ;;  %v22256_v48 = vpack.c.bf16 %v12408_v0, %v12407_v5  ;;  %v22258_v41 = vpack.c.bf16 %v12410_v50, %v12409_v32 }
 0xadc   : > { %v22228_v33 = vpack.c.bf16 %v11881_v18, %v11880_v15  ;;  %v12412_v35 = vld [vmem:[#allocation2 + $0x82] sm:$0xff]  ;;  %v12413_v18 = vld [vmem:[#allocation2 + $0x92] sm:$0xff]  ;;  %v12423_v32 = vld [vmem:[#allocation2 + $0x10a] sm:$0xff] }
 0xadd   : > { %17999 = vmatmul.mubr.msk.bf16.gmra.mrb[92].mxu0 %vm3157_vm6, %v22165_v46  ;;  %v12420_v11 = vld [vmem:[#allocation2 + $0xe2] sm:$0xff]  ;;  %v12424_v50 = vld [vmem:[#allocation2 + $0x112] sm:$0xff] }
 0xade   : > { %18006 = vmatprep.mubr.msk.bf16.mxu0 %vm3157_vm6, %v11886_v9  ;;  %v11883_v9 = vld [vmem:[#allocation2 + $0x158] sm:$0xff] }
 0xadf   : > { %v22230_v6 = vpack.c.bf16 %v11883_v9, %v11882_v39  ;;  %v12414_v9 = vld [vmem:[#allocation2 + $0x9a] sm:$0xff] }
 0xae0   : > { %v22266_v39 = vpack.c.bf16 %v12414_v9, %v12413_v18  ;;  %v22288_v18 = vpack.c.bf16 %v12424_v50, %v12423_v32  ;;  %v19681_v50 = vld [vmem:[%s22672_s9 + $0x48] sm:$0xff]  }
 0xae5   : > { %18007 = vmatmul.mubr.msk.bf16.vlgmr.msra.gmra.mrb[64].mxu0 %vm3157_vm6, %v22170_v34 }
 0xae6   : > { %18039 = vmatpush3.bf16.msra.mxu0 %v22070_v52  ;;  %18010 = vmatprep.mubr.msk.bf16.mxu0 %vm3157_vm6, %v22175_v42  ;;  %v11865_v52 = vld [vmem:[#allocation2 + $0x80] sm:$0xff] }
 0xae7   : > { %18040 = vmatprep.subr.bf16.mxu0 %v19677_v27  ;;  %v22196_v47 = vpack.c.bf16 %v11865_v52, %v11864_v57  ;;  %v22236_v52 = vpack.c.bf16 %v11885_v31, %v11884_v45  ;;  %v12404_v57 = vld [vmem:[#allocation2 + $0x22] sm:$0xff]  ;;  %v12418_v45 = vld [vmem:[#allocation2 + $0xca] sm:$0xff] }
 0xae8   : > { %v22241_v49 = vpack.c.bf16 %v12404_v57, %v12403_v55  ;;  %v12417_v31 = vld [vmem:[#allocation2 + $0xc2] sm:$0xff]  ;;  %v12419_v57 = vld [vmem:[#allocation2 + $0xda] sm:$0xff] }
 0xae9   : > { %v22274_v55 = vpack.c.bf16 %v12418_v45, %v12417_v31  ;;  %v22280_v5 = vpack.c.bf16 %v12420_v11, %v12419_v57  ;;  %v12429_v31 = vld [vmem:[#allocation2 + $0x152] sm:$0xff]  ;;  %v12430_v45 = vld [vmem:[#allocation2 + $0x15a] sm:$0xff] }
 0xaea   : > { %18041 = vmatpush3.bf16.msra.mxu0 %v19677_v27  ;;  %v12401_v27 = vld [vmem:[#allocation2 + $0x2] sm:$0xff]  ;;  %v22298_v11 = vpack.c.bf16 %v12430_v45, %v12429_v31  ;;  %v13939_v45 = vld [vmem:[#allocation2 + $0x91] sm:$0xff] }
 0xaeb   : > { %18074 = vmatprep.subr.bf16.mxu0 %v22185_v54  ;;  %v12433_v61 = vpack.c.bf16 %v12402_v60, %v12401_v27  ;;  %v12415_v27 = vld [vmem:[#allocation2 + $0xaa] sm:$0xff]  ;;  %v12416_v60 = vld [vmem:[#allocation2 + $0xb2] sm:$0xff] }
 0xaed   : > { %18011 = vmatmul.mubr.msk.bf16.gmra.mrb[68].mxu0 %vm3157_vm6, %v22187_v1 }
 0xaee   : > { %18014 = vmatprep.mubr.msk.bf16.mxu0 %vm3157_vm6, %v22190_v29 }
 0xaf5   : > { %18015 = vmatmul.mubr.msk.bf16.gmra.mrb[72].mxu0 %vm3157_vm6, %v22196_v47 }
 0xaf6   : > { %18018 = vmatprep.mubr.msk.bf16.mxu0 %vm3157_vm6, %v22198_v38 }
 0xafd   : > { %18019 = vmatmul.mubr.msk.bf16.gmra.mrb[76].mxu0 %vm3157_vm6, %v22204_v51 }
 0xafe   : > { %18022 = vmatprep.mubr.msk.bf16.mxu0 %vm3157_vm6, %v22206_v24 }
 0xb05   : > { %18023 = vmatmul.mubr.msk.bf16.gmra.mrb[80].mxu0 %vm3157_vm6, %v22212_v30 }
 0xb06   : > { %18026 = vmatprep.mubr.msk.bf16.mxu0 %vm3157_vm6, %v22214_v62 }
 0xb0d   : > { %18027 = vmatmul.mubr.msk.bf16.gmra.mrb[84].mxu0 %vm3157_vm6, %v22220_v63 }
 0xb0e   : > { %18030 = vmatprep.mubr.msk.bf16.mxu0 %vm3157_vm6, %v22222_v43 }
 0xb15   : > { %18031 = vmatmul.mubr.msk.bf16.gmra.mrb[88].mxu0 %vm3157_vm6, %v22228_v33 }
 0xb16   : > { %18034 = vmatprep.mubr.msk.bf16.mxu0 %vm3157_vm6, %v22230_v6 }
 0xb1d   : > { %18035 = vmatmul.mubr.msk.bf16.gmra.mrb[92].mxu0 %vm3157_vm6, %v22236_v52 }
 0xb1e   : > { %18042 = vmatprep.mubr.msk.bf16.mxu0 %vm3157_vm6, %v12433_v61  ;;  %v22272_v61 = vpack.c.bf16 %v12416_v60, %v12415_v27  ;;  %v12427_v27 = vld [vmem:[#allocation2 + $0x13a] sm:$0xff]  ;;  %v12428_v60 = vld [vmem:[#allocation2 + $0x142] sm:$0xff] }
 0xb1f   : > { %v22296_v57 = vpack.c.bf16 %v12428_v60, %v12427_v27  ;;  %v19683_v27 = vld [vmem:[%s22672_s9 + $0x58] sm:$0xff]   ;;  %v19684_v60 = vld [vmem:[%s22672_s9 + $0x60] sm:$0xff]  }
 0xb25   : > { %18043 = vmatmul.mubr.msk.bf16.vlgmr.msra.gmra.mrb[64].mxu0 %vm3157_vm6, %v22241_v49 }
 0xb26   : > { %18075 = vmatpush3.bf16.msra.mxu0 %v22185_v54  ;;  %18046 = vmatprep.mubr.msk.bf16.mxu0 %vm3157_vm6, %v22246_v37  ;;  %v12411_v54 = vld [vmem:[#allocation2 + $0x7a] sm:$0xff] }
 0xb27   : > { %18076 = vmatprep.subr.bf16.mxu0 %v19679_v58  ;;  %v22264_v15 = vpack.c.bf16 %v12412_v35, %v12411_v54  ;;  %v12425_v54 = vld [vmem:[#allocation2 + $0x122] sm:$0xff]  ;;  %v12426_v35 = vld [vmem:[#allocation2 + $0x12a] sm:$0xff] }
 0xb28   : > { %v22290_v9 = vpack.c.bf16 %v12426_v35, %v12425_v54  ;;  %v19682_v54 = vld [vmem:[%s22672_s9 + $0x50] sm:$0xff]  }
 0xb2a   : > { %18077 = vmatpush3.bf16.msra.mxu0 %v19679_v58  ;;  %v12422_v58 = vld [vmem:[#allocation2 + $0xfa] sm:$0xff] }
 0xb2b   : > { %18110 = vmatprep.subr.bf16.mxu0 %v19680_v44  ;;  %v22282_v0 = vpack.c.bf16 %v12422_v58, %v12421_v2  ;;  %v12431_v2 = vld [vmem:[#allocation2 + $0x16a] sm:$0xff]  ;;  %v12432_v58 = vld [vmem:[#allocation2 + $0x172] sm:$0xff] }
 0xb2c   : > { %v22304_v32 = vpack.c.bf16 %v12432_v58, %v12431_v2  ;;  %v13942_v58 = vld [vmem:[#allocation2 + $0xb1] sm:$0xff] }
 0xb2d   : > { %18047 = vmatmul.mubr.msk.bf16.gmra.mrb[68].mxu0 %vm3157_vm6, %v22256_v48 }
 0xb2e   : > { %18050 = vmatprep.mubr.msk.bf16.mxu0 %vm3157_vm6, %v22258_v41 }
 0xb35   : > { %18051 = vmatmul.mubr.msk.bf16.gmra.mrb[72].mxu0 %vm3157_vm6, %v22264_v15 }
 0xb36   : > { %18054 = vmatprep.mubr.msk.bf16.mxu0 %vm3157_vm6, %v22266_v39 }
 0xb3d   : > { %18055 = vmatmul.mubr.msk.bf16.gmra.mrb[76].mxu0 %vm3157_vm6, %v22272_v61 }
 0xb3e   : > { %18058 = vmatprep.mubr.msk.bf16.mxu0 %vm3157_vm6, %v22274_v55 }
 0xb45   : > { %18059 = vmatmul.mubr.msk.bf16.gmra.mrb[80].mxu0 %vm3157_vm6, %v22280_v5 }
 0xb46   : > { %18062 = vmatprep.mubr.msk.bf16.mxu0 %vm3157_vm6, %v22282_v0 }
 0xb4d   : > { %18063 = vmatmul.mubr.msk.bf16.gmra.mrb[84].mxu0 %vm3157_vm6, %v22288_v18 }
 0xb4e   : > { %18066 = vmatprep.mubr.msk.bf16.mxu0 %vm3157_vm6, %v22290_v9 }
 0xb55   : > { %18067 = vmatmul.mubr.msk.bf16.gmra.mrb[88].mxu0 %vm3157_vm6, %v22296_v57 }
 0xb56   : > { %18070 = vmatprep.mubr.msk.bf16.mxu0 %vm3157_vm6, %v22298_v11 }
 0xb5d   : > { %18071 = vmatmul.mubr.msk.bf16.gmra.mrb[92].mxu0 %vm3157_vm6, %v22304_v32 }
 0xb5e   : > { %18078 = vmatprep.mubr.msk.bf16.mxu0 %vm3157_vm6, %v22170_v34  ;;  %v12738_v34 = vld [vmem:[#allocation2 + $0x188] sm:$0xff] }
 0xb65   : > { %18079 = vmatmul.mubr.msk.bf16.vlgmr.msra.gmra.mrb[64].mxu0 %vm3157_vm6, %v22175_v42 }
 0xb66   : > { %18111 = vmatpush3.bf16.msra.mxu0 %v19680_v44  ;;  %18082 = vmatprep.mubr.msk.bf16.mxu0 %vm3157_vm6, %v22187_v1  ;;  %v12737_v44 = vld [vmem:[#allocation2 + $0x180] sm:$0xff] }
 0xb67   : > { %18112 = vmatprep.subr.bf16.mxu0 %v19681_v50  ;;  %v22344_v35 = vpack.c.bf16 %v12738_v34, %v12737_v44  ;;  %v13943_v44 = vld [vmem:[#allocation2 + $0xc1] sm:$0xff] }
 0xb6a   : > { %18113 = vmatpush3.bf16.msra.mxu0 %v19681_v50  ;;  %v13944_v50 = vld [vmem:[#allocation2 + $0xc9] sm:$0xff] }
 0xb6b   : > { %18146 = vmatprep.subr.bf16.mxu0 %v19682_v54 }
 0xb6d   : > { %18083 = vmatmul.mubr.msk.bf16.gmra.mrb[68].mxu0 %vm3157_vm6, %v22190_v29 }
 0xb6e   : > { %18086 = vmatprep.mubr.msk.bf16.mxu0 %vm3157_vm6, %v22196_v47 }
 0xb75   : > { %18087 = vmatmul.mubr.msk.bf16.gmra.mrb[72].mxu0 %vm3157_vm6, %v22198_v38 }
 0xb76   : > { %18090 = vmatprep.mubr.msk.bf16.mxu0 %vm3157_vm6, %v22204_v51 }
 0xb7d   : > { %18091 = vmatmul.mubr.msk.bf16.gmra.mrb[76].mxu0 %vm3157_vm6, %v22206_v24 }
 0xb7e   : > { %18094 = vmatprep.mubr.msk.bf16.mxu0 %vm3157_vm6, %v22212_v30 }
 0xb85   : > { %18095 = vmatmul.mubr.msk.bf16.gmra.mrb[80].mxu0 %vm3157_vm6, %v22214_v62 }
 0xb86   : > { %18098 = vmatprep.mubr.msk.bf16.mxu0 %vm3157_vm6, %v22220_v63 }
 0xb8d   : > { %18099 = vmatmul.mubr.msk.bf16.gmra.mrb[84].mxu0 %vm3157_vm6, %v22222_v43 }
 0xb8e   : > { %18102 = vmatprep.mubr.msk.bf16.mxu0 %vm3157_vm6, %v22228_v33 }
 0xb95   : > { %18103 = vmatmul.mubr.msk.bf16.gmra.mrb[88].mxu0 %vm3157_vm6, %v22230_v6 }
 0xb96   : > { %18106 = vmatprep.mubr.msk.bf16.mxu0 %vm3157_vm6, %v22236_v52 }
 0xb9d   : > { %18107 = vmatmul.mubr.msk.bf16.gmra.mrb[92].mxu0 %vm3157_vm6, %v22344_v35 }
 0xb9e   : > { %18114 = vmatprep.mubr.msk.bf16.mxu0 %vm3157_vm6, %v22052_v28  ;;  %v13044_v28 = vld [vmem:[#allocation2 + $0x189] sm:$0xff] }
 0xba5   : > { %18115 = vmatmul.mubr.msk.bf16.vlgmr.msra.gmra.mrb[64].mxu0 %vm3157_vm6, %v22058_v10  ;;  %v13043_v10 = vld [vmem:[#allocation2 + $0x181] sm:$0xff] }
 0xba6   : > { %18147 = vmatpush3.bf16.msra.mxu0 %v19682_v54  ;;  %18118 = vmatprep.mubr.msk.bf16.mxu0 %vm3157_vm6, %v22076_v16  ;;  %v22384_v16 = vpack.c.bf16 %v13044_v28, %v13043_v10  ;;  %v13941_v54 = vld [vmem:[#allocation2 + $0xa9] sm:$0xff]  ;;  %v13945_v28 = vld [vmem:[#allocation2 + $0xd9] sm:$0xff] }
 0xba7   : > { %18148 = vmatprep.subr.bf16.mxu0 %v19683_v27  ;;  %v13968_v34 = vpack.c.bf16 %v13942_v58, %v13941_v54 }
 0xbaa   : > { %18149 = vmatpush3.bf16.msra.mxu0 %v19683_v27  ;;  %v13946_v27 = vld [vmem:[#allocation2 + $0xe1] sm:$0xff] }
 0xbab   : > { %18182 = vmatprep.subr.bf16.mxu0 %v19684_v60  ;;  %v13970_v10 = vpack.c.bf16 %v13946_v27, %v13945_v28  ;;  %v22722_v27 = vld [vmem:[#allocation5_spill] sm:$0xff]  ;;  %v22723_v28 = vld [vmem:[#allocation4_spill] sm:$0xff] }
 0xbad   : > { %18119 = vmatmul.mubr.msk.bf16.gmra.mrb[68].mxu0 %vm3157_vm6, %v22080_v40  ;;  %v19685_v40 = vld [vmem:[%s22672_s9 + $0x68] sm:$0xff]  }
 0xbae   : > { %18122 = vmatprep.mubr.msk.bf16.mxu0 %vm3157_vm6, %v22093_v56  ;;  %v19686_v56 = vld [vmem:[%s22672_s9 + $0x70] sm:$0xff]  }
 0xbb5   : > { %18123 = vmatmul.mubr.msk.bf16.gmra.mrb[72].mxu0 %vm3157_vm6, %v22096_v36  ;;  %v13349_v36 = vld [vmem:[#allocation2 + $0x182] sm:$0xff] }
 0xbb6   : > { %18126 = vmatprep.mubr.msk.bf16.mxu0 %vm3157_vm6, %v22109_v23  ;;  %v13350_v23 = vld [vmem:[#allocation2 + $0x18a] sm:$0xff] }
 0xbbd   : > { %18127 = vmatmul.mubr.msk.bf16.gmra.mrb[76].mxu0 %vm3157_vm6, %v22112_v3  ;;  %v22424_v3 = vpack.c.bf16 %v13350_v23, %v13349_v36  ;;  %v13950_v36 = vld [vmem:[#allocation2 + $0x111] sm:$0xff]  ;;  %v13949_v23 = vld [vmem:[#allocation2 + $0x109] sm:$0xff] }
 0xbbe   : > { %18130 = vmatprep.mubr.msk.bf16.mxu0 %vm3157_vm6, %v22125_v7  ;;  %v19687_v7 = vld [vmem:[%s22672_s9 + $0x78] sm:$0xff]  }
 0xbc5   : > { %18131 = vmatmul.mubr.msk.bf16.gmra.mrb[80].mxu0 %vm3157_vm6, %v22128_v4  ;;  %v19688_v4 = vld [vmem:[%s22672_s9 + $0x80] sm:$0xff]  }
 0xbc6   : > { %18134 = vmatprep.mubr.msk.bf16.mxu0 %vm3157_vm6, %v22141_v59  ;;  %v13655_v59 = vld [vmem:[#allocation2 + $0x198] sm:$0xff] }
 0xbcd   : > { %18135 = vmatmul.mubr.msk.bf16.gmra.mrb[84].mxu0 %vm3157_vm6, %v22144_v8 }
 0xbce   : > { %18138 = vmatprep.mubr.msk.bf16.mxu0 %vm3157_vm6, %v22157_v53 }
 0xbd5   : > { %18139 = vmatmul.mubr.msk.bf16.gmra.mrb[88].mxu0 %vm3157_vm6, %v22159_v26 }
 0xbd6   : > { %18142 = vmatprep.mubr.msk.bf16.mxu0 %vm3157_vm6, %v22165_v46 }
 0xbdd   : > { %18143 = vmatmul.mubr.msk.bf16.gmra.mrb[92].mxu0 %vm3157_vm6, %v22384_v16 }
 0xbde   : > { %18150 = vmatprep.mubr.msk.bf16.mxu0 %vm3157_vm6, %v22241_v49  ;;  %v13937_v49 = vld [vmem:[#allocation2 + $0x79] sm:$0xff] }
 0xbe5   : > { %18151 = vmatmul.mubr.msk.bf16.vlgmr.msra.gmra.mrb[64].mxu0 %vm3157_vm6, %v22246_v37 }
 0xbe6   : > { %18183 = vmatpush3.bf16.msra.mxu0 %v19684_v60  ;;  %18154 = vmatprep.mubr.msk.bf16.mxu0 %vm3157_vm6, %v22256_v48  ;;  %v13948_v60 = vld [vmem:[#allocation2 + $0xf9] sm:$0xff] }
 0xbe7   : > { %18184 = vmatprep.subr.bf16.mxu0 %v19685_v40 }
 0xbea   : > { %18185 = vmatpush3.bf16.msra.mxu0 %v19685_v40  ;;  %v13947_v40 = vld [vmem:[#allocation2 + $0xf1] sm:$0xff] }
 0xbeb   : > { %18218 = vmatprep.subr.bf16.mxu0 %v19686_v56 }
 0xbed   : > { %18155 = vmatmul.mubr.msk.bf16.gmra.mrb[68].mxu0 %vm3157_vm6, %v22258_v41 }
 0xbee   : > { %18158 = vmatprep.mubr.msk.bf16.mxu0 %vm3157_vm6, %v22264_v15 }
 0xbf5   : > { %18159 = vmatmul.mubr.msk.bf16.gmra.mrb[72].mxu0 %vm3157_vm6, %v22266_v39 }
 0xbf6   : > { %18162 = vmatprep.mubr.msk.bf16.mxu0 %vm3157_vm6, %v22272_v61 }
 0xbfd   : > { %18163 = vmatmul.mubr.msk.bf16.gmra.mrb[76].mxu0 %vm3157_vm6, %v22274_v55 }
 0xbfe   : > { %18166 = vmatprep.mubr.msk.bf16.mxu0 %vm3157_vm6, %v22280_v5 }
 0xc05   : > { %18167 = vmatmul.mubr.msk.bf16.gmra.mrb[80].mxu0 %vm3157_vm6, %v22282_v0 }
 0xc06   : > { %18170 = vmatprep.mubr.msk.bf16.mxu0 %vm3157_vm6, %v22288_v18 }
 0xc0d   : > { %18171 = vmatmul.mubr.msk.bf16.gmra.mrb[84].mxu0 %vm3157_vm6, %v22290_v9 }
 0xc0e   : > { %18174 = vmatprep.mubr.msk.bf16.mxu0 %vm3157_vm6, %v22296_v57 }
 0xc15   : > { %18175 = vmatmul.mubr.msk.bf16.gmra.mrb[88].mxu0 %vm3157_vm6, %v22298_v11 }
 0xc16   : > { %18178 = vmatprep.mubr.msk.bf16.mxu0 %vm3157_vm6, %v22304_v32 }
 0xc1d   : > { %18179 = vmatmul.mubr.msk.bf16.gmra.mrb[92].mxu0 %vm3157_vm6, %v22424_v3 }
 0xc1e   : > { %18186 = vmatprep.mubr.msk.bf16.mxu0 %vm3157_vm6, %v22175_v42  ;;  %v13656_v42 = vld [vmem:[#allocation2 + $0x1a0] sm:$0xff] }
 0xc25   : > { %18187 = vmatmul.mubr.msk.bf16.vlgmr.msra.gmra.mrb[64].mxu0 %vm3157_vm6, %v22187_v1  ;;  %v13672_v1 = vpack.c.bf16 %v13656_v42, %v13655_v59  ;;  %v13962_v59 = vld [vmem:[#allocation2 + $0x1a1] sm:$0xff] }
 0xc26   : > { %18219 = vmatpush3.bf16.msra.mxu0 %v19686_v56  ;;  %18190 = vmatprep.mubr.msk.bf16.mxu0 %vm3157_vm6, %v22190_v29  ;;  %v13932_v29 = vld [vmem:[#allocation2 + $0x39] sm:$0xff]  ;;  %v13971_v56 = vpack.c.bf16 %v13948_v60, %v13947_v40 }
 0xc27   : > { %18220 = vmatprep.subr.bf16.mxu0 %v19687_v7 }
 0xc2a   : > { %18221 = vmatpush3.bf16.msra.mxu0 %v19687_v7  ;;  %v13972_v7 = vpack.c.bf16 %v13950_v36, %v13949_v23 }
 0xc2b   : > { %18254 = vmatprep.subr.bf16.mxu0 %v19688_v4 }
 0xc2d   : > { %18191 = vmatmul.mubr.msk.bf16.gmra.mrb[68].mxu0 %vm3157_vm6, %v22196_v47  ;;  %v13931_v47 = vld [vmem:[#allocation2 + $0x31] sm:$0xff] }
 0xc2e   : > { %18194 = vmatprep.mubr.msk.bf16.mxu0 %vm3157_vm6, %v22198_v38  ;;  %v13963_v38 = vpack.c.bf16 %v13932_v29, %v13931_v47 }
 0xc35   : > { %18195 = vmatmul.mubr.msk.bf16.gmra.mrb[72].mxu0 %vm3157_vm6, %v22204_v51  ;;  %v13934_v51 = vld [vmem:[#allocation2 + $0x51] sm:$0xff] }
 0xc36   : > { %18198 = vmatprep.mubr.msk.bf16.mxu0 %vm3157_vm6, %v22206_v24  ;;  %v13936_v24 = vld [vmem:[#allocation2 + $0x69] sm:$0xff] }
 0xc3d   : > { %18199 = vmatmul.mubr.msk.bf16.gmra.mrb[76].mxu0 %vm3157_vm6, %v22212_v30  ;;  %v13933_v30 = vld [vmem:[#allocation2 + $0x49] sm:$0xff] }
 0xc3e   : > { %18202 = vmatprep.mubr.msk.bf16.mxu0 %vm3157_vm6, %v22214_v62  ;;  %v13964_v62 = vpack.c.bf16 %v13934_v51, %v13933_v30 }
 0xc45   : > { %18203 = vmatmul.mubr.msk.bf16.gmra.mrb[80].mxu0 %vm3157_vm6, %v22220_v63  ;;  %v13935_v63 = vld [vmem:[#allocation2 + $0x61] sm:$0xff] }
 0xc46   : > { %18206 = vmatprep.mubr.msk.bf16.mxu0 %vm3157_vm6, %v22222_v43  ;;  %v19689_v43 = vld [vmem:[%s22672_s9 + $0x88] sm:$0xff]  }
 0xc4d   : > { %18207 = vmatmul.mubr.msk.bf16.gmra.mrb[84].mxu0 %vm3157_vm6, %v22228_v33  ;;  %v13965_v33 = vpack.c.bf16 %v13936_v24, %v13935_v63 }
 0xc4e   : > { %18210 = vmatprep.mubr.msk.bf16.mxu0 %vm3157_vm6, %v22230_v6  ;;  %v13938_v6 = vld [vmem:[#allocation2 + $0x81] sm:$0xff] }
 0xc4f   : > { %v13966_v31 = vpack.c.bf16 %v13938_v6, %v13937_v49 }
 0xc55   : > { %18211 = vmatmul.mubr.msk.bf16.gmra.mrb[88].mxu0 %vm3157_vm6, %v22236_v52  ;;  %v13940_v52 = vld [vmem:[#allocation2 + $0x99] sm:$0xff] }
 0xc56   : > { %18214 = vmatprep.mubr.msk.bf16.mxu0 %vm3157_vm6, %v22344_v35  ;;  %v13967_v2 = vpack.c.bf16 %v13940_v52, %v13939_v45  ;;  %v13969_v35 = vpack.c.bf16 %v13944_v50, %v13943_v44 }
 0xc5d   : > { %18215 = vmatmul.mubr.msk.bf16.gmra.mrb[92].mxu0 %vm3157_vm6, %v13672_v1 }
 0xc5e   : > { %18222 = vmatprep.mubr.msk.bf16.mxu0 %vm3157_vm6, %v13963_v38 }
 0xc65   : > { %18223 = vmatmul.mubr.msk.bf16.vlgmr.msra.gmra.mrb[64].mxu0 %vm3157_vm6, %v13964_v62 }
 0xc66   : > { %18255 = vmatpush3.bf16.msra.mxu0 %v19688_v4  ;;  %18226 = vmatprep.mubr.msk.bf16.mxu0 %vm3157_vm6, %v13965_v33  ;;  %v13961_v4 = vld [vmem:[#allocation2 + $0x199] sm:$0xff] }
 0xc67   : > { %18256 = vmatprep.subr.bf16.mxu0 %v19689_v43  ;;  %v13978_v42 = vpack.c.bf16 %v13962_v59, %v13961_v4 }
 0xc6a   : > { %18257 = vmatpush3.bf16.msra.mxu0 %v19689_v43 }
 0xc6d   : > { %18227 = vmatmul.mubr.msk.bf16.gmra.mrb[68].mxu0 %vm3157_vm6, %v13966_v31 }
 0xc6e   : > { %18230 = vmatprep.mubr.msk.bf16.mxu0 %vm3157_vm6, %v13967_v2 }
 0xc75   : > { %18231 = vmatmul.mubr.msk.bf16.gmra.mrb[72].mxu0 %vm3157_vm6, %v13968_v34  ;;  %v22721_v34 = vld [vmem:[#allocation3_spill] sm:$0xff] }
 0xc76   : > { %18234 = vmatprep.mubr.msk.bf16.mxu0 %vm3157_vm6, %v13969_v35 }
 0xc7d   : > { %18235 = vmatmul.mubr.msk.bf16.gmra.mrb[76].mxu0 %vm3157_vm6, %v13970_v10 }
 0xc7e   : > { %18238 = vmatprep.mubr.msk.bf16.mxu0 %vm3157_vm6, %v13971_v56 }
 0xc85   : > { %18239 = vmatmul.mubr.msk.bf16.gmra.mrb[80].mxu0 %vm3157_vm6, %v13972_v7 }
 0xc86   : > { %18242 = vmatprep.mubr.msk.bf16.mxu0 %vm3157_vm6, %v22144_v8  ;;  %v14267_v8 = vld [vmem:[#allocation2 + $0x19a] sm:$0xff] }
 0xc8d   : > { %18243 = vmatmul.mubr.msk.bf16.gmra.mrb[84].mxu0 %vm3157_vm6, %v22157_v53  ;;  %v14268_v53 = vld [vmem:[#allocation2 + $0x1a2] sm:$0xff] }
 0xc8e   : > { %18246 = vmatprep.mubr.msk.bf16.mxu0 %vm3157_vm6, %v22159_v26  ;;  %v14284_v26 = vpack.c.bf16 %v14268_v53, %v14267_v8  ;;  %v22724_v53 = vld [vmem:[#allocation8_spill] sm:$0xff] }
 0xc95   : > { %18247 = vmatmul.mubr.msk.bf16.gmra.mrb[88].mxu0 %vm3157_vm6, %v22165_v46  ;;  %v22523_v46 = vld [vmem:[%s22673_s10] ss:$0 sm:$0xff] }
 0xc96   : > { %18250 = vmatprep.mubr.msk.bf16.mxu0 %vm3157_vm6, %v22384_v16 }
 0xc9d   : > { %18251 = vmatmul.mubr.msk.bf16.gmra.mrb[92].mxu0 %vm3157_vm6, %v13978_v42 }
 0xc9e   : > { %18258 = vmatprep.mubr.msk.bf16.mxu0 %vm3157_vm6, %v22246_v37 }
 0xca5   : > { %18259 = vmatmul.mubr.msk.bf16.vlgmr.msra.gmra.mrb[64].mxu0 %vm3157_vm6, %v22256_v48 }
 0xca6   : > { %18262 = vmatprep.mubr.msk.bf16.mxu0 %vm3157_vm6, %v22258_v41 }
 0xcad   : > { %18263 = vmatmul.mubr.msk.bf16.gmra.mrb[68].mxu0 %vm3157_vm6, %v22264_v15 }
 0xcae   : > { %18266 = vmatprep.mubr.msk.bf16.mxu0 %vm3157_vm6, %v22266_v39 }
 0xcb5   : > { %18267 = vmatmul.mubr.msk.bf16.gmra.mrb[72].mxu0 %vm3157_vm6, %v22272_v61 }
 0xcb6   : > { %18270 = vmatprep.mubr.msk.bf16.mxu0 %vm3157_vm6, %v22274_v55 }
 0xcbd   : > { %18271 = vmatmul.mubr.msk.bf16.gmra.mrb[76].mxu0 %vm3157_vm6, %v22280_v5 }
 0xcbe   : > { %18274 = vmatprep.mubr.msk.bf16.mxu0 %vm3157_vm6, %v22282_v0 }
 0xcc5   : > { %18275 = vmatmul.mubr.msk.bf16.gmra.mrb[80].mxu0 %vm3157_vm6, %v22288_v18 }
 0xcc6   : > { %18278 = vmatprep.mubr.msk.bf16.mxu0 %vm3157_vm6, %v22290_v9 }
 0xccd   : > { %18279 = vmatmul.mubr.msk.bf16.gmra.mrb[84].mxu0 %vm3157_vm6, %v22296_v57 }
 0xcce   : > { %18282 = vmatprep.mubr.msk.bf16.mxu0 %vm3157_vm6, %v22298_v11 }
 0xcd5   : > { %18283 = vmatmul.mubr.msk.bf16.gmra.mrb[88].mxu0 %vm3157_vm6, %v22304_v32 }
 0xcd6   : > { %18286 = vmatprep.mubr.msk.bf16.mxu0 %vm3157_vm6, %v22424_v3 }
 0xcdd   : > { %18287 = vmatmul.mubr.msk.bf16.gmra.mrb[92].mxu0 %vm3157_vm6, %v14284_v26 }
 0xd78   : > { %v18260_v37 = vpop.f32.mrb[64].mxu0 }
 0xd79   : > { %v14552_v48 = vadd.f32 %v18260_v37, %v22523_v46  ;;  %v14384_v41 = vpop.f32.mrb[65].mxu0 }
 0xd7a   : > { %v14550_v15 = vadd.f32 %v22523_v46, %v14384_v41  ;;  %v18261_v39 = vpop.f32.mrb[66].mxu0 }
 0xd7b   : > { %v14584_v61 = vmax.f32 %v14552_v48, 0.0  ;;  %v14553_v55 = vadd.f32 %v18261_v39, %v22523_v46  ;;  %v14387_v5 = vpop.f32.mrb[67].mxu0  ;;  %v22725_v48 = vld [vmem:[#allocation6_spill] sm:$0xff]  ;;  %v22726_v39 = vld [vmem:[#allocation9_spill] sm:$0xff] }
 0xd7c   : > { %v14582_v0 = vmax.f32 %v14550_v15, 0.0  ;;  %v14551_v18 = vadd.f32 %v22523_v46, %v14387_v5 }
 0xd7d   : > { %v14616_v9 = vadd.f32 %v14584_v61, %v19853_v14  ;;  %v14585_v57 = vmax.f32 %v14553_v55, 0.0  ;;  %v22727_v55 = vld [vmem:[#allocation7_spill] sm:$0xff] }
 0xd7e   : > { %v14614_v11 = vadd.f32 %v14582_v0, %v19847_v12  ;;  %v14583_v32 = vmax.f32 %v14551_v18, 0.0 }
 0xd7f   : > { %14648 = vst.msk [vmem:[%s22533_s29 + $0x10] sm:$0xff] %vm467_vm5, %v14616_v9  ;;  %v14617_v16 = vadd.f32 %v14585_v57, %v19860_v17 }
 0xd80   : > { %14646 = vst.msk [vmem:[%s22533_s29] sm:$0xff] %vm467_vm5, %v14614_v11  ;;  %v14615_v3 = vadd.f32 %v14583_v32, %v19850_v13  ;;  %v18264_v1 = vpop.f32.mrb[68].mxu0 }
 0xd81   : > { %14649 = vst.msk [vmem:[%s22533_s29 + $0x18] sm:$0xff] %vm467_vm5, %v14617_v16  ;;  %v14556_v29 = vadd.f32 %v18264_v1, %v22523_v46  ;;  %v14400_v14 = vpop.f32.mrb[69].mxu0 }
 0xd82   : > { %14647 = vst.msk [vmem:[%s22533_s29 + $0x8] sm:$0xff] %vm467_vm5, %v14615_v3  ;;  %v14554_v12 = vadd.f32 %v22523_v46, %v14400_v14  ;;  %v18265_v47 = vpop.f32.mrb[70].mxu0  ;;  %v22728_v14 = vld [vmem:[#allocation12_spill] sm:$0xff] }
 0xd83   : > { %v14588_v38 = vmax.f32 %v14556_v29, 0.0  ;;  %v14557_v17 = vadd.f32 %v18265_v47, %v22523_v46  ;;  %v14403_v51 = vpop.f32.mrb[71].mxu0 }
 0xd84   : > { %v14586_v13 = vmax.f32 %v14554_v12, 0.0  ;;  %v14555_v24 = vadd.f32 %v22523_v46, %v14403_v51 }
 0xd85   : > { %v14620_v30 = vadd.f32 %v14588_v38, %v19873_v21  ;;  %v14589_v62 = vmax.f32 %v14557_v17, 0.0  ;;  %v22729_v38 = vld [vmem:[#allocation10_spill] sm:$0xff] }
 0xd86   : > { %v14618_v63 = vadd.f32 %v14586_v13, %v19867_v19  ;;  %v14587_v43 = vmax.f32 %v14555_v24, 0.0  ;;  %v22730_v13 = vld [vmem:[#allocation13_spill] sm:$0xff] }
 0xd87   : > { %14652 = vst.msk [vmem:[%s22533_s29 + $0x30] sm:$0xff] %vm467_vm5, %v14620_v30  ;;  %v14621_v33 = vadd.f32 %v14589_v62, %v19880_v22  ;;  %v22731_v30 = vld [vmem:[#allocation11_spill] sm:$0xff] }
 0xd88   : > { %14650 = vst.msk [vmem:[%s22533_s29 + $0x20] sm:$0xff] %vm467_vm5, %v14618_v63  ;;  %v14619_v6 = vadd.f32 %v14587_v43, %v19870_v20  ;;  %v18268_v52 = vpop.f32.mrb[72].mxu0 }
 0xd89   : > { %14653 = vst.msk [vmem:[%s22533_s29 + $0x38] sm:$0xff] %vm467_vm5, %v14621_v33  ;;  %v14560_v49 = vadd.f32 %v18268_v52, %v22523_v46  ;;  %v14416_v21 = vpop.f32.mrb[73].mxu0 }
 0xd8a   : > { %14651 = vst.msk [vmem:[%s22533_s29 + $0x28] sm:$0xff] %vm467_vm5, %v14619_v6  ;;  %v14558_v19 = vadd.f32 %v22523_v46, %v14416_v21  ;;  %v18269_v31 = vpop.f32.mrb[74].mxu0 }
 0xd8b   : > { %v14592_v45 = vmax.f32 %v14560_v49, 0.0  ;;  %v14561_v22 = vadd.f32 %v18269_v31, %v22523_v46  ;;  %v14419_v2 = vpop.f32.mrb[75].mxu0 }
 0xd8c   : > { %v14590_v20 = vmax.f32 %v14558_v19, 0.0  ;;  %v14559_v58 = vadd.f32 %v22523_v46, %v14419_v2 }
 0xd8d   : > { %v14624_v50 = vadd.f32 %v14592_v45, %v19898_v25  ;;  %v14593_v54 = vmax.f32 %v14561_v22, 0.0  ;;  %v22732_v22 = vld [vmem:[#allocation16_spill] sm:$0xff] }
 0xd8e   : > { %v14622_v44 = vadd.f32 %v14590_v20, %v22721_v34  ;;  %v14591_v35 = vmax.f32 %v14559_v58, 0.0  ;;  %v22733_v58 = vld [vmem:[#allocation14_spill] sm:$0xff]  ;;  %v22734_v34 = vld [vmem:[#allocation17_spill] sm:$0xff] }
 0xd8f   : > { %14656 = vst.msk [vmem:[%s22533_s29 + $0x50] sm:$0xff] %vm467_vm5, %v14624_v50  ;;  %v14625_v60 = vadd.f32 %v14593_v54, %v22722_v27 }
 0xd90   : > { %14654 = vst.msk [vmem:[%s22533_s29 + $0x40] sm:$0xff] %vm467_vm5, %v14622_v44  ;;  %v14623_v10 = vadd.f32 %v14591_v35, %v22723_v28  ;;  %v18272_v40 = vpop.f32.mrb[76].mxu0  ;;  %v22735_v35 = vld [vmem:[#allocation15_spill] sm:$0xff] }
 0xd91   : > { %14657 = vst.msk [vmem:[%s22533_s29 + $0x58] sm:$0xff] %vm467_vm5, %v14625_v60  ;;  %v14564_v56 = vadd.f32 %v18272_v40, %v22523_v46  ;;  %v14432_v25 = vpop.f32.mrb[77].mxu0 }
 0xd92   : > { %14655 = vst.msk [vmem:[%s22533_s29 + $0x48] sm:$0xff] %vm467_vm5, %v14623_v10  ;;  %v14562_v36 = vadd.f32 %v22523_v46, %v14432_v25  ;;  %v18273_v23 = vpop.f32.mrb[78].mxu0 }
 0xd93   : > { %v14596_v7 = vmax.f32 %v14564_v56, 0.0  ;;  %v14565_v4 = vadd.f32 %v18273_v23, %v22523_v46  ;;  %v14435_v59 = vpop.f32.mrb[79].mxu0 }
 0xd94   : > { %v14594_v42 = vmax.f32 %v14562_v36, 0.0  ;;  %v14563_v8 = vadd.f32 %v22523_v46, %v14435_v59  ;;  %v22736_v59 = vld [vmem:[#allocation20_spill] sm:$0xff] }
 0xd95   : > { %v14628_v26 = vadd.f32 %v14596_v7, %v22724_v53  ;;  %v14597_v37 = vmax.f32 %v14565_v4, 0.0  ;;  %v22737_v53 = vld [vmem:[#allocation18_spill] sm:$0xff] }
 0xd96   : > { %v14626_v41 = vadd.f32 %v14594_v42, %v22725_v48  ;;  %v14595_v15 = vmax.f32 %v14563_v8, 0.0  ;;  %v22738_v48 = vld [vmem:[#allocation21_spill] sm:$0xff] }
 0xd97   : > { %14660 = vst.msk [vmem:[%s22533_s29 + $0x70] sm:$0xff] %vm467_vm5, %v14628_v26  ;;  %v14629_v61 = vadd.f32 %v14597_v37, %v22726_v39 }
 0xd98   : > { %14658 = vst.msk [vmem:[%s22533_s29 + $0x60] sm:$0xff] %vm467_vm5, %v14626_v41  ;;  %v14627_v5 = vadd.f32 %v14595_v15, %v22727_v55  ;;  %v18276_v0 = vpop.f32.mrb[80].mxu0  ;;  %v22739_v15 = vld [vmem:[#allocation19_spill] sm:$0xff] }
 0xd99   : > { %14661 = vst.msk [vmem:[%s22533_s29 + $0x78] sm:$0xff] %vm467_vm5, %v14629_v61  ;;  %v14568_v18 = vadd.f32 %v18276_v0, %v22523_v46  ;;  %v14448_v9 = vpop.f32.mrb[81].mxu0 }
 0xd9a   : > { %14659 = vst.msk [vmem:[%s22533_s29 + $0x68] sm:$0xff] %vm467_vm5, %v14627_v5  ;;  %v14566_v57 = vadd.f32 %v22523_v46, %v14448_v9  ;;  %v18277_v11 = vpop.f32.mrb[82].mxu0 }
 0xd9b   : > { %v14600_v32 = vmax.f32 %v14568_v18, 0.0  ;;  %v14569_v16 = vadd.f32 %v18277_v11, %v22523_v46  ;;  %v14451_v3 = vpop.f32.mrb[83].mxu0 }
 0xd9c   : > { %v14598_v1 = vmax.f32 %v14566_v57, 0.0  ;;  %v14567_v29 = vadd.f32 %v22523_v46, %v14451_v3  ;;  %v22740_v3 = vld [vmem:[#allocation24_spill] sm:$0xff] }
 0xd9d   : > { %v14632_v12 = vadd.f32 %v14600_v32, %v22728_v14  ;;  %v14601_v47 = vmax.f32 %v14569_v16, 0.0  ;;  %v22741_v14 = vld [vmem:[#allocation22_spill] sm:$0xff] }
 0xd9e   : > { %v14630_v17 = vadd.f32 %v14598_v1, %v22729_v38  ;;  %v14599_v51 = vmax.f32 %v14567_v29, 0.0  ;;  %v22742_v38 = vld [vmem:[#allocation25_spill] sm:$0xff] }
 0xd9f   : > { %14664 = vst.msk [vmem:[%s22533_s29 + $0x90] sm:$0xff] %vm467_vm5, %v14632_v12  ;;  %v14633_v24 = vadd.f32 %v14601_v47, %v22730_v13 }
 0xda0   : > { %14662 = vst.msk [vmem:[%s22533_s29 + $0x80] sm:$0xff] %vm467_vm5, %v14630_v17  ;;  %v14631_v62 = vadd.f32 %v14599_v51, %v22731_v30  ;;  %v18280_v63 = vpop.f32.mrb[84].mxu0  ;;  %v22743_v51 = vld [vmem:[#allocation23_spill] sm:$0xff] }
 0xda1   : > { %14665 = vst.msk [vmem:[%s22533_s29 + $0x98] sm:$0xff] %vm467_vm5, %v14633_v24  ;;  %v14572_v43 = vadd.f32 %v18280_v63, %v22523_v46  ;;  %v14464_v33 = vpop.f32.mrb[85].mxu0 }
 0xda2   : > { %14663 = vst.msk [vmem:[%s22533_s29 + $0x88] sm:$0xff] %vm467_vm5, %v14631_v62  ;;  %v14570_v6 = vadd.f32 %v22523_v46, %v14464_v33  ;;  %v18281_v52 = vpop.f32.mrb[86].mxu0 }
 0xda3   : > { %v14604_v49 = vmax.f32 %v14572_v43, 0.0  ;;  %v14573_v21 = vadd.f32 %v18281_v52, %v22523_v46  ;;  %v14467_v19 = vpop.f32.mrb[87].mxu0 }
 0xda4   : > { %v14602_v31 = vmax.f32 %v14570_v6, 0.0  ;;  %v14571_v45 = vadd.f32 %v22523_v46, %v14467_v19 }
 0xda5   : > { %v14636_v2 = vadd.f32 %v14604_v49, %v22732_v22  ;;  %v14605_v20 = vmax.f32 %v14573_v21, 0.0 }
 0xda6   : > { %v14634_v50 = vadd.f32 %v14602_v31, %v22733_v58  ;;  %v14603_v54 = vmax.f32 %v14571_v45, 0.0 }
 0xda7   : > { %14668 = vst.msk [vmem:[%s22533_s29 + $0xb0] sm:$0xff] %vm467_vm5, %v14636_v2  ;;  %v14637_v44 = vadd.f32 %v14605_v20, %v22734_v34 }
 0xda8   : > { %14666 = vst.msk [vmem:[%s22533_s29 + $0xa0] sm:$0xff] %vm467_vm5, %v14634_v50  ;;  %v14635_v27 = vadd.f32 %v14603_v54, %v22735_v35  ;;  %v18284_v60 = vpop.f32.mrb[88].mxu0 }
 0xda9   : > { %14669 = vst.msk [vmem:[%s22533_s29 + $0xb8] sm:$0xff] %vm467_vm5, %v14637_v44  ;;  %v14576_v28 = vadd.f32 %v18284_v60, %v22523_v46  ;;  %v14480_v10 = vpop.f32.mrb[89].mxu0 }
 0xdaa   : > { %14667 = vst.msk [vmem:[%s22533_s29 + $0xa8] sm:$0xff] %vm467_vm5, %v14635_v27  ;;  %v14574_v40 = vadd.f32 %v22523_v46, %v14480_v10  ;;  %v18285_v56 = vpop.f32.mrb[90].mxu0 }
 0xdab   : > { %v14608_v25 = vmax.f32 %v14576_v28, 0.0  ;;  %v14577_v36 = vadd.f32 %v18285_v56, %v22523_v46  ;;  %v14483_v23 = vpop.f32.mrb[91].mxu0 }
 0xdac   : > { %v14606_v7 = vmax.f32 %v14574_v40, 0.0  ;;  %v14575_v4 = vadd.f32 %v22523_v46, %v14483_v23 }
 0xdad   : > { %v14640_v42 = vadd.f32 %v14608_v25, %v22736_v59  ;;  %v14609_v8 = vmax.f32 %v14577_v36, 0.0 }
 0xdae   : > { %v14638_v26 = vadd.f32 %v14606_v7, %v22737_v53  ;;  %v14607_v37 = vmax.f32 %v14575_v4, 0.0 }
 0xdaf   : > { %14672 = vst.msk [vmem:[%s22533_s29 + $0xd0] sm:$0xff] %vm467_vm5, %v14640_v42  ;;  %v14641_v41 = vadd.f32 %v14609_v8, %v22738_v48 }
 0xdb0   : > { %14670 = vst.msk [vmem:[%s22533_s29 + $0xc0] sm:$0xff] %vm467_vm5, %v14638_v26  ;;  %v14639_v39 = vadd.f32 %v14607_v37, %v22739_v15  ;;  %v18288_v61 = vpop.f32.mrb[92].mxu0 }
 0xdb1   : > { %14673 = vst.msk [vmem:[%s22533_s29 + $0xd8] sm:$0xff] %vm467_vm5, %v14641_v41  ;;  %v14580_v55 = vadd.f32 %v18288_v61, %v22523_v46  ;;  %v14496_v5 = vpop.f32.mrb[93].mxu0 }
 0xdb2   : > { %14671 = vst.msk [vmem:[%s22533_s29 + $0xc8] sm:$0xff] %vm467_vm5, %v14639_v39  ;;  %v14578_v0 = vadd.f32 %v22523_v46, %v14496_v5  ;;  %v18289_v18 = vpop.f32.mrb[94].mxu0 }
 0xdb3   : > { %v14612_v9 = vmax.f32 %v14580_v55, 0.0  ;;  %v14581_v57 = vadd.f32 %v18289_v18, %v22523_v46  ;;  %v14499_v11 = vpop.f32.mrb[95].mxu0 }
 0xdb4   : > { %v14610_v32 = vmax.f32 %v14578_v0, 0.0  ;;  %v14579_v16 = vadd.f32 %v22523_v46, %v14499_v11 }
 0xdb5   : > { %v14644_v1 = vadd.f32 %v14612_v9, %v22740_v3  ;;  %v14613_v29 = vmax.f32 %v14581_v57, 0.0 }
 0xdb6   : > { %v14642_v12 = vadd.f32 %v14610_v32, %v22741_v14  ;;  %v14611_v47 = vmax.f32 %v14579_v16, 0.0 }
 0xdb7   : > { %14676 = vst.msk [vmem:[%s22533_s29 + $0xf0] sm:$0xff] %vm467_vm5, %v14644_v1  ;;  %v14645_v17 = vadd.f32 %v14613_v29, %v22742_v38 }
 0xdb8   : > { %14674 = vst.msk [vmem:[%s22533_s29 + $0xe0] sm:$0xff] %vm467_vm5, %v14642_v12  ;;  %v14643_v13 = vadd.f32 %v14611_v47, %v22743_v51 }
 0xdb9   : > { %14677 = vst.msk [vmem:[%s22533_s29 + $0xf8] sm:$0xff] %vm467_vm5, %v14645_v17 }
 0xdba   : > { %14675 = vst.msk [vmem:[%s22533_s29 + $0xe8] sm:$0xff] %vm467_vm5, %v14643_v13 }
 0xdbb PF: > { %s21_s17 = sadd.s32 1, %s19696_s17  }
 0xdbc   : > { %p18_p4 = scmp.ge.s32.totalorder %s21_s17, 4  }
 0xdbe   :  { %20 = sbr.rel (!%p18_p4) target bundleno = 1 (0x1), region = 137 }

</bundles_post_ra>
